<compile_context>
chip_gen: v7x
topology: tpu7x:2x2x1
jax: 0.10.0
libtpu: 0.0.40
codegen_flags: <defaults>
</compile_context>

<pallas_src>
import functools

import jax
import jax.numpy as jnp
from jax.experimental import pallas as pl
from jax.experimental.pallas import tpu as pltpu


CONV_NAMES = ("conv1", "conv2", "conv3", "conv4", "conv5", "conv6", "conv7", "conv8")

# Conv application order + whether a MaxPool1d(2,2) follows, matching the PyTorch forward
# (conv6 is applied twice, conv8 five times, exactly as in the reference module).
PLAN = (
    ("conv1", False), ("conv2", True),
    ("conv3", False), ("conv4", True),
    ("conv5", False), ("conv6", False), ("conv6", True),
    ("conv7", False), ("conv8", False), ("conv8", True),
    ("conv8", False), ("conv8", False), ("conv8", False),
)

_VMEM_SPEC = pl.BlockSpec(memory_space=pltpu.MemorySpace.VMEM)


# ----------------------------------------------------------------------------- fused kernel

def _vnet_fused_kernel(*refs, B, L):
    # refs layout: [x, (w,b) x 8 convs, fc1_w, fc1_b, fc2_w, fc2_b, out_w, out_b, o_ref]
    x_ref = refs[0]
    conv_refs = {name: (refs[1 + 2 * i], refs[2 + 2 * i])
                 for i, name in enumerate(CONV_NAMES)}
    fc1_w, fc1_b, fc2_w, fc2_b, out_w, out_b = refs[17:23]
    o_ref = refs[23]

    f32 = jnp.float32
    shift_cache = {}   # traced constants reused across layers with the same (M, Lc)
    pool_cache = {}

    def shift_mats(M, Lc):
        key = (M, Lc)
        if key not in shift_cache:
            r = jax.lax.broadcasted_iota(jnp.int32, (M, M), 0)   # output row
            c = jax.lax.broadcasted_iota(jnp.int32, (M, M), 1)   # source row
            # One-row shifts over the flat (B*Lc) layout that also zero the rows at each
            # per-sequence edge: this realizes both the conv's zero padding and the batch
            # boundaries, with no unaligned sublane slices.
            s_prev = jnp.where((c == r - 1) & (r % Lc != 0), 1.0, 0.0).astype(f32)
            s_next = jnp.where((c == r + 1) & (r % Lc != Lc - 1), 1.0, 0.0).astype(f32)
            shift_cache[key] = (s_prev, s_next)
        return shift_cache[key]

    def pool_mats(M):
        if M not in pool_cache:
            Mh = M // 2
            r = jax.lax.broadcasted_iota(jnp.int32, (Mh, M), 0)
            c = jax.lax.broadcasted_iota(jnp.int32, (Mh, M), 1)
            even = jnp.where(c == 2 * r, 1.0, 0.0).astype(f32)
            odd = jnp.where(c == 2 * r + 1, 1.0, 0.0).astype(f32)
            pool_cache[M] = (even, odd)
        return pool_cache[M]

    def conv_relu(a, Lc, w_ref, b_ref):
        # a: (B*Lc, Cin)   w_ref: (3, Cin, Cout)   b_ref: (1, Cout)
        M = a.shape[0]
        y = jnp.dot(a, w_ref[1], preferred_element_type=f32) + b_ref[...]
        if Lc > 1:  # length-1 sequences only see the center tap (padding rows are zero)
            s_prev, s_next = shift_mats(M, Lc)
            a_prev = jnp.dot(s_prev, a, preferred_element_type=f32)   # row l -> a[l-1]
            a_next = jnp.dot(s_next, a, preferred_element_type=f32)   # row l -> a[l+1]
            y = y + jnp.dot(a_prev, w_ref[0], preferred_element_type=f32)
            y = y + jnp.dot(a_next, w_ref[2], preferred_element_type=f32)
        return jnp.maximum(y, 0.0)

    def maxpool2(a):
        # (B*Lc, C) -> (B*Lc//2, C); pairs never straddle batches because Lc is even here.
        even, odd = pool_mats(a.shape[0])
        return jnp.maximum(jnp.dot(even, a, preferred_element_type=f32),
                           jnp.dot(odd, a, preferred_element_type=f32))

    a = x_ref[...].astype(f32)         # (B*L, Cin), channels-last
    Lc = L
    for name, do_pool in PLAN:
        w_ref, b_ref = conv_refs[name]
        a = conv_relu(a, Lc, w_ref, b_ref)
        if do_pool:
            a = maxpool2(a)
            Lc //= 2

    # Lc == 1 here, so `a` is (B, 512) — identical to PyTorch's x.view(-1, 512).
    h = jnp.maximum(jnp.dot(a, fc1_w[...], preferred_element_type=f32) + fc1_b[...], 0.0)
    h = jnp.maximum(jnp.dot(h, fc2_w[...], preferred_element_type=f32) + fc2_b[...], 0.0)
    y = jnp.maximum(jnp.dot(h, out_w[...], preferred_element_type=f32) + out_b[...], 0.0)
    o_ref[...] = y


# ----------------------------------------------------------------------------- params

def init_params(key, in_channels):
    """Deterministic PyTorch-default-style (uniform +-1/sqrt(fan_in)) init, PyTorch layouts."""
    def conv_p(k, cin, cout):
        k1, k2 = jax.random.split(k)
        bound = 1.0 / (cin * 3) ** 0.5
        w = jax.random.uniform(k1, (cout, cin, 3), jnp.float32, -bound, bound)
        b = jax.random.uniform(k2, (cout,), jnp.float32, -bound, bound)
        return w, b

    def lin_p(k, din, dout):
        k1, k2 = jax.random.split(k)
        bound = 1.0 / din ** 0.5
        w = jax.random.uniform(k1, (dout, din), jnp.float32, -bound, bound)
        b = jax.random.uniform(k2, (dout,), jnp.float32, -bound, bound)
        return w, b

    ks = jax.random.split(key, 11)
    return {
        "conv1": conv_p(ks[0], in_channels, 64),
        "conv2": conv_p(ks[1], 64, 64),
        "conv3": conv_p(ks[2], 64, 128),
        "conv4": conv_p(ks[3], 128, 128),
        "conv5": conv_p(ks[4], 128, 256),
        "conv6": conv_p(ks[5], 256, 256),
        "conv7": conv_p(ks[6], 256, 512),
        "conv8": conv_p(ks[7], 512, 512),
        "fc1": lin_p(ks[8], 512, 128),
        "fc2": lin_p(ks[9], 128, 32),
        "output": lin_p(ks[10], 32, 1),
    }


def prep_params(p):
    """One-time layout prep (hoisted out of the forward): conv weights (Cout,Cin,3) ->
    (3, Cin, Cout) tap-major, linear weights (Dout,Din) -> (Din, Dout), biases -> (1, D)."""
    prepped = {}
    for name in CONV_NAMES:
        w, b = p[name]
        cout = w.shape[0]
        prepped[name] = (jnp.transpose(w, (2, 1, 0)).astype(jnp.float32),
                         b.reshape(1, cout).astype(jnp.float32))
    for name in ("fc1", "fc2", "output"):
        w, b = p[name]
        prepped[name] = (jnp.transpose(w).astype(jnp.float32),
                         b.reshape(1, w.shape[0]).astype(jnp.float32))
    return prepped


# ----------------------------------------------------------------------------- wrapper

def _cost_estimate(B, L, Cin, prepped):
    flops = 0
    Lc = L
    for name, do_pool in PLAN:
        w, _ = prepped[name]                 # (3, cin, cout)
        _, cin, cout = w.shape
        flops += 2 * (B * Lc) * (3 * cin) * cout
        if do_pool:
            Lc //= 2
    for name in ("fc1", "fc2", "output"):
        w, _ = prepped[name]                 # (din, dout)
        din, dout = w.shape
        flops += 2 * (B * Lc) * din * dout
    bytes_accessed = B * L * Cin * 4 + B * Lc * 4
    for w, b in prepped.values():
        bytes_accessed += (w.size + b.size) * 4
    return pl.CostEstimate(flops=int(flops), transcendentals=0,
                           bytes_accessed=int(bytes_accessed))


def vnet_forward(inp, prepped):
    """inp: (B, L, Cin) channels-last (same layout PyTorch receives before its permute)."""
    B, L, Cin = inp.shape
    Lf = L
    for _, do_pool in PLAN:
        if do_pool:
            Lf //= 2
    # TODO(synk): x.view(-1, 512) with a final spatial length > 1 interleaves channels/length;
    # only the intended VGG16-style configuration (final length == 1, e.g. L == 16) is fused.
    assert Lf == 1, "fused flatten assumes the final spatial length is 1 (use L == 16)"

    x_flat = inp.reshape(B * L, Cin).astype(jnp.float32)

    flat_inputs = [x_flat]
    for name in CONV_NAMES:
        flat_inputs.extend(prepped[name])
    for name in ("fc1", "fc2", "output"):
        flat_inputs.extend(prepped[name])

    return pl.pallas_call(
        functools.partial(_vnet_fused_kernel, B=B, L=L),
        out_shape=jax.ShapeDtypeStruct((B * Lf, 1), jnp.float32),
        in_specs=[_VMEM_SPEC] * len(flat_inputs),
        out_specs=_VMEM_SPEC,
        compiler_params=pltpu.CompilerParams(vmem_limit_bytes=32 * 1024 * 1024),
        cost_estimate=_cost_estimate(B, L, Cin, prepped),
    )(*flat_inputs)


# ----------------------------------------------------------------------------- main

if __name__ == "__main__":
    B, L, C_IN = 2, 16, 4            # L = 16 -> 8 -> 4 -> 2 -> 1 across the four maxpools
    key = jax.random.PRNGKey(0)
    k_in, k_par = jax.random.split(key)
    inp = jax.random.normal(k_in, (B, L, C_IN), jnp.float32)
    params = init_params(k_par, C_IN)
    prepped = prep_params(params)     # one-time weight layout prep, outside the jitted forward

    fwd = jax.jit(vnet_forward)
    out = jax.block_until_ready(fwd(inp, prepped))
    assert out.shape == (B, 1), out.shape
    print("KERNEL_OK")
</pallas_src>

<mosaic_0001>
module attributes {stable_mosaic.version = 11 : i64} {
  func.func @_vnet_fused_kernel(%arg0: memref<32x4xf32, #tpu.memory_space<vmem>>, %arg1: memref<3x4x64xf32, #tpu.memory_space<vmem>>, %arg2: memref<1x64xf32, #tpu.memory_space<vmem>>, %arg3: memref<3x64x64xf32, #tpu.memory_space<vmem>>, %arg4: memref<1x64xf32, #tpu.memory_space<vmem>>, %arg5: memref<3x64x128xf32, #tpu.memory_space<vmem>>, %arg6: memref<1x128xf32, #tpu.memory_space<vmem>>, %arg7: memref<3x128x128xf32, #tpu.memory_space<vmem>>, %arg8: memref<1x128xf32, #tpu.memory_space<vmem>>, %arg9: memref<3x128x256xf32, #tpu.memory_space<vmem>>, %arg10: memref<1x256xf32, #tpu.memory_space<vmem>>, %arg11: memref<3x256x256xf32, #tpu.memory_space<vmem>>, %arg12: memref<1x256xf32, #tpu.memory_space<vmem>>, %arg13: memref<3x256x512xf32, #tpu.memory_space<vmem>>, %arg14: memref<1x512xf32, #tpu.memory_space<vmem>>, %arg15: memref<3x512x512xf32, #tpu.memory_space<vmem>>, %arg16: memref<1x512xf32, #tpu.memory_space<vmem>>, %arg17: memref<512x128xf32, #tpu.memory_space<vmem>>, %arg18: memref<1x128xf32, #tpu.memory_space<vmem>>, %arg19: memref<128x32xf32, #tpu.memory_space<vmem>>, %arg20: memref<1x32xf32, #tpu.memory_space<vmem>>, %arg21: memref<32x1xf32, #tpu.memory_space<vmem>>, %arg22: memref<1x1xf32, #tpu.memory_space<vmem>>, %arg23: memref<2x1xf32, #tpu.memory_space<vmem>>) attributes {dimension_semantics = [], scalar_prefetch = 0 : i64, scratch_operands = 0 : i64, tpu.core_type = #tpu.core_type<tc>} {
    %c0 = arith.constant 0 : index
    %c0_0 = arith.constant 0 : index
    %0 = vector.load %arg0[%c0, %c0_0] : memref<32x4xf32, #tpu.memory_space<vmem>>, vector<32x4xf32>
    %c1 = arith.constant 1 : index
    %c0_1 = arith.constant 0 : index
    %c0_2 = arith.constant 0 : index
    %1 = vector.load %arg1[%c1, %c0_1, %c0_2] : memref<3x4x64xf32, #tpu.memory_space<vmem>>, vector<1x4x64xf32>
    %2 = vector.shape_cast %1 : vector<1x4x64xf32> to vector<4x64xf32>
    %cst = arith.constant dense<0.000000e+00> : vector<32x64xf32>
    %3 = tpu.matmul %0, %2, %cst {dimension_numbers = #tpu.dot_dimension_numbers<[1], [0], [0], [1], [0, 0, 1, 1], [], []>} : vector<32x4xf32>, vector<4x64xf32>, vector<32x64xf32> -> vector<32x64xf32>
    %c0_3 = arith.constant 0 : index
    %c0_4 = arith.constant 0 : index
    %4 = vector.load %arg2[%c0_3, %c0_4] : memref<1x64xf32, #tpu.memory_space<vmem>>, vector<1x64xf32>
    %5 = vector.broadcast %4 : vector<1x64xf32> to vector<32x64xf32>
    %6 = arith.addf %3, %5 : vector<32x64xf32>
    %7 = tpu.iota {dimensions = array<i32: 0>} : vector<32x32xi32>
    %8 = tpu.iota {dimensions = array<i32: 1>} : vector<32x32xi32>
    %c1_i32 = arith.constant 1 : i32
    %9 = vector.broadcast %c1_i32 : i32 to vector<32x32xi32>
    %10 = arith.subi %7, %9 : vector<32x32xi32>
    %11 = arith.cmpi eq, %8, %10 : vector<32x32xi32>
    %c16_i32 = arith.constant 16 : i32
    %c0_i32 = arith.constant 0 : i32
    %12 = arith.cmpi eq, %c16_i32, %c0_i32 : i32
    %c1_i32_5 = arith.constant 1 : i32
    %13 = arith.select %12, %c1_i32_5, %c16_i32 : i32
    %14 = vector.broadcast %13 : i32 to vector<32x32xi32>
    %15 = arith.remsi %7, %14 : vector<32x32xi32>
    %c0_i32_6 = arith.constant 0 : i32
    %16 = vector.broadcast %c0_i32_6 : i32 to vector<32x32xi32>
    %17 = arith.cmpi ne, %15, %16 : vector<32x32xi32>
    %c0_i32_7 = arith.constant 0 : i32
    %18 = vector.broadcast %c0_i32_7 : i32 to vector<32x32xi32>
    %19 = arith.cmpi slt, %15, %18 : vector<32x32xi32>
    %c0_i32_8 = arith.constant 0 : i32
    %20 = arith.cmpi slt, %13, %c0_i32_8 : i32
    %21 = vector.broadcast %20 : i1 to vector<32x32xi1>
    %22 = vector.broadcast %21 : vector<32x32xi1> to vector<32x32xi1>
    %23 = arith.xori %19, %22 : vector<32x32xi1>
    %24 = arith.andi %23, %17 : vector<32x32xi1>
    %25 = vector.broadcast %13 : i32 to vector<32x32xi32>
    %26 = arith.addi %15, %25 : vector<32x32xi32>
    %27 = arith.select %24, %26, %15 : vector<32x32xi1>, vector<32x32xi32>
    %c0_i32_9 = arith.constant 0 : i32
    %28 = vector.broadcast %c0_i32_9 : i32 to vector<32x32xi32>
    %29 = arith.cmpi ne, %27, %28 : vector<32x32xi32>
    %30 = arith.andi %11, %29 : vector<32x32xi1>
    %cst_10 = arith.constant 1.000000e+00 : f32
    %cst_11 = arith.constant 0.000000e+00 : f32
    %31 = vector.broadcast %cst_10 : f32 to vector<32x32xf32>
    %32 = vector.broadcast %cst_11 : f32 to vector<32x32xf32>
    %33 = arith.select %30, %31, %32 : vector<32x32xi1>, vector<32x32xf32>
    %c1_i32_12 = arith.constant 1 : i32
    %34 = vector.broadcast %c1_i32_12 : i32 to vector<32x32xi32>
    %35 = arith.addi %7, %34 : vector<32x32xi32>
    %36 = arith.cmpi eq, %8, %35 : vector<32x32xi32>
    %c16_i32_13 = arith.constant 16 : i32
    %c0_i32_14 = arith.constant 0 : i32
    %37 = arith.cmpi eq, %c16_i32_13, %c0_i32_14 : i32
    %c1_i32_15 = arith.constant 1 : i32
    %38 = arith.select %37, %c1_i32_15, %c16_i32_13 : i32
    %39 = vector.broadcast %38 : i32 to vector<32x32xi32>
    %40 = arith.remsi %7, %39 : vector<32x32xi32>
    %c0_i32_16 = arith.constant 0 : i32
    %41 = vector.broadcast %c0_i32_16 : i32 to vector<32x32xi32>
    %42 = arith.cmpi ne, %40, %41 : vector<32x32xi32>
    %c0_i32_17 = arith.constant 0 : i32
    %43 = vector.broadcast %c0_i32_17 : i32 to vector<32x32xi32>
    %44 = arith.cmpi slt, %40, %43 : vector<32x32xi32>
    %c0_i32_18 = arith.constant 0 : i32
    %45 = arith.cmpi slt, %38, %c0_i32_18 : i32
    %46 = vector.broadcast %45 : i1 to vector<32x32xi1>
    %47 = vector.broadcast %46 : vector<32x32xi1> to vector<32x32xi1>
    %48 = arith.xori %44, %47 : vector<32x32xi1>
    %49 = arith.andi %48, %42 : vector<32x32xi1>
    %50 = vector.broadcast %38 : i32 to vector<32x32xi32>
    %51 = arith.addi %40, %50 : vector<32x32xi32>
    %52 = arith.select %49, %51, %40 : vector<32x32xi1>, vector<32x32xi32>
    %c15_i32 = arith.constant 15 : i32
    %53 = vector.broadcast %c15_i32 : i32 to vector<32x32xi32>
    %54 = arith.cmpi ne, %52, %53 : vector<32x32xi32>
    %55 = arith.andi %36, %54 : vector<32x32xi1>
    %cst_19 = arith.constant 1.000000e+00 : f32
    %cst_20 = arith.constant 0.000000e+00 : f32
    %56 = vector.broadcast %cst_19 : f32 to vector<32x32xf32>
    %57 = vector.broadcast %cst_20 : f32 to vector<32x32xf32>
    %58 = arith.select %55, %56, %57 : vector<32x32xi1>, vector<32x32xf32>
    %cst_21 = arith.constant dense<0.000000e+00> : vector<32x4xf32>
    %59 = tpu.matmul %33, %0, %cst_21 {dimension_numbers = #tpu.dot_dimension_numbers<[1], [0], [0], [1], [0, 0, 1, 1], [], []>} : vector<32x32xf32>, vector<32x4xf32>, vector<32x4xf32> -> vector<32x4xf32>
    %cst_22 = arith.constant dense<0.000000e+00> : vector<32x4xf32>
    %60 = tpu.matmul %58, %0, %cst_22 {dimension_numbers = #tpu.dot_dimension_numbers<[1], [0], [0], [1], [0, 0, 1, 1], [], []>} : vector<32x32xf32>, vector<32x4xf32>, vector<32x4xf32> -> vector<32x4xf32>
    %c0_23 = arith.constant 0 : index
    %c0_24 = arith.constant 0 : index
    %c0_25 = arith.constant 0 : index
    %61 = vector.load %arg1[%c0_23, %c0_24, %c0_25] : memref<3x4x64xf32, #tpu.memory_space<vmem>>, vector<1x4x64xf32>
    %62 = vector.shape_cast %61 : vector<1x4x64xf32> to vector<4x64xf32>
    %cst_26 = arith.constant dense<0.000000e+00> : vector<32x64xf32>
    %63 = tpu.matmul %59, %62, %cst_26 {dimension_numbers = #tpu.dot_dimension_numbers<[1], [0], [0], [1], [0, 0, 1, 1], [], []>} : vector<32x4xf32>, vector<4x64xf32>, vector<32x64xf32> -> vector<32x64xf32>
    %64 = arith.addf %6, %63 : vector<32x64xf32>
    %c2 = arith.constant 2 : index
    %c0_27 = arith.constant 0 : index
    %c0_28 = arith.constant 0 : index
    %65 = vector.load %arg1[%c2, %c0_27, %c0_28] : memref<3x4x64xf32, #tpu.memory_space<vmem>>, vector<1x4x64xf32>
    %66 = vector.shape_cast %65 : vector<1x4x64xf32> to vector<4x64xf32>
    %cst_29 = arith.constant dense<0.000000e+00> : vector<32x64xf32>
    %67 = tpu.matmul %60, %66, %cst_29 {dimension_numbers = #tpu.dot_dimension_numbers<[1], [0], [0], [1], [0, 0, 1, 1], [], []>} : vector<32x4xf32>, vector<4x64xf32>, vector<32x64xf32> -> vector<32x64xf32>
    %68 = arith.addf %64, %67 : vector<32x64xf32>
    %cst_30 = arith.constant 0.000000e+00 : f32
    %69 = vector.broadcast %cst_30 : f32 to vector<32x64xf32>
    %70 = arith.maximumf %68, %69 : vector<32x64xf32>
    %c1_31 = arith.constant 1 : index
    %c0_32 = arith.constant 0 : index
    %c0_33 = arith.constant 0 : index
    %71 = vector.load %arg3[%c1_31, %c0_32, %c0_33] : memref<3x64x64xf32, #tpu.memory_space<vmem>>, vector<1x64x64xf32>
    %72 = vector.shape_cast %71 : vector<1x64x64xf32> to vector<64x64xf32>
    %cst_34 = arith.constant dense<0.000000e+00> : vector<32x64xf32>
    %73 = tpu.matmul %70, %72, %cst_34 {dimension_numbers = #tpu.dot_dimension_numbers<[1], [0], [0], [1], [0, 0, 1, 1], [], []>} : vector<32x64xf32>, vector<64x64xf32>, vector<32x64xf32> -> vector<32x64xf32>
    %c0_35 = arith.constant 0 : index
    %c0_36 = arith.constant 0 : index
    %74 = vector.load %arg4[%c0_35, %c0_36] : memref<1x64xf32, #tpu.memory_space<vmem>>, vector<1x64xf32>
    %75 = vector.broadcast %74 : vector<1x64xf32> to vector<32x64xf32>
    %76 = arith.addf %73, %75 : vector<32x64xf32>
    %cst_37 = arith.constant dense<0.000000e+00> : vector<32x64xf32>
    %77 = tpu.matmul %33, %70, %cst_37 {dimension_numbers = #tpu.dot_dimension_numbers<[1], [0], [0], [1], [0, 0, 1, 1], [], []>} : vector<32x32xf32>, vector<32x64xf32>, vector<32x64xf32> -> vector<32x64xf32>
    %cst_38 = arith.constant dense<0.000000e+00> : vector<32x64xf32>
    %78 = tpu.matmul %58, %70, %cst_38 {dimension_numbers = #tpu.dot_dimension_numbers<[1], [0], [0], [1], [0, 0, 1, 1], [], []>} : vector<32x32xf32>, vector<32x64xf32>, vector<32x64xf32> -> vector<32x64xf32>
    %c0_39 = arith.constant 0 : index
    %c0_40 = arith.constant 0 : index
    %c0_41 = arith.constant 0 : index
    %79 = vector.load %arg3[%c0_39, %c0_40, %c0_41] : memref<3x64x64xf32, #tpu.memory_space<vmem>>, vector<1x64x64xf32>
    %80 = vector.shape_cast %79 : vector<1x64x64xf32> to vector<64x64xf32>
    %cst_42 = arith.constant dense<0.000000e+00> : vector<32x64xf32>
    %81 = tpu.matmul %77, %80, %cst_42 {dimension_numbers = #tpu.dot_dimension_numbers<[1], [0], [0], [1], [0, 0, 1, 1], [], []>} : vector<32x64xf32>, vector<64x64xf32>, vector<32x64xf32> -> vector<32x64xf32>
    %82 = arith.addf %76, %81 : vector<32x64xf32>
    %c2_43 = arith.constant 2 : index
    %c0_44 = arith.constant 0 : index
    %c0_45 = arith.constant 0 : index
    %83 = vector.load %arg3[%c2_43, %c0_44, %c0_45] : memref<3x64x64xf32, #tpu.memory_space<vmem>>, vector<1x64x64xf32>
    %84 = vector.shape_cast %83 : vector<1x64x64xf32> to vector<64x64xf32>
    %cst_46 = arith.constant dense<0.000000e+00> : vector<32x64xf32>
    %85 = tpu.matmul %78, %84, %cst_46 {dimension_numbers = #tpu.dot_dimension_numbers<[1], [0], [0], [1], [0, 0, 1, 1], [], []>} : vector<32x64xf32>, vector<64x64xf32>, vector<32x64xf32> -> vector<32x64xf32>
    %86 = arith.addf %82, %85 : vector<32x64xf32>
    %cst_47 = arith.constant 0.000000e+00 : f32
    %87 = vector.broadcast %cst_47 : f32 to vector<32x64xf32>
    %88 = arith.maximumf %86, %87 : vector<32x64xf32>
    %89 = tpu.iota {dimensions = array<i32: 0>} : vector<16x32xi32>
    %90 = tpu.iota {dimensions = array<i32: 1>} : vector<16x32xi32>
    %c2_i32 = arith.constant 2 : i32
    %91 = vector.broadcast %c2_i32 : i32 to vector<16x32xi32>
    %92 = arith.muli %91, %89 : vector<16x32xi32>
    %93 = arith.cmpi eq, %90, %92 : vector<16x32xi32>
    %cst_48 = arith.constant 1.000000e+00 : f32
    %cst_49 = arith.constant 0.000000e+00 : f32
    %94 = vector.broadcast %cst_48 : f32 to vector<16x32xf32>
    %95 = vector.broadcast %cst_49 : f32 to vector<16x32xf32>
    %96 = arith.select %93, %94, %95 : vector<16x32xi1>, vector<16x32xf32>
    %c2_i32_50 = arith.constant 2 : i32
    %97 = vector.broadcast %c2_i32_50 : i32 to vector<16x32xi32>
    %98 = arith.muli %97, %89 : vector<16x32xi32>
    %c1_i32_51 = arith.constant 1 : i32
    %99 = vector.broadcast %c1_i32_51 : i32 to vector<16x32xi32>
    %100 = arith.addi %98, %99 : vector<16x32xi32>
    %101 = arith.cmpi eq, %90, %100 : vector<16x32xi32>
    %cst_52 = arith.constant 1.000000e+00 : f32
    %cst_53 = arith.constant 0.000000e+00 : f32
    %102 = vector.broadcast %cst_52 : f32 to vector<16x32xf32>
    %103 = vector.broadcast %cst_53 : f32 to vector<16x32xf32>
    %104 = arith.select %101, %102, %103 : vector<16x32xi1>, vector<16x32xf32>
    %cst_54 = arith.constant dense<0.000000e+00> : vector<16x64xf32>
    %105 = tpu.matmul %96, %88, %cst_54 {dimension_numbers = #tpu.dot_dimension_numbers<[1], [0], [0], [1], [0, 0, 1, 1], [], []>} : vector<16x32xf32>, vector<32x64xf32>, vector<16x64xf32> -> vector<16x64xf32>
    %cst_55 = arith.constant dense<0.000000e+00> : vector<16x64xf32>
    %106 = tpu.matmul %104, %88, %cst_55 {dimension_numbers = #tpu.dot_dimension_numbers<[1], [0], [0], [1], [0, 0, 1, 1], [], []>} : vector<16x32xf32>, vector<32x64xf32>, vector<16x64xf32> -> vector<16x64xf32>
    %107 = arith.maximumf %105, %106 : vector<16x64xf32>
    %c1_56 = arith.constant 1 : index
    %c0_57 = arith.constant 0 : index
    %c0_58 = arith.constant 0 : index
    %108 = vector.load %arg5[%c1_56, %c0_57, %c0_58] : memref<3x64x128xf32, #tpu.memory_space<vmem>>, vector<1x64x128xf32>
    %109 = vector.shape_cast %108 : vector<1x64x128xf32> to vector<64x128xf32>
    %cst_59 = arith.constant dense<0.000000e+00> : vector<16x128xf32>
    %110 = tpu.matmul %107, %109, %cst_59 {dimension_numbers = #tpu.dot_dimension_numbers<[1], [0], [0], [1], [0, 0, 1, 1], [], []>} : vector<16x64xf32>, vector<64x128xf32>, vector<16x128xf32> -> vector<16x128xf32>
    %c0_60 = arith.constant 0 : index
    %c0_61 = arith.constant 0 : index
    %111 = vector.load %arg6[%c0_60, %c0_61] : memref<1x128xf32, #tpu.memory_space<vmem>>, vector<1x128xf32>
    %112 = vector.broadcast %111 : vector<1x128xf32> to vector<16x128xf32>
    %113 = arith.addf %110, %112 : vector<16x128xf32>
    %114 = tpu.iota {dimensions = array<i32: 0>} : vector<16x16xi32>
    %115 = tpu.iota {dimensions = array<i32: 1>} : vector<16x16xi32>
    %c1_i32_62 = arith.constant 1 : i32
    %116 = vector.broadcast %c1_i32_62 : i32 to vector<16x16xi32>
    %117 = arith.subi %114, %116 : vector<16x16xi32>
    %118 = arith.cmpi eq, %115, %117 : vector<16x16xi32>
    %c8_i32 = arith.constant 8 : i32
    %c0_i32_63 = arith.constant 0 : i32
    %119 = arith.cmpi eq, %c8_i32, %c0_i32_63 : i32
    %c1_i32_64 = arith.constant 1 : i32
    %120 = arith.select %119, %c1_i32_64, %c8_i32 : i32
    %121 = vector.broadcast %120 : i32 to vector<16x16xi32>
    %122 = arith.remsi %114, %121 : vector<16x16xi32>
    %c0_i32_65 = arith.constant 0 : i32
    %123 = vector.broadcast %c0_i32_65 : i32 to vector<16x16xi32>
    %124 = arith.cmpi ne, %122, %123 : vector<16x16xi32>
    %c0_i32_66 = arith.constant 0 : i32
    %125 = vector.broadcast %c0_i32_66 : i32 to vector<16x16xi32>
    %126 = arith.cmpi slt, %122, %125 : vector<16x16xi32>
    %c0_i32_67 = arith.constant 0 : i32
    %127 = arith.cmpi slt, %120, %c0_i32_67 : i32
    %128 = vector.broadcast %127 : i1 to vector<16x16xi1>
    %129 = vector.broadcast %128 : vector<16x16xi1> to vector<16x16xi1>
    %130 = arith.xori %126, %129 : vector<16x16xi1>
    %131 = arith.andi %130, %124 : vector<16x16xi1>
    %132 = vector.broadcast %120 : i32 to vector<16x16xi32>
    %133 = arith.addi %122, %132 : vector<16x16xi32>
    %134 = arith.select %131, %133, %122 : vector<16x16xi1>, vector<16x16xi32>
    %c0_i32_68 = arith.constant 0 : i32
    %135 = vector.broadcast %c0_i32_68 : i32 to vector<16x16xi32>
    %136 = arith.cmpi ne, %134, %135 : vector<16x16xi32>
    %137 = arith.andi %118, %136 : vector<16x16xi1>
    %cst_69 = arith.constant 1.000000e+00 : f32
    %cst_70 = arith.constant 0.000000e+00 : f32
    %138 = vector.broadcast %cst_69 : f32 to vector<16x16xf32>
    %139 = vector.broadcast %cst_70 : f32 to vector<16x16xf32>
    %140 = arith.select %137, %138, %139 : vector<16x16xi1>, vector<16x16xf32>
    %c1_i32_71 = arith.constant 1 : i32
    %141 = vector.broadcast %c1_i32_71 : i32 to vector<16x16xi32>
    %142 = arith.addi %114, %141 : vector<16x16xi32>
    %143 = arith.cmpi eq, %115, %142 : vector<16x16xi32>
    %c8_i32_72 = arith.constant 8 : i32
    %c0_i32_73 = arith.constant 0 : i32
    %144 = arith.cmpi eq, %c8_i32_72, %c0_i32_73 : i32
    %c1_i32_74 = arith.constant 1 : i32
    %145 = arith.select %144, %c1_i32_74, %c8_i32_72 : i32
    %146 = vector.broadcast %145 : i32 to vector<16x16xi32>
    %147 = arith.remsi %114, %146 : vector<16x16xi32>
    %c0_i32_75 = arith.constant 0 : i32
    %148 = vector.broadcast %c0_i32_75 : i32 to vector<16x16xi32>
    %149 = arith.cmpi ne, %147, %148 : vector<16x16xi32>
    %c0_i32_76 = arith.constant 0 : i32
    %150 = vector.broadcast %c0_i32_76 : i32 to vector<16x16xi32>
    %151 = arith.cmpi slt, %147, %150 : vector<16x16xi32>
    %c0_i32_77 = arith.constant 0 : i32
    %152 = arith.cmpi slt, %145, %c0_i32_77 : i32
    %153 = vector.broadcast %152 : i1 to vector<16x16xi1>
    %154 = vector.broadcast %153 : vector<16x16xi1> to vector<16x16xi1>
    %155 = arith.xori %151, %154 : vector<16x16xi1>
    %156 = arith.andi %155, %149 : vector<16x16xi1>
    %157 = vector.broadcast %145 : i32 to vector<16x16xi32>
    %158 = arith.addi %147, %157 : vector<16x16xi32>
    %159 = arith.select %156, %158, %147 : vector<16x16xi1>, vector<16x16xi32>
    %c7_i32 = arith.constant 7 : i32
    %160 = vector.broadcast %c7_i32 : i32 to vector<16x16xi32>
    %161 = arith.cmpi ne, %159, %160 : vector<16x16xi32>
    %162 = arith.andi %143, %161 : vector<16x16xi1>
    %cst_78 = arith.constant 1.000000e+00 : f32
    %cst_79 = arith.constant 0.000000e+00 : f32
    %163 = vector.broadcast %cst_78 : f32 to vector<16x16xf32>
    %164 = vector.broadcast %cst_79 : f32 to vector<16x16xf32>
    %165 = arith.select %162, %163, %164 : vector<16x16xi1>, vector<16x16xf32>
    %cst_80 = arith.constant dense<0.000000e+00> : vector<16x64xf32>
    %166 = tpu.matmul %140, %107, %cst_80 {dimension_numbers = #tpu.dot_dimension_numbers<[1], [0], [0], [1], [0, 0, 1, 1], [], []>} : vector<16x16xf32>, vector<16x64xf32>, vector<16x64xf32> -> vector<16x64xf32>
    %cst_81 = arith.constant dense<0.000000e+00> : vector<16x64xf32>
    %167 = tpu.matmul %165, %107, %cst_81 {dimension_numbers = #tpu.dot_dimension_numbers<[1], [0], [0], [1], [0, 0, 1, 1], [], []>} : vector<16x16xf32>, vector<16x64xf32>, vector<16x64xf32> -> vector<16x64xf32>
    %c0_82 = arith.constant 0 : index
    %c0_83 = arith.constant 0 : index
    %c0_84 = arith.constant 0 : index
    %168 = vector.load %arg5[%c0_82, %c0_83, %c0_84] : memref<3x64x128xf32, #tpu.memory_space<vmem>>, vector<1x64x128xf32>
    %169 = vector.shape_cast %168 : vector<1x64x128xf32> to vector<64x128xf32>
    %cst_85 = arith.constant dense<0.000000e+00> : vector<16x128xf32>
    %170 = tpu.matmul %166, %169, %cst_85 {dimension_numbers = #tpu.dot_dimension_numbers<[1], [0], [0], [1], [0, 0, 1, 1], [], []>} : vector<16x64xf32>, vector<64x128xf32>, vector<16x128xf32> -> vector<16x128xf32>
    %171 = arith.addf %113, %170 : vector<16x128xf32>
    %c2_86 = arith.constant 2 : index
    %c0_87 = arith.constant 0 : index
    %c0_88 = arith.constant 0 : index
    %172 = vector.load %arg5[%c2_86, %c0_87, %c0_88] : memref<3x64x128xf32, #tpu.memory_space<vmem>>, vector<1x64x128xf32>
    %173 = vector.shape_cast %172 : vector<1x64x128xf32> to vector<64x128xf32>
    %cst_89 = arith.constant dense<0.000000e+00> : vector<16x128xf32>
    %174 = tpu.matmul %167, %173, %cst_89 {dimension_numbers = #tpu.dot_dimension_numbers<[1], [0], [0], [1], [0, 0, 1, 1], [], []>} : vector<16x64xf32>, vector<64x128xf32>, vector<16x128xf32> -> vector<16x128xf32>
    %175 = arith.addf %171, %174 : vector<16x128xf32>
    %cst_90 = arith.constant 0.000000e+00 : f32
    %176 = vector.broadcast %cst_90 : f32 to vector<16x128xf32>
    %177 = arith.maximumf %175, %176 : vector<16x128xf32>
    %c1_91 = arith.constant 1 : index
    %c0_92 = arith.constant 0 : index
    %c0_93 = arith.constant 0 : index
    %178 = vector.load %arg7[%c1_91, %c0_92, %c0_93] : memref<3x128x128xf32, #tpu.memory_space<vmem>>, vector<1x128x128xf32>
    %179 = vector.shape_cast %178 : vector<1x128x128xf32> to vector<128x128xf32>
    %cst_94 = arith.constant dense<0.000000e+00> : vector<16x128xf32>
    %180 = tpu.matmul %177, %179, %cst_94 {dimension_numbers = #tpu.dot_dimension_numbers<[1], [0], [0], [1], [0, 0, 1, 1], [], []>} : vector<16x128xf32>, vector<128x128xf32>, vector<16x128xf32> -> vector<16x128xf32>
    %c0_95 = arith.constant 0 : index
    %c0_96 = arith.constant 0 : index
    %181 = vector.load %arg8[%c0_95, %c0_96] : memref<1x128xf32, #tpu.memory_space<vmem>>, vector<1x128xf32>
    %182 = vector.broadcast %181 : vector<1x128xf32> to vector<16x128xf32>
    %183 = arith.addf %180, %182 : vector<16x128xf32>
    %cst_97 = arith.constant dense<0.000000e+00> : vector<16x128xf32>
    %184 = tpu.matmul %140, %177, %cst_97 {dimension_numbers = #tpu.dot_dimension_numbers<[1], [0], [0], [1], [0, 0, 1, 1], [], []>} : vector<16x16xf32>, vector<16x128xf32>, vector<16x128xf32> -> vector<16x128xf32>
    %cst_98 = arith.constant dense<0.000000e+00> : vector<16x128xf32>
    %185 = tpu.matmul %165, %177, %cst_98 {dimension_numbers = #tpu.dot_dimension_numbers<[1], [0], [0], [1], [0, 0, 1, 1], [], []>} : vector<16x16xf32>, vector<16x128xf32>, vector<16x128xf32> -> vector<16x128xf32>
    %c0_99 = arith.constant 0 : index
    %c0_100 = arith.constant 0 : index
    %c0_101 = arith.constant 0 : index
    %186 = vector.load %arg7[%c0_99, %c0_100, %c0_101] : memref<3x128x128xf32, #tpu.memory_space<vmem>>, vector<1x128x128xf32>
    %187 = vector.shape_cast %186 : vector<1x128x128xf32> to vector<128x128xf32>
    %cst_102 = arith.constant dense<0.000000e+00> : vector<16x128xf32>
    %188 = tpu.matmul %184, %187, %cst_102 {dimension_numbers = #tpu.dot_dimension_numbers<[1], [0], [0], [1], [0, 0, 1, 1], [], []>} : vector<16x128xf32>, vector<128x128xf32>, vector<16x128xf32> -> vector<16x128xf32>
    %189 = arith.addf %183, %188 : vector<16x128xf32>
    %c2_103 = arith.constant 2 : index
    %c0_104 = arith.constant 0 : index
    %c0_105 = arith.constant 0 : index
    %190 = vector.load %arg7[%c2_103, %c0_104, %c0_105] : memref<3x128x128xf32, #tpu.memory_space<vmem>>, vector<1x128x128xf32>
    %191 = vector.shape_cast %190 : vector<1x128x128xf32> to vector<128x128xf32>
    %cst_106 = arith.constant dense<0.000000e+00> : vector<16x128xf32>
    %192 = tpu.matmul %185, %191, %cst_106 {dimension_numbers = #tpu.dot_dimension_numbers<[1], [0], [0], [1], [0, 0, 1, 1], [], []>} : vector<16x128xf32>, vector<128x128xf32>, vector<16x128xf32> -> vector<16x128xf32>
    %193 = arith.addf %189, %192 : vector<16x128xf32>
    %cst_107 = arith.constant 0.000000e+00 : f32
    %194 = vector.broadcast %cst_107 : f32 to vector<16x128xf32>
    %195 = arith.maximumf %193, %194 : vector<16x128xf32>
    %196 = tpu.iota {dimensions = array<i32: 0>} : vector<8x16xi32>
    %197 = tpu.iota {dimensions = array<i32: 1>} : vector<8x16xi32>
    %c2_i32_108 = arith.constant 2 : i32
    %198 = vector.broadcast %c2_i32_108 : i32 to vector<8x16xi32>
    %199 = arith.muli %198, %196 : vector<8x16xi32>
    %200 = arith.cmpi eq, %197, %199 : vector<8x16xi32>
    %cst_109 = arith.constant 1.000000e+00 : f32
    %cst_110 = arith.constant 0.000000e+00 : f32
    %201 = vector.broadcast %cst_109 : f32 to vector<8x16xf32>
    %202 = vector.broadcast %cst_110 : f32 to vector<8x16xf32>
    %203 = arith.select %200, %201, %202 : vector<8x16xi1>, vector<8x16xf32>
    %c2_i32_111 = arith.constant 2 : i32
    %204 = vector.broadcast %c2_i32_111 : i32 to vector<8x16xi32>
    %205 = arith.muli %204, %196 : vector<8x16xi32>
    %c1_i32_112 = arith.constant 1 : i32
    %206 = vector.broadcast %c1_i32_112 : i32 to vector<8x16xi32>
    %207 = arith.addi %205, %206 : vector<8x16xi32>
    %208 = arith.cmpi eq, %197, %207 : vector<8x16xi32>
    %cst_113 = arith.constant 1.000000e+00 : f32
    %cst_114 = arith.constant 0.000000e+00 : f32
    %209 = vector.broadcast %cst_113 : f32 to vector<8x16xf32>
    %210 = vector.broadcast %cst_114 : f32 to vector<8x16xf32>
    %211 = arith.select %208, %209, %210 : vector<8x16xi1>, vector<8x16xf32>
    %cst_115 = arith.constant dense<0.000000e+00> : vector<8x128xf32>
    %212 = tpu.matmul %203, %195, %cst_115 {dimension_numbers = #tpu.dot_dimension_numbers<[1], [0], [0], [1], [0, 0, 1, 1], [], []>} : vector<8x16xf32>, vector<16x128xf32>, vector<8x128xf32> -> vector<8x128xf32>
    %cst_116 = arith.constant dense<0.000000e+00> : vector<8x128xf32>
    %213 = tpu.matmul %211, %195, %cst_116 {dimension_numbers = #tpu.dot_dimension_numbers<[1], [0], [0], [1], [0, 0, 1, 1], [], []>} : vector<8x16xf32>, vector<16x128xf32>, vector<8x128xf32> -> vector<8x128xf32>
    %214 = arith.maximumf %212, %213 : vector<8x128xf32>
    %c1_117 = arith.constant 1 : index
    %c0_118 = arith.constant 0 : index
    %c0_119 = arith.constant 0 : index
    %215 = vector.load %arg9[%c1_117, %c0_118, %c0_119] : memref<3x128x256xf32, #tpu.memory_space<vmem>>, vector<1x128x256xf32>
    %216 = vector.shape_cast %215 : vector<1x128x256xf32> to vector<128x256xf32>
    %cst_120 = arith.constant dense<0.000000e+00> : vector<8x256xf32>
    %217 = tpu.matmul %214, %216, %cst_120 {dimension_numbers = #tpu.dot_dimension_numbers<[1], [0], [0], [1], [0, 0, 1, 1], [], []>} : vector<8x128xf32>, vector<128x256xf32>, vector<8x256xf32> -> vector<8x256xf32>
    %c0_121 = arith.constant 0 : index
    %c0_122 = arith.constant 0 : index
    %218 = vector.load %arg10[%c0_121, %c0_122] : memref<1x256xf32, #tpu.memory_space<vmem>>, vector<1x256xf32>
    %219 = vector.broadcast %218 : vector<1x256xf32> to vector<8x256xf32>
    %220 = arith.addf %217, %219 : vector<8x256xf32>
    %221 = tpu.iota {dimensions = array<i32: 0>} : vector<8x8xi32>
    %222 = tpu.iota {dimensions = array<i32: 1>} : vector<8x8xi32>
    %c1_i32_123 = arith.constant 1 : i32
    %223 = vector.broadcast %c1_i32_123 : i32 to vector<8x8xi32>
    %224 = arith.subi %221, %223 : vector<8x8xi32>
    %225 = arith.cmpi eq, %222, %224 : vector<8x8xi32>
    %c4_i32 = arith.constant 4 : i32
    %c0_i32_124 = arith.constant 0 : i32
    %226 = arith.cmpi eq, %c4_i32, %c0_i32_124 : i32
    %c1_i32_125 = arith.constant 1 : i32
    %227 = arith.select %226, %c1_i32_125, %c4_i32 : i32
    %228 = vector.broadcast %227 : i32 to vector<8x8xi32>
    %229 = arith.remsi %221, %228 : vector<8x8xi32>
    %c0_i32_126 = arith.constant 0 : i32
    %230 = vector.broadcast %c0_i32_126 : i32 to vector<8x8xi32>
    %231 = arith.cmpi ne, %229, %230 : vector<8x8xi32>
    %c0_i32_127 = arith.constant 0 : i32
    %232 = vector.broadcast %c0_i32_127 : i32 to vector<8x8xi32>
    %233 = arith.cmpi slt, %229, %232 : vector<8x8xi32>
    %c0_i32_128 = arith.constant 0 : i32
    %234 = arith.cmpi slt, %227, %c0_i32_128 : i32
    %235 = vector.broadcast %234 : i1 to vector<8x8xi1>
    %236 = vector.broadcast %235 : vector<8x8xi1> to vector<8x8xi1>
    %237 = arith.xori %233, %236 : vector<8x8xi1>
    %238 = arith.andi %237, %231 : vector<8x8xi1>
    %239 = vector.broadcast %227 : i32 to vector<8x8xi32>
    %240 = arith.addi %229, %239 : vector<8x8xi32>
    %241 = arith.select %238, %240, %229 : vector<8x8xi1>, vector<8x8xi32>
    %c0_i32_129 = arith.constant 0 : i32
    %242 = vector.broadcast %c0_i32_129 : i32 to vector<8x8xi32>
    %243 = arith.cmpi ne, %241, %242 : vector<8x8xi32>
    %244 = arith.andi %225, %243 : vector<8x8xi1>
    %cst_130 = arith.constant 1.000000e+00 : f32
    %cst_131 = arith.constant 0.000000e+00 : f32
    %245 = vector.broadcast %cst_130 : f32 to vector<8x8xf32>
    %246 = vector.broadcast %cst_131 : f32 to vector<8x8xf32>
    %247 = arith.select %244, %245, %246 : vector<8x8xi1>, vector<8x8xf32>
    %c1_i32_132 = arith.constant 1 : i32
    %248 = vector.broadcast %c1_i32_132 : i32 to vector<8x8xi32>
    %249 = arith.addi %221, %248 : vector<8x8xi32>
    %250 = arith.cmpi eq, %222, %249 : vector<8x8xi32>
    %c4_i32_133 = arith.constant 4 : i32
    %c0_i32_134 = arith.constant 0 : i32
    %251 = arith.cmpi eq, %c4_i32_133, %c0_i32_134 : i32
    %c1_i32_135 = arith.constant 1 : i32
    %252 = arith.select %251, %c1_i32_135, %c4_i32_133 : i32
    %253 = vector.broadcast %252 : i32 to vector<8x8xi32>
    %254 = arith.remsi %221, %253 : vector<8x8xi32>
    %c0_i32_136 = arith.constant 0 : i32
    %255 = vector.broadcast %c0_i32_136 : i32 to vector<8x8xi32>
    %256 = arith.cmpi ne, %254, %255 : vector<8x8xi32>
    %c0_i32_137 = arith.constant 0 : i32
    %257 = vector.broadcast %c0_i32_137 : i32 to vector<8x8xi32>
    %258 = arith.cmpi slt, %254, %257 : vector<8x8xi32>
    %c0_i32_138 = arith.constant 0 : i32
    %259 = arith.cmpi slt, %252, %c0_i32_138 : i32
    %260 = vector.broadcast %259 : i1 to vector<8x8xi1>
    %261 = vector.broadcast %260 : vector<8x8xi1> to vector<8x8xi1>
    %262 = arith.xori %258, %261 : vector<8x8xi1>
    %263 = arith.andi %262, %256 : vector<8x8xi1>
    %264 = vector.broadcast %252 : i32 to vector<8x8xi32>
    %265 = arith.addi %254, %264 : vector<8x8xi32>
    %266 = arith.select %263, %265, %254 : vector<8x8xi1>, vector<8x8xi32>
    %c3_i32 = arith.constant 3 : i32
    %267 = vector.broadcast %c3_i32 : i32 to vector<8x8xi32>
    %268 = arith.cmpi ne, %266, %267 : vector<8x8xi32>
    %269 = arith.andi %250, %268 : vector<8x8xi1>
    %cst_139 = arith.constant 1.000000e+00 : f32
    %cst_140 = arith.constant 0.000000e+00 : f32
    %270 = vector.broadcast %cst_139 : f32 to vector<8x8xf32>
    %271 = vector.broadcast %cst_140 : f32 to vector<8x8xf32>
    %272 = arith.select %269, %270, %271 : vector<8x8xi1>, vector<8x8xf32>
    %cst_141 = arith.constant dense<0.000000e+00> : vector<8x128xf32>
    %273 = tpu.matmul %247, %214, %cst_141 {dimension_numbers = #tpu.dot_dimension_numbers<[1], [0], [0], [1], [0, 0, 1, 1], [], []>} : vector<8x8xf32>, vector<8x128xf32>, vector<8x128xf32> -> vector<8x128xf32>
    %cst_142 = arith.constant dense<0.000000e+00> : vector<8x128xf32>
    %274 = tpu.matmul %272, %214, %cst_142 {dimension_numbers = #tpu.dot_dimension_numbers<[1], [0], [0], [1], [0, 0, 1, 1], [], []>} : vector<8x8xf32>, vector<8x128xf32>, vector<8x128xf32> -> vector<8x128xf32>
    %c0_143 = arith.constant 0 : index
    %c0_144 = arith.constant 0 : index
    %c0_145 = arith.constant 0 : index
    %275 = vector.load %arg9[%c0_143, %c0_144, %c0_145] : memref<3x128x256xf32, #tpu.memory_space<vmem>>, vector<1x128x256xf32>
    %276 = vector.shape_cast %275 : vector<1x128x256xf32> to vector<128x256xf32>
    %cst_146 = arith.constant dense<0.000000e+00> : vector<8x256xf32>
    %277 = tpu.matmul %273, %276, %cst_146 {dimension_numbers = #tpu.dot_dimension_numbers<[1], [0], [0], [1], [0, 0, 1, 1], [], []>} : vector<8x128xf32>, vector<128x256xf32>, vector<8x256xf32> -> vector<8x256xf32>
    %278 = arith.addf %220, %277 : vector<8x256xf32>
    %c2_147 = arith.constant 2 : index
    %c0_148 = arith.constant 0 : index
    %c0_149 = arith.constant 0 : index
    %279 = vector.load %arg9[%c2_147, %c0_148, %c0_149] : memref<3x128x256xf32, #tpu.memory_space<vmem>>, vector<1x128x256xf32>
    %280 = vector.shape_cast %279 : vector<1x128x256xf32> to vector<128x256xf32>
    %cst_150 = arith.constant dense<0.000000e+00> : vector<8x256xf32>
    %281 = tpu.matmul %274, %280, %cst_150 {dimension_numbers = #tpu.dot_dimension_numbers<[1], [0], [0], [1], [0, 0, 1, 1], [], []>} : vector<8x128xf32>, vector<128x256xf32>, vector<8x256xf32> -> vector<8x256xf32>
    %282 = arith.addf %278, %281 : vector<8x256xf32>
    %cst_151 = arith.constant 0.000000e+00 : f32
    %283 = vector.broadcast %cst_151 : f32 to vector<8x256xf32>
    %284 = arith.maximumf %282, %283 : vector<8x256xf32>
    %c1_152 = arith.constant 1 : index
    %c0_153 = arith.constant 0 : index
    %c0_154 = arith.constant 0 : index
    %285 = vector.load %arg11[%c1_152, %c0_153, %c0_154] : memref<3x256x256xf32, #tpu.memory_space<vmem>>, vector<1x256x256xf32>
    %286 = vector.shape_cast %285 : vector<1x256x256xf32> to vector<256x256xf32>
    %cst_155 = arith.constant dense<0.000000e+00> : vector<8x256xf32>
    %287 = tpu.matmul %284, %286, %cst_155 {dimension_numbers = #tpu.dot_dimension_numbers<[1], [0], [0], [1], [0, 0, 1, 1], [], []>} : vector<8x256xf32>, vector<256x256xf32>, vector<8x256xf32> -> vector<8x256xf32>
    %c0_156 = arith.constant 0 : index
    %c0_157 = arith.constant 0 : index
    %288 = vector.load %arg12[%c0_156, %c0_157] : memref<1x256xf32, #tpu.memory_space<vmem>>, vector<1x256xf32>
    %289 = vector.broadcast %288 : vector<1x256xf32> to vector<8x256xf32>
    %290 = arith.addf %287, %289 : vector<8x256xf32>
    %cst_158 = arith.constant dense<0.000000e+00> : vector<8x256xf32>
    %291 = tpu.matmul %247, %284, %cst_158 {dimension_numbers = #tpu.dot_dimension_numbers<[1], [0], [0], [1], [0, 0, 1, 1], [], []>} : vector<8x8xf32>, vector<8x256xf32>, vector<8x256xf32> -> vector<8x256xf32>
    %cst_159 = arith.constant dense<0.000000e+00> : vector<8x256xf32>
    %292 = tpu.matmul %272, %284, %cst_159 {dimension_numbers = #tpu.dot_dimension_numbers<[1], [0], [0], [1], [0, 0, 1, 1], [], []>} : vector<8x8xf32>, vector<8x256xf32>, vector<8x256xf32> -> vector<8x256xf32>
    %c0_160 = arith.constant 0 : index
    %c0_161 = arith.constant 0 : index
    %c0_162 = arith.constant 0 : index
    %293 = vector.load %arg11[%c0_160, %c0_161, %c0_162] : memref<3x256x256xf32, #tpu.memory_space<vmem>>, vector<1x256x256xf32>
    %294 = vector.shape_cast %293 : vector<1x256x256xf32> to vector<256x256xf32>
    %cst_163 = arith.constant dense<0.000000e+00> : vector<8x256xf32>
    %295 = tpu.matmul %291, %294, %cst_163 {dimension_numbers = #tpu.dot_dimension_numbers<[1], [0], [0], [1], [0, 0, 1, 1], [], []>} : vector<8x256xf32>, vector<256x256xf32>, vector<8x256xf32> -> vector<8x256xf32>
    %296 = arith.addf %290, %295 : vector<8x256xf32>
    %c2_164 = arith.constant 2 : index
    %c0_165 = arith.constant 0 : index
    %c0_166 = arith.constant 0 : index
    %297 = vector.load %arg11[%c2_164, %c0_165, %c0_166] : memref<3x256x256xf32, #tpu.memory_space<vmem>>, vector<1x256x256xf32>
    %298 = vector.shape_cast %297 : vector<1x256x256xf32> to vector<256x256xf32>
    %cst_167 = arith.constant dense<0.000000e+00> : vector<8x256xf32>
    %299 = tpu.matmul %292, %298, %cst_167 {dimension_numbers = #tpu.dot_dimension_numbers<[1], [0], [0], [1], [0, 0, 1, 1], [], []>} : vector<8x256xf32>, vector<256x256xf32>, vector<8x256xf32> -> vector<8x256xf32>
    %300 = arith.addf %296, %299 : vector<8x256xf32>
    %cst_168 = arith.constant 0.000000e+00 : f32
    %301 = vector.broadcast %cst_168 : f32 to vector<8x256xf32>
    %302 = arith.maximumf %300, %301 : vector<8x256xf32>
    %c1_169 = arith.constant 1 : index
    %c0_170 = arith.constant 0 : index
    %c0_171 = arith.constant 0 : index
    %303 = vector.load %arg11[%c1_169, %c0_170, %c0_171] : memref<3x256x256xf32, #tpu.memory_space<vmem>>, vector<1x256x256xf32>
    %304 = vector.shape_cast %303 : vector<1x256x256xf32> to vector<256x256xf32>
    %cst_172 = arith.constant dense<0.000000e+00> : vector<8x256xf32>
    %305 = tpu.matmul %302, %304, %cst_172 {dimension_numbers = #tpu.dot_dimension_numbers<[1], [0], [0], [1], [0, 0, 1, 1], [], []>} : vector<8x256xf32>, vector<256x256xf32>, vector<8x256xf32> -> vector<8x256xf32>
    %c0_173 = arith.constant 0 : index
    %c0_174 = arith.constant 0 : index
    %306 = vector.load %arg12[%c0_173, %c0_174] : memref<1x256xf32, #tpu.memory_space<vmem>>, vector<1x256xf32>
    %307 = vector.broadcast %306 : vector<1x256xf32> to vector<8x256xf32>
    %308 = arith.addf %305, %307 : vector<8x256xf32>
    %cst_175 = arith.constant dense<0.000000e+00> : vector<8x256xf32>
    %309 = tpu.matmul %247, %302, %cst_175 {dimension_numbers = #tpu.dot_dimension_numbers<[1], [0], [0], [1], [0, 0, 1, 1], [], []>} : vector<8x8xf32>, vector<8x256xf32>, vector<8x256xf32> -> vector<8x256xf32>
    %cst_176 = arith.constant dense<0.000000e+00> : vector<8x256xf32>
    %310 = tpu.matmul %272, %302, %cst_176 {dimension_numbers = #tpu.dot_dimension_numbers<[1], [0], [0], [1], [0, 0, 1, 1], [], []>} : vector<8x8xf32>, vector<8x256xf32>, vector<8x256xf32> -> vector<8x256xf32>
    %c0_177 = arith.constant 0 : index
    %c0_178 = arith.constant 0 : index
    %c0_179 = arith.constant 0 : index
    %311 = vector.load %arg11[%c0_177, %c0_178, %c0_179] : memref<3x256x256xf32, #tpu.memory_space<vmem>>, vector<1x256x256xf32>
    %312 = vector.shape_cast %311 : vector<1x256x256xf32> to vector<256x256xf32>
    %cst_180 = arith.constant dense<0.000000e+00> : vector<8x256xf32>
    %313 = tpu.matmul %309, %312, %cst_180 {dimension_numbers = #tpu.dot_dimension_numbers<[1], [0], [0], [1], [0, 0, 1, 1], [], []>} : vector<8x256xf32>, vector<256x256xf32>, vector<8x256xf32> -> vector<8x256xf32>
    %314 = arith.addf %308, %313 : vector<8x256xf32>
    %c2_181 = arith.constant 2 : index
    %c0_182 = arith.constant 0 : index
    %c0_183 = arith.constant 0 : index
    %315 = vector.load %arg11[%c2_181, %c0_182, %c0_183] : memref<3x256x256xf32, #tpu.memory_space<vmem>>, vector<1x256x256xf32>
    %316 = vector.shape_cast %315 : vector<1x256x256xf32> to vector<256x256xf32>
    %cst_184 = arith.constant dense<0.000000e+00> : vector<8x256xf32>
    %317 = tpu.matmul %310, %316, %cst_184 {dimension_numbers = #tpu.dot_dimension_numbers<[1], [0], [0], [1], [0, 0, 1, 1], [], []>} : vector<8x256xf32>, vector<256x256xf32>, vector<8x256xf32> -> vector<8x256xf32>
    %318 = arith.addf %314, %317 : vector<8x256xf32>
    %cst_185 = arith.constant 0.000000e+00 : f32
    %319 = vector.broadcast %cst_185 : f32 to vector<8x256xf32>
    %320 = arith.maximumf %318, %319 : vector<8x256xf32>
    %321 = tpu.iota {dimensions = array<i32: 0>} : vector<4x8xi32>
    %322 = tpu.iota {dimensions = array<i32: 1>} : vector<4x8xi32>
    %c2_i32_186 = arith.constant 2 : i32
    %323 = vector.broadcast %c2_i32_186 : i32 to vector<4x8xi32>
    %324 = arith.muli %323, %321 : vector<4x8xi32>
    %325 = arith.cmpi eq, %322, %324 : vector<4x8xi32>
    %cst_187 = arith.constant 1.000000e+00 : f32
    %cst_188 = arith.constant 0.000000e+00 : f32
    %326 = vector.broadcast %cst_187 : f32 to vector<4x8xf32>
    %327 = vector.broadcast %cst_188 : f32 to vector<4x8xf32>
    %328 = arith.select %325, %326, %327 : vector<4x8xi1>, vector<4x8xf32>
    %c2_i32_189 = arith.constant 2 : i32
    %329 = vector.broadcast %c2_i32_189 : i32 to vector<4x8xi32>
    %330 = arith.muli %329, %321 : vector<4x8xi32>
    %c1_i32_190 = arith.constant 1 : i32
    %331 = vector.broadcast %c1_i32_190 : i32 to vector<4x8xi32>
    %332 = arith.addi %330, %331 : vector<4x8xi32>
    %333 = arith.cmpi eq, %322, %332 : vector<4x8xi32>
    %cst_191 = arith.constant 1.000000e+00 : f32
    %cst_192 = arith.constant 0.000000e+00 : f32
    %334 = vector.broadcast %cst_191 : f32 to vector<4x8xf32>
    %335 = vector.broadcast %cst_192 : f32 to vector<4x8xf32>
    %336 = arith.select %333, %334, %335 : vector<4x8xi1>, vector<4x8xf32>
    %cst_193 = arith.constant dense<0.000000e+00> : vector<4x256xf32>
    %337 = tpu.matmul %328, %320, %cst_193 {dimension_numbers = #tpu.dot_dimension_numbers<[1], [0], [0], [1], [0, 0, 1, 1], [], []>} : vector<4x8xf32>, vector<8x256xf32>, vector<4x256xf32> -> vector<4x256xf32>
    %cst_194 = arith.constant dense<0.000000e+00> : vector<4x256xf32>
    %338 = tpu.matmul %336, %320, %cst_194 {dimension_numbers = #tpu.dot_dimension_numbers<[1], [0], [0], [1], [0, 0, 1, 1], [], []>} : vector<4x8xf32>, vector<8x256xf32>, vector<4x256xf32> -> vector<4x256xf32>
    %339 = arith.maximumf %337, %338 : vector<4x256xf32>
    %c1_195 = arith.constant 1 : index
    %c0_196 = arith.constant 0 : index
    %c0_197 = arith.constant 0 : index
    %340 = vector.load %arg13[%c1_195, %c0_196, %c0_197] : memref<3x256x512xf32, #tpu.memory_space<vmem>>, vector<1x256x512xf32>
    %341 = vector.shape_cast %340 : vector<1x256x512xf32> to vector<256x512xf32>
    %cst_198 = arith.constant dense<0.000000e+00> : vector<4x512xf32>
    %342 = tpu.matmul %339, %341, %cst_198 {dimension_numbers = #tpu.dot_dimension_numbers<[1], [0], [0], [1], [0, 0, 1, 1], [], []>} : vector<4x256xf32>, vector<256x512xf32>, vector<4x512xf32> -> vector<4x512xf32>
    %c0_199 = arith.constant 0 : index
    %c0_200 = arith.constant 0 : index
    %343 = vector.load %arg14[%c0_199, %c0_200] : memref<1x512xf32, #tpu.memory_space<vmem>>, vector<1x512xf32>
    %344 = vector.broadcast %343 : vector<1x512xf32> to vector<4x512xf32>
    %345 = arith.addf %342, %344 : vector<4x512xf32>
    %346 = tpu.iota {dimensions = array<i32: 0>} : vector<4x4xi32>
    %347 = tpu.iota {dimensions = array<i32: 1>} : vector<4x4xi32>
    %c1_i32_201 = arith.constant 1 : i32
    %348 = vector.broadcast %c1_i32_201 : i32 to vector<4x4xi32>
    %349 = arith.subi %346, %348 : vector<4x4xi32>
    %350 = arith.cmpi eq, %347, %349 : vector<4x4xi32>
    %c2_i32_202 = arith.constant 2 : i32
    %c0_i32_203 = arith.constant 0 : i32
    %351 = arith.cmpi eq, %c2_i32_202, %c0_i32_203 : i32
    %c1_i32_204 = arith.constant 1 : i32
    %352 = arith.select %351, %c1_i32_204, %c2_i32_202 : i32
    %353 = vector.broadcast %352 : i32 to vector<4x4xi32>
    %354 = arith.remsi %346, %353 : vector<4x4xi32>
    %c0_i32_205 = arith.constant 0 : i32
    %355 = vector.broadcast %c0_i32_205 : i32 to vector<4x4xi32>
    %356 = arith.cmpi ne, %354, %355 : vector<4x4xi32>
    %c0_i32_206 = arith.constant 0 : i32
    %357 = vector.broadcast %c0_i32_206 : i32 to vector<4x4xi32>
    %358 = arith.cmpi slt, %354, %357 : vector<4x4xi32>
    %c0_i32_207 = arith.constant 0 : i32
    %359 = arith.cmpi slt, %352, %c0_i32_207 : i32
    %360 = vector.broadcast %359 : i1 to vector<4x4xi1>
    %361 = vector.broadcast %360 : vector<4x4xi1> to vector<4x4xi1>
    %362 = arith.xori %358, %361 : vector<4x4xi1>
    %363 = arith.andi %362, %356 : vector<4x4xi1>
    %364 = vector.broadcast %352 : i32 to vector<4x4xi32>
    %365 = arith.addi %354, %364 : vector<4x4xi32>
    %366 = arith.select %363, %365, %354 : vector<4x4xi1>, vector<4x4xi32>
    %c0_i32_208 = arith.constant 0 : i32
    %367 = vector.broadcast %c0_i32_208 : i32 to vector<4x4xi32>
    %368 = arith.cmpi ne, %366, %367 : vector<4x4xi32>
    %369 = arith.andi %350, %368 : vector<4x4xi1>
    %cst_209 = arith.constant 1.000000e+00 : f32
    %cst_210 = arith.constant 0.000000e+00 : f32
    %370 = vector.broadcast %cst_209 : f32 to vector<4x4xf32>
    %371 = vector.broadcast %cst_210 : f32 to vector<4x4xf32>
    %372 = arith.select %369, %370, %371 : vector<4x4xi1>, vector<4x4xf32>
    %c1_i32_211 = arith.constant 1 : i32
    %373 = vector.broadcast %c1_i32_211 : i32 to vector<4x4xi32>
    %374 = arith.addi %346, %373 : vector<4x4xi32>
    %375 = arith.cmpi eq, %347, %374 : vector<4x4xi32>
    %c2_i32_212 = arith.constant 2 : i32
    %c0_i32_213 = arith.constant 0 : i32
    %376 = arith.cmpi eq, %c2_i32_212, %c0_i32_213 : i32
    %c1_i32_214 = arith.constant 1 : i32
    %377 = arith.select %376, %c1_i32_214, %c2_i32_212 : i32
    %378 = vector.broadcast %377 : i32 to vector<4x4xi32>
    %379 = arith.remsi %346, %378 : vector<4x4xi32>
    %c0_i32_215 = arith.constant 0 : i32
    %380 = vector.broadcast %c0_i32_215 : i32 to vector<4x4xi32>
    %381 = arith.cmpi ne, %379, %380 : vector<4x4xi32>
    %c0_i32_216 = arith.constant 0 : i32
    %382 = vector.broadcast %c0_i32_216 : i32 to vector<4x4xi32>
    %383 = arith.cmpi slt, %379, %382 : vector<4x4xi32>
    %c0_i32_217 = arith.constant 0 : i32
    %384 = arith.cmpi slt, %377, %c0_i32_217 : i32
    %385 = vector.broadcast %384 : i1 to vector<4x4xi1>
    %386 = vector.broadcast %385 : vector<4x4xi1> to vector<4x4xi1>
    %387 = arith.xori %383, %386 : vector<4x4xi1>
    %388 = arith.andi %387, %381 : vector<4x4xi1>
    %389 = vector.broadcast %377 : i32 to vector<4x4xi32>
    %390 = arith.addi %379, %389 : vector<4x4xi32>
    %391 = arith.select %388, %390, %379 : vector<4x4xi1>, vector<4x4xi32>
    %c1_i32_218 = arith.constant 1 : i32
    %392 = vector.broadcast %c1_i32_218 : i32 to vector<4x4xi32>
    %393 = arith.cmpi ne, %391, %392 : vector<4x4xi32>
    %394 = arith.andi %375, %393 : vector<4x4xi1>
    %cst_219 = arith.constant 1.000000e+00 : f32
    %cst_220 = arith.constant 0.000000e+00 : f32
    %395 = vector.broadcast %cst_219 : f32 to vector<4x4xf32>
    %396 = vector.broadcast %cst_220 : f32 to vector<4x4xf32>
    %397 = arith.select %394, %395, %396 : vector<4x4xi1>, vector<4x4xf32>
    %cst_221 = arith.constant dense<0.000000e+00> : vector<4x256xf32>
    %398 = tpu.matmul %372, %339, %cst_221 {dimension_numbers = #tpu.dot_dimension_numbers<[1], [0], [0], [1], [0, 0, 1, 1], [], []>} : vector<4x4xf32>, vector<4x256xf32>, vector<4x256xf32> -> vector<4x256xf32>
    %cst_222 = arith.constant dense<0.000000e+00> : vector<4x256xf32>
    %399 = tpu.matmul %397, %339, %cst_222 {dimension_numbers = #tpu.dot_dimension_numbers<[1], [0], [0], [1], [0, 0, 1, 1], [], []>} : vector<4x4xf32>, vector<4x256xf32>, vector<4x256xf32> -> vector<4x256xf32>
    %c0_223 = arith.constant 0 : index
    %c0_224 = arith.constant 0 : index
    %c0_225 = arith.constant 0 : index
    %400 = vector.load %arg13[%c0_223, %c0_224, %c0_225] : memref<3x256x512xf32, #tpu.memory_space<vmem>>, vector<1x256x512xf32>
    %401 = vector.shape_cast %400 : vector<1x256x512xf32> to vector<256x512xf32>
    %cst_226 = arith.constant dense<0.000000e+00> : vector<4x512xf32>
    %402 = tpu.matmul %398, %401, %cst_226 {dimension_numbers = #tpu.dot_dimension_numbers<[1], [0], [0], [1], [0, 0, 1, 1], [], []>} : vector<4x256xf32>, vector<256x512xf32>, vector<4x512xf32> -> vector<4x512xf32>
    %403 = arith.addf %345, %402 : vector<4x512xf32>
    %c2_227 = arith.constant 2 : index
    %c0_228 = arith.constant 0 : index
    %c0_229 = arith.constant 0 : index
    %404 = vector.load %arg13[%c2_227, %c0_228, %c0_229] : memref<3x256x512xf32, #tpu.memory_space<vmem>>, vector<1x256x512xf32>
    %405 = vector.shape_cast %404 : vector<1x256x512xf32> to vector<256x512xf32>
    %cst_230 = arith.constant dense<0.000000e+00> : vector<4x512xf32>
    %406 = tpu.matmul %399, %405, %cst_230 {dimension_numbers = #tpu.dot_dimension_numbers<[1], [0], [0], [1], [0, 0, 1, 1], [], []>} : vector<4x256xf32>, vector<256x512xf32>, vector<4x512xf32> -> vector<4x512xf32>
    %407 = arith.addf %403, %406 : vector<4x512xf32>
    %cst_231 = arith.constant 0.000000e+00 : f32
    %408 = vector.broadcast %cst_231 : f32 to vector<4x512xf32>
    %409 = arith.maximumf %407, %408 : vector<4x512xf32>
    %c1_232 = arith.constant 1 : index
    %c0_233 = arith.constant 0 : index
    %c0_234 = arith.constant 0 : index
    %410 = vector.load %arg15[%c1_232, %c0_233, %c0_234] : memref<3x512x512xf32, #tpu.memory_space<vmem>>, vector<1x512x512xf32>
    %411 = vector.shape_cast %410 : vector<1x512x512xf32> to vector<512x512xf32>
    %cst_235 = arith.constant dense<0.000000e+00> : vector<4x512xf32>
    %412 = tpu.matmul %409, %411, %cst_235 {dimension_numbers = #tpu.dot_dimension_numbers<[1], [0], [0], [1], [0, 0, 1, 1], [], []>} : vector<4x512xf32>, vector<512x512xf32>, vector<4x512xf32> -> vector<4x512xf32>
    %c0_236 = arith.constant 0 : index
    %c0_237 = arith.constant 0 : index
    %413 = vector.load %arg16[%c0_236, %c0_237] : memref<1x512xf32, #tpu.memory_space<vmem>>, vector<1x512xf32>
    %414 = vector.broadcast %413 : vector<1x512xf32> to vector<4x512xf32>
    %415 = arith.addf %412, %414 : vector<4x512xf32>
    %cst_238 = arith.constant dense<0.000000e+00> : vector<4x512xf32>
    %416 = tpu.matmul %372, %409, %cst_238 {dimension_numbers = #tpu.dot_dimension_numbers<[1], [0], [0], [1], [0, 0, 1, 1], [], []>} : vector<4x4xf32>, vector<4x512xf32>, vector<4x512xf32> -> vector<4x512xf32>
    %cst_239 = arith.constant dense<0.000000e+00> : vector<4x512xf32>
    %417 = tpu.matmul %397, %409, %cst_239 {dimension_numbers = #tpu.dot_dimension_numbers<[1], [0], [0], [1], [0, 0, 1, 1], [], []>} : vector<4x4xf32>, vector<4x512xf32>, vector<4x512xf32> -> vector<4x512xf32>
    %c0_240 = arith.constant 0 : index
    %c0_241 = arith.constant 0 : index
    %c0_242 = arith.constant 0 : index
    %418 = vector.load %arg15[%c0_240, %c0_241, %c0_242] : memref<3x512x512xf32, #tpu.memory_space<vmem>>, vector<1x512x512xf32>
    %419 = vector.shape_cast %418 : vector<1x512x512xf32> to vector<512x512xf32>
    %cst_243 = arith.constant dense<0.000000e+00> : vector<4x512xf32>
    %420 = tpu.matmul %416, %419, %cst_243 {dimension_numbers = #tpu.dot_dimension_numbers<[1], [0], [0], [1], [0, 0, 1, 1], [], []>} : vector<4x512xf32>, vector<512x512xf32>, vector<4x512xf32> -> vector<4x512xf32>
    %421 = arith.addf %415, %420 : vector<4x512xf32>
    %c2_244 = arith.constant 2 : index
    %c0_245 = arith.constant 0 : index
    %c0_246 = arith.constant 0 : index
    %422 = vector.load %arg15[%c2_244, %c0_245, %c0_246] : memref<3x512x512xf32, #tpu.memory_space<vmem>>, vector<1x512x512xf32>
    %423 = vector.shape_cast %422 : vector<1x512x512xf32> to vector<512x512xf32>
    %cst_247 = arith.constant dense<0.000000e+00> : vector<4x512xf32>
    %424 = tpu.matmul %417, %423, %cst_247 {dimension_numbers = #tpu.dot_dimension_numbers<[1], [0], [0], [1], [0, 0, 1, 1], [], []>} : vector<4x512xf32>, vector<512x512xf32>, vector<4x512xf32> -> vector<4x512xf32>
    %425 = arith.addf %421, %424 : vector<4x512xf32>
    %cst_248 = arith.constant 0.000000e+00 : f32
    %426 = vector.broadcast %cst_248 : f32 to vector<4x512xf32>
    %427 = arith.maximumf %425, %426 : vector<4x512xf32>
    %c1_249 = arith.constant 1 : index
    %c0_250 = arith.constant 0 : index
    %c0_251 = arith.constant 0 : index
    %428 = vector.load %arg15[%c1_249, %c0_250, %c0_251] : memref<3x512x512xf32, #tpu.memory_space<vmem>>, vector<1x512x512xf32>
    %429 = vector.shape_cast %428 : vector<1x512x512xf32> to vector<512x512xf32>
    %cst_252 = arith.constant dense<0.000000e+00> : vector<4x512xf32>
    %430 = tpu.matmul %427, %429, %cst_252 {dimension_numbers = #tpu.dot_dimension_numbers<[1], [0], [0], [1], [0, 0, 1, 1], [], []>} : vector<4x512xf32>, vector<512x512xf32>, vector<4x512xf32> -> vector<4x512xf32>
    %c0_253 = arith.constant 0 : index
    %c0_254 = arith.constant 0 : index
    %431 = vector.load %arg16[%c0_253, %c0_254] : memref<1x512xf32, #tpu.memory_space<vmem>>, vector<1x512xf32>
    %432 = vector.broadcast %431 : vector<1x512xf32> to vector<4x512xf32>
    %433 = arith.addf %430, %432 : vector<4x512xf32>
    %cst_255 = arith.constant dense<0.000000e+00> : vector<4x512xf32>
    %434 = tpu.matmul %372, %427, %cst_255 {dimension_numbers = #tpu.dot_dimension_numbers<[1], [0], [0], [1], [0, 0, 1, 1], [], []>} : vector<4x4xf32>, vector<4x512xf32>, vector<4x512xf32> -> vector<4x512xf32>
    %cst_256 = arith.constant dense<0.000000e+00> : vector<4x512xf32>
    %435 = tpu.matmul %397, %427, %cst_256 {dimension_numbers = #tpu.dot_dimension_numbers<[1], [0], [0], [1], [0, 0, 1, 1], [], []>} : vector<4x4xf32>, vector<4x512xf32>, vector<4x512xf32> -> vector<4x512xf32>
    %c0_257 = arith.constant 0 : index
    %c0_258 = arith.constant 0 : index
    %c0_259 = arith.constant 0 : index
    %436 = vector.load %arg15[%c0_257, %c0_258, %c0_259] : memref<3x512x512xf32, #tpu.memory_space<vmem>>, vector<1x512x512xf32>
    %437 = vector.shape_cast %436 : vector<1x512x512xf32> to vector<512x512xf32>
    %cst_260 = arith.constant dense<0.000000e+00> : vector<4x512xf32>
    %438 = tpu.matmul %434, %437, %cst_260 {dimension_numbers = #tpu.dot_dimension_numbers<[1], [0], [0], [1], [0, 0, 1, 1], [], []>} : vector<4x512xf32>, vector<512x512xf32>, vector<4x512xf32> -> vector<4x512xf32>
    %439 = arith.addf %433, %438 : vector<4x512xf32>
    %c2_261 = arith.constant 2 : index
    %c0_262 = arith.constant 0 : index
    %c0_263 = arith.constant 0 : index
    %440 = vector.load %arg15[%c2_261, %c0_262, %c0_263] : memref<3x512x512xf32, #tpu.memory_space<vmem>>, vector<1x512x512xf32>
    %441 = vector.shape_cast %440 : vector<1x512x512xf32> to vector<512x512xf32>
    %cst_264 = arith.constant dense<0.000000e+00> : vector<4x512xf32>
    %442 = tpu.matmul %435, %441, %cst_264 {dimension_numbers = #tpu.dot_dimension_numbers<[1], [0], [0], [1], [0, 0, 1, 1], [], []>} : vector<4x512xf32>, vector<512x512xf32>, vector<4x512xf32> -> vector<4x512xf32>
    %443 = arith.addf %439, %442 : vector<4x512xf32>
    %cst_265 = arith.constant 0.000000e+00 : f32
    %444 = vector.broadcast %cst_265 : f32 to vector<4x512xf32>
    %445 = arith.maximumf %443, %444 : vector<4x512xf32>
    %446 = tpu.iota {dimensions = array<i32: 0>} : vector<2x4xi32>
    %447 = tpu.iota {dimensions = array<i32: 1>} : vector<2x4xi32>
    %c2_i32_266 = arith.constant 2 : i32
    %448 = vector.broadcast %c2_i32_266 : i32 to vector<2x4xi32>
    %449 = arith.muli %448, %446 : vector<2x4xi32>
    %450 = arith.cmpi eq, %447, %449 : vector<2x4xi32>
    %cst_267 = arith.constant 1.000000e+00 : f32
    %cst_268 = arith.constant 0.000000e+00 : f32
    %451 = vector.broadcast %cst_267 : f32 to vector<2x4xf32>
    %452 = vector.broadcast %cst_268 : f32 to vector<2x4xf32>
    %453 = arith.select %450, %451, %452 : vector<2x4xi1>, vector<2x4xf32>
    %c2_i32_269 = arith.constant 2 : i32
    %454 = vector.broadcast %c2_i32_269 : i32 to vector<2x4xi32>
    %455 = arith.muli %454, %446 : vector<2x4xi32>
    %c1_i32_270 = arith.constant 1 : i32
    %456 = vector.broadcast %c1_i32_270 : i32 to vector<2x4xi32>
    %457 = arith.addi %455, %456 : vector<2x4xi32>
    %458 = arith.cmpi eq, %447, %457 : vector<2x4xi32>
    %cst_271 = arith.constant 1.000000e+00 : f32
    %cst_272 = arith.constant 0.000000e+00 : f32
    %459 = vector.broadcast %cst_271 : f32 to vector<2x4xf32>
    %460 = vector.broadcast %cst_272 : f32 to vector<2x4xf32>
    %461 = arith.select %458, %459, %460 : vector<2x4xi1>, vector<2x4xf32>
    %cst_273 = arith.constant dense<0.000000e+00> : vector<2x512xf32>
    %462 = tpu.matmul %453, %445, %cst_273 {dimension_numbers = #tpu.dot_dimension_numbers<[1], [0], [0], [1], [0, 0, 1, 1], [], []>} : vector<2x4xf32>, vector<4x512xf32>, vector<2x512xf32> -> vector<2x512xf32>
    %cst_274 = arith.constant dense<0.000000e+00> : vector<2x512xf32>
    %463 = tpu.matmul %461, %445, %cst_274 {dimension_numbers = #tpu.dot_dimension_numbers<[1], [0], [0], [1], [0, 0, 1, 1], [], []>} : vector<2x4xf32>, vector<4x512xf32>, vector<2x512xf32> -> vector<2x512xf32>
    %464 = arith.maximumf %462, %463 : vector<2x512xf32>
    %c1_275 = arith.constant 1 : index
    %c0_276 = arith.constant 0 : index
    %c0_277 = arith.constant 0 : index
    %465 = vector.load %arg15[%c1_275, %c0_276, %c0_277] : memref<3x512x512xf32, #tpu.memory_space<vmem>>, vector<1x512x512xf32>
    %466 = vector.shape_cast %465 : vector<1x512x512xf32> to vector<512x512xf32>
    %cst_278 = arith.constant dense<0.000000e+00> : vector<2x512xf32>
    %467 = tpu.matmul %464, %466, %cst_278 {dimension_numbers = #tpu.dot_dimension_numbers<[1], [0], [0], [1], [0, 0, 1, 1], [], []>} : vector<2x512xf32>, vector<512x512xf32>, vector<2x512xf32> -> vector<2x512xf32>
    %c0_279 = arith.constant 0 : index
    %c0_280 = arith.constant 0 : index
    %468 = vector.load %arg16[%c0_279, %c0_280] : memref<1x512xf32, #tpu.memory_space<vmem>>, vector<1x512xf32>
    %469 = vector.broadcast %468 : vector<1x512xf32> to vector<2x512xf32>
    %470 = arith.addf %467, %469 : vector<2x512xf32>
    %cst_281 = arith.constant 0.000000e+00 : f32
    %471 = vector.broadcast %cst_281 : f32 to vector<2x512xf32>
    %472 = arith.maximumf %470, %471 : vector<2x512xf32>
    %c1_282 = arith.constant 1 : index
    %c0_283 = arith.constant 0 : index
    %c0_284 = arith.constant 0 : index
    %473 = vector.load %arg15[%c1_282, %c0_283, %c0_284] : memref<3x512x512xf32, #tpu.memory_space<vmem>>, vector<1x512x512xf32>
    %474 = vector.shape_cast %473 : vector<1x512x512xf32> to vector<512x512xf32>
    %cst_285 = arith.constant dense<0.000000e+00> : vector<2x512xf32>
    %475 = tpu.matmul %472, %474, %cst_285 {dimension_numbers = #tpu.dot_dimension_numbers<[1], [0], [0], [1], [0, 0, 1, 1], [], []>} : vector<2x512xf32>, vector<512x512xf32>, vector<2x512xf32> -> vector<2x512xf32>
    %c0_286 = arith.constant 0 : index
    %c0_287 = arith.constant 0 : index
    %476 = vector.load %arg16[%c0_286, %c0_287] : memref<1x512xf32, #tpu.memory_space<vmem>>, vector<1x512xf32>
    %477 = vector.broadcast %476 : vector<1x512xf32> to vector<2x512xf32>
    %478 = arith.addf %475, %477 : vector<2x512xf32>
    %cst_288 = arith.constant 0.000000e+00 : f32
    %479 = vector.broadcast %cst_288 : f32 to vector<2x512xf32>
    %480 = arith.maximumf %478, %479 : vector<2x512xf32>
    %c1_289 = arith.constant 1 : index
    %c0_290 = arith.constant 0 : index
    %c0_291 = arith.constant 0 : index
    %481 = vector.load %arg15[%c1_289, %c0_290, %c0_291] : memref<3x512x512xf32, #tpu.memory_space<vmem>>, vector<1x512x512xf32>
    %482 = vector.shape_cast %481 : vector<1x512x512xf32> to vector<512x512xf32>
    %cst_292 = arith.constant dense<0.000000e+00> : vector<2x512xf32>
    %483 = tpu.matmul %480, %482, %cst_292 {dimension_numbers = #tpu.dot_dimension_numbers<[1], [0], [0], [1], [0, 0, 1, 1], [], []>} : vector<2x512xf32>, vector<512x512xf32>, vector<2x512xf32> -> vector<2x512xf32>
    %c0_293 = arith.constant 0 : index
    %c0_294 = arith.constant 0 : index
    %484 = vector.load %arg16[%c0_293, %c0_294] : memref<1x512xf32, #tpu.memory_space<vmem>>, vector<1x512xf32>
    %485 = vector.broadcast %484 : vector<1x512xf32> to vector<2x512xf32>
    %486 = arith.addf %483, %485 : vector<2x512xf32>
    %cst_295 = arith.constant 0.000000e+00 : f32
    %487 = vector.broadcast %cst_295 : f32 to vector<2x512xf32>
    %488 = arith.maximumf %486, %487 : vector<2x512xf32>
    %c0_296 = arith.constant 0 : index
    %c0_297 = arith.constant 0 : index
    %489 = vector.load %arg17[%c0_296, %c0_297] : memref<512x128xf32, #tpu.memory_space<vmem>>, vector<512x128xf32>
    %cst_298 = arith.constant dense<0.000000e+00> : vector<2x128xf32>
    %490 = tpu.matmul %488, %489, %cst_298 {dimension_numbers = #tpu.dot_dimension_numbers<[1], [0], [0], [1], [0, 0, 1, 1], [], []>} : vector<2x512xf32>, vector<512x128xf32>, vector<2x128xf32> -> vector<2x128xf32>
    %c0_299 = arith.constant 0 : index
    %c0_300 = arith.constant 0 : index
    %491 = vector.load %arg18[%c0_299, %c0_300] : memref<1x128xf32, #tpu.memory_space<vmem>>, vector<1x128xf32>
    %492 = vector.broadcast %491 : vector<1x128xf32> to vector<2x128xf32>
    %493 = arith.addf %490, %492 : vector<2x128xf32>
    %cst_301 = arith.constant 0.000000e+00 : f32
    %494 = vector.broadcast %cst_301 : f32 to vector<2x128xf32>
    %495 = arith.maximumf %493, %494 : vector<2x128xf32>
    %c0_302 = arith.constant 0 : index
    %c0_303 = arith.constant 0 : index
    %496 = vector.load %arg19[%c0_302, %c0_303] : memref<128x32xf32, #tpu.memory_space<vmem>>, vector<128x32xf32>
    %cst_304 = arith.constant dense<0.000000e+00> : vector<2x32xf32>
    %497 = tpu.matmul %495, %496, %cst_304 {dimension_numbers = #tpu.dot_dimension_numbers<[1], [0], [0], [1], [0, 0, 1, 1], [], []>} : vector<2x128xf32>, vector<128x32xf32>, vector<2x32xf32> -> vector<2x32xf32>
    %c0_305 = arith.constant 0 : index
    %c0_306 = arith.constant 0 : index
    %498 = vector.load %arg20[%c0_305, %c0_306] : memref<1x32xf32, #tpu.memory_space<vmem>>, vector<1x32xf32>
    %499 = vector.broadcast %498 : vector<1x32xf32> to vector<2x32xf32>
    %500 = arith.addf %497, %499 : vector<2x32xf32>
    %cst_307 = arith.constant 0.000000e+00 : f32
    %501 = vector.broadcast %cst_307 : f32 to vector<2x32xf32>
    %502 = arith.maximumf %500, %501 : vector<2x32xf32>
    %c0_308 = arith.constant 0 : index
    %c0_309 = arith.constant 0 : index
    %503 = vector.load %arg21[%c0_308, %c0_309] : memref<32x1xf32, #tpu.memory_space<vmem>>, vector<32x1xf32>
    %cst_310 = arith.constant dense<0.000000e+00> : vector<2x1xf32>
    %504 = tpu.matmul %502, %503, %cst_310 {dimension_numbers = #tpu.dot_dimension_numbers<[1], [0], [0], [1], [0, 0, 1, 1], [], []>} : vector<2x32xf32>, vector<32x1xf32>, vector<2x1xf32> -> vector<2x1xf32>
    %c0_311 = arith.constant 0 : index
    %c0_312 = arith.constant 0 : index
    %505 = vector.load %arg22[%c0_311, %c0_312] : memref<1x1xf32, #tpu.memory_space<vmem>>, vector<1x1xf32>
    %506 = vector.broadcast %505 : vector<1x1xf32> to vector<2x1xf32>
    %507 = arith.addf %504, %506 : vector<2x1xf32>
    %cst_313 = arith.constant 0.000000e+00 : f32
    %508 = vector.broadcast %cst_313 : f32 to vector<2x1xf32>
    %509 = arith.maximumf %507, %508 : vector<2x1xf32>
    %c0_314 = arith.constant 0 : index
    %c0_315 = arith.constant 0 : index
    %510 = vector.load %arg23[%c0_314, %c0_315] : memref<2x1xf32, #tpu.memory_space<vmem>>, vector<2x1xf32>
    tpu.vector_store %arg23[%c0_314, %c0_315], %509 {strides = array<i32>} : memref<2x1xf32, #tpu.memory_space<vmem>>, vector<2x1xf32>,
    return
  }
}

</mosaic_0001>

<bundles_post_ra>
// kernel: vnet_forward.1
= control target key start
LH: loop header
LB: loop body
LE: loop exit
PB: predicated region body
PF: predicated region fallthrough
CT: control target
= control target key end

     0   :  { %s18262_s0 = inlined_call_operand.vmem [shape: f32[32,4], index: 0, kind: input, shape index: {}]   ;;  %s18263_s1 = inlined_call_operand.hbm [shape: f32[3,4,64], index: 1, kind: input, shape index: {}]   ;;  %s18264_s2 = inlined_call_operand.hbm [shape: f32[1,64], index: 2, kind: input, shape index: {}]   ;;  %s18265_s3 = inlined_call_operand.hbm [shape: f32[3,64,64], index: 3, kind: input, shape index: {}]   ;;  %s18266_s4 = inlined_call_operand.hbm [shape: f32[1,64], index: 4, kind: input, shape index: {}]   ;;  %s18267_s5 = inlined_call_operand.hbm [shape: f32[3,64,128], index: 5, kind: input, shape index: {}]   ;;  %s18268_s6 = inlined_call_operand.hbm [shape: f32[1,128], index: 6, kind: input, shape index: {}]   ;;  %s18269_s7 = inlined_call_operand.hbm [shape: f32[3,128,128], index: 7, kind: input, shape index: {}]   ;;  %s18270_s8 = inlined_call_operand.hbm [shape: f32[1,128], index: 8, kind: input, shape index: {}]   ;;  %s18271_s9 = inlined_call_operand.hbm [shape: f32[3,128,256], index: 9, kind: input, shape index: {}]   ;;  %s18272_s10 = inlined_call_operand.hbm [shape: f32[1,256], index: 10, kind: input, shape index: {}]   ;;  %s18273_s11 = inlined_call_operand.hbm [shape: f32[3,256,256], index: 11, kind: input, shape index: {}]   ;;  %s18274_s12 = inlined_call_operand.hbm [shape: f32[1,256], index: 12, kind: input, shape index: {}]   ;;  %s18275_s13 = inlined_call_operand.hbm [shape: f32[3,256,512], index: 13, kind: input, shape index: {}]   ;;  %s18276_s14 = inlined_call_operand.hbm [shape: f32[1,512], index: 14, kind: input, shape index: {}]   ;;  %s18277_s15 = inlined_call_operand.hbm [shape: f32[3,512,512], index: 15, kind: input, shape index: {}]   ;;  %s18278_s16 = inlined_call_operand.hbm [shape: f32[1,512], index: 16, kind: input, shape index: {}]   ;;  %s18279_s17 = inlined_call_operand.hbm [shape: f32[512,128], index: 17, kind: input, shape index: {}]   ;;  %s18280_s18 = inlined_call_operand.hbm [shape: f32[1,128], index: 18, kind: input, shape index: {}]   ;;  %s18281_s19 = inlined_call_operand.vmem [shape: f32[128,32], index: 19, kind: input, shape index: {}]   ;;  %s18282_s20 = inlined_call_operand.hbm [shape: f32[1,32], index: 20, kind: input, shape index: {}]   ;;  %s18283_s21 = inlined_call_operand.vmem [shape: f32[32,1], index: 21, kind: input, shape index: {}]   ;;  %s18284_s22 = inlined_call_operand.<no memory space> [shape: f32[1,1], index: 22, kind: input, shape index: {}]   ;;  %s18285_s23 = inlined_call_operand.vmem [shape: f32[2,1], index: 23, kind: output, shape index: {}]  }
   0x1   :  { %18829 = sst [smem:[#allocation402_spill]] %s18262_s0  ;;  %v28_v0 = vstv %s18284_s22 }
   0x2   :  { %18830 = sst [smem:[#allocation403_spill]] %s18263_s1  ;;  %29 = vst [vmem:[#allocation2] sm:$0x1] %v28_v0 }
   0x3   :  { %18831 = sst [smem:[#allocation404_spill]] %s18264_s2 }
   0x4   :  { %18832 = sst [smem:[#allocation405_spill]] %s18265_s3 }
   0x5   :  { %18833 = sst [smem:[#allocation406_spill]] %s18266_s4 }
   0x6   :  { %18834 = sst [smem:[#allocation407_spill]] %s18267_s5 }
   0x7   :  { %18835 = sst [smem:[#allocation408_spill]] %s18268_s6 }
   0x8   :  { %18836 = sst [smem:[#allocation409_spill]] %s18269_s7 }
   0x9   :  { %30 = vsyncpa [#allocation4], 0 }
   0xa   :  { %31 = vsyncpa [#allocation6], 0 }
   0xb   :  { %32 = vsyncpa [#allocation9], 0 }
   0xc   :  { %33 = vsyncpa [#allocation12], 0 }
   0xd   :  { %34 = vsyncpa [#allocation15], 0 }
   0xe   :  { %35 = vsyncpa [#allocation18], 0 }
   0xf   :  { %36 = vsyncpa [#allocation21], 0 }
  0x10   :  { %37 = vsyncpa [#allocation24], 0 }
  0x11   :  { %38 = vsyncpa [#allocation27], 0 }
  0x12   :  { %39 = vsyncpa [#allocation30], 0  ;;  %s14935_s24 = smov [#allocation5]   ;;  %s14936_s5 = smov [#allocation8]  }
  0x13   :  { %s60_s25 = sshll.u32 %s14935_s24, 4  ;;  %s82_s1 = sshll.u32 %s14936_s5, 4  ;;  %s61_s25 = int_to_ptr.vmem [resolvable:$true] %s60_s25  ;;  %s83_s1 = int_to_ptr.vmem [resolvable:$true] %s82_s1 }
  0x14   :  { %s18837_s22 = sld [smem:[#allocation404_spill]] }
  0x1a   :  { %s14497_s6 = scalar_lea.hbm %s18837_s22, 16 }
  0x1b   :  { %p14498_p0 = scmp.ne.s32.totalorder %s18837_s22, %s14497_s6  ;;  %p14501_p1 = scmp.lt.u32.totalorder %s14497_s6, %s18837_s22 }
  0x1d   :  { %p14503_p2 = pnand %p14501_p1, %p14498_p0 }
  0x1f   :  { %14506 = shalt.err (!%p14503_p2)
}
  0x20   :  { %s14507_s3 = scalar_lea.vmem %s61_s25, 16  ;;  %s14511_s0 = scalar_lea.vmem %s61_s25, 32 }
  0x21   :  { %p14508_p3 = scmp.ne.s32.totalorder %s61_s25, %s14507_s3  ;;  %p14512_p4 = scmp.lt.s32.totalorder %s61_s25, %s61_s25 }
  0x22   :  { %p14513_p5 = scmp.lt.s32.totalorder %s14511_s0, %s14507_s3 }
  0x24   :  { %p14514_p6 = por %p14513_p5, %p14512_p4 }
  0x26   :  { %p14515_p7 = pnand %p14514_p6, %p14508_p3 }
  0x28   :  { %14518 = shalt.err (!%p14515_p7)
}
  0x29   :  { %63 = dma.hbm_to_vmem [thread:$0]  %s18837_s22, 16, %s61_s25, [#allocation6]  }
  0x2a   :  { %s18838_s26 = sld [smem:[#allocation406_spill]] }
  0x30   :  { %s14519_s2 = scalar_lea.hbm %s18838_s26, 16 }
  0x31   :  { %p14520_p8 = scmp.ne.s32.totalorder %s18838_s26, %s14519_s2  ;;  %p14523_p9 = scmp.lt.u32.totalorder %s14519_s2, %s18838_s26 }
  0x33   :  { %p14525_p10 = pnand %p14523_p9, %p14520_p8 }
  0x35   :  { %14528 = shalt.err (!%p14525_p10)
}
  0x36   :  { %s14529_s29 = scalar_lea.vmem %s83_s1, 16  ;;  %s14533_s3 = scalar_lea.vmem %s83_s1, 32 }
  0x37   :  { %p14530_p11 = scmp.ne.s32.totalorder %s83_s1, %s14529_s29  ;;  %p14534_p12 = scmp.lt.s32.totalorder %s83_s1, %s83_s1 }
  0x38   :  { %p14535_p13 = scmp.lt.s32.totalorder %s14533_s3, %s14529_s29 }
  0x3a   :  { %p14536_p0 = por %p14535_p13, %p14534_p12 }
  0x3c   :  { %p14537_p1 = pnand %p14536_p0, %p14530_p11 }
  0x3e   :  { %14540 = shalt.err (!%p14537_p1)
}
  0x3f   :  { %85 = dma.hbm_to_vmem [thread:$0]  %s18838_s26, 16, %s83_s1, [#allocation9]  }
  0x40   :  { %s14937_s0 = smov [#allocation11]   ;;  %s14938_s30 = smov [#allocation14]  }
  0x41   :  { %s104_s4 = sshll.u32 %s14937_s0, 4  ;;  %s126_s24 = sshll.u32 %s14938_s30, 4  ;;  %s105_s4 = int_to_ptr.vmem [resolvable:$true] %s104_s4  ;;  %s127_s24 = int_to_ptr.vmem [resolvable:$true] %s126_s24 }
  0x42   :  { %s18839_s27 = sld [smem:[#allocation408_spill]] }
  0x48   :  { %s14541_s6 = scalar_lea.hbm %s18839_s27, 16 }
  0x49   :  { %p14542_p2 = scmp.ne.s32.totalorder %s18839_s27, %s14541_s6  ;;  %p14545_p3 = scmp.lt.u32.totalorder %s14541_s6, %s18839_s27 }
  0x4b   :  { %p14547_p4 = pnand %p14545_p3, %p14542_p2 }
  0x4d   :  { %14550 = shalt.err (!%p14547_p4)
}
  0x4e   :  { %s14551_s1 = scalar_lea.vmem %s105_s4, 16  ;;  %s14555_s26 = scalar_lea.vmem %s105_s4, 32 }
  0x4f   :  { %p14552_p5 = scmp.ne.s32.totalorder %s105_s4, %s14551_s1  ;;  %p14556_p6 = scmp.lt.s32.totalorder %s105_s4, %s105_s4 }
  0x50   :  { %p14557_p7 = scmp.lt.s32.totalorder %s14555_s26, %s14551_s1 }
  0x52   :  { %p14558_p8 = por %p14557_p7, %p14556_p6 }
  0x54   :  { %p14559_p9 = pnand %p14558_p8, %p14552_p5 }
  0x56   :  { %14562 = shalt.err (!%p14559_p9)
}
  0x57   :  { %107 = dma.hbm_to_vmem [thread:$0]  %s18839_s27, 16, %s105_s4, [#allocation12]  }
  0x58   :  { %s14563_s5 = scalar_lea.hbm %s18270_s8, 16 }
  0x59   :  { %p14564_p10 = scmp.ne.s32.totalorder %s18270_s8, %s14563_s5  ;;  %p14567_p11 = scmp.lt.u32.totalorder %s14563_s5, %s18270_s8 }
  0x5b   :  { %p14569_p12 = pnand %p14567_p11, %p14564_p10 }
  0x5d   :  { %14572 = shalt.err (!%p14569_p12)
}
  0x5e   :  { %s14573_s29 = scalar_lea.vmem %s127_s24, 16  ;;  %s14577_s3 = scalar_lea.vmem %s127_s24, 32 }
  0x5f   :  { %p14574_p13 = scmp.ne.s32.totalorder %s127_s24, %s14573_s29  ;;  %p14578_p0 = scmp.lt.s32.totalorder %s127_s24, %s127_s24 }
  0x60   :  { %p14579_p1 = scmp.lt.s32.totalorder %s14577_s3, %s14573_s29 }
  0x62   :  { %p14580_p2 = por %p14579_p1, %p14578_p0 }
  0x64   :  { %p14581_p3 = pnand %p14580_p2, %p14574_p13 }
  0x66   :  { %14584 = shalt.err (!%p14581_p3)
}
  0x67   :  { %129 = dma.hbm_to_vmem [thread:$0]  %s18270_s8, 16, %s127_s24, [#allocation15]  }
  0x68   :  { %s14939_s1 = smov [#allocation17]   ;;  %s14940_s25 = smov [#allocation20]  }
  0x69   :  { %s148_s26 = sshll.u32 %s14939_s1, 4  ;;  %s170_s22 = sshll.u32 %s14940_s25, 4  ;;  %s149_s26 = int_to_ptr.vmem [resolvable:$true] %s148_s26  ;;  %s171_s22 = int_to_ptr.vmem [resolvable:$true] %s170_s22 }
  0x6a   :  { %s14585_s5 = scalar_lea.hbm %s18272_s10, 32 }
  0x6b   :  { %p14586_p4 = scmp.ne.s32.totalorder %s18272_s10, %s14585_s5  ;;  %p14589_p5 = scmp.lt.u32.totalorder %s14585_s5, %s18272_s10 }
  0x6d   :  { %p14591_p6 = pnand %p14589_p5, %p14586_p4 }
  0x6f   :  { %14594 = shalt.err (!%p14591_p6)
}
  0x70   :  { %s14595_s8 = scalar_lea.vmem %s149_s26, 32  ;;  %p14600_p8 = scmp.lt.s32.totalorder %s149_s26, %s149_s26 }
  0x71   :  { %p14596_p7 = scmp.ne.s32.totalorder %s149_s26, %s14595_s8  ;;  %p14601_p9 = scmp.lt.s32.totalorder %s14595_s8, %s14595_s8 }
  0x73   :  { %p14602_p10 = por %p14601_p9, %p14600_p8 }
  0x75   :  { %p14603_p11 = pnand %p14602_p10, %p14596_p7 }
  0x77   :  { %14606 = shalt.err (!%p14603_p11)
}
  0x78   :  { %151 = dma.hbm_to_vmem [thread:$0]  %s18272_s10, 32, %s149_s26, [#allocation18]  }
  0x79   :  { %s14607_s27 = scalar_lea.hbm %s18274_s12, 32 }
  0x7a   :  { %p14608_p12 = scmp.ne.s32.totalorder %s18274_s12, %s14607_s27  ;;  %p14611_p13 = scmp.lt.u32.totalorder %s14607_s27, %s18274_s12 }
  0x7c   :  { %p14613_p0 = pnand %p14611_p13, %p14608_p12 }
  0x7e   :  { %14616 = shalt.err (!%p14613_p0)
}
  0x7f   :  { %s14617_s5 = scalar_lea.vmem %s171_s22, 32  ;;  %p14622_p2 = scmp.lt.s32.totalorder %s171_s22, %s171_s22 }
  0x80   :  { %p14618_p1 = scmp.ne.s32.totalorder %s171_s22, %s14617_s5  ;;  %p14623_p3 = scmp.lt.s32.totalorder %s14617_s5, %s14617_s5 }
  0x82   :  { %p14624_p4 = por %p14623_p3, %p14622_p2 }
  0x84   :  { %p14625_p5 = pnand %p14624_p4, %p14618_p1 }
  0x86   :  { %14628 = shalt.err (!%p14625_p5)
}
  0x87   :  { %173 = dma.hbm_to_vmem [thread:$0]  %s18274_s12, 32, %s171_s22, [#allocation21]  }
  0x88   :  { %s14941_s2 = smov [#allocation23]   ;;  %s14942_s7 = smov [#allocation26]  }
  0x89   :  { %s192_s6 = sshll.u32 %s14941_s2, 4  ;;  %s214_s28 = sshll.u32 %s14942_s7, 4  ;;  %s193_s6 = int_to_ptr.vmem [resolvable:$true] %s192_s6  ;;  %s215_s28 = int_to_ptr.vmem [resolvable:$true] %s214_s28 }
  0x8a   :  { %s14629_s29 = scalar_lea.hbm %s18276_s14, 64 }
  0x8b   :  { %p14630_p6 = scmp.ne.s32.totalorder %s18276_s14, %s14629_s29  ;;  %p14633_p7 = scmp.lt.u32.totalorder %s14629_s29, %s18276_s14 }
  0x8d   :  { %p14635_p8 = pnand %p14633_p7, %p14630_p6 }
  0x8f   :  { %14638 = shalt.err (!%p14635_p8)
}
  0x90   :  { %s14639_s12 = scalar_lea.vmem %s193_s6, 64  ;;  %p14644_p10 = scmp.lt.s32.totalorder %s193_s6, %s193_s6 }
  0x91   :  { %p14640_p9 = scmp.ne.s32.totalorder %s193_s6, %s14639_s12  ;;  %p14645_p11 = scmp.lt.s32.totalorder %s14639_s12, %s14639_s12 }
  0x93   :  { %p14646_p12 = por %p14645_p11, %p14644_p10 }
  0x95   :  { %p14647_p13 = pnand %p14646_p12, %p14640_p9 }
  0x97   :  { %14650 = shalt.err (!%p14647_p13)
}
  0x98   :  { %195 = dma.hbm_to_vmem [thread:$0]  %s18276_s14, 64, %s193_s6, [#allocation24]  }
  0x99   :  { %s14651_s5 = scalar_lea.hbm %s18278_s16, 64 }
  0x9a   :  { %p14652_p0 = scmp.ne.s32.totalorder %s18278_s16, %s14651_s5  ;;  %p14655_p1 = scmp.lt.u32.totalorder %s14651_s5, %s18278_s16 }
  0x9c   :  { %p14657_p2 = pnand %p14655_p1, %p14652_p0 }
  0x9e   :  { %14660 = shalt.err (!%p14657_p2)
}
  0x9f   :  { %s14661_s8 = scalar_lea.vmem %s215_s28, 64  ;;  %p14666_p4 = scmp.lt.s32.totalorder %s215_s28, %s215_s28 }
  0xa0   :  { %p14662_p3 = scmp.ne.s32.totalorder %s215_s28, %s14661_s8  ;;  %p14667_p5 = scmp.lt.s32.totalorder %s14661_s8, %s14661_s8 }
  0xa2   :  { %p14668_p6 = por %p14667_p5, %p14666_p4 }
  0xa4   :  { %p14669_p7 = pnand %p14668_p6, %p14662_p3 }
  0xa6   :  { %14672 = shalt.err (!%p14669_p7)
}
  0xa7   :  { %217 = dma.hbm_to_vmem [thread:$0]  %s18278_s16, 64, %s215_s28, [#allocation27]  }
  0xa8   :  { %s14943_s24 = smov [#allocation29]   ;;  %s14944_s3 = smov [#allocation3]  }
  0xa9   :  { %s236_s29 = sshll.u32 %s14943_s24, 4  ;;  %s47_s4 = sshll.u32 %s14944_s3, 4  ;;  %s237_s29 = int_to_ptr.vmem [resolvable:$true] %s236_s29  ;;  %s15184_s4 = int_to_ptr.vmem [resolvable:$true] %s47_s4 }
  0xaa   :  { %s14673_s12 = scalar_lea.hbm %s18280_s18, 16 }
  0xab   :  { %p14674_p8 = scmp.ne.s32.totalorder %s18280_s18, %s14673_s12  ;;  %p14677_p9 = scmp.lt.u32.totalorder %s14673_s12, %s18280_s18 }
  0xad   :  { %p14679_p10 = pnand %p14677_p9, %p14674_p8 }
  0xaf   :  { %14682 = shalt.err (!%p14679_p10)
}
  0xb0   :  { %s14683_s16 = scalar_lea.vmem %s237_s29, 16  ;;  %s14687_s28 = scalar_lea.vmem %s237_s29, 32 }
  0xb1   :  { %p14684_p11 = scmp.ne.s32.totalorder %s237_s29, %s14683_s16  ;;  %p14688_p12 = scmp.lt.s32.totalorder %s237_s29, %s237_s29 }
  0xb2   :  { %p14689_p13 = scmp.lt.s32.totalorder %s14687_s28, %s14683_s16 }
  0xb4   :  { %p14690_p0 = por %p14689_p13, %p14688_p12 }
  0xb6   :  { %p14691_p1 = pnand %p14690_p0, %p14684_p11 }
  0xb8   :  { %14694 = shalt.err (!%p14691_p1)
}
  0xb9   :  { %239 = dma.hbm_to_vmem [thread:$0]  %s18280_s18, 16, %s237_s29, [#allocation30]  }
  0xba   :  { %s18840_s7 = sld [smem:[#allocation403_spill]] }
  0xc0   :  { %s14695_s8 = scalar_lea.hbm %s18840_s7, 192 }
  0xc1   :  { %p14696_p2 = scmp.ne.s32.totalorder %s18840_s7, %s14695_s8  ;;  %p14699_p3 = scmp.lt.u32.totalorder %s14695_s8, %s18840_s7 }
  0xc3   :  { %p14701_p4 = pnand %p14699_p3, %p14696_p2 }
  0xc5   :  { %14704 = shalt.err (!%p14701_p4)
}
  0xc6   :  { %s14705_s27 = scalar_lea.vmem %s15184_s4, 192  ;;  %p14710_p6 = scmp.lt.s32.totalorder %s15184_s4, %s15184_s4 }
  0xc7   :  { %p14706_p5 = scmp.ne.s32.totalorder %s15184_s4, %s14705_s27  ;;  %p14711_p7 = scmp.lt.s32.totalorder %s14705_s27, %s14705_s27 }
  0xc9   :  { %p14712_p8 = por %p14711_p7, %p14710_p6 }
  0xcb   :  { %p14713_p9 = pnand %p14712_p8, %p14706_p5 }
  0xcd   :  { %14716 = shalt.err (!%p14713_p9)
}
  0xce   :  { %s14945_s18 = smov 64   ;;  %s14946_s29 = smov 4  }
  0xcf   :  { %53 = dma.hbm_to_vmem [thread:$0]  %s18840_s7, 192, %s15184_s4, [#allocation4], %s14945_s18, %s14945_s18, %s14946_s29  }
  0xd0   :  { %s14947_s22 = smov [#allocation7]   ;;  %s18841_s16 = sld [smem:[#allocation405_spill]] }
  0xd1   :  { %s69_s25 = sshll.u32 %s14947_s22, 4  ;;  %s70_s25 = int_to_ptr.vmem [resolvable:$true] %s69_s25 }
  0xd6   :  { %s14717_s28 = scalar_lea.hbm %s18841_s16, 3072 }
  0xd7   :  { %p14718_p10 = scmp.ne.s32.totalorder %s18841_s16, %s14717_s28  ;;  %p14721_p11 = scmp.lt.u32.totalorder %s14717_s28, %s18841_s16 }
  0xd9   :  { %p14723_p12 = pnand %p14721_p11, %p14718_p10 }
  0xdb   :  { %14726 = shalt.err (!%p14723_p12)
}
  0xdc   :  { %s14727_s8 = scalar_lea.vmem %s70_s25, 3072  ;;  %p14732_p0 = scmp.lt.s32.totalorder %s70_s25, %s70_s25 }
  0xdd   :  { %p14728_p13 = scmp.ne.s32.totalorder %s70_s25, %s14727_s8  ;;  %p14733_p1 = scmp.lt.s32.totalorder %s14727_s8, %s14727_s8 }
  0xdf   :  { %p14734_p2 = por %p14733_p1, %p14732_p0 }
  0xe1   :  { %p14735_p3 = pnand %p14734_p2, %p14728_p13 }
  0xe3   :  { %14738 = shalt.err (!%p14735_p3)
}
  0xe4   :  { %s14948_s4 = smov 128   ;;  %s14949_s7 = smov 8  }
  0xe5   :  { %75 = dma.hbm_to_vmem [thread:$0]  %s18841_s16, 3072, %s70_s25, [#allocation6], %s14948_s4, %s14948_s4, %s14949_s7  }
  0xe6   :  { %s14950_s24 = smov [#allocation10]   ;;  %s14951_s27 = smov [#allocation13]  }
  0xe7   :  { %s91_s3 = sshll.u32 %s14950_s24, 4  ;;  %s113_s18 = sshll.u32 %s14951_s27, 4  ;;  %s92_s3 = int_to_ptr.vmem [resolvable:$true] %s91_s3  ;;  %s114_s18 = int_to_ptr.vmem [resolvable:$true] %s113_s18 }
  0xe8   :  { %s18842_s12 = sld [smem:[#allocation407_spill]] }
  0xee   :  { %s14739_s22 = scalar_lea.hbm %s18842_s12, 3072 }
  0xef   :  { %p14740_p4 = scmp.ne.s32.totalorder %s18842_s12, %s14739_s22  ;;  %p14743_p5 = scmp.lt.u32.totalorder %s14739_s22, %s18842_s12 }
  0xf1   :  { %p14745_p6 = pnand %p14743_p5, %p14740_p4 }
  0xf3   :  { %14748 = shalt.err (!%p14745_p6)
}
  0xf4   :  { %s14749_s25 = scalar_lea.vmem %s92_s3, 3072  ;;  %p14754_p8 = scmp.lt.s32.totalorder %s92_s3, %s92_s3 }
  0xf5   :  { %p14750_p7 = scmp.ne.s32.totalorder %s92_s3, %s14749_s25  ;;  %p14755_p9 = scmp.lt.s32.totalorder %s14749_s25, %s14749_s25 }
  0xf7   :  { %p14756_p10 = por %p14755_p9, %p14754_p8 }
  0xf9   :  { %p14757_p11 = pnand %p14756_p10, %p14750_p7 }
  0xfb   :  { %14760 = shalt.err (!%p14757_p11)
}
  0xfc   :  { %97 = dma.hbm_to_vmem [thread:$0]  %s18842_s12, 3072, %s92_s3, [#allocation9], %s14948_s4, %s14948_s4, %s14949_s7  }
  0xfd   :  { %s18843_s8 = sld [smem:[#allocation409_spill]] }
 0x103   :  { %s14761_s14 = scalar_lea.hbm %s18843_s8, 6144 }
 0x104   :  { %p14762_p12 = scmp.ne.s32.totalorder %s18843_s8, %s14761_s14  ;;  %p14765_p13 = scmp.lt.u32.totalorder %s14761_s14, %s18843_s8 }
 0x106   :  { %p14767_p0 = pnand %p14765_p13, %p14762_p12 }
 0x108   :  { %14770 = shalt.err (!%p14767_p0)
}
 0x109   :  { %s14771_s1 = scalar_lea.vmem %s114_s18, 6144  ;;  %p14776_p2 = scmp.lt.s32.totalorder %s114_s18, %s114_s18 }
 0x10a   :  { %p14772_p1 = scmp.ne.s32.totalorder %s114_s18, %s14771_s1  ;;  %p14777_p3 = scmp.lt.s32.totalorder %s14771_s1, %s14771_s1 }
 0x10c   :  { %p14778_p4 = por %p14777_p3, %p14776_p2 }
 0x10e   :  { %p14779_p5 = pnand %p14778_p4, %p14772_p1 }
 0x110   :  { %14782 = shalt.err (!%p14779_p5)
}
 0x111   :  { %119 = dma.hbm_to_vmem [thread:$0]  %s18843_s8, 6144, %s114_s18, [#allocation12], %s14948_s4, %s14948_s4, %s14949_s7  }
 0x112   :  { %s14952_s22 = smov [#allocation16]   ;;  %s14783_s5 = scalar_lea.hbm %s18271_s9, 12288 }
 0x113   :  { %s135_s0 = sshll.u32 %s14952_s22, 4  ;;  %p14784_p6 = scmp.ne.s32.totalorder %s18271_s9, %s14783_s5  ;;  %s136_s0 = int_to_ptr.vmem [resolvable:$true] %s135_s0 }
 0x114   :  { %p14787_p7 = scmp.lt.u32.totalorder %s14783_s5, %s18271_s9 }
 0x116   :  { %p14789_p8 = pnand %p14787_p7, %p14784_p6 }
 0x118   :  { %14792 = shalt.err (!%p14789_p8)
}
 0x119   :  { %s14793_s2 = scalar_lea.vmem %s136_s0, 12288  ;;  %p14798_p10 = scmp.lt.s32.totalorder %s136_s0, %s136_s0 }
 0x11a   :  { %p14794_p9 = scmp.ne.s32.totalorder %s136_s0, %s14793_s2  ;;  %p14799_p11 = scmp.lt.s32.totalorder %s14793_s2, %s14793_s2 }
 0x11c   :  { %p14800_p12 = por %p14799_p11, %p14798_p10 }
 0x11e   :  { %p14801_p13 = pnand %p14800_p12, %p14794_p9 }
 0x120   :  { %14804 = shalt.err (!%p14801_p13)
}
 0x121   :  { %s14953_s18 = smov 256   ;;  %s14954_s8 = smov 16  }
 0x122   :  { %141 = dma.hbm_to_vmem [thread:$0]  %s18271_s9, 12288, %s136_s0, [#allocation15], %s14953_s18, %s14953_s18, %s14954_s8  }
 0x123   :  { %s14955_s24 = smov [#allocation19]   ;;  %s14956_s29 = smov [#allocation22]  }
 0x124   :  { %s157_s27 = sshll.u32 %s14955_s24, 4  ;;  %s179_s1 = sshll.u32 %s14956_s29, 4  ;;  %s158_s27 = int_to_ptr.vmem [resolvable:$true] %s157_s27  ;;  %s15272_s1 = int_to_ptr.vmem [resolvable:$true] %s179_s1 }
 0x125   :  { %s14805_s22 = scalar_lea.hbm %s18273_s11, 24576 }
 0x126   :  { %p14806_p0 = scmp.ne.s32.totalorder %s18273_s11, %s14805_s22  ;;  %p14809_p1 = scmp.lt.u32.totalorder %s14805_s22, %s18273_s11 }
 0x128   :  { %p14811_p2 = pnand %p14809_p1, %p14806_p0 }
 0x12a   :  { %14814 = shalt.err (!%p14811_p2)
}
 0x12b   :  { %s14815_s9 = scalar_lea.vmem %s158_s27, 24576  ;;  %p14820_p4 = scmp.lt.s32.totalorder %s158_s27, %s158_s27 }
 0x12c   :  { %p14816_p3 = scmp.ne.s32.totalorder %s158_s27, %s14815_s9  ;;  %p14821_p5 = scmp.lt.s32.totalorder %s14815_s9, %s14815_s9 }
 0x12e   :  { %p14822_p6 = por %p14821_p5, %p14820_p4 }
 0x130   :  { %p14823_p7 = pnand %p14822_p6, %p14816_p3 }
 0x132   :  { %14826 = shalt.err (!%p14823_p7)
}
 0x133   :  { %163 = dma.hbm_to_vmem [thread:$0]  %s18273_s11, 24576, %s158_s27, [#allocation18], %s14953_s18, %s14953_s18, %s14954_s8  }
 0x134   :  { %s14827_s2 = scalar_lea.hbm %s18275_s13, 49152 }
 0x135   :  { %p14828_p8 = scmp.ne.s32.totalorder %s18275_s13, %s14827_s2  ;;  %p14831_p9 = scmp.lt.u32.totalorder %s14827_s2, %s18275_s13 }
 0x137   :  { %p14833_p10 = pnand %p14831_p9, %p14828_p8 }
 0x139   :  { %14836 = shalt.err (!%p14833_p10)
}
 0x13a   :  { %s14837_s3 = scalar_lea.vmem %s15272_s1, 49152  ;;  %p14842_p12 = scmp.lt.s32.totalorder %s15272_s1, %s15272_s1 }
 0x13b   :  { %p14838_p11 = scmp.ne.s32.totalorder %s15272_s1, %s14837_s3  ;;  %p14843_p13 = scmp.lt.s32.totalorder %s14837_s3, %s14837_s3 }
 0x13d   :  { %p14844_p0 = por %p14843_p13, %p14842_p12 }
 0x13f   :  { %p14845_p1 = pnand %p14844_p0, %p14838_p11 }
 0x141   :  { %14848 = shalt.err (!%p14845_p1)
}
 0x142   :  { %s14957_s11 = smov 512   ;;  %s14958_s18 = smov 32  }
 0x143   :  { %185 = dma.hbm_to_vmem [thread:$0]  %s18275_s13, 49152, %s15272_s1, [#allocation21], %s14957_s11, %s14957_s11, %s14958_s18  }
 0x144   :  { %s14959_s12 = smov [#allocation25]   ;;  %s14960_s30 = smov [#allocation28]  }
 0x145   :  { %s201_s22 = sshll.u32 %s14959_s12, 4  ;;  %s223_s28 = sshll.u32 %s14960_s30, 4  ;;  %s202_s22 = int_to_ptr.vmem [resolvable:$true] %s201_s22  ;;  %s15303_s28 = int_to_ptr.vmem [resolvable:$true] %s223_s28 }
 0x146   :  { %s14849_s9 = scalar_lea.hbm %s18277_s15, 98304 }
 0x147   :  { %p14850_p2 = scmp.ne.s32.totalorder %s18277_s15, %s14849_s9  ;;  %p14853_p3 = scmp.lt.u32.totalorder %s14849_s9, %s18277_s15 }
 0x149   :  { %p14855_p4 = pnand %p14853_p3, %p14850_p2 }
 0x14b   :  { %14858 = shalt.err (!%p14855_p4)
}
 0x14c   :  { %s14859_s13 = scalar_lea.vmem %s202_s22, 98304  ;;  %p14864_p6 = scmp.lt.s32.totalorder %s202_s22, %s202_s22 }
 0x14d   :  { %p14860_p5 = scmp.ne.s32.totalorder %s202_s22, %s14859_s13  ;;  %p14865_p7 = scmp.lt.s32.totalorder %s14859_s13, %s14859_s13 }
 0x14f   :  { %p14866_p8 = por %p14865_p7, %p14864_p6 }
 0x151   :  { %p14867_p9 = pnand %p14866_p8, %p14860_p5 }
 0x153   :  { %14870 = shalt.err (!%p14867_p9)
}
 0x154   :  { %207 = dma.hbm_to_vmem [thread:$0]  %s18277_s15, 98304, %s202_s22, [#allocation24], %s14957_s11, %s14957_s11, %s14958_s18  }
 0x155   :  { %s14871_s24 = scalar_lea.hbm %s18279_s17, 8192 }
 0x156   :  { %p14872_p10 = scmp.ne.s32.totalorder %s18279_s17, %s14871_s24  ;;  %p14875_p11 = scmp.lt.u32.totalorder %s14871_s24, %s18279_s17 }
 0x158   :  { %p14877_p12 = pnand %p14875_p11, %p14872_p10 }
 0x15a   :  { %14880 = shalt.err (!%p14877_p12)
}
 0x15b   :  { %s14881_s12 = scalar_lea.vmem %s15303_s28, 8192  ;;  %p14886_p0 = scmp.lt.s32.totalorder %s15303_s28, %s15303_s28 }
 0x15c   :  { %p14882_p13 = scmp.ne.s32.totalorder %s15303_s28, %s14881_s12  ;;  %p14887_p1 = scmp.lt.s32.totalorder %s14881_s12, %s14881_s12 }
 0x15e   :  { %p14888_p2 = por %p14887_p1, %p14886_p0 }
 0x160   :  { %p14889_p3 = pnand %p14888_p2, %p14882_p13 }
 0x162   :  { %14892 = shalt.err (!%p14889_p3)
}
 0x163   :  { %229 = dma.hbm_to_vmem [thread:$0]  %s18279_s17, 8192, %s15303_s28, [#allocation27], %s14948_s4, %s14948_s4, %s14949_s7  }
 0x164   :  { %s14961_s18 = smov [#allocation31]   ;;  %s14893_s25 = scalar_lea.hbm %s18282_s20, 16 }
 0x165   :  { %s248_s22 = sshll.u32 %s14961_s18, 4  ;;  %p14894_p4 = scmp.ne.s32.totalorder %s18282_s20, %s14893_s25  ;;  %s249_s22 = int_to_ptr.vmem [resolvable:$true] %s248_s22 }
 0x166   :  { %p14897_p5 = scmp.lt.u32.totalorder %s14893_s25, %s18282_s20 }
 0x168   :  { %p14899_p6 = pnand %p14897_p5, %p14894_p4 }
 0x16a   :  { %14902 = shalt.err (!%p14899_p6)
}
 0x16b   :  { %s14903_s26 = scalar_lea.vmem %s249_s22, 16  ;;  %s14907_s17 = scalar_lea.vmem %s249_s22, 32 }
 0x16c   :  { %p14904_p7 = scmp.ne.s32.totalorder %s249_s22, %s14903_s26  ;;  %p14908_p8 = scmp.lt.s32.totalorder %s249_s22, %s249_s22 }
 0x16d   :  { %p14909_p9 = scmp.lt.s32.totalorder %s14907_s17, %s14903_s26 }
 0x16f   :  { %p14910_p10 = por %p14909_p9, %p14908_p8 }
 0x171   :  { %p14911_p11 = pnand %p14910_p10, %p14904_p7 }
 0x173   :  { %14914 = shalt.err (!%p14911_p11)
}
 0x174   :  { %251 = dma.hbm_to_vmem [thread:$0]  %s18282_s20, 16, %s249_s22, [#allocation30]  }
 0x175   :  { %14915 = dma.done.wait [#allocation4], 192  }
 0x176   :  { %14916 = vsyncadd [#allocation4], 4294967104 }
 0x177   :  { %14917 = dma.done.wait [#allocation6], 3088  }
 0x178   :  { %14918 = vsyncadd [#allocation6], 4294964208 }
 0x179   :  { %14919 = dma.done.wait [#allocation9], 3088  }
 0x17a   :  { %14920 = vsyncadd [#allocation9], 4294964208 }
 0x17b   :  { %14921 = dma.done.wait [#allocation12], 6160  }
 0x17c   :  { %14922 = vsyncadd [#allocation12], 4294961136 }
 0x17d   :  { %14923 = dma.done.wait [#allocation15], 12304  }
 0x17e   :  { %14924 = vsyncadd [#allocation15], 4294954992 }
 0x17f   :  { %14925 = dma.done.wait [#allocation18], 24608  }
 0x180   :  { %14926 = vsyncadd [#allocation18], 4294942688 }
 0x181   :  { %14927 = dma.done.wait [#allocation21], 49184  }
 0x182   :  { %14928 = vsyncadd [#allocation21], 4294918112 }
 0x183   :  { %14929 = dma.done.wait [#allocation24], 98368  }
 0x184   :  { %14930 = vsyncadd [#allocation24], 4294868928 }
 0x185   :  { %14931 = dma.done.wait [#allocation27], 8256  }
 0x186   :  { %14932 = vsyncadd [#allocation27], 4294959040 }
 0x187   :  { %14933 = dma.done.wait [#allocation30], 32  }
 0x188   :  { %14934 = vsyncadd [#allocation30], 4294967264  ;;  %v428_v1 = vlaneseq  ;;  %vm339_vm0 = vcmask 1043456   ;;  %vm326_vm1 = vcmask 31744   ;;  %s18848_s13 = sld [smem:[#allocation402_spill]]  ;;  %v18296_v20 = vmov 0.0  }
 0x189   :  { %v318_v18 = vld [vmem:[#allocation3 + $0x4] sm:$0xf]  ;;  %vm523_vm5 = vcmask 261120   ;;  %v718_v32 = vld [vmem:[#allocation3] sm:$0xf]  ;;  %v934_v38 = vld [vmem:[#allocation7 + $0x40] sm:$0xff] }
 0x18a   :  { %v15349_v2 = vshrl.u32 %v428_v1, 7  ;;  %v15351_v3 = vand.u32 127, %v428_v1  ;;  %10377 = vmatprep.subr.msk.mxu0 %vm339_vm0, %v318_v18  ;;  %v824_v37 = vld [vmem:[#allocation3 + $0x8] sm:$0xf]  ;;  %v935_v39 = vld [vmem:[#allocation7 + $0x48] sm:$0xff]  ;;  %v936_v40 = vld [vmem:[#allocation7 + $0x50] sm:$0xff] }
 0x18b   :  { %10378 = vmatpush3.msk.msra.mxu0 %vm339_vm0, %v318_v18  ;;  %v10821_v41 = vpack.c.bf16 %v935_v39, %v934_v38  ;;  %v937_v42 = vld [vmem:[#allocation7 + $0x58] sm:$0xff]  ;;  %v938_v44 = vld [vmem:[#allocation7 + $0x60] sm:$0xff]  ;;  %v939_v45 = vld [vmem:[#allocation7 + $0x68] sm:$0xff] }
 0x18c   :  { %18844 = vst [vmem:[#allocation42_spill] sm:$0xff] %v15349_v2  ;;  %18845 = vst [vmem:[#allocation43_spill] sm:$0xff] %v15351_v3  ;;  %v15354_v4 = vadd.s32 4294967295, %v15349_v2  ;;  %v447_v5 = vand.u32 15, %v15349_v2  ;;  %v15358_v6 = vadd.s32 8, %v15349_v2  ;;  %v431_v7 = vadd.s32 16, %v15349_v2 }
 0x18d   :  { %v15362_v8 = vadd.s32 1, %v15349_v2  ;;  %v432_v9 = vadd.s32 24, %v15349_v2  ;;  %v10825_v43 = vpack.c.bf16 %v937_v42, %v936_v40  ;;  %v10829_v46 = vpack.c.bf16 %v939_v45, %v938_v44  ;;  %v940_v55 = vld [vmem:[#allocation7 + $0x70] sm:$0xff]  ;;  %v941_v56 = vld [vmem:[#allocation7 + $0x78] sm:$0xff]  ;;  %v1332_v40 = vld [vmem:[#allocation7 + $0xa8] sm:$0xff] }
 0x18e   :  { %18846 = vst [vmem:[#allocation44_spill] sm:$0xff] %v15354_v4  ;;  %vm439_vm2 = vcmp.eq.s32.totalorder %v15351_v3, %v15354_v4  ;;  %vm491_vm3 = vcmp.ne.s32.totalorder %v447_v5, 0  ;;  %v313_v10 = vld [vmem:[%s18848_s13] sm:$0xff]  ;;  %v314_v11 = vld [vmem:[%s18848_s13 + $0x8] sm:$0xff]  ;;  %v315_v12 = vld [vmem:[%s18848_s13 + $0x10] sm:$0xff]  ;;  %v15377_v13 = vadd.s32 4294967295, %v15358_v6  ;;  %v10833_v57 = vpack.c.bf16 %v941_v56, %v940_v55 }
 0x18f   :  { %18847 = vst [vmem:[#allocation45_spill] sm:$0xff] %v15362_v8  ;;  %v9963_v14 = vadd.s32 4294967295, %v431_v7  ;;  %v461_v15 = vand.u32 15, %v431_v7  ;;  %v10805_v16 = vpack.c.bf16 %v314_v11, %v313_v10  ;;  %v316_v17 = vld [vmem:[%s18848_s13 + $0x18] sm:$0xff]  ;;  %10379 = vmatprep.mubr.msk.f32.mxu0 %vm326_vm1, %v313_v10  ;;  %vm495_vm4 = vmand %vm439_vm2, %vm491_vm3  ;;  %vm507_vm6 = vcmp.eq.s32.totalorder %v15351_v3, %v15362_v8  ;;  %v9955_v58 = vld [vmem:[#allocation5] ss:$0 sm:$0xff] }
 0x190   :  { %v10809_v19 = vpack.c.bf16 %v316_v17, %v315_v12  ;;  %v15388_v21 = vsel %vm495_vm4, 1.0, %v18296_v20  ;;  %v454_v23 = vand.u32 15, %v15358_v6  ;;  %v15400_v24 = vadd.s32 1, %v15358_v6  ;;  %10380 = vmatmul.mubr.msk.f32.vlgmr.msra.gmra.mrb[0].mxu0 %vm326_vm1, %v314_v11  ;;  %v1219_v18 = vld [vmem:[#allocation7 + $0x10] sm:$0xff]  ;;  %v3626_v8 = vld [vmem:[#allocation19 + $0x4c0] sm:$0xff]  ;;  %v3628_v4 = vld [vmem:[#allocation19 + $0x4d0] sm:$0xff] }
 0x191   :  { %10806 = vmatprep.subr.bf16.mxu1 %v10805_v16  ;;  %vm441_vm7 = vcmp.eq.s32.totalorder %v15351_v3, %v9963_v14  ;;  %vm15394_vm8 = vcmp.ne.s32.totalorder %v461_v15, 0  ;;  %vm440_vm9 = vcmp.eq.s32.totalorder %v15351_v3, %v15377_v13  ;;  %v9964_v25 = vadd.s32 4294967295, %v432_v9  ;;  %10393 = vmatprep.mubr.msk.f32.mxu1 %vm523_vm5, %v15388_v21  ;;  %v1218_v14 = vld [vmem:[#allocation7 + $0x8] sm:$0xff] }
 0x192   :  { %10808 = vmatpush3.bf16.msra.mxu1 %v10805_v16  ;;  %v505_v26 = vadd.s32 1, %v431_v7  ;;  %vm508_vm10 = vcmp.eq.s32.totalorder %v15351_v3, %v15400_v24  ;;  %vm512_vm11 = vcmp.ne.s32.totalorder %v454_v23, 15  ;;  %v468_v27 = vand.u32 15, %v432_v9  ;;  %10814 = vmatprep.subr.bf16.mxu0 %v10805_v16  ;;  %vm497_vm12 = vmand %vm441_vm7, %vm15394_vm8  ;;  %v1221_v23 = vld [vmem:[#allocation7 + $0x20] sm:$0xff] }
 0x193   :  { %10810 = vmatprep.subr.bf16.mxu1 %v10809_v19  ;;  %v506_v28 = vadd.s32 1, %v432_v9  ;;  %10382 = vmatprep.mubr.msk.f32.mxu0 %vm326_vm1, %v315_v12  ;;  %v519_v29 = vsel %vm507_vm6, 1.0, %v18296_v20  ;;  %v15422_v30 = vsel %vm440_vm9, 1.0, %v18296_v20  ;;  %vm442_vm13 = vcmp.eq.s32.totalorder %v15351_v3, %v9964_v25  ;;  %vm516_vm14 = vmand %vm508_vm10, %vm512_vm11  ;;  %v1217_v12 = vld [vmem:[#allocation7] sm:$0xff]  ;;  %v1222_v25 = vld [vmem:[#allocation7 + $0x28] sm:$0xff] }
 0x194   :  { %10816 = vmatpush3.bf16.msra.mxu0 %v10805_v16  ;;  %v15430_v31 = vsel %vm497_vm12, 1.0, %v18296_v20  ;;  %vm509_vm15 = vcmp.eq.s32.totalorder %v15351_v3, %v505_v26  ;;  %vm514_vm4 = vcmp.ne.s32.totalorder %v468_v27, 15  ;;  %v15438_v33 = vsel %vm516_vm14, 1.0, %v18296_v20  ;;  %v1224_v27 = vld [vmem:[#allocation7 + $0x38] sm:$0xff] }
 0x195   :  { %10383 = vmatmul.mubr.msk.f32.gmra.mrb[2].mxu0 %vm326_vm1, %v316_v17  ;;  %10818 = vmatprep.subr.bf16.mxu0 %v10809_v19  ;;  %vm510_vm3 = vcmp.eq.s32.totalorder %v15351_v3, %v506_v28  ;;  %v15443_v34 = vsel %vm442_vm13, 1.0, %v18296_v20  ;;  %v15446_v35 = vsel %vm509_vm15, 1.0, %v18296_v20  ;;  %vm949_vm8 = vcmask 523264  }
 0x196   :  { %10812 = vmatpush3.bf16.msra.mxu1 %v10809_v19  ;;  %10407 = vmatprep.mubr.msk.f32.mxu0 %vm523_vm5, %v519_v29  ;;  %vm518_vm7 = vmand %vm510_vm3, %vm514_vm4  ;;  %v10853_v17 = vpack.c.bf16 %v1218_v14, %v1217_v12  ;;  %v10861_v26 = vpack.c.bf16 %v1222_v25, %v1221_v23  ;;  %v1622_v23 = vld [vmem:[#allocation10 + $0x68] sm:$0xff]  ;;  %vm1749_vm4 = vcmask 130048  }
 0x197   :  { %v15456_v36 = vsel %vm518_vm7, 1.0, %v18296_v20  ;;  %10822 = vmatprep.subr.bf16.mxu1 %v10821_v41 }
 0x198   :  { %10820 = vmatpush3.bf16.msra.mxu0 %v10809_v19  ;;  %v1220_v19 = vld [vmem:[#allocation7 + $0x18] sm:$0xff] }
 0x199   :  { %10394 = vmatmul.mubr.msk.f32.vlgmr.msra.gmra.mrb[0].mxu1 %vm523_vm5, %v15422_v30  ;;  %10413 = vmatprep.subr.msk.mxu0 %vm339_vm0, %v718_v32  ;;  %v10857_v22 = vpack.c.bf16 %v1220_v19, %v1219_v18  ;;  %v1620_v18 = vld [vmem:[#allocation10 + $0x58] sm:$0xff] }
 0x19a   :  { %10396 = vmatprep.mubr.msk.f32.mxu1 %vm523_vm5, %v15430_v31  ;;  %10824 = vmatpush3.bf16.msra.mxu1 %v10821_v41 }
 0x19b   :  { %10408 = vmatmul.mubr.msk.f32.vlgmr.msra.gmra.mrb[4].mxu0 %vm523_vm5, %v15438_v33  ;;  %10826 = vmatprep.subr.bf16.mxu1 %v10825_v43 }
 0x19c   :  { %10410 = vmatprep.mubr.msk.f32.mxu0 %vm523_vm5, %v15446_v35  ;;  %10414 = vmatpush3.msk.msra.mxu0 %vm339_vm0, %v718_v32  ;;  %v1329_v32 = vld [vmem:[#allocation7 + $0x90] sm:$0xff] }
 0x19d   :  { %10397 = vmatmul.mubr.msk.f32.gmra.mrb[2].mxu1 %vm523_vm5, %v15443_v34  ;;  %10421 = vmatprep.subr.msk.mxu0 %vm339_vm0, %v824_v37 }
 0x19e   :  { %10828 = vmatpush3.bf16.msra.mxu1 %v10825_v43 }
 0x19f   :  { %10411 = vmatmul.mubr.msk.f32.gmra.mrb[6].mxu0 %vm523_vm5, %v15456_v36  ;;  %10830 = vmatprep.subr.bf16.mxu1 %v10829_v46 }
 0x1a2   :  { %10832 = vmatpush3.bf16.msra.mxu1 %v10829_v46  ;;  %v1333_v46 = vld [vmem:[#allocation7 + $0xb0] sm:$0xff] }
 0x1a3   :  { %10834 = vmatprep.subr.bf16.mxu1 %v10833_v57 }
 0x1a6   :  { %10836 = vmatpush3.bf16.msra.mxu1 %v10833_v57 }
 0x26c   :  { %v10395_v47 = vpop.f32.mrb[0].mxu1 }
 0x26d   :  { %v602_v48 = vpop.f32.mrb[1].mxu1 }
 0x26e   :  { %10415 = vmatprep.mubr.msk.f32.mxu0 %vm326_vm1, %v602_v48  ;;  %v10409_v49 = vpop.f32.mrb[4].mxu0 }
 0x26f   :  { %10416 = vmatmul.mubr.msk.f32.vlgmr.msra.gmra.mrb[0].mxu0 %vm326_vm1, %v10395_v47  ;;  %v699_v51 = vpop.f32.mrb[5].mxu0  ;;  %v1334_v47 = vld [vmem:[#allocation7 + $0xb8] sm:$0xff] }
 0x270   :  { %v10398_v50 = vpop.f32.mrb[2].mxu1  ;;  %10422 = vmatpush3.msk.msra.mxu0 %vm339_vm0, %v824_v37  ;;  %v10881_v48 = vpack.c.bf16 %v1334_v47, %v1333_v46  ;;  %v1917_v46 = vld [vmem:[#allocation10 + $0x28] sm:$0xff]  ;;  %v1918_v47 = vld [vmem:[#allocation10 + $0x30] sm:$0xff] }
 0x271   :  { %v612_v52 = vpop.f32.mrb[3].mxu1 }
 0x272   :  { %10418 = vmatprep.mubr.msk.f32.mxu0 %vm326_vm1, %v612_v52  ;;  %v10412_v53 = vpop.f32.mrb[6].mxu0  ;;  %v1618_v52 = vld [vmem:[#allocation10 + $0x48] sm:$0xff] }
 0x273   :  { %10419 = vmatmul.mubr.msk.f32.gmra.mrb[2].mxu0 %vm326_vm1, %v10398_v50  ;;  %v709_v54 = vpop.f32.mrb[7].mxu0 }
 0x274   :  { %10423 = vmatprep.mubr.msk.f32.mxu0 %vm326_vm1, %v699_v51  ;;  %v1617_v51 = vld [vmem:[#allocation10 + $0x40] sm:$0xff] }
 0x277   :  { %10424 = vmatmul.mubr.msk.f32.vlgmr.msra.gmra.mrb[0].mxu0 %vm326_vm1, %v10409_v49  ;;  %v1440_v49 = vmul.u32 2, %v15349_v2 }
 0x278   :  { %10426 = vmatprep.mubr.msk.f32.mxu0 %vm326_vm1, %v709_v54  ;;  %v9983_v54 = vld [vmem:[#allocation8] ss:$0 sm:$0xff] }
 0x279   :  { %vm1442_vm11 = vcmp.eq.s32.totalorder %v15351_v3, %v1440_v49 }
 0x27a   :  { %v15501_v50 = vsel %vm1442_vm11, 1.0, %v18296_v20 }
 0x27b   :  { %10427 = vmatmul.mubr.msk.f32.gmra.mrb[2].mxu0 %vm326_vm1, %v10412_v53  ;;  %18851 = vst [vmem:[#allocation46_spill] sm:$0xff] %v15501_v50  ;;  %v10901_v53 = vpack.c.bf16 %v1618_v52, %v1617_v51  ;;  %v2004_v51 = vld [vmem:[#allocation10 + $0x80] sm:$0xff]  ;;  %v2005_v52 = vld [vmem:[#allocation10 + $0x88] sm:$0xff] }
 0x27c   :  { %10473 = vmatprep.mubr.msk.f32.mxu0 %vm523_vm5, %v519_v29  ;;  %v1327_v29 = vld [vmem:[#allocation7 + $0x80] sm:$0xff] }
 0x34a   :  { %v10425_v59 = vpop.f32.mrb[0].mxu0 }
 0x34b   :  { %v14329_v60 = vadd.f32 %v10425_v59, %v9955_v58  ;;  %v906_v61 = vpop.f32.mrb[1].mxu0 }
 0x34c   :  { %v14330_v62 = vadd.f32 %v9955_v58, %v906_v61 }
 0x34d   :  { %v930_v63 = vmax.f32 %v14329_v60, 0.0 }
 0x34e   :  { %v929_v0 = vmax.f32 %v14330_v62, 0.0  ;;  %v10428_v1 = vpop.f32.mrb[2].mxu0 }
 0x34f   :  { %v14331_v5 = vadd.f32 %v10428_v1, %v9955_v58  ;;  %v916_v7 = vpop.f32.mrb[3].mxu0 }
 0x350   :  { %v10837_v9 = vpack.c.bf16 %v930_v63, %v929_v0  ;;  %v14332_v10 = vadd.f32 %v9955_v58, %v916_v7  ;;  %10445 = vmatprep.mubr.msk.f32.mxu1 %vm949_vm8, %v929_v0 }
 0x351   :  { %v932_v11 = vmax.f32 %v14331_v5, 0.0  ;;  %10446 = vmatmul.mubr.msk.f32.vlgmr.msra.gmra.mrb[4].mxu1 %vm949_vm8, %v930_v63  ;;  %v1441_v5 = vmul.u32 2, %v15358_v6 }
 0x352   :  { %v931_v15 = vmax.f32 %v14332_v10, 0.0  ;;  %10838 = vmatprep.subr.bf16.mxu1 %v10837_v9  ;;  %10846 = vmatprep.subr.bf16.mxu0 %v10837_v9 }
 0x353   :  { %10840 = vmatpush3.bf16.msra.mxu1 %v10837_v9  ;;  %10848 = vmatpush3.bf16.msra.mxu0 %v10837_v9  ;;  %v1446_v9 = vadd.s32 1, %v1440_v49  ;;  %vm1443_vm12 = vcmp.eq.s32.totalorder %v15351_v3, %v1441_v5 }
 0x354   :  { %v10841_v16 = vpack.c.bf16 %v932_v11, %v931_v15  ;;  %10448 = vmatprep.mubr.msk.f32.mxu1 %vm949_vm8, %v931_v15  ;;  %v1445_v12 = vsel %vm1443_vm12, 1.0, %v18296_v20  ;;  %v1447_v15 = vadd.s32 1, %v1441_v5  ;;  %v2106_v5 = vld [vmem:[#allocation13 + $0xc0] sm:$0xff] }
 0x355   :  { %10449 = vmatmul.mubr.msk.f32.gmra.mrb[6].mxu1 %vm949_vm8, %v932_v11  ;;  %vm1448_vm13 = vcmp.eq.s32.totalorder %v15351_v3, %v1446_v9 }
 0x356   :  { %10842 = vmatprep.subr.bf16.mxu1 %v10841_v16  ;;  %10850 = vmatprep.subr.bf16.mxu0 %v10841_v16  ;;  %v15510_v14 = vsel %vm1448_vm13, 1.0, %v18296_v20  ;;  %vm1449_vm14 = vcmp.eq.s32.totalorder %v15351_v3, %v1447_v15  ;;  %v2110_v15 = vld [vmem:[#allocation13 + $0xe0] sm:$0xff] }
 0x357   :  { %10844 = vmatpush3.bf16.msra.mxu1 %v10841_v16  ;;  %10852 = vmatpush3.bf16.msra.mxu0 %v10841_v16  ;;  %18852 = vst [vmem:[#allocation47_spill] sm:$0xff] %v15510_v14  ;;  %v1451_v16 = vsel %vm1449_vm14, 1.0, %v18296_v20  ;;  %v3630_v3 = vld [vmem:[#allocation19 + $0x4e0] sm:$0xff] }
 0x358   :  { %10459 = vmatprep.mubr.msk.f32.mxu1 %vm523_vm5, %v15388_v21  ;;  %10854 = vmatprep.subr.bf16.mxu1 %v10853_v17  ;;  %v1223_v21 = vld [vmem:[#allocation7 + $0x30] sm:$0xff] }
 0x359   :  { %v10865_v28 = vpack.c.bf16 %v1224_v27, %v1223_v21  ;;  %v1624_v21 = vld [vmem:[#allocation10 + $0x78] sm:$0xff] }
 0x35a   :  { %10460 = vmatmul.mubr.msk.f32.vlgmr.msra.gmra.mrb[8].mxu1 %vm523_vm5, %v15422_v30  ;;  %10474 = vmatmul.mubr.msk.f32.vlgmr.msra.gmra.mrb[8].mxu0 %vm523_vm5, %v15438_v33  ;;  %v1328_v30 = vld [vmem:[#allocation7 + $0x88] sm:$0xff]  ;;  %v1330_v33 = vld [vmem:[#allocation7 + $0x98] sm:$0xff] }
 0x35b   :  { %10462 = vmatprep.mubr.msk.f32.mxu1 %vm523_vm5, %v15430_v31  ;;  %10476 = vmatprep.mubr.msk.f32.mxu0 %vm523_vm5, %v15446_v35  ;;  %v10869_v31 = vpack.c.bf16 %v1328_v30, %v1327_v29  ;;  %v10873_v38 = vpack.c.bf16 %v1330_v33, %v1329_v32  ;;  %v1724_v32 = vand.u32 7, %v15358_v6  ;;  %v1912_v6 = vld [vmem:[#allocation10] sm:$0xff] }
 0x35c   :  { %10856 = vmatpush3.bf16.msra.mxu1 %v10853_v17  ;;  %v1619_v17 = vld [vmem:[#allocation10 + $0x50] sm:$0xff] }
 0x35d   :  { %10858 = vmatprep.subr.bf16.mxu1 %v10857_v22  ;;  %v10905_v19 = vpack.c.bf16 %v1620_v18, %v1619_v17  ;;  %vm1738_vm7 = vcmp.ne.s32.totalorder %v1724_v32, 0  ;;  %vm1744_vm14 = vcmp.ne.s32.totalorder %v1724_v32, 7 }
 0x35e   :  { %10463 = vmatmul.mubr.msk.f32.gmra.mrb[10].mxu1 %vm523_vm5, %v15443_v34  ;;  %10477 = vmatmul.mubr.msk.f32.gmra.mrb[10].mxu0 %vm523_vm5, %v15456_v36  ;;  %v1331_v36 = vld [vmem:[#allocation7 + $0xa0] sm:$0xff]  ;;  %vm1740_vm12 = vmand %vm440_vm9, %vm1738_vm7 }
 0x35f   :  { %v10877_v44 = vpack.c.bf16 %v1332_v40, %v1331_v36  ;;  %10531 = vmatprep.mubr.msk.f32.mxu0 %vm523_vm5, %v15501_v50  ;;  %v15537_v36 = vsel %vm1740_vm12, 1.0, %v18296_v20  ;;  %vm1746_vm9 = vmand %vm508_vm10, %vm1744_vm14  ;;  %vm14964_vm10 = vmmov 0  }
 0x360   :  { %10860 = vmatpush3.bf16.msra.mxu1 %v10857_v22  ;;  %v1621_v22 = vld [vmem:[#allocation10 + $0x60] sm:$0xff] }
 0x361   :  { %10862 = vmatprep.subr.bf16.mxu1 %v10861_v26  ;;  %v10909_v25 = vpack.c.bf16 %v1622_v23, %v1621_v22  ;;  %v2006_v22 = vld [vmem:[#allocation10 + $0x90] sm:$0xff]  ;;  %v2007_v23 = vld [vmem:[#allocation10 + $0x98] sm:$0xff] }
 0x364   :  { %10864 = vmatpush3.bf16.msra.mxu1 %v10861_v26  ;;  %v1623_v26 = vld [vmem:[#allocation10 + $0x70] sm:$0xff] }
 0x365   :  { %10866 = vmatprep.subr.bf16.mxu1 %v10865_v28  ;;  %v10913_v27 = vpack.c.bf16 %v1624_v21, %v1623_v26  ;;  %v10945_v21 = vpack.c.bf16 %v2007_v23, %v2006_v22 }
 0x368   :  { %10868 = vmatpush3.bf16.msra.mxu1 %v10865_v28  ;;  %v1717_v28 = vand.u32 7, %v15349_v2 }
 0x369   :  { %10870 = vmatprep.subr.bf16.mxu1 %v10869_v31 }
 0x36a   :  { %vm1737_vm15 = vcmp.ne.s32.totalorder %v1717_v28, 0  ;;  %vm1743_vm11 = vcmp.ne.s32.totalorder %v1717_v28, 7  ;;  %v2009_v28 = vld [vmem:[#allocation10 + $0xa8] sm:$0xff] }
 0x36b   :  { %vm1739_vm3 = vmand %vm439_vm2, %vm1737_vm15 }
 0x36c   :  { %v15523_v29 = vsel %vm1739_vm3, 1.0, %v18296_v20  ;;  %vm1745_vm13 = vmand %vm507_vm6, %vm1743_vm11 }
 0x36d   :  { %v15540_v13 = vsel %vm1745_vm13, 1.0, %v18296_v20 }
 0x42d   :  { %v10461_v35 = vpop.f32.mrb[8].mxu1  ;;  %v10475_v37 = vpop.f32.mrb[8].mxu0 }
 0x42e   :  { %v1113_v34 = vpop.f32.mrb[9].mxu1  ;;  %v1198_v39 = vpop.f32.mrb[9].mxu0 }
 0x42f   :  { %10495 = vmatprep.mubr.msk.f32.mxu1 %vm949_vm8, %v1113_v34 }
 0x430   :  { %10496 = vmatmul.mubr.msk.f32.vlgmr.msra.gmra.mrb[4].mxu1 %vm949_vm8, %v10461_v35 }
 0x431   :  { %10872 = vmatpush3.bf16.msra.mxu1 %v10869_v31  ;;  %v10464_v41 = vpop.f32.mrb[10].mxu1  ;;  %v10478_v42 = vpop.f32.mrb[10].mxu0 }
 0x432   :  { %10874 = vmatprep.subr.bf16.mxu1 %v10873_v38  ;;  %v1123_v43 = vpop.f32.mrb[11].mxu1  ;;  %v1208_v45 = vpop.f32.mrb[11].mxu0 }
 0x433   :  { %10498 = vmatprep.mubr.msk.f32.mxu1 %vm949_vm8, %v1123_v43  ;;  %v15550_v43 = vsel %vm1746_vm9, 1.0, %v18296_v20 }
 0x434   :  { %10499 = vmatmul.mubr.msk.f32.gmra.mrb[6].mxu1 %vm949_vm8, %v10464_v41  ;;  %v1914_v41 = vld [vmem:[#allocation10 + $0x10] sm:$0xff] }
 0x435   :  { %10876 = vmatpush3.bf16.msra.mxu1 %v10873_v38  ;;  %10517 = vmatprep.mubr.msk.f32.mxu1 %vm949_vm8, %v1198_v39  ;;  %v1913_v39 = vld [vmem:[#allocation10 + $0x8] sm:$0xff] }
 0x436   :  { %10878 = vmatprep.subr.bf16.mxu1 %v10877_v44  ;;  %v10925_v40 = vpack.c.bf16 %v1913_v39, %v1912_v6  ;;  %v10008_v39 = vld [vmem:[#allocation11] ss:$0 sm:$0xff] }
 0x439   :  { %10880 = vmatpush3.bf16.msra.mxu1 %v10877_v44 }
 0x43a   :  { %10882 = vmatprep.subr.bf16.mxu1 %v10881_v48 }
 0x43d   :  { %10884 = vmatpush3.bf16.msra.mxu1 %v10881_v48  ;;  %v1919_v48 = vld [vmem:[#allocation10 + $0x38] sm:$0xff] }
 0x43e   :  { %10902 = vmatprep.subr.bf16.mxu1 %v10901_v53  ;;  %v10937_v49 = vpack.c.bf16 %v1919_v48, %v1918_v47  ;;  %v2346_v47 = vld [vmem:[#allocation13] sm:$0xff]  ;;  %v2347_v48 = vld [vmem:[#allocation13 + $0x8] sm:$0xff] }
 0x440   :  { %10518 = vmatmul.mubr.msk.f32.vlgmr.msra.gmra.mrb[4].mxu1 %vm949_vm8, %v10475_v37 }
 0x441   :  { %10520 = vmatprep.mubr.msk.f32.mxu1 %vm949_vm8, %v1208_v45  ;;  %10904 = vmatpush3.bf16.msra.mxu1 %v10901_v53  ;;  %v1916_v45 = vld [vmem:[#allocation10 + $0x20] sm:$0xff]  ;;  %v10941_v53 = vpack.c.bf16 %v2005_v52, %v2004_v51  ;;  %v10997_v52 = vpack.c.bf16 %v2347_v48, %v2346_v47 }
 0x442   :  { %10906 = vmatprep.subr.bf16.mxu1 %v10905_v19  ;;  %v10933_v24 = vpack.c.bf16 %v1917_v46, %v1916_v45 }
 0x444   :  { %10521 = vmatmul.mubr.msk.f32.gmra.mrb[6].mxu1 %vm949_vm8, %v10478_v42  ;;  %v1915_v42 = vld [vmem:[#allocation10 + $0x18] sm:$0xff] }
 0x445   :  { %10908 = vmatpush3.bf16.msra.mxu1 %v10905_v19  ;;  %v10929_v44 = vpack.c.bf16 %v1915_v42, %v1914_v41 }
 0x446   :  { %10910 = vmatprep.subr.bf16.mxu1 %v10909_v25 }
 0x449   :  { %10912 = vmatpush3.bf16.msra.mxu1 %v10909_v25 }
 0x44a   :  { %10914 = vmatprep.subr.bf16.mxu1 %v10913_v27 }
 0x44d   :  { %10916 = vmatpush3.bf16.msra.mxu1 %v10913_v27  ;;  %v2008_v27 = vld [vmem:[#allocation10 + $0xa0] sm:$0xff] }
 0x513   :  { %v10519_v55 = vpop.f32.mrb[4].mxu1 }
 0x514   :  { %v14333_v56 = vadd.f32 %v10519_v55, %v9983_v54  ;;  %v1413_v57 = vpop.f32.mrb[5].mxu1  ;;  %v2099_v55 = vld [vmem:[#allocation13 + $0x88] sm:$0xff] }
 0x515   :  { %v14334_v58 = vadd.f32 %v9983_v54, %v1413_v57 }
 0x516   :  { %v1437_v59 = vmax.f32 %v14333_v56, 0.0  ;;  %v2100_v56 = vld [vmem:[#allocation13 + $0x90] sm:$0xff] }
 0x517   :  { %v1436_v60 = vmax.f32 %v14334_v58, 0.0  ;;  %v10522_v61 = vpop.f32.mrb[6].mxu1  ;;  %v2101_v58 = vld [vmem:[#allocation13 + $0x98] sm:$0xff] }
 0x518   :  { %v14335_v62 = vadd.f32 %v10522_v61, %v9983_v54  ;;  %v1423_v63 = vpop.f32.mrb[7].mxu1  ;;  %v2103_v61 = vld [vmem:[#allocation13 + $0xa8] sm:$0xff] }
 0x519   :  { %v10885_v0 = vpack.c.bf16 %v1437_v59, %v1436_v60  ;;  %v14336_v1 = vadd.f32 %v9983_v54, %v1423_v63  ;;  %v2098_v54 = vld [vmem:[#allocation13 + $0x80] sm:$0xff]  ;;  %v10961_v59 = vpack.c.bf16 %v2101_v58, %v2100_v56  ;;  %v2104_v63 = vld [vmem:[#allocation13 + $0xb0] sm:$0xff]  ;;  %v2351_v56 = vld [vmem:[#allocation13 + $0x28] sm:$0xff] }
 0x51a   :  { %v1439_v7 = vmax.f32 %v14335_v62, 0.0  ;;  %v10957_v57 = vpack.c.bf16 %v2099_v55, %v2098_v54  ;;  %v2102_v60 = vld [vmem:[#allocation13 + $0xa0] sm:$0xff]  ;;  %v2352_v58 = vld [vmem:[#allocation13 + $0x30] sm:$0xff] }
 0x51b   :  { %v1438_v10 = vmax.f32 %v14336_v1, 0.0  ;;  %10886 = vmatprep.subr.bf16.mxu0 %v10885_v0  ;;  %v10965_v62 = vpack.c.bf16 %v2103_v61, %v2102_v60  ;;  %v2350_v55 = vld [vmem:[#allocation13 + $0x20] sm:$0xff] }
 0x51c   :  { %10888 = vmatpush3.bf16.msra.mxu0 %v10885_v0  ;;  %10958 = vmatprep.subr.bf16.mxu1 %v10957_v57  ;;  %v2354_v61 = vld [vmem:[#allocation13 + $0x40] sm:$0xff] }
 0x51d   :  { %v10889_v11 = vpack.c.bf16 %v1439_v7, %v1438_v10  ;;  %v2107_v7 = vld [vmem:[#allocation13 + $0xc8] sm:$0xff]  ;;  %v2108_v10 = vld [vmem:[#allocation13 + $0xd0] sm:$0xff] }
 0x51e   :  { %v10973_v9 = vpack.c.bf16 %v2107_v7, %v2106_v5  ;;  %v2360_v7 = vld [vmem:[#allocation13 + $0x70] sm:$0xff] }
 0x51f   :  { %10890 = vmatprep.subr.bf16.mxu0 %v10889_v11 }
 0x520   :  { %10892 = vmatpush3.bf16.msra.mxu0 %v10889_v11 }
 0x521   :  { %10894 = vmatprep.subr.bf16.mxu0 %v10885_v0 }
 0x523   :  { %10532 = vmatmul.mubr.msk.f32.vlgmr.msra.gmra.mrb[12].mxu0 %vm523_vm5, %v1445_v12 }
 0x524   :  { %10896 = vmatpush3.bf16.msra.mxu0 %v10885_v0  ;;  %10542 = vmatprep.mubr.msk.f32.mxu0 %vm523_vm5, %v15510_v14  ;;  %v2105_v0 = vld [vmem:[#allocation13 + $0xb8] sm:$0xff] }
 0x525   :  { %10898 = vmatprep.subr.bf16.mxu0 %v10889_v11  ;;  %v10969_v1 = vpack.c.bf16 %v2105_v0, %v2104_v63  ;;  %v2356_v63 = vld [vmem:[#allocation13 + $0x50] sm:$0xff]  ;;  %v2357_v0 = vld [vmem:[#allocation13 + $0x58] sm:$0xff] }
 0x528   :  { %10900 = vmatpush3.bf16.msra.mxu0 %v10889_v11  ;;  %v2109_v11 = vld [vmem:[#allocation13 + $0xd8] sm:$0xff] }
 0x529   :  { %v10977_v12 = vpack.c.bf16 %v2109_v11, %v2108_v10  ;;  %v2440_v11 = vld [vmem:[#allocation13 + $0x100] sm:$0xff] }
 0x52b   :  { %10543 = vmatmul.mubr.msk.f32.vlgmr.msra.gmra.mrb[14].mxu0 %vm523_vm5, %v1451_v16  ;;  %v2111_v16 = vld [vmem:[#allocation13 + $0xe8] sm:$0xff] }
 0x52c   :  { %10568 = vmatprep.mubr.msk.f32.mxu0 %vm1749_vm4, %v15523_v29  ;;  %v10981_v17 = vpack.c.bf16 %v2111_v16, %v2110_v15  ;;  %v2442_v16 = vld [vmem:[#allocation13 + $0x110] sm:$0xff] }
 0x5f6   :  { %v10533_v30 = vpop.f32.mrb[12].mxu0 }
 0x5f7   :  { %v1524_v31 = vpop.f32.mrb[13].mxu0 }
 0x5fe   :  { %v10544_v33 = vpop.f32.mrb[14].mxu0 }
 0x5ff   :  { %v1615_v35 = vmax.f32 %v10533_v30, %v10544_v33  ;;  %v1605_v37 = vpop.f32.mrb[15].mxu0  ;;  %v2010_v33 = vld [vmem:[#allocation10 + $0xb0] sm:$0xff] }
 0x600   :  { %v1614_v34 = vmax.f32 %v1524_v31, %v1605_v37  ;;  %v10949_v31 = vpack.c.bf16 %v2009_v28, %v2008_v27  ;;  %v2446_v28 = vld [vmem:[#allocation13 + $0x130] sm:$0xff] }
 0x602   :  { %v10917_v38 = vpack.c.bf16 %v1615_v35, %v1614_v34  ;;  %10561 = vmatprep.mubr.msk.f32.mxu1 %vm949_vm8, %v1614_v34  ;;  %v2112_v34 = vld [vmem:[#allocation13 + $0xf0] sm:$0xff] }
 0x603   :  { %10562 = vmatmul.mubr.msk.f32.vlgmr.msra.gmra.mrb[12].mxu1 %vm949_vm8, %v1615_v35  ;;  %v2011_v35 = vld [vmem:[#allocation10 + $0xb8] sm:$0xff] }
 0x604   :  { %10918 = vmatprep.subr.bf16.mxu0 %v10917_v38  ;;  %10960 = vmatpush3.bf16.msra.mxu1 %v10957_v57  ;;  %v10953_v37 = vpack.c.bf16 %v2011_v35, %v2010_v33  ;;  %v11005_v57 = vpack.c.bf16 %v2351_v56, %v2350_v55  ;;  %v2449_v33 = vld [vmem:[#allocation13 + $0x148] sm:$0xff] }
 0x605   :  { %10920 = vmatpush3.bf16.msra.mxu0 %v10917_v38  ;;  %10962 = vmatprep.subr.bf16.mxu1 %v10961_v59  ;;  %v2681_v56 = vld [vmem:[#allocation16 + $0x100] sm:$0xff] }
 0x606   :  { %10922 = vmatprep.subr.bf16.mxu0 %v10917_v38 }
 0x608   :  { %10569 = vmatmul.mubr.msk.f32.vlgmr.msra.gmra.mrb[16].mxu0 %vm1749_vm4, %v15537_v36  ;;  %10964 = vmatpush3.bf16.msra.mxu1 %v10961_v59  ;;  %v2353_v59 = vld [vmem:[#allocation13 + $0x38] sm:$0xff] }
 0x609   :  { %10924 = vmatpush3.bf16.msra.mxu0 %v10917_v38  ;;  %10575 = vmatprep.mubr.msk.f32.mxu0 %vm1749_vm4, %v15540_v13  ;;  %v2113_v38 = vld [vmem:[#allocation13 + $0xf8] sm:$0xff]  ;;  %v11009_v60 = vpack.c.bf16 %v2353_v59, %v2352_v58  ;;  %v2686_v58 = vld [vmem:[#allocation16 + $0x128] sm:$0xff] }
 0x60a   :  { %10926 = vmatprep.subr.bf16.mxu0 %v10925_v40  ;;  %10966 = vmatprep.subr.bf16.mxu1 %v10965_v62  ;;  %v10985_v6 = vpack.c.bf16 %v2113_v38, %v2112_v34  ;;  %v2451_v34 = vld [vmem:[#allocation13 + $0x158] sm:$0xff] }
 0x60b   :  { %v2688_v59 = vld [vmem:[#allocation16 + $0x138] sm:$0xff] }
 0x60c   :  { %10576 = vmatmul.mubr.msk.f32.vlgmr.msra.gmra.mrb[18].mxu0 %vm1749_vm4, %v15550_v43  ;;  %10968 = vmatpush3.bf16.msra.mxu1 %v10965_v62 }
 0x60d   :  { %10928 = vmatpush3.bf16.msra.mxu0 %v10925_v40  ;;  %10970 = vmatprep.subr.bf16.mxu1 %v10969_v1 }
 0x60e   :  { %10930 = vmatprep.subr.bf16.mxu0 %v10929_v44 }
 0x610   :  { %10972 = vmatpush3.bf16.msra.mxu1 %v10969_v1  ;;  %v2358_v1 = vld [vmem:[#allocation13 + $0x60] sm:$0xff] }
 0x611   :  { %10932 = vmatpush3.bf16.msra.mxu0 %v10929_v44  ;;  %10974 = vmatprep.subr.bf16.mxu1 %v10973_v9 }
 0x612   :  { %10934 = vmatprep.subr.bf16.mxu0 %v10933_v24 }
 0x614   :  { %10976 = vmatpush3.bf16.msra.mxu1 %v10973_v9  ;;  %v2361_v9 = vld [vmem:[#allocation13 + $0x78] sm:$0xff] }
 0x615   :  { %10936 = vmatpush3.bf16.msra.mxu0 %v10933_v24  ;;  %10978 = vmatprep.subr.bf16.mxu1 %v10977_v12  ;;  %v11025_v10 = vpack.c.bf16 %v2361_v9, %v2360_v7  ;;  %v2694_v7 = vld [vmem:[#allocation16 + $0x168] sm:$0xff]  ;;  %v2696_v9 = vld [vmem:[#allocation16 + $0x178] sm:$0xff] }
 0x616   :  { %10938 = vmatprep.subr.bf16.mxu0 %v10937_v49 }
 0x618   :  { %10980 = vmatpush3.bf16.msra.mxu1 %v10977_v12  ;;  %v2441_v12 = vld [vmem:[#allocation13 + $0x108] sm:$0xff] }
 0x619   :  { %10940 = vmatpush3.bf16.msra.mxu0 %v10937_v49  ;;  %10982 = vmatprep.subr.bf16.mxu1 %v10981_v17  ;;  %v11029_v15 = vpack.c.bf16 %v2441_v12, %v2440_v11  ;;  %v11079_v11 = vpack.c.bf16 %v2696_v9, %v2694_v7  ;;  %v2693_v12 = vld [vmem:[#allocation16 + $0x160] sm:$0xff]  ;;  %v2974_v7 = vld [vmem:[#allocation16 + $0x68] sm:$0xff]  ;;  %v2976_v9 = vld [vmem:[#allocation16 + $0x78] sm:$0xff] }
 0x61a   :  { %10942 = vmatprep.subr.bf16.mxu0 %v10941_v53 }
 0x61c   :  { %10984 = vmatpush3.bf16.msra.mxu1 %v10981_v17  ;;  %v2443_v17 = vld [vmem:[#allocation13 + $0x118] sm:$0xff] }
 0x61d   :  { %10986 = vmatprep.subr.bf16.mxu1 %v10985_v6  ;;  %v11033_v23 = vpack.c.bf16 %v2443_v17, %v2442_v16  ;;  %v2698_v16 = vld [vmem:[#allocation16 + $0x188] sm:$0xff]  ;;  %v2700_v17 = vld [vmem:[#allocation16 + $0x198] sm:$0xff] }
 0x620   :  { %10988 = vmatpush3.bf16.msra.mxu1 %v10985_v6  ;;  %v2452_v6 = vld [vmem:[#allocation13 + $0x160] sm:$0xff] }
 0x6d6   :  { %v10563_v18 = vpop.f32.mrb[12].mxu1 }
 0x6d7   :  { %v1704_v19 = vpop.f32.mrb[13].mxu1  ;;  %v1710_v40 = vadd.f32 %v10563_v18, %v10008_v39 }
 0x6d8   :  { %v1705_v41 = vadd.f32 %v10008_v39, %v1704_v19  ;;  %v2453_v39 = vld [vmem:[#allocation13 + $0x168] sm:$0xff] }
 0x6db   :  { %v10570_v25 = vpop.f32.mrb[16].mxu0 }
 0x6dc   :  { %v1822_v26 = vpop.f32.mrb[17].mxu0 }
 0x6dd   :  { %10594 = vmatprep.mubr.msk.f32.mxu0 %vm949_vm8, %v1822_v26  ;;  %v2444_v26 = vld [vmem:[#allocation13 + $0x120] sm:$0xff] }
 0x6de   :  { %10595 = vmatmul.mubr.msk.f32.vlgmr.msra.gmra.mrb[20].mxu0 %vm949_vm8, %v10570_v25 }
 0x6df   :  { %10944 = vmatpush3.bf16.msra.mxu0 %v10941_v53  ;;  %v10577_v30 = vpop.f32.mrb[18].mxu0  ;;  %v2349_v53 = vld [vmem:[#allocation13 + $0x18] sm:$0xff] }
 0x6e0   :  { %10946 = vmatprep.subr.bf16.mxu0 %v10945_v21  ;;  %v1903_v32 = vpop.f32.mrb[19].mxu0 }
 0x6e1   :  { %10613 = vmatprep.mubr.msk.f32.mxu0 %vm949_vm8, %v1903_v32  ;;  %v2448_v32 = vld [vmem:[#allocation13 + $0x140] sm:$0xff] }
 0x6e2   :  { %v11045_v35 = vpack.c.bf16 %v2449_v33, %v2448_v32  ;;  %v2708_v32 = vld [vmem:[#allocation16 + $0x1d8] sm:$0xff] }
 0x6e3   :  { %10948 = vmatpush3.bf16.msra.mxu0 %v10945_v21  ;;  %v2445_v21 = vld [vmem:[#allocation13 + $0x128] sm:$0xff] }
 0x6e4   :  { %10950 = vmatprep.subr.bf16.mxu0 %v10949_v31  ;;  %v11037_v27 = vpack.c.bf16 %v2445_v21, %v2444_v26  ;;  %v2704_v26 = vld [vmem:[#allocation16 + $0x1b8] sm:$0xff] }
 0x6e7   :  { %10952 = vmatpush3.bf16.msra.mxu0 %v10949_v31 }
 0x6e8   :  { %10954 = vmatprep.subr.bf16.mxu0 %v10953_v37 }
 0x6eb   :  { %10956 = vmatpush3.bf16.msra.mxu0 %v10953_v37  ;;  %v2450_v37 = vld [vmem:[#allocation13 + $0x150] sm:$0xff] }
 0x6ec   :  { %v11049_v38 = vpack.c.bf16 %v2451_v34, %v2450_v37  ;;  %v2705_v37 = vld [vmem:[#allocation16 + $0x1c0] sm:$0xff]  ;;  %v2707_v34 = vld [vmem:[#allocation16 + $0x1d0] sm:$0xff] }
 0x6ee   :  { %10614 = vmatmul.mubr.msk.f32.vlgmr.msra.gmra.mrb[20].mxu0 %vm949_vm8, %v10577_v30  ;;  %v2447_v30 = vld [vmem:[#allocation13 + $0x138] sm:$0xff] }
 0x6ef   :  { %10655 = vmatprep.mubr.msk.f32.mxu0 %vm1749_vm4, %v15523_v29  ;;  %v2348_v29 = vld [vmem:[#allocation13 + $0x10] sm:$0xff]  ;;  %v11041_v31 = vpack.c.bf16 %v2447_v30, %v2446_v28  ;;  %v2701_v28 = vld [vmem:[#allocation16 + $0x1a0] sm:$0xff] }
 0x6f0   :  { %v11001_v54 = vpack.c.bf16 %v2349_v53, %v2348_v29  ;;  %v2682_v53 = vld [vmem:[#allocation16 + $0x108] sm:$0xff]  ;;  %v2703_v30 = vld [vmem:[#allocation16 + $0x1b0] sm:$0xff] }
 0x6f1   :  { %v11089_v33 = vpack.c.bf16 %v2703_v30, %v2701_v28  ;;  %v2981_v28 = vld [vmem:[#allocation16 + $0xa0] sm:$0xff]  ;;  %v2983_v30 = vld [vmem:[#allocation16 + $0xb0] sm:$0xff] }
 0x7c1   :  { %v10615_v42 = vpop.f32.mrb[20].mxu0 }
 0x7c2   :  { %v14338_v44 = vadd.f32 %v10615_v42, %v1710_v40  ;;  %v2084_v45 = vpop.f32.mrb[21].mxu0  ;;  %v11053_v40 = vpack.c.bf16 %v2453_v39, %v2452_v6  ;;  %v2455_v42 = vld [vmem:[#allocation13 + $0x178] sm:$0xff]  ;;  %v2710_v6 = vld [vmem:[#allocation16 + $0x1e8] sm:$0xff] }
 0x7c3   :  { %v14340_v46 = vadd.f32 %v2084_v45, %v1705_v41  ;;  %v2454_v41 = vld [vmem:[#allocation13 + $0x170] sm:$0xff]  ;;  %v18294_v45 = vmov 0.0|0.0   ;;  %v2712_v39 = vld [vmem:[#allocation16 + $0x1f8] sm:$0xff] }
 0x7c4   :  { %v2096_v24 = vmax.f32 %v14338_v44, 0.0  ;;  %v11057_v44 = vpack.c.bf16 %v2455_v42, %v2454_v41  ;;  %v2709_v41 = vld [vmem:[#allocation16 + $0x1e0] sm:$0xff]  ;;  %v2711_v42 = vld [vmem:[#allocation16 + $0x1f0] sm:$0xff] }
 0x7c5   :  { %v2095_v49 = vmax.f32 %v14340_v46, 0.0  ;;  %v10019_v46 = vld [vmem:[#allocation14] ss:$0 sm:$0xff] }
 0x7c7   :  { %v10989_v51 = vpack.c.bf16 %v2096_v24, %v2095_v49  ;;  %10648 = vmatprep.mubr.f32.mxu1 %v2095_v49 }
 0x7c8   :  { %10649 = vmatmul.mubr.f32.vlgmr.msra.gmra.mrb[14].mxu1 %v2096_v24 }
 0x7c9   :  { %10990 = vmatprep.subr.bf16.mxu0 %v10989_v51  ;;  %10994 = vmatprep.subr.bf16.mxu1 %v10989_v51 }
 0x7ca   :  { %10992 = vmatpush3.bf16.msra.mxu0 %v10989_v51  ;;  %10996 = vmatpush3.bf16.msra.mxu1 %v10989_v51 }
 0x7cb   :  { %10662 = vmatprep.mubr.msk.f32.mxu1 %vm1749_vm4, %v15540_v13  ;;  %10998 = vmatprep.subr.bf16.mxu1 %v10997_v52  ;;  %v2355_v13 = vld [vmem:[#allocation13 + $0x48] sm:$0xff] }
 0x7cc   :  { %v11013_v62 = vpack.c.bf16 %v2355_v13, %v2354_v61  ;;  %11061 = vmatprep.subr.bf16.mxu0 %v18294_v45  ;;  %v11071_v61 = vpack.c.bf16 %v2688_v59, %v2686_v58  ;;  %v2685_v13 = vld [vmem:[#allocation16 + $0x120] sm:$0xff]  ;;  %v2968_v58 = vld [vmem:[#allocation16 + $0x38] sm:$0xff] }
 0x7cd   :  { %10656 = vmatmul.mubr.msk.f32.vlgmr.msra.gmra.mrb[22].mxu0 %vm1749_vm4, %v15537_v36  ;;  %10663 = vmatmul.mubr.msk.f32.vlgmr.msra.gmra.mrb[16].mxu1 %vm1749_vm4, %v15550_v43  ;;  %v11017_v36 = vpack.c.bf16 %v2357_v0, %v2356_v63  ;;  %v2359_v43 = vld [vmem:[#allocation13 + $0x68] sm:$0xff]  ;;  %v2692_v0 = vld [vmem:[#allocation16 + $0x158] sm:$0xff] }
 0x7ce   :  { %11000 = vmatpush3.bf16.msra.mxu1 %v10997_v52  ;;  %v11021_v5 = vpack.c.bf16 %v2359_v43, %v2358_v1  ;;  %10739 = vmatprep.mubr.msk.f32.mxu0 %vm14964_vm10, %v18296_v20  ;;  %v2690_v63 = vld [vmem:[#allocation16 + $0x148] sm:$0xff]  ;;  %v2689_v43 = vld [vmem:[#allocation16 + $0x140] sm:$0xff] }
 0x7cf   :  { %11002 = vmatprep.subr.bf16.mxu1 %v11001_v54  ;;  %v11075_v1 = vpack.c.bf16 %v2692_v0, %v2690_v63  ;;  %v2970_v63 = vld [vmem:[#allocation16 + $0x48] sm:$0xff]  ;;  %v2972_v0 = vld [vmem:[#allocation16 + $0x58] sm:$0xff] }
 0x7d2   :  { %11004 = vmatpush3.bf16.msra.mxu1 %v11001_v54  ;;  %v2684_v54 = vld [vmem:[#allocation16 + $0x118] sm:$0xff] }
 0x7d3   :  { %11006 = vmatprep.subr.bf16.mxu1 %v11005_v57  ;;  %v11067_v55 = vpack.c.bf16 %v2684_v54, %v2682_v53 }
 0x7d6   :  { %11008 = vmatpush3.bf16.msra.mxu1 %v11005_v57  ;;  %v2683_v57 = vld [vmem:[#allocation16 + $0x110] sm:$0xff] }
 0x7d7   :  { %11010 = vmatprep.subr.bf16.mxu1 %v11009_v60 }
 0x7da   :  { %11012 = vmatpush3.bf16.msra.mxu1 %v11009_v60  ;;  %v11069_v60 = vpack.c.bf16 %v2683_v57, %v2681_v56  ;;  %v2963_v56 = vld [vmem:[#allocation16 + $0x10] sm:$0xff]  ;;  %v2966_v57 = vld [vmem:[#allocation16 + $0x28] sm:$0xff] }
 0x7db   :  { %11014 = vmatprep.subr.bf16.mxu1 %v11013_v62 }
 0x7de   :  { %11016 = vmatpush3.bf16.msra.mxu1 %v11013_v62  ;;  %v2687_v62 = vld [vmem:[#allocation16 + $0x130] sm:$0xff] }
 0x7df   :  { %11018 = vmatprep.subr.bf16.mxu1 %v11017_v36 }
 0x7e2   :  { %11020 = vmatpush3.bf16.msra.mxu1 %v11017_v36  ;;  %v11073_v36 = vpack.c.bf16 %v2687_v62, %v2685_v13  ;;  %v2965_v13 = vld [vmem:[#allocation16 + $0x20] sm:$0xff]  ;;  %v2967_v62 = vld [vmem:[#allocation16 + $0x30] sm:$0xff] }
 0x7e3   :  { %11022 = vmatprep.subr.bf16.mxu1 %v11021_v5 }
 0x7e6   :  { %11024 = vmatpush3.bf16.msra.mxu1 %v11021_v5  ;;  %v2691_v5 = vld [vmem:[#allocation16 + $0x150] sm:$0xff] }
 0x7e7   :  { %11026 = vmatprep.subr.bf16.mxu1 %v11025_v10 }
 0x7ea   :  { %11028 = vmatpush3.bf16.msra.mxu1 %v11025_v10  ;;  %v11077_v10 = vpack.c.bf16 %v2691_v5, %v2689_v43  ;;  %v2969_v43 = vld [vmem:[#allocation16 + $0x40] sm:$0xff]  ;;  %v2971_v5 = vld [vmem:[#allocation16 + $0x50] sm:$0xff] }
 0x7eb   :  { %11030 = vmatprep.subr.bf16.mxu1 %v11029_v15 }
 0x8a0   :  { %v10657_v18 = vpop.f32.mrb[22].mxu0  ;;  %v10664_v19 = vpop.f32.mrb[16].mxu1 }
 0x8a1   :  { %v2262_v22 = vpop.f32.mrb[23].mxu0  ;;  %v2337_v25 = vpop.f32.mrb[17].mxu1 }
 0x8a2   :  { %10697 = vmatprep.mubr.f32.mxu1 %v2262_v22  ;;  %v2697_v22 = vld [vmem:[#allocation16 + $0x180] sm:$0xff] }
 0x8a3   :  { %10698 = vmatmul.mubr.f32.vlgmr.msra.gmra.mrb[14].mxu1 %v10657_v18 }
 0x8a4   :  { %11032 = vmatpush3.bf16.msra.mxu1 %v11029_v15  ;;  %10732 = vmatprep.mubr.f32.mxu1 %v2337_v25  ;;  %v2695_v15 = vld [vmem:[#allocation16 + $0x170] sm:$0xff]  ;;  %v2702_v25 = vld [vmem:[#allocation16 + $0x1a8] sm:$0xff] }
 0x8a5   :  { %11034 = vmatprep.subr.bf16.mxu1 %v11033_v23  ;;  %v11081_v18 = vpack.c.bf16 %v2695_v15, %v2693_v12  ;;  %v2973_v12 = vld [vmem:[#allocation16 + $0x60] sm:$0xff]  ;;  %v2975_v15 = vld [vmem:[#allocation16 + $0x70] sm:$0xff] }
 0x8a8   :  { %11036 = vmatpush3.bf16.msra.mxu1 %v11033_v23  ;;  %v2699_v23 = vld [vmem:[#allocation16 + $0x190] sm:$0xff] }
 0x8a9   :  { %11038 = vmatprep.subr.bf16.mxu1 %v11037_v27  ;;  %v11085_v21 = vpack.c.bf16 %v2699_v23, %v2697_v22  ;;  %v2977_v22 = vld [vmem:[#allocation16 + $0x80] sm:$0xff]  ;;  %v2979_v23 = vld [vmem:[#allocation16 + $0x90] sm:$0xff] }
 0x8ac   :  { %11040 = vmatpush3.bf16.msra.mxu1 %v11037_v27  ;;  %v11087_v27 = vpack.c.bf16 %v2704_v26, %v2702_v25  ;;  %v2982_v25 = vld [vmem:[#allocation16 + $0xa8] sm:$0xff]  ;;  %v2984_v26 = vld [vmem:[#allocation16 + $0xb8] sm:$0xff] }
 0x8ad   :  { %11042 = vmatprep.subr.bf16.mxu1 %v11041_v31 }
 0x8b0   :  { %11044 = vmatpush3.bf16.msra.mxu1 %v11041_v31  ;;  %v2706_v31 = vld [vmem:[#allocation16 + $0x1c8] sm:$0xff] }
 0x8b1   :  { %11046 = vmatprep.subr.bf16.mxu1 %v11045_v35 }
 0x8b4   :  { %11048 = vmatpush3.bf16.msra.mxu1 %v11045_v35  ;;  %v11091_v35 = vpack.c.bf16 %v2708_v32, %v2706_v31  ;;  %v2986_v31 = vld [vmem:[#allocation16 + $0xc8] sm:$0xff]  ;;  %v2988_v32 = vld [vmem:[#allocation16 + $0xd8] sm:$0xff] }
 0x8b5   :  { %11050 = vmatprep.subr.bf16.mxu1 %v11049_v38 }
 0x8b8   :  { %11052 = vmatpush3.bf16.msra.mxu1 %v11049_v38  ;;  %v11093_v38 = vpack.c.bf16 %v2707_v34, %v2705_v37  ;;  %v2985_v37 = vld [vmem:[#allocation16 + $0xc0] sm:$0xff]  ;;  %v2987_v34 = vld [vmem:[#allocation16 + $0xd0] sm:$0xff] }
 0x8b9   :  { %11054 = vmatprep.subr.bf16.mxu1 %v11053_v40 }
 0x8bc   :  { %11056 = vmatpush3.bf16.msra.mxu1 %v11053_v40  ;;  %v11095_v40 = vpack.c.bf16 %v2712_v39, %v2710_v6  ;;  %v2992_v6 = vld [vmem:[#allocation16 + $0xf8] sm:$0xff]  ;;  %v11125_v39 = vpack.c.bf16 %v2987_v34, %v2985_v37 }
 0x8bd   :  { %11058 = vmatprep.subr.bf16.mxu1 %v11057_v44  ;;  %v3206_v37 = vld [vmem:[#allocation19 + $0x2f8] sm:$0xff] }
 0x8c0   :  { %11060 = vmatpush3.bf16.msra.mxu1 %v11057_v44  ;;  %v11097_v44 = vpack.c.bf16 %v2711_v42, %v2709_v41  ;;  %v2989_v41 = vld [vmem:[#allocation16 + $0xe0] sm:$0xff]  ;;  %v2991_v42 = vld [vmem:[#allocation16 + $0xf0] sm:$0xff] }
 0x8c3   :  { %10733 = vmatmul.mubr.f32.vlgmr.msra.gmra.mrb[14].mxu1 %v10664_v19  ;;  %v11083_v19 = vpack.c.bf16 %v2700_v17, %v2698_v16  ;;  %v2978_v16 = vld [vmem:[#allocation16 + $0x88] sm:$0xff]  ;;  %v2980_v17 = vld [vmem:[#allocation16 + $0x98] sm:$0xff] }
 0x996   :  { %v10734_v24 = vpop.f32.mrb[14].mxu1 }
 0x997   :  { %v14341_v47 = vadd.f32 %v10734_v24, %v10019_v46  ;;  %v2522_v48 = vpop.f32.mrb[15].mxu1 }
 0x998   :  { %v14342_v49 = vadd.f32 %v10019_v46, %v2522_v48  ;;  %v2800_v46 = vand.u32 3, %v15349_v2 }
 0x999   :  { %v2534_v51 = vmax.f32 %v14341_v47, 0.0 }
 0x99a   :  { %v2533_v52 = vmax.f32 %v14342_v49, 0.0  ;;  %vm2808_vm8 = vcmp.ne.s32.totalorder %v2800_v46, 0  ;;  %vm2811_vm3 = vcmp.ne.s32.totalorder %v2800_v46, 3  ;;  %v3068_v46 = vld [vmem:[#allocation16 + $0x208] sm:$0xff] }
 0x99b   :  { %vm2809_vm15 = vmand %vm439_vm2, %vm2808_vm8 }
 0x99c   :  { %v11062_v29 = vpack.c.bf16 %v2534_v51, %v2533_v52  ;;  %v2962_v52 = vld [vmem:[#allocation16 + $0x8] sm:$0xff]  ;;  %v15585_v53 = vsel %vm2809_vm15, 1.0, %v18296_v20  ;;  %vm2812_vm7 = vmand %vm507_vm6, %vm2811_vm3 }
 0x99d   :  { %v15596_v59 = vsel %vm2812_vm7, 1.0, %v18296_v20 }
 0x99e   :  { %11063 = vmatpush3.bf16.msra.mxu0 %v11062_v29 }
 0x99f   :  { %11064 = vmatprep.subr.bf16.mxu0 %v18294_v45  ;;  %v3622_v45 = vld [vmem:[#allocation19 + $0x4a0] sm:$0xff] }
 0x9a1   :  { %10740 = vmatmul.mubr.msk.f32.vlgmr.msra.gmra.mrb[24].mxu0 %vm1749_vm4, %v15501_v50  ;;  %v3636_v50 = vld [vmem:[#allocation19 + $0x510] sm:$0xff] }
 0x9a2   :  { %11066 = vmatpush3.bf16.msra.mxu0 %v11062_v29  ;;  %10746 = vmatprep.mubr.msk.f32.mxu0 %vm14964_vm10, %v18296_v20  ;;  %v2964_v29 = vld [vmem:[#allocation16 + $0x18] sm:$0xff] }
 0x9a3   :  { %11068 = vmatprep.subr.bf16.mxu0 %v11067_v55  ;;  %v11099_v54 = vpack.c.bf16 %v2964_v29, %v2962_v52  ;;  %v2961_v55 = vld [vmem:[#allocation16] sm:$0xff]  ;;  %v3177_v29 = vld [vmem:[#allocation19 + $0x210] sm:$0xff] }
 0x9a5   :  { %10747 = vmatmul.mubr.msk.f32.vlgmr.msra.gmra.mrb[26].mxu0 %vm1749_vm4, %v15510_v14  ;;  %vm2814_vm4 = vcmask 64512   ;;  %v3634_v14 = vld [vmem:[#allocation19 + $0x500] sm:$0xff] }
 0x9a6   :  { %11070 = vmatpush1.bf16.msra.mxu0 %v11069_v60  ;;  %2789 = vmatprep.mubr.f32.mxu0 %v18296_v20  ;;  %v11101_v60 = vpack.c.bf16 %v2963_v56, %v2961_v55  ;;  %v3182_v55 = vld [vmem:[#allocation19 + $0x238] sm:$0xff] }
 0x9a7   :  { %11072 = vmatprep.subr.bf16.mxu0 %v11071_v61  ;;  %v11103_v61 = vpack.c.bf16 %v2968_v58, %v2966_v57  ;;  %v3179_v58 = vld [vmem:[#allocation19 + $0x220] sm:$0xff] }
 0x9aa   :  { %11074 = vmatpush1.bf16.msra.mxu0 %v11073_v36  ;;  %v11105_v36 = vpack.c.bf16 %v2967_v62, %v2965_v13  ;;  %v3186_v13 = vld [vmem:[#allocation19 + $0x258] sm:$0xff] }
 0x9ab   :  { %11076 = vmatprep.subr.bf16.mxu0 %v11075_v1  ;;  %v11107_v1 = vpack.c.bf16 %v2972_v0, %v2970_v63  ;;  %v3183_v0 = vld [vmem:[#allocation19 + $0x240] sm:$0xff] }
 0x9ae   :  { %11078 = vmatpush1.bf16.msra.mxu0 %v11077_v10  ;;  %v11109_v10 = vpack.c.bf16 %v2971_v5, %v2969_v43  ;;  %v3190_v43 = vld [vmem:[#allocation19 + $0x278] sm:$0xff] }
 0x9af   :  { %11080 = vmatprep.subr.bf16.mxu0 %v11079_v11  ;;  %v11111_v11 = vpack.c.bf16 %v2976_v9, %v2974_v7  ;;  %v3187_v9 = vld [vmem:[#allocation19 + $0x260] sm:$0xff] }
 0x9b2   :  { %11082 = vmatpush1.bf16.msra.mxu0 %v11081_v18  ;;  %v11113_v18 = vpack.c.bf16 %v2975_v15, %v2973_v12  ;;  %v3194_v12 = vld [vmem:[#allocation19 + $0x298] sm:$0xff] }
 0x9b3   :  { %11084 = vmatprep.subr.bf16.mxu0 %v11083_v19  ;;  %v11115_v19 = vpack.c.bf16 %v2980_v17, %v2978_v16  ;;  %v3191_v17 = vld [vmem:[#allocation19 + $0x280] sm:$0xff] }
 0x9b6   :  { %11086 = vmatpush1.bf16.msra.mxu0 %v11085_v21  ;;  %v11117_v21 = vpack.c.bf16 %v2979_v23, %v2977_v22  ;;  %v3198_v22 = vld [vmem:[#allocation19 + $0x2b8] sm:$0xff] }
 0x9b7   :  { %11088 = vmatprep.subr.bf16.mxu0 %v11087_v27  ;;  %v11119_v27 = vpack.c.bf16 %v2984_v26, %v2982_v25  ;;  %v3195_v26 = vld [vmem:[#allocation19 + $0x2a0] sm:$0xff] }
 0x9ba   :  { %11090 = vmatpush1.bf16.msra.mxu0 %v11089_v33  ;;  %v11121_v33 = vpack.c.bf16 %v2983_v30, %v2981_v28  ;;  %v3202_v28 = vld [vmem:[#allocation19 + $0x2d8] sm:$0xff] }
 0x9bb   :  { %11092 = vmatprep.subr.bf16.mxu0 %v11091_v35  ;;  %v11123_v35 = vpack.c.bf16 %v2988_v32, %v2986_v31  ;;  %v3199_v32 = vld [vmem:[#allocation19 + $0x2c0] sm:$0xff] }
 0x9be   :  { %11094 = vmatpush1.bf16.msra.mxu0 %v11093_v38  ;;  %v2990_v38 = vld [vmem:[#allocation16 + $0xe8] sm:$0xff] }
 0x9bf   :  { %11096 = vmatprep.subr.bf16.mxu0 %v11095_v40  ;;  %v11127_v40 = vpack.c.bf16 %v2992_v6, %v2990_v38  ;;  %v3203_v6 = vld [vmem:[#allocation19 + $0x2e0] sm:$0xff] }
 0x9c2   :  { %11098 = vmatpush1.bf16.msra.mxu0 %v11097_v44  ;;  %v11129_v44 = vpack.c.bf16 %v2991_v42, %v2989_v41  ;;  %v3210_v41 = vld [vmem:[#allocation19 + $0x318] sm:$0xff] }
 0x9c3   :  { %10749 = vmatprep.subr.mxu0 %v18296_v20 }
 0xa74   :  { %v2603_v24 = vpop.f32.mrb[24].mxu0 }
 0xa75   :  { %v10741_v47 = vpop.f32.mrb[25].mxu0 }
 0xa78   :  { %v2675_v48 = vpop.f32.mrb[26].mxu0 }
 0xa79   :  { %v2679_v49 = vmax.f32 %v2603_v24, %v2675_v48  ;;  %v10748_v51 = vpop.f32.mrb[27].mxu0  ;;  %v3070_v24 = vld [vmem:[#allocation16 + $0x218] sm:$0xff]  ;;  %v3176_v48 = vld [vmem:[#allocation19 + $0x208] sm:$0xff] }
 0xa7a   :  { %v11131_v47 = vpack.c.bf16 %v3070_v24, %v3068_v46  ;;  %v3175_v51 = vld [vmem:[#allocation19 + $0x200] sm:$0xff]  ;;  %v3209_v24 = vld [vmem:[#allocation19 + $0x310] sm:$0xff] }
 0xa7b   :  { %2790 = vmatmul.mubr.f32.vlgmr.msra.gmra.mrb[28].mxu0 %v2679_v49  ;;  %v15603_v56 = vpack.c.bf16 %v3177_v29, %v3175_v51  ;;  %v3207_v46 = vld [vmem:[#allocation19 + $0x300] sm:$0xff] }
 0xa7c   :  { %10750 = vmatpush3.msra.mxu0 %v2679_v49  ;;  %10751 = vmatprep.mubr.msk.f32.mxu0 %vm14964_vm10, %v18296_v20  ;;  %v3211_v29 = vld [vmem:[#allocation19 + $0x320] sm:$0xff] }
 0xa7d   :  { %10754 = vmatprep.subr.mxu0 %v18296_v20 }
 0xa7f   :  { %10752 = vmatmul.mubr.msk.f32.vlgmr.msra.gmra.mrb[30].mxu0 %vm2814_vm4, %v15585_v53 }
 0xa80   :  { %10755 = vmatpush3.msra.mxu0 %v2679_v49  ;;  %10756 = vmatprep.mubr.msk.f32.mxu0 %vm14964_vm10, %v18296_v20  ;;  %v3178_v49 = vld [vmem:[#allocation19 + $0x218] sm:$0xff] }
 0xa81   :  { %11100 = vmatprep.subr.bf16.mxu0 %v11099_v54  ;;  %v15601_v52 = vpack.c.bf16 %v3178_v49, %v3176_v48  ;;  %v3180_v54 = vld [vmem:[#allocation19 + $0x228] sm:$0xff]  ;;  %v3214_v48 = vld [vmem:[#allocation19 + $0x338] sm:$0xff]  ;;  %v15651_v49 = vpack.c.bf16 %v3209_v24, %v3207_v46 }
 0xa82   :  { %v15605_v57 = vpack.c.bf16 %v3182_v55, %v3180_v54  ;;  %v3213_v54 = vld [vmem:[#allocation19 + $0x330] sm:$0xff]  ;;  %v3216_v55 = vld [vmem:[#allocation19 + $0x348] sm:$0xff] }
 0xa83   :  { %10757 = vmatmul.mubr.msk.f32.vlgmr.msra.gmra.mrb[32].mxu0 %vm2814_vm4, %v15596_v59  ;;  %11164 = vmatprep.subr.bf16.mxu1 %v15601_v52  ;;  %v3069_v46 = vld [vmem:[#allocation16 + $0x210] sm:$0xff]  ;;  %v3072_v24 = vld [vmem:[#allocation16 + $0x228] sm:$0xff] }
 0xa84   :  { %11102 = vmatpush1.bf16.msra.mxu0 %v11101_v60  ;;  %3057 = vmatprep.mubr.f32.mxu0 %v18296_v20  ;;  %v3181_v60 = vld [vmem:[#allocation19 + $0x230] sm:$0xff] }
 0xa85   :  { %11104 = vmatprep.subr.bf16.mxu0 %v11103_v61  ;;  %v3184_v61 = vld [vmem:[#allocation19 + $0x248] sm:$0xff]  ;;  %11166 = vmatpush1.bf16.msra.mxu1 %v15603_v56  ;;  %v15609_v62 = vpack.c.bf16 %v3181_v60, %v3179_v58  ;;  %v3218_v58 = vld [vmem:[#allocation19 + $0x358] sm:$0xff]  ;;  %v15657_v60 = vpack.c.bf16 %v3213_v54, %v3211_v29 }
 0xa86   :  { %11168 = vmatprep.subr.bf16.mxu1 %v15605_v57  ;;  %v15612_v63 = vpack.c.bf16 %v3186_v13, %v3184_v61  ;;  %v15660_v61 = vpack.c.bf16 %v3218_v58, %v3216_v55  ;;  %v3215_v13 = vld [vmem:[#allocation19 + $0x340] sm:$0xff]  ;;  %v3073_v55 = vld [vmem:[#allocation16 + $0x230] sm:$0xff] }
 0xa87   :  { %v3071_v54 = vld [vmem:[#allocation16 + $0x220] sm:$0xff] }
 0xa88   :  { %11106 = vmatpush1.bf16.msra.mxu0 %v11105_v36  ;;  %v3185_v36 = vld [vmem:[#allocation19 + $0x250] sm:$0xff] }
 0xa89   :  { %11108 = vmatprep.subr.bf16.mxu0 %v11107_v1  ;;  %v3188_v1 = vld [vmem:[#allocation19 + $0x268] sm:$0xff]  ;;  %11170 = vmatpush1.bf16.msra.mxu1 %v15609_v62  ;;  %v15615_v5 = vpack.c.bf16 %v3185_v36, %v3183_v0  ;;  %v3217_v0 = vld [vmem:[#allocation19 + $0x350] sm:$0xff] }
 0xa8a   :  { %11172 = vmatprep.subr.bf16.mxu1 %v15612_v63  ;;  %v15618_v7 = vpack.c.bf16 %v3190_v43, %v3188_v1  ;;  %v3220_v36 = vld [vmem:[#allocation19 + $0x368] sm:$0xff]  ;;  %v3222_v1 = vld [vmem:[#allocation19 + $0x378] sm:$0xff]  ;;  %v15663_v43 = vpack.c.bf16 %v3217_v0, %v3215_v13 }
 0xa8b   :  { %v3076_v13 = vld [vmem:[#allocation16 + $0x248] sm:$0xff]  ;;  %v3078_v0 = vld [vmem:[#allocation16 + $0x258] sm:$0xff] }
 0xa8c   :  { %11110 = vmatpush1.bf16.msra.mxu0 %v11109_v10  ;;  %v3189_v10 = vld [vmem:[#allocation19 + $0x270] sm:$0xff] }
 0xa8d   :  { %11112 = vmatprep.subr.bf16.mxu0 %v11111_v11  ;;  %v3192_v11 = vld [vmem:[#allocation19 + $0x288] sm:$0xff]  ;;  %11174 = vmatpush1.bf16.msra.mxu1 %v15615_v5  ;;  %v15621_v15 = vpack.c.bf16 %v3189_v10, %v3187_v9  ;;  %v15666_v9 = vpack.c.bf16 %v3222_v1, %v3220_v36  ;;  %v3219_v10 = vld [vmem:[#allocation19 + $0x360] sm:$0xff]  ;;  %v11137_v1 = vpack.c.bf16 %v3073_v55, %v3071_v54  ;;  %v3090_v54 = vld [vmem:[#allocation16 + $0x2b8] sm:$0xff] }
 0xa8e   :  { %11176 = vmatprep.subr.bf16.mxu1 %v15618_v7  ;;  %v15624_v16 = vpack.c.bf16 %v3194_v12, %v3192_v11  ;;  %v3221_v11 = vld [vmem:[#allocation19 + $0x370] sm:$0xff]  ;;  %v3224_v12 = vld [vmem:[#allocation19 + $0x388] sm:$0xff] }
 0xa90   :  { %11114 = vmatpush1.bf16.msra.mxu0 %v11113_v18  ;;  %v3193_v18 = vld [vmem:[#allocation19 + $0x290] sm:$0xff] }
 0xa91   :  { %11116 = vmatprep.subr.bf16.mxu0 %v11115_v19  ;;  %v3196_v19 = vld [vmem:[#allocation19 + $0x2a8] sm:$0xff]  ;;  %11178 = vmatpush1.bf16.msra.mxu1 %v15621_v15  ;;  %v15627_v23 = vpack.c.bf16 %v3193_v18, %v3191_v17  ;;  %v3226_v17 = vld [vmem:[#allocation19 + $0x398] sm:$0xff]  ;;  %v15669_v18 = vpack.c.bf16 %v3221_v11, %v3219_v10  ;;  %v11139_v10 = vpack.c.bf16 %v3078_v0, %v3076_v13 }
 0xa92   :  { %11180 = vmatprep.subr.bf16.mxu1 %v15624_v16  ;;  %v15630_v25 = vpack.c.bf16 %v3198_v22, %v3196_v19  ;;  %v15672_v19 = vpack.c.bf16 %v3226_v17, %v3224_v12  ;;  %v3223_v22 = vld [vmem:[#allocation19 + $0x380] sm:$0xff]  ;;  %v3077_v12 = vld [vmem:[#allocation16 + $0x250] sm:$0xff] }
 0xa93   :  { %v3075_v11 = vld [vmem:[#allocation16 + $0x240] sm:$0xff]  ;;  %v3080_v17 = vld [vmem:[#allocation16 + $0x268] sm:$0xff]  ;;  %v3089_v0 = vld [vmem:[#allocation16 + $0x2b0] sm:$0xff] }
 0xa94   :  { %11118 = vmatpush1.bf16.msra.mxu0 %v11117_v21  ;;  %v3197_v21 = vld [vmem:[#allocation19 + $0x2b0] sm:$0xff]  ;;  %v3087_v13 = vld [vmem:[#allocation16 + $0x2a0] sm:$0xff] }
 0xa95   :  { %11120 = vmatprep.subr.bf16.mxu0 %v11119_v27  ;;  %v3200_v27 = vld [vmem:[#allocation19 + $0x2c8] sm:$0xff]  ;;  %11182 = vmatpush1.bf16.msra.mxu1 %v15627_v23  ;;  %v15633_v30 = vpack.c.bf16 %v3197_v21, %v3195_v26  ;;  %v3225_v26 = vld [vmem:[#allocation19 + $0x390] sm:$0xff] }
 0xa96   :  { %11184 = vmatprep.subr.bf16.mxu1 %v15630_v25  ;;  %v15636_v31 = vpack.c.bf16 %v3202_v28, %v3200_v27  ;;  %v3228_v21 = vld [vmem:[#allocation19 + $0x3a8] sm:$0xff]  ;;  %v3230_v27 = vld [vmem:[#allocation19 + $0x3b8] sm:$0xff]  ;;  %v15675_v28 = vpack.c.bf16 %v3225_v26, %v3223_v22 }
 0xa97   :  { %v3082_v22 = vld [vmem:[#allocation16 + $0x278] sm:$0xff] }
 0xa98   :  { %11122 = vmatpush1.bf16.msra.mxu0 %v11121_v33  ;;  %v3201_v33 = vld [vmem:[#allocation19 + $0x2d0] sm:$0xff] }
 0xa99   :  { %11124 = vmatprep.subr.bf16.mxu0 %v11123_v35  ;;  %v3204_v35 = vld [vmem:[#allocation19 + $0x2e8] sm:$0xff]  ;;  %11186 = vmatpush1.bf16.msra.mxu1 %v15633_v30  ;;  %v15639_v34 = vpack.c.bf16 %v3201_v33, %v3199_v32  ;;  %v15678_v32 = vpack.c.bf16 %v3230_v27, %v3228_v21  ;;  %v3227_v33 = vld [vmem:[#allocation19 + $0x3a0] sm:$0xff]  ;;  %v11141_v27 = vpack.c.bf16 %v3077_v12, %v3075_v11 }
 0xa9a   :  { %11188 = vmatprep.subr.bf16.mxu1 %v15636_v31  ;;  %v15642_v38 = vpack.c.bf16 %v3206_v37, %v3204_v35  ;;  %v3229_v35 = vld [vmem:[#allocation19 + $0x3b0] sm:$0xff]  ;;  %v3232_v37 = vld [vmem:[#allocation19 + $0x3c8] sm:$0xff]  ;;  %v3091_v12 = vld [vmem:[#allocation16 + $0x2c0] sm:$0xff] }
 0xa9c   :  { %11126 = vmatpush1.bf16.msra.mxu0 %v11125_v39  ;;  %v3205_v39 = vld [vmem:[#allocation19 + $0x2f0] sm:$0xff] }
 0xa9d   :  { %11128 = vmatprep.subr.bf16.mxu0 %v11127_v40  ;;  %v3208_v40 = vld [vmem:[#allocation19 + $0x308] sm:$0xff]  ;;  %11190 = vmatpush1.bf16.msra.mxu1 %v15639_v34  ;;  %v15645_v42 = vpack.c.bf16 %v3205_v39, %v3203_v6  ;;  %v3234_v6 = vld [vmem:[#allocation19 + $0x3d8] sm:$0xff]  ;;  %v15681_v39 = vpack.c.bf16 %v3229_v35, %v3227_v33  ;;  %v11143_v33 = vpack.c.bf16 %v3082_v22, %v3080_v17 }
 0xa9e   :  { %11192 = vmatprep.subr.bf16.mxu1 %v15642_v38  ;;  %v3079_v35 = vld [vmem:[#allocation16 + $0x260] sm:$0xff]  ;;  %v3093_v17 = vld [vmem:[#allocation16 + $0x2d0] sm:$0xff]  ;;  %v3096_v22 = vld [vmem:[#allocation16 + $0x2e8] sm:$0xff] }
 0xaa0   :  { %11130 = vmatpush1.bf16.msra.mxu0 %v11129_v44  ;;  %v15648_v44 = vpack.c.bf16 %v3210_v41, %v3208_v40  ;;  %v15684_v40 = vpack.c.bf16 %v3234_v6, %v3232_v37  ;;  %v3067_v41 = vld [vmem:[#allocation16 + $0x200] sm:$0xff]  ;;  %v3081_v37 = vld [vmem:[#allocation16 + $0x270] sm:$0xff]  ;;  %v3084_v6 = vld [vmem:[#allocation16 + $0x288] sm:$0xff] }
 0xaa1   :  { %11132 = vmatprep.subr.bf16.mxu0 %v11131_v47  ;;  %v3212_v47 = vld [vmem:[#allocation19 + $0x328] sm:$0xff]  ;;  %11194 = vmatpush1.bf16.msra.mxu1 %v15645_v42 }
 0xaa2   :  { %11196 = vmatprep.subr.bf16.mxu1 %v15648_v44  ;;  %v15654_v51 = vpack.c.bf16 %v3214_v48, %v3212_v47  ;;  %v3074_v47 = vld [vmem:[#allocation16 + $0x238] sm:$0xff]  ;;  %v11133_v48 = vpack.c.bf16 %v3069_v46, %v3067_v41  ;;  %v11145_v46 = vpack.c.bf16 %v3081_v37, %v3079_v35  ;;  %v3095_v35 = vld [vmem:[#allocation16 + $0x2e0] sm:$0xff]  ;;  %v3097_v37 = vld [vmem:[#allocation16 + $0x2f0] sm:$0xff] }
 0xaa3   :  { %v11135_v29 = vpack.c.bf16 %v3074_v47, %v3072_v24  ;;  %v3086_v41 = vld [vmem:[#allocation16 + $0x298] sm:$0xff]  ;;  %v3083_v47 = vld [vmem:[#allocation16 + $0x280] sm:$0xff] }
 0xaa4   :  { %v11147_v24 = vpack.c.bf16 %v3086_v41, %v3084_v6  ;;  %v11161_v6 = vpack.c.bf16 %v3097_v37, %v3095_v35  ;;  %v3231_v41 = vld [vmem:[#allocation19 + $0x3c0] sm:$0xff]  ;;  %v3466_v35 = vld [vmem:[#allocation19 + $0x10] sm:$0xff] }
 0xaa5   :  { %11198 = vmatpush1.bf16.msra.mxu1 %v15651_v49 }
 0xaa6   :  { %11200 = vmatprep.subr.bf16.mxu1 %v15654_v51 }
 0xaa9   :  { %11202 = vmatpush1.bf16.msra.mxu1 %v15657_v60 }
 0xaaa   :  { %11204 = vmatprep.subr.bf16.mxu1 %v15660_v61 }
 0xaad   :  { %11206 = vmatpush1.bf16.msra.mxu1 %v15663_v43 }
 0xaae   :  { %11208 = vmatprep.subr.bf16.mxu1 %v15666_v9 }
 0xab1   :  { %11210 = vmatpush1.bf16.msra.mxu1 %v15669_v18 }
 0xab2   :  { %11212 = vmatprep.subr.bf16.mxu1 %v15672_v19 }
 0xab5   :  { %11214 = vmatpush1.bf16.msra.mxu1 %v15675_v28 }
 0xab6   :  { %11216 = vmatprep.subr.bf16.mxu1 %v15678_v32 }
 0xab9   :  { %11218 = vmatpush1.bf16.msra.mxu1 %v15681_v39 }
 0xaba   :  { %11220 = vmatprep.subr.bf16.mxu1 %v15684_v40 }
 0xb52   :  { %v2884_v58 = vpop.f32.mrb[30].mxu0 }
 0xb53   :  { %v10753_v36 = vpop.f32.mrb[31].mxu0  ;;  %3058 = vmatmul.mubr.f32.vlgmr.msra.gmra.mrb[28].mxu0 %v2884_v58 }
 0xb54   :  { %11134 = vmatpush1.bf16.msra.mxu0 %v11133_v48  ;;  %3163 = vmatprep.mubr.f32.mxu0 %v18296_v20  ;;  %v3085_v48 = vld [vmem:[#allocation16 + $0x290] sm:$0xff]  ;;  %v3092_v36 = vld [vmem:[#allocation16 + $0x2c8] sm:$0xff] }
 0xb55   :  { %11136 = vmatprep.subr.bf16.mxu0 %v11135_v29  ;;  %v3088_v29 = vld [vmem:[#allocation16 + $0x2a8] sm:$0xff]  ;;  %v11149_v55 = vpack.c.bf16 %v3085_v48, %v3083_v47  ;;  %v3238_v48 = vld [vmem:[#allocation19 + $0x3f8] sm:$0xff] }
 0xb56   :  { %v2957_v26 = vpop.f32.mrb[32].mxu0  ;;  %v11151_v58 = vpack.c.bf16 %v3090_v54, %v3088_v29  ;;  %v3236_v47 = vld [vmem:[#allocation19 + $0x3e8] sm:$0xff]  ;;  %v3235_v54 = vld [vmem:[#allocation19 + $0x3e0] sm:$0xff] }
 0xb57   :  { %v10758_v21 = vpop.f32.mrb[33].mxu0  ;;  %v15693_v29 = vpack.c.bf16 %v3238_v48, %v3236_v47 }
 0xb58   :  { %11138 = vmatpush1.bf16.msra.mxu0 %v11137_v1  ;;  %v3094_v1 = vld [vmem:[#allocation16 + $0x2d8] sm:$0xff] }
 0xb59   :  { %11140 = vmatprep.subr.bf16.mxu0 %v11139_v10  ;;  %v11153_v10 = vpack.c.bf16 %v3089_v0, %v3087_v13  ;;  %v11155_v11 = vpack.c.bf16 %v3094_v1, %v3092_v36  ;;  %v3098_v21 = vld [vmem:[#allocation16 + $0x2f8] sm:$0xff]  ;;  %v15703_v36 = vsub.s32 0, %v15349_v2  ;;  %v2713_v1 = vld [vmem:[#allocation17] sm:$0x3] }
 0xb5a   :  { %v3467_v13 = vld [vmem:[#allocation19 + $0x18] sm:$0xff] }
 0xb5b   :  { %18853 = vst [vmem:[#allocation48_spill] sm:$0xff] %v15703_v36 }
 0xb5c   :  { %11142 = vmatpush1.bf16.msra.mxu0 %v11141_v27  ;;  %v11157_v27 = vpack.c.bf16 %v3093_v17, %v3091_v12 }
 0xb5d   :  { %11144 = vmatprep.subr.bf16.mxu0 %v11143_v33  ;;  %v11159_v33 = vpack.c.bf16 %v3098_v21, %v3096_v22 }
 0xb60   :  { %11146 = vmatpush1.bf16.msra.mxu0 %v11145_v46  ;;  %v3233_v46 = vld [vmem:[#allocation19 + $0x3d0] sm:$0xff] }
 0xb61   :  { %11148 = vmatprep.subr.bf16.mxu0 %v11147_v24  ;;  %v15690_v24 = vpack.c.bf16 %v3233_v46, %v3231_v41  ;;  %v3471_v41 = vld [vmem:[#allocation19 + $0x38] sm:$0xff] }
 0xb63   :  { %11222 = vmatpush1.bf16.msra.mxu1 %v15690_v24 }
 0xb64   :  { %11150 = vmatpush1.bf16.msra.mxu0 %v11149_v55  ;;  %v3237_v55 = vld [vmem:[#allocation19 + $0x3f0] sm:$0xff]  ;;  %11224 = vmatprep.subr.bf16.mxu1 %v15693_v29 }
 0xb65   :  { %11152 = vmatprep.subr.bf16.mxu0 %v11151_v58  ;;  %v15695_v58 = vpack.c.bf16 %v3237_v55, %v3235_v54  ;;  %v3468_v54 = vld [vmem:[#allocation19 + $0x20] sm:$0xff]  ;;  %v3470_v55 = vld [vmem:[#allocation19 + $0x30] sm:$0xff] }
 0xb67   :  { %11226 = vmatpush1.bf16.msra.mxu1 %v15695_v58 }
 0xb68   :  { %11154 = vmatpush1.bf16.msra.mxu0 %v11153_v10  ;;  %v15706_v10 = vsub.s32 1, %v15349_v2  ;;  %v3632_v2 = vld [vmem:[#allocation19 + $0x4f0] sm:$0xff] }
 0xb69   :  { %11156 = vmatprep.subr.bf16.mxu0 %v11155_v11  ;;  %v2718_v11 = vrot.slane %v2713_v1, %v15703_v36 }
 0xb6a   :  { %18854 = vst [vmem:[#allocation49_spill] sm:$0xff] %v15706_v10  ;;  %v2722_v12 = vrot.slane %v2713_v1, %v15706_v10  ;;  %v15718_v1 = vpack.c.bf16 %v3470_v55, %v3468_v54  ;;  %v3485_v54 = vld [vmem:[#allocation19 + $0xa8] sm:$0xff]  ;;  %v3487_v55 = vld [vmem:[#allocation19 + $0xb8] sm:$0xff] }
 0xb6c   :  { %11158 = vmatpush1.bf16.msra.mxu0 %v11157_v27 }
 0xb6d   :  { %11160 = vmatprep.subr.bf16.mxu0 %v11159_v33  ;;  %v3464_v33 = vld [vmem:[#allocation19] sm:$0xff] }
 0xb6e   :  { %v15710_v47 = vpack.c.bf16 %v3466_v35, %v3464_v33  ;;  %v3476_v33 = vld [vmem:[#allocation19 + $0x60] sm:$0xff]  ;;  %v3478_v35 = vld [vmem:[#allocation19 + $0x70] sm:$0xff] }
 0xb70   :  { %11162 = vmatpush1.bf16.msra.mxu0 %v11161_v6  ;;  %v3469_v6 = vld [vmem:[#allocation19 + $0x28] sm:$0xff] }
 0xb71   :  { %v15712_v48 = vpack.c.bf16 %v3471_v41, %v3469_v6  ;;  %v3483_v6 = vld [vmem:[#allocation19 + $0x98] sm:$0xff]  ;;  %v15736_v41 = vpack.c.bf16 %v3478_v35, %v3476_v33  ;;  %v3493_v33 = vld [vmem:[#allocation19 + $0xe8] sm:$0xff] }
 0xb72   :  { %v3495_v35 = vld [vmem:[#allocation19 + $0xf8] sm:$0xff] }
 0xb73   :  { %3164 = vmatmul.mubr.f32.vlgmr.msra.gmra.mrb[28].mxu0 %v2957_v26  ;;  %v3465_v26 = vld [vmem:[#allocation19 + $0x8] sm:$0xff] }
 0xb74   :  { %3386 = vmatprep.mubr.f32.mxu0 %v18296_v20  ;;  %v15699_v0 = vpack.c.bf16 %v3467_v13, %v3465_v26  ;;  %v3473_v26 = vld [vmem:[#allocation19 + $0x48] sm:$0xff]  ;;  %v3475_v13 = vld [vmem:[#allocation19 + $0x58] sm:$0xff] }
 0xb76   :  { %11228 = vmatprep.subr.bf16.mxu1 %v15699_v0 }
 0xc46   :  { %v3165_v17 = vpop.f32.mrb[28].mxu0 }
 0xc47   :  { %v14343_v22 = vadd.f32 %v3165_v17, %v2718_v11  ;;  %v3167_v21 = vpop.f32.mrb[29].mxu0  ;;  %v15722_v11 = vpack.c.bf16 %v3475_v13, %v3473_v26  ;;  %v3474_v17 = vld [vmem:[#allocation19 + $0x50] sm:$0xff] }
 0xc48   :  { %v14344_v27 = vadd.f32 %v3167_v21, %v2722_v12  ;;  %v3472_v12 = vld [vmem:[#allocation19 + $0x40] sm:$0xff]  ;;  %v3479_v21 = vld [vmem:[#allocation19 + $0x78] sm:$0xff]  ;;  %v3486_v13 = vld [vmem:[#allocation19 + $0xb0] sm:$0xff] }
 0xc49   :  { %v3172_v46 = vmax.f32 %v14343_v22, 0.0  ;;  %v3477_v22 = vld [vmem:[#allocation19 + $0x68] sm:$0xff] }
 0xc4a   :  { %v3173_v37 = vmax.f32 %v14344_v27, 0.0  ;;  %v15728_v27 = vpack.c.bf16 %v3474_v17, %v3472_v12  ;;  %v3489_v12 = vld [vmem:[#allocation19 + $0xc8] sm:$0xff]  ;;  %v3491_v17 = vld [vmem:[#allocation19 + $0xd8] sm:$0xff] }
 0xc4c   :  { %3315 = vmatprep.mubr.f32.mxu1 %v3173_v37  ;;  %3322 = vmatprep.subr.mxu0 %v3173_v37 }
 0xc4d   :  { %3316 = vmatmul.mubr.f32.vlgmr.msra.gmra.mrb[18].mxu1 %v3172_v46  ;;  %3323 = vmatpush1.msra.mxu0 %v3172_v46 }
 0xc4e   :  { %10028 = vmatmul.mubr.msk.f32.vlgmr.msra.gmra.mrb[34].mxu0 %vm2814_vm4, %v15585_v53  ;;  %3393 = vmatprep.subr.mxu0 %v3173_v37  ;;  %v3481_v37 = vld [vmem:[#allocation19 + $0x88] sm:$0xff] }
 0xc4f   :  { %3394 = vmatpush1.msra.mxu0 %v3172_v46  ;;  %3457 = vmatprep.mubr.f32.mxu0 %v18296_v20  ;;  %v3482_v46 = vld [vmem:[#allocation19 + $0x90] sm:$0xff] }
 0xc50   :  { %11230 = vmatpush1.bf16.msra.mxu1 %v15710_v47  ;;  %11356 = vmatprep.subr.bf16.mxu0 %v15601_v52  ;;  %v15732_v52 = vpack.c.bf16 %v3479_v21, %v3477_v22  ;;  %v3490_v21 = vld [vmem:[#allocation19 + $0xd0] sm:$0xff] }
 0xc51   :  { %11232 = vmatprep.subr.bf16.mxu1 %v15712_v48  ;;  %v3624_v20 = vld [vmem:[#allocation19 + $0x4b0] sm:$0xff] }
 0xc52   :  { %10029 = vmatmul.mubr.msk.f32.vlgmr.msra.gmra.mrb[36].mxu0 %vm2814_vm4, %v15596_v59 }
 0xc53   :  { %11358 = vmatpush1.bf16.msra.mxu0 %v15603_v56  ;;  %v15740_v56 = vpack.c.bf16 %v3483_v6, %v3481_v37  ;;  %v3494_v6 = vld [vmem:[#allocation19 + $0xf0] sm:$0xff] }
 0xc54   :  { %11234 = vmatpush1.bf16.msra.mxu1 %v15718_v1  ;;  %11360 = vmatprep.subr.bf16.mxu0 %v15605_v57  ;;  %v3480_v57 = vld [vmem:[#allocation19 + $0x80] sm:$0xff] }
 0xc55   :  { %11236 = vmatprep.subr.bf16.mxu1 %v15722_v11  ;;  %v15744_v26 = vpack.c.bf16 %v3482_v46, %v3480_v57  ;;  %v3497_v57 = vld [vmem:[#allocation19 + $0x108] sm:$0xff]  ;;  %v3499_v46 = vld [vmem:[#allocation19 + $0x118] sm:$0xff] }
 0xc57   :  { %11362 = vmatpush1.bf16.msra.mxu0 %v15609_v62  ;;  %v15748_v62 = vpack.c.bf16 %v3487_v55, %v3485_v54  ;;  %v3498_v55 = vld [vmem:[#allocation19 + $0x110] sm:$0xff] }
 0xc58   :  { %11238 = vmatpush1.bf16.msra.mxu1 %v15728_v27  ;;  %11364 = vmatprep.subr.bf16.mxu0 %v15612_v63  ;;  %v3484_v63 = vld [vmem:[#allocation19 + $0xa0] sm:$0xff] }
 0xc59   :  { %11240 = vmatprep.subr.bf16.mxu1 %v15732_v52  ;;  %v15752_v22 = vpack.c.bf16 %v3486_v13, %v3484_v63  ;;  %v3501_v63 = vld [vmem:[#allocation19 + $0x128] sm:$0xff]  ;;  %v3503_v13 = vld [vmem:[#allocation19 + $0x138] sm:$0xff] }
 0xc5b   :  { %11366 = vmatpush1.bf16.msra.mxu0 %v15615_v5  ;;  %v15756_v5 = vpack.c.bf16 %v3491_v17, %v3489_v12  ;;  %v3502_v17 = vld [vmem:[#allocation19 + $0x130] sm:$0xff] }
 0xc5c   :  { %11242 = vmatpush1.bf16.msra.mxu1 %v15736_v41  ;;  %11368 = vmatprep.subr.bf16.mxu0 %v15618_v7  ;;  %v3488_v7 = vld [vmem:[#allocation19 + $0xc0] sm:$0xff] }
 0xc5d   :  { %11244 = vmatprep.subr.bf16.mxu1 %v15740_v56  ;;  %v15760_v37 = vpack.c.bf16 %v3490_v21, %v3488_v7  ;;  %v3505_v7 = vld [vmem:[#allocation19 + $0x148] sm:$0xff]  ;;  %v3507_v21 = vld [vmem:[#allocation19 + $0x158] sm:$0xff] }
 0xc5f   :  { %11370 = vmatpush1.bf16.msra.mxu0 %v15621_v15  ;;  %v15764_v15 = vpack.c.bf16 %v3495_v35, %v3493_v33  ;;  %v3506_v35 = vld [vmem:[#allocation19 + $0x150] sm:$0xff] }
 0xc60   :  { %11246 = vmatpush1.bf16.msra.mxu1 %v15744_v26  ;;  %11372 = vmatprep.subr.bf16.mxu0 %v15624_v16  ;;  %v3492_v16 = vld [vmem:[#allocation19 + $0xe0] sm:$0xff] }
 0xc61   :  { %11248 = vmatprep.subr.bf16.mxu1 %v15748_v62  ;;  %v15768_v54 = vpack.c.bf16 %v3494_v6, %v3492_v16  ;;  %v3509_v16 = vld [vmem:[#allocation19 + $0x168] sm:$0xff]  ;;  %v3511_v6 = vld [vmem:[#allocation19 + $0x178] sm:$0xff] }
 0xc63   :  { %11374 = vmatpush1.bf16.msra.mxu0 %v15627_v23  ;;  %v15772_v23 = vpack.c.bf16 %v3499_v46, %v3497_v57  ;;  %v3510_v46 = vld [vmem:[#allocation19 + $0x170] sm:$0xff] }
 0xc64   :  { %11250 = vmatpush1.bf16.msra.mxu1 %v15752_v22  ;;  %11376 = vmatprep.subr.bf16.mxu0 %v15630_v25  ;;  %v3496_v25 = vld [vmem:[#allocation19 + $0x100] sm:$0xff] }
 0xc65   :  { %11252 = vmatprep.subr.bf16.mxu1 %v15756_v5  ;;  %v15776_v12 = vpack.c.bf16 %v3498_v55, %v3496_v25  ;;  %v3513_v25 = vld [vmem:[#allocation19 + $0x188] sm:$0xff]  ;;  %v3515_v55 = vld [vmem:[#allocation19 + $0x198] sm:$0xff] }
 0xc67   :  { %11378 = vmatpush1.bf16.msra.mxu0 %v15633_v30  ;;  %v15780_v30 = vpack.c.bf16 %v3503_v13, %v3501_v63  ;;  %v3514_v13 = vld [vmem:[#allocation19 + $0x190] sm:$0xff] }
 0xc68   :  { %11254 = vmatpush1.bf16.msra.mxu1 %v15760_v37  ;;  %11380 = vmatprep.subr.bf16.mxu0 %v15636_v31  ;;  %v3500_v31 = vld [vmem:[#allocation19 + $0x120] sm:$0xff] }
 0xc69   :  { %11256 = vmatprep.subr.bf16.mxu1 %v15764_v15  ;;  %v15784_v33 = vpack.c.bf16 %v3502_v17, %v3500_v31  ;;  %v3517_v31 = vld [vmem:[#allocation19 + $0x1a8] sm:$0xff]  ;;  %v3519_v17 = vld [vmem:[#allocation19 + $0x1b8] sm:$0xff] }
 0xc6b   :  { %11382 = vmatpush1.bf16.msra.mxu0 %v15639_v34  ;;  %v15788_v34 = vpack.c.bf16 %v3507_v21, %v3505_v7  ;;  %v3518_v21 = vld [vmem:[#allocation19 + $0x1b0] sm:$0xff] }
 0xc6c   :  { %11258 = vmatpush1.bf16.msra.mxu1 %v15768_v54  ;;  %11384 = vmatprep.subr.bf16.mxu0 %v15642_v38  ;;  %v3504_v38 = vld [vmem:[#allocation19 + $0x140] sm:$0xff] }
 0xc6d   :  { %11260 = vmatprep.subr.bf16.mxu1 %v15772_v23  ;;  %v15792_v57 = vpack.c.bf16 %v3506_v35, %v3504_v38  ;;  %v3521_v38 = vld [vmem:[#allocation19 + $0x1c8] sm:$0xff]  ;;  %v3523_v35 = vld [vmem:[#allocation19 + $0x1d8] sm:$0xff] }
 0xc6f   :  { %11386 = vmatpush1.bf16.msra.mxu0 %v15645_v42  ;;  %v15796_v42 = vpack.c.bf16 %v3511_v6, %v3509_v16  ;;  %v3522_v6 = vld [vmem:[#allocation19 + $0x1d0] sm:$0xff] }
 0xc70   :  { %11262 = vmatpush1.bf16.msra.mxu1 %v15776_v12  ;;  %11388 = vmatprep.subr.bf16.mxu0 %v15648_v44  ;;  %v3508_v44 = vld [vmem:[#allocation19 + $0x160] sm:$0xff] }
 0xc71   :  { %11264 = vmatprep.subr.bf16.mxu1 %v15780_v30  ;;  %v15800_v63 = vpack.c.bf16 %v3510_v46, %v3508_v44  ;;  %v3525_v44 = vld [vmem:[#allocation19 + $0x1e8] sm:$0xff]  ;;  %v3527_v46 = vld [vmem:[#allocation19 + $0x1f8] sm:$0xff] }
 0xc73   :  { %11390 = vmatpush1.bf16.msra.mxu0 %v15651_v49  ;;  %v15804_v49 = vpack.c.bf16 %v3515_v55, %v3513_v25  ;;  %v3526_v55 = vld [vmem:[#allocation19 + $0x1f0] sm:$0xff] }
 0xc74   :  { %11266 = vmatpush1.bf16.msra.mxu1 %v15784_v33  ;;  %11392 = vmatprep.subr.bf16.mxu0 %v15654_v51  ;;  %v3512_v51 = vld [vmem:[#allocation19 + $0x180] sm:$0xff] }
 0xc75   :  { %11268 = vmatprep.subr.bf16.mxu1 %v15788_v34  ;;  %v15808_v7 = vpack.c.bf16 %v3514_v13, %v3512_v51 }
 0xc77   :  { %11394 = vmatpush1.bf16.msra.mxu0 %v15657_v60  ;;  %v15812_v60 = vpack.c.bf16 %v3519_v17, %v3517_v31  ;;  %v3604_v31 = vld [vmem:[#allocation19 + $0x410] sm:$0xff]  ;;  %v3607_v17 = vld [vmem:[#allocation19 + $0x428] sm:$0xff] }
 0xc78   :  { %11270 = vmatpush1.bf16.msra.mxu1 %v15792_v57  ;;  %11396 = vmatprep.subr.bf16.mxu0 %v15660_v61  ;;  %v3516_v61 = vld [vmem:[#allocation19 + $0x1a0] sm:$0xff] }
 0xc79   :  { %11272 = vmatprep.subr.bf16.mxu1 %v15796_v42  ;;  %v15816_v16 = vpack.c.bf16 %v3518_v21, %v3516_v61 }
 0xc7b   :  { %11398 = vmatpush1.bf16.msra.mxu0 %v15663_v43  ;;  %v15820_v43 = vpack.c.bf16 %v3523_v35, %v3521_v38  ;;  %v3606_v35 = vld [vmem:[#allocation19 + $0x420] sm:$0xff] }
 0xc7c   :  { %11274 = vmatpush1.bf16.msra.mxu1 %v15800_v63  ;;  %11400 = vmatprep.subr.bf16.mxu0 %v15666_v9  ;;  %v3520_v9 = vld [vmem:[#allocation19 + $0x1c0] sm:$0xff] }
 0xc7d   :  { %11276 = vmatprep.subr.bf16.mxu1 %v15804_v49  ;;  %v15824_v25 = vpack.c.bf16 %v3522_v6, %v3520_v9  ;;  %v3613_v9 = vld [vmem:[#allocation19 + $0x458] sm:$0xff] }
 0xc7f   :  { %11402 = vmatpush1.bf16.msra.mxu0 %v15669_v18  ;;  %v15828_v18 = vpack.c.bf16 %v3527_v46, %v3525_v44 }
 0xc80   :  { %11278 = vmatpush1.bf16.msra.mxu1 %v15808_v7  ;;  %11404 = vmatprep.subr.bf16.mxu0 %v15672_v19  ;;  %v3524_v19 = vld [vmem:[#allocation19 + $0x1e0] sm:$0xff] }
 0xc81   :  { %11280 = vmatprep.subr.bf16.mxu1 %v15812_v60  ;;  %v15832_v51 = vpack.c.bf16 %v3526_v55, %v3524_v19  ;;  %v3610_v19 = vld [vmem:[#allocation19 + $0x440] sm:$0xff]  ;;  %v3612_v55 = vld [vmem:[#allocation19 + $0x450] sm:$0xff] }
 0xc83   :  { %11406 = vmatpush1.bf16.msra.mxu0 %v15675_v28  ;;  %v3603_v28 = vld [vmem:[#allocation19 + $0x408] sm:$0xff] }
 0xc84   :  { %11282 = vmatpush1.bf16.msra.mxu1 %v15816_v16  ;;  %11408 = vmatprep.subr.bf16.mxu0 %v15678_v32  ;;  %v3605_v32 = vld [vmem:[#allocation19 + $0x418] sm:$0xff] }
 0xc85   :  { %11284 = vmatprep.subr.bf16.mxu1 %v15820_v43  ;;  %v15840_v13 = vpack.c.bf16 %v3605_v32, %v3603_v28  ;;  %v3615_v32 = vld [vmem:[#allocation19 + $0x468] sm:$0xff] }
 0xc87   :  { %11410 = vmatpush1.bf16.msra.mxu0 %v15681_v39  ;;  %v3602_v39 = vld [vmem:[#allocation19 + $0x400] sm:$0xff] }
 0xc88   :  { %11286 = vmatpush1.bf16.msra.mxu1 %v15824_v25  ;;  %11412 = vmatprep.subr.bf16.mxu0 %v15684_v40  ;;  %v3609_v40 = vld [vmem:[#allocation19 + $0x438] sm:$0xff]  ;;  %v15843_v21 = vpack.c.bf16 %v3604_v31, %v3602_v39  ;;  %v15856_v31 = vpack.c.bf16 %v3612_v55, %v3610_v19  ;;  %v3623_v19 = vld [vmem:[#allocation19 + $0x4a8] sm:$0xff] }
 0xc89   :  { %11288 = vmatprep.subr.bf16.mxu1 %v15828_v18  ;;  %v15845_v38 = vpack.c.bf16 %v3609_v40, %v3607_v17  ;;  %v3617_v39 = vld [vmem:[#allocation19 + $0x478] sm:$0xff]  ;;  %v3614_v40 = vld [vmem:[#allocation19 + $0x460] sm:$0xff] }
 0xc8a   :  { %v15859_v17 = vpack.c.bf16 %v3617_v39, %v3615_v32  ;;  %v3625_v55 = vld [vmem:[#allocation19 + $0x4b8] sm:$0xff] }
 0xc8b   :  { %11414 = vmatpush1.bf16.msra.mxu0 %v15690_v24  ;;  %v15871_v39 = vpack.c.bf16 %v3625_v55, %v3623_v19  ;;  %v15880_v19 = vpack.c.bf16 %v3628_v4, %v3626_v8  ;;  %v3639_v4 = vld [vmem:[#allocation19 + $0x528] sm:$0xff]  ;;  %v3641_v8 = vld [vmem:[#allocation19 + $0x538] sm:$0xff] }
 0xc8c   :  { %11290 = vmatpush1.bf16.msra.mxu1 %v15832_v51  ;;  %11416 = vmatprep.subr.bf16.mxu0 %v15693_v29  ;;  %v3608_v29 = vld [vmem:[#allocation19 + $0x430] sm:$0xff] }
 0xc8d   :  { %11292 = vmatprep.subr.bf16.mxu1 %v15840_v13  ;;  %v15848_v6 = vpack.c.bf16 %v3608_v29, %v3606_v35  ;;  %v3621_v35 = vld [vmem:[#allocation19 + $0x498] sm:$0xff]  ;;  %18856 = vst [vmem:[#allocation51_spill] sm:$0xff] %v15880_v19 }
 0xc8f   :  { %11418 = vmatpush1.bf16.msra.mxu0 %v15695_v58  ;;  %v3611_v58 = vld [vmem:[#allocation19 + $0x448] sm:$0xff] }
 0xc90   :  { %v15853_v46 = vpack.c.bf16 %v3613_v9, %v3611_v58  ;;  %v3618_v9 = vld [vmem:[#allocation19 + $0x480] sm:$0xff] }
 0xd21   :  { %v3388_v61 = vpop.f32.mrb[34].mxu0 }
 0xd22   :  { %v3390_v24 = vpop.f32.mrb[35].mxu0 }
 0xd23   :  { %3592 = vmatprep.mubr.f32.mxu1 %v3390_v24  ;;  %v3619_v24 = vld [vmem:[#allocation19 + $0x488] sm:$0xff] }
 0xd24   :  { %3593 = vmatmul.mubr.f32.vlgmr.msra.gmra.mrb[18].mxu1 %v3388_v61  ;;  %v3616_v61 = vld [vmem:[#allocation19 + $0x470] sm:$0xff]  ;;  %v15865_v58 = vpack.c.bf16 %v3621_v35, %v3619_v24  ;;  %v15874_v24 = vpack.c.bf16 %v3624_v20, %v3622_v45  ;;  %v3635_v20 = vld [vmem:[#allocation19 + $0x508] sm:$0xff]  ;;  %v3637_v45 = vld [vmem:[#allocation19 + $0x518] sm:$0xff] }
 0xd25   :  { %11294 = vmatpush1.bf16.msra.mxu1 %v15843_v21  ;;  %v15850_v44 = vpop.f32.mrb[36].mxu0  ;;  %v15862_v29 = vpack.c.bf16 %v3616_v61, %v3614_v40  ;;  %v3627_v40 = vld [vmem:[#allocation19 + $0x4c8] sm:$0xff]  ;;  %v3629_v61 = vld [vmem:[#allocation19 + $0x4d8] sm:$0xff] }
 0xd26   :  { %11296 = vmatprep.subr.bf16.mxu1 %v15845_v38  ;;  %v3461_v28 = vpop.f32.mrb[37].mxu0  ;;  %v15877_v35 = vpack.c.bf16 %v3629_v61, %v3627_v40  ;;  %v15886_v40 = vpack.c.bf16 %v3632_v2, %v3630_v3  ;;  %v15889_v61 = vpack.c.bf16 %v3637_v45, %v3635_v20  ;;  %v3643_v2 = vld [vmem:[#allocation19 + $0x548] sm:$0xff]  ;;  %v3645_v3 = vld [vmem:[#allocation19 + $0x558] sm:$0xff] }
 0xd27   :  { %3730 = vmatprep.mubr.f32.mxu1 %v3461_v28  ;;  %v3620_v28 = vld [vmem:[#allocation19 + $0x490] sm:$0xff]  ;;  %v15901_v45 = vpack.c.bf16 %v3645_v3, %v3643_v2 }
 0xd28   :  { %v15868_v32 = vpack.c.bf16 %v3620_v28, %v3618_v9  ;;  %18855 = vst [vmem:[#allocation50_spill] sm:$0xff] %v15877_v35  ;;  %v3631_v9 = vld [vmem:[#allocation19 + $0x4e8] sm:$0xff]  ;;  %v3633_v28 = vld [vmem:[#allocation19 + $0x4f8] sm:$0xff]  ;;  %18858 = vst [vmem:[#allocation53_spill] sm:$0xff] %v15886_v40 }
 0xd29   :  { %11298 = vmatpush1.bf16.msra.mxu1 %v15848_v6  ;;  %v15883_v55 = vpack.c.bf16 %v3633_v28, %v3631_v9  ;;  %18859 = vst [vmem:[#allocation54_spill] sm:$0xff] %v15889_v61  ;;  %v15892_v9 = vpack.c.bf16 %v3636_v50, %v3634_v14  ;;  %v15895_v28 = vpack.c.bf16 %v3641_v8, %v3639_v4  ;;  %18863 = vst [vmem:[#allocation58_spill] sm:$0xff] %v15901_v45  ;;  %v3647_v50 = vld [vmem:[#allocation19 + $0x568] sm:$0xff]  ;;  %v3649_v14 = vld [vmem:[#allocation19 + $0x578] sm:$0xff] }
 0xd2a   :  { %11300 = vmatprep.subr.bf16.mxu1 %v15853_v46  ;;  %v15907_v8 = vpack.c.bf16 %v3649_v14, %v3647_v50 }
 0xd2b   :  { %18857 = vst [vmem:[#allocation52_spill] sm:$0xff] %v15883_v55  ;;  %18860 = vst [vmem:[#allocation55_spill] sm:$0xff] %v15892_v9 }
 0xd2c   :  { %18861 = vst [vmem:[#allocation56_spill] sm:$0xff] %v15895_v28  ;;  %18865 = vst [vmem:[#allocation60_spill] sm:$0xff] %v15907_v8 }
 0xd2d   :  { %11302 = vmatpush1.bf16.msra.mxu1 %v15856_v31 }
 0xd2e   :  { %11304 = vmatprep.subr.bf16.mxu1 %v15859_v17 }
 0xd31   :  { %11306 = vmatpush1.bf16.msra.mxu1 %v15862_v29 }
 0xd32   :  { %11308 = vmatprep.subr.bf16.mxu1 %v15865_v58 }
 0xd35   :  { %11310 = vmatpush1.bf16.msra.mxu1 %v15868_v32 }
 0xd36   :  { %11312 = vmatprep.subr.bf16.mxu1 %v15871_v39 }
 0xd39   :  { %11314 = vmatpush1.bf16.msra.mxu1 %v15874_v24 }
 0xd3a   :  { %11316 = vmatprep.subr.bf16.mxu1 %v15877_v35  ;;  %v3638_v35 = vld [vmem:[#allocation19 + $0x520] sm:$0xff] }
 0xd3d   :  { %11318 = vmatpush1.bf16.msra.mxu1 %v15880_v19  ;;  %v3640_v19 = vld [vmem:[#allocation19 + $0x530] sm:$0xff] }
 0xd3e   :  { %11320 = vmatprep.subr.bf16.mxu1 %v15883_v55  ;;  %v15898_v20 = vpack.c.bf16 %v3640_v19, %v3638_v35  ;;  %v3642_v55 = vld [vmem:[#allocation19 + $0x540] sm:$0xff]  ;;  %v3651_v35 = vld [vmem:[#allocation19 + $0x588] sm:$0xff]  ;;  %v3653_v19 = vld [vmem:[#allocation19 + $0x598] sm:$0xff] }
 0xd3f   :  { %v15913_v3 = vpack.c.bf16 %v3653_v19, %v3651_v35 }
 0xd40   :  { %18862 = vst [vmem:[#allocation57_spill] sm:$0xff] %v15898_v20 }
 0xd41   :  { %11322 = vmatpush1.bf16.msra.mxu1 %v15886_v40  ;;  %v3644_v40 = vld [vmem:[#allocation19 + $0x550] sm:$0xff]  ;;  %18867 = vst [vmem:[#allocation62_spill] sm:$0xff] %v15913_v3 }
 0xd42   :  { %11324 = vmatprep.subr.bf16.mxu1 %v15889_v61  ;;  %v15904_v4 = vpack.c.bf16 %v3644_v40, %v3642_v55  ;;  %v3646_v61 = vld [vmem:[#allocation19 + $0x560] sm:$0xff]  ;;  %v3655_v55 = vld [vmem:[#allocation19 + $0x5a8] sm:$0xff]  ;;  %v3657_v40 = vld [vmem:[#allocation19 + $0x5b8] sm:$0xff] }
 0xd43   :  { %v15919_v14 = vpack.c.bf16 %v3657_v40, %v3655_v55 }
 0xd44   :  { %18864 = vst [vmem:[#allocation59_spill] sm:$0xff] %v15904_v4 }
 0xd45   :  { %11326 = vmatpush1.bf16.msra.mxu1 %v15892_v9  ;;  %v3648_v9 = vld [vmem:[#allocation19 + $0x570] sm:$0xff] }
 0xd46   :  { %11328 = vmatprep.subr.bf16.mxu1 %v15895_v28  ;;  %v15910_v2 = vpack.c.bf16 %v3648_v9, %v3646_v61  ;;  %v3650_v28 = vld [vmem:[#allocation19 + $0x580] sm:$0xff]  ;;  %v3659_v61 = vld [vmem:[#allocation19 + $0x5c8] sm:$0xff]  ;;  %v3661_v9 = vld [vmem:[#allocation19 + $0x5d8] sm:$0xff] }
 0xd47   :  { %v15925_v19 = vpack.c.bf16 %v3661_v9, %v3659_v61 }
 0xd48   :  { %18866 = vst [vmem:[#allocation61_spill] sm:$0xff] %v15910_v2 }
 0xd49   :  { %11330 = vmatpush1.bf16.msra.mxu1 %v15898_v20  ;;  %v3652_v20 = vld [vmem:[#allocation19 + $0x590] sm:$0xff] }
 0xd4a   :  { %11332 = vmatprep.subr.bf16.mxu1 %v15901_v45  ;;  %v15916_v50 = vpack.c.bf16 %v3652_v20, %v3650_v28  ;;  %v3654_v45 = vld [vmem:[#allocation19 + $0x5a0] sm:$0xff]  ;;  %v3663_v28 = vld [vmem:[#allocation19 + $0x5e8] sm:$0xff]  ;;  %v3665_v20 = vld [vmem:[#allocation19 + $0x5f8] sm:$0xff] }
 0xd4b   :  { %v15931_v40 = vpack.c.bf16 %v3665_v20, %v3663_v28 }
 0xd4c   :  { %18868 = vst [vmem:[#allocation63_spill] sm:$0xff] %v15916_v50 }
 0xd4d   :  { %11334 = vmatpush1.bf16.msra.mxu1 %v15904_v4  ;;  %v3656_v4 = vld [vmem:[#allocation19 + $0x5b0] sm:$0xff]  ;;  %18869 = vst [vmem:[#allocation64_spill] sm:$0xff] %v15931_v40 }
 0xd4e   :  { %11336 = vmatprep.subr.bf16.mxu1 %v15907_v8  ;;  %v15922_v35 = vpack.c.bf16 %v3656_v4, %v3654_v45  ;;  %v3658_v8 = vld [vmem:[#allocation19 + $0x5c0] sm:$0xff]  ;;  %v18870_v4 = vmov 0.0  }
 0xd51   :  { %11338 = vmatpush1.bf16.msra.mxu1 %v15910_v2  ;;  %v3660_v2 = vld [vmem:[#allocation19 + $0x5d0] sm:$0xff] }
 0xd52   :  { %11340 = vmatprep.subr.bf16.mxu1 %v15913_v3  ;;  %v15928_v55 = vpack.c.bf16 %v3660_v2, %v3658_v8  ;;  %v3662_v3 = vld [vmem:[#allocation19 + $0x5e0] sm:$0xff] }
 0xd53   :  { %v3239_v8 = vld [vmem:[#allocation20] sm:$0x3] }
 0xd54   :  { %v15941_v2 = vrot.slane %v3239_v8, %v15703_v36  ;;  %v15944_v61 = vrot.slane %v3239_v8, %v15706_v10  ;;  %v4297_v8 = vld [vmem:[#allocation22 + $0x570] sm:$0xff] }
 0xd55   :  { %11342 = vmatpush1.bf16.msra.mxu1 %v15916_v50  ;;  %v3664_v50 = vld [vmem:[#allocation19 + $0x5f0] sm:$0xff] }
 0xd56   :  { %11344 = vmatprep.subr.bf16.mxu1 %v15919_v14  ;;  %v15934_v45 = vpack.c.bf16 %v3664_v50, %v3662_v3 }
 0xd59   :  { %11346 = vmatpush1.bf16.msra.mxu1 %v15922_v35 }
 0xd5a   :  { %11348 = vmatprep.subr.bf16.mxu1 %v15925_v19 }
 0xd5d   :  { %11350 = vmatpush1.bf16.msra.mxu1 %v15928_v55 }
 0xd5e   :  { %11352 = vmatprep.subr.bf16.mxu1 %v15931_v40 }
 0xd61   :  { %11354 = vmatpush1.bf16.msra.mxu1 %v15934_v45 }
 0xd64   :  { %3731 = vmatmul.mubr.f32.vlgmr.msra.gmra.mrb[18].mxu1 %v15850_v44  ;;  %v4282_v44 = vld [vmem:[#allocation22 + $0x4f8] sm:$0xff] }
 0xd65   :  { %4168 = vmatprep.mubr.f32.mxu1 %v18870_v4 }
 0xe37   :  { %v3732_v9 = vpop.f32.mrb[18].mxu1 }
 0xe38   :  { %v14345_v28 = vadd.f32 %v3732_v9, %v15941_v2  ;;  %v3734_v3 = vpop.f32.mrb[19].mxu1 }
 0xe39   :  { %v14346_v50 = vadd.f32 %v3734_v3, %v15944_v61  ;;  %v4306_v3 = vld [vmem:[#allocation22 + $0x5b8] sm:$0xff] }
 0xe3a   :  { %v3739_v40 = vmax.f32 %v14345_v28, 0.0  ;;  %v4302_v28 = vld [vmem:[#allocation22 + $0x598] sm:$0xff] }
 0xe3b   :  { %v3740_v20 = vmax.f32 %v14346_v50, 0.0  ;;  %v4301_v50 = vld [vmem:[#allocation22 + $0x590] sm:$0xff] }
 0xe3d   :  { %3805 = vmatprep.mubr.f32.mxu0 %v3740_v20  ;;  %3812 = vmatprep.subr.mxu0 %v3740_v20 }
 0xe3e   :  { %3806 = vmatmul.mubr.f32.vlgmr.msra.gmra.mrb[38].mxu0 %v3739_v40 }
 0xe3f   :  { %3813 = vmatpush1.msra.mxu0 %v3739_v40  ;;  %3876 = vmatprep.mubr.f32.mxu0 %v18870_v4 }
 0xe40   :  { %3883 = vmatprep.subr.mxu0 %v3740_v20  ;;  %v11635_v20 = vpack.c.bf16 %v4306_v3, %v4302_v28  ;;  %v4260_v28 = vld [vmem:[#allocation22 + $0x448] sm:$0xff] }
 0xe41   :  { %v4264_v3 = vld [vmem:[#allocation22 + $0x468] sm:$0xff] }
 0xe42   :  { %10030 = vmatmul.mubr.msk.f32.vlgmr.msra.gmra.mrb[40].mxu0 %vm2814_vm4, %v15585_v53 }
 0xe43   :  { %3884 = vmatpush1.msra.mxu0 %v3739_v40  ;;  %3947 = vmatprep.mubr.f32.mxu0 %v18870_v4  ;;  %v4293_v40 = vld [vmem:[#allocation22 + $0x550] sm:$0xff] }
 0xe44   :  { %11420 = vmatprep.subr.bf16.mxu0 %v15699_v0  ;;  %v11633_v9 = vpack.c.bf16 %v4297_v8, %v4293_v40  ;;  %v4251_v8 = vld [vmem:[#allocation22 + $0x400] sm:$0xff] }
 0xe46   :  { %10031 = vmatmul.mubr.msk.f32.vlgmr.msra.gmra.mrb[42].mxu0 %vm2814_vm4, %v15596_v59 }
 0xe47   :  { %11422 = vmatpush1.bf16.msra.mxu0 %v15710_v47 }
 0xe48   :  { %11424 = vmatprep.subr.bf16.mxu0 %v15712_v48  ;;  %v18871_v48 = vld [vmem:[#allocation50_spill] sm:$0xff] }
 0xe4b   :  { %11426 = vmatpush1.bf16.msra.mxu0 %v15718_v1  ;;  %v18872_v1 = vld [vmem:[#allocation51_spill] sm:$0xff] }
 0xe4c   :  { %11428 = vmatprep.subr.bf16.mxu0 %v15722_v11  ;;  %v18873_v11 = vld [vmem:[#allocation52_spill] sm:$0xff] }
 0xe4f   :  { %11430 = vmatpush1.bf16.msra.mxu0 %v15728_v27  ;;  %v18874_v27 = vld [vmem:[#allocation53_spill] sm:$0xff] }
 0xe50   :  { %11432 = vmatprep.subr.bf16.mxu0 %v15732_v52  ;;  %v18875_v52 = vld [vmem:[#allocation54_spill] sm:$0xff] }
 0xe53   :  { %11434 = vmatpush1.bf16.msra.mxu0 %v15736_v41  ;;  %v18876_v41 = vld [vmem:[#allocation55_spill] sm:$0xff] }
 0xe54   :  { %11436 = vmatprep.subr.bf16.mxu0 %v15740_v56  ;;  %v18877_v56 = vld [vmem:[#allocation56_spill] sm:$0xff] }
 0xe57   :  { %11438 = vmatpush1.bf16.msra.mxu0 %v15744_v26  ;;  %v18878_v26 = vld [vmem:[#allocation57_spill] sm:$0xff] }
 0xe58   :  { %11440 = vmatprep.subr.bf16.mxu0 %v15748_v62  ;;  %v18879_v62 = vld [vmem:[#allocation58_spill] sm:$0xff] }
 0xe5b   :  { %11442 = vmatpush1.bf16.msra.mxu0 %v15752_v22  ;;  %v18880_v22 = vld [vmem:[#allocation59_spill] sm:$0xff] }
 0xe5c   :  { %11444 = vmatprep.subr.bf16.mxu0 %v15756_v5  ;;  %v18881_v5 = vld [vmem:[#allocation60_spill] sm:$0xff] }
 0xe5f   :  { %11446 = vmatpush1.bf16.msra.mxu0 %v15760_v37  ;;  %v18882_v37 = vld [vmem:[#allocation61_spill] sm:$0xff] }
 0xe60   :  { %11448 = vmatprep.subr.bf16.mxu0 %v15764_v15  ;;  %v18883_v15 = vld [vmem:[#allocation62_spill] sm:$0xff] }
 0xe63   :  { %11450 = vmatpush1.bf16.msra.mxu0 %v15768_v54  ;;  %v18884_v54 = vld [vmem:[#allocation63_spill] sm:$0xff] }
 0xe64   :  { %11452 = vmatprep.subr.bf16.mxu0 %v15772_v23  ;;  %v18885_v23 = vld [vmem:[#allocation64_spill] sm:$0xff] }
 0xe67   :  { %11454 = vmatpush1.bf16.msra.mxu0 %v15776_v12  ;;  %v4254_v12 = vld [vmem:[#allocation22 + $0x418] sm:$0xff] }
 0xe68   :  { %11456 = vmatprep.subr.bf16.mxu0 %v15780_v30  ;;  %v4258_v30 = vld [vmem:[#allocation22 + $0x438] sm:$0xff] }
 0xe6b   :  { %11458 = vmatpush1.bf16.msra.mxu0 %v15784_v33  ;;  %v11611_v33 = vpack.c.bf16 %v4258_v30, %v4254_v12  ;;  %v4334_v30 = vld [vmem:[#allocation22 + $0x698] sm:$0xff] }
 0xe6c   :  { %11460 = vmatprep.subr.bf16.mxu0 %v15788_v34  ;;  %v4253_v34 = vld [vmem:[#allocation22 + $0x410] sm:$0xff] }
 0xe6f   :  { %11462 = vmatpush1.bf16.msra.mxu0 %v15792_v57  ;;  %v4257_v57 = vld [vmem:[#allocation22 + $0x430] sm:$0xff] }
 0xe70   :  { %11464 = vmatprep.subr.bf16.mxu0 %v15796_v42  ;;  %v11613_v42 = vpack.c.bf16 %v4257_v57, %v4253_v34  ;;  %v4333_v34 = vld [vmem:[#allocation22 + $0x690] sm:$0xff] }
 0xe73   :  { %11466 = vmatpush1.bf16.msra.mxu0 %v15800_v63  ;;  %v4262_v63 = vld [vmem:[#allocation22 + $0x458] sm:$0xff] }
 0xe74   :  { %11468 = vmatprep.subr.bf16.mxu0 %v15804_v49  ;;  %v4266_v49 = vld [vmem:[#allocation22 + $0x478] sm:$0xff] }
 0xe77   :  { %11470 = vmatpush1.bf16.msra.mxu0 %v15808_v7  ;;  %v4261_v7 = vld [vmem:[#allocation22 + $0x450] sm:$0xff] }
 0xe78   :  { %11472 = vmatprep.subr.bf16.mxu0 %v15812_v60  ;;  %v11615_v60 = vpack.c.bf16 %v4266_v49, %v4262_v63  ;;  %v4342_v49 = vld [vmem:[#allocation22 + $0x6d8] sm:$0xff] }
 0xe7b   :  { %11474 = vmatpush1.bf16.msra.mxu0 %v15816_v16  ;;  %v4265_v16 = vld [vmem:[#allocation22 + $0x470] sm:$0xff] }
 0xe7c   :  { %11476 = vmatprep.subr.bf16.mxu0 %v15820_v43  ;;  %v11617_v43 = vpack.c.bf16 %v4265_v16, %v4261_v7  ;;  %v4346_v7 = vld [vmem:[#allocation22 + $0x6f8] sm:$0xff] }
 0xe7d   :  { %v11655_v16 = vpack.c.bf16 %v4346_v7, %v4342_v49  ;;  %v4300_v49 = vld [vmem:[#allocation22 + $0x588] sm:$0xff] }
 0xe7e   :  { %v4304_v7 = vld [vmem:[#allocation22 + $0x5a8] sm:$0xff] }
 0xe7f   :  { %11478 = vmatpush1.bf16.msra.mxu0 %v15824_v25  ;;  %v4270_v25 = vld [vmem:[#allocation22 + $0x498] sm:$0xff] }
 0xe80   :  { %11480 = vmatprep.subr.bf16.mxu0 %v15828_v18  ;;  %v4274_v18 = vld [vmem:[#allocation22 + $0x4b8] sm:$0xff] }
 0xe83   :  { %11482 = vmatpush1.bf16.msra.mxu0 %v15832_v51  ;;  %v4269_v51 = vld [vmem:[#allocation22 + $0x490] sm:$0xff] }
 0xe84   :  { %11484 = vmatprep.subr.bf16.mxu0 %v15840_v13  ;;  %v11619_v13 = vpack.c.bf16 %v4274_v18, %v4270_v25  ;;  %v4350_v18 = vld [vmem:[#allocation22 + $0x718] sm:$0xff] }
 0xf15   :  { %v3878_v53 = vpop.f32.mrb[40].mxu0 }
 0xf16   :  { %v3880_v59 = vpop.f32.mrb[41].mxu0 }
 0xf17   :  { %4018 = vmatprep.mubr.f32.mxu0 %v3880_v59 }
 0xf18   :  { %4019 = vmatmul.mubr.f32.vlgmr.msra.gmra.mrb[38].mxu0 %v3878_v53  ;;  %v4305_v53 = vld [vmem:[#allocation22 + $0x5b0] sm:$0xff] }
 0xf19   :  { %11486 = vmatpush1.bf16.msra.mxu0 %v15843_v21  ;;  %v3949_v0 = vpop.f32.mrb[42].mxu0  ;;  %v4273_v21 = vld [vmem:[#allocation22 + $0x4b0] sm:$0xff]  ;;  %v11637_v59 = vpack.c.bf16 %v4305_v53, %v4301_v50  ;;  %v4263_v53 = vld [vmem:[#allocation22 + $0x460] sm:$0xff] }
 0xf1a   :  { %11488 = vmatprep.subr.bf16.mxu0 %v15845_v38  ;;  %v3951_v47 = vpop.f32.mrb[43].mxu0  ;;  %v11621_v38 = vpack.c.bf16 %v4273_v21, %v4269_v51  ;;  %v4354_v51 = vld [vmem:[#allocation22 + $0x738] sm:$0xff]  ;;  %v18886_v50 = vld [vmem:[#allocation46_spill] sm:$0xff] }
 0xf1b   :  { %4091 = vmatprep.mubr.f32.mxu0 %v3951_v47  ;;  %v4314_v47 = vld [vmem:[#allocation22 + $0x5f8] sm:$0xff]  ;;  %v11659_v21 = vpack.c.bf16 %v4354_v51, %v4350_v18  ;;  %v4308_v18 = vld [vmem:[#allocation22 + $0x5c8] sm:$0xff] }
 0xf1c   :  { %v4312_v51 = vld [vmem:[#allocation22 + $0x5e8] sm:$0xff] }
 0xf1d   :  { %11490 = vmatpush1.bf16.msra.mxu0 %v15848_v6  ;;  %v4278_v6 = vld [vmem:[#allocation22 + $0x4d8] sm:$0xff] }
 0xf1e   :  { %11492 = vmatprep.subr.bf16.mxu0 %v15853_v46  ;;  %v4277_v46 = vld [vmem:[#allocation22 + $0x4d0] sm:$0xff] }
 0xf21   :  { %11494 = vmatpush1.bf16.msra.mxu0 %v15856_v31  ;;  %v11623_v31 = vpack.c.bf16 %v4282_v44, %v4278_v6  ;;  %v4358_v44 = vld [vmem:[#allocation22 + $0x758] sm:$0xff] }
 0xf22   :  { %11496 = vmatprep.subr.bf16.mxu0 %v15859_v17  ;;  %v4281_v17 = vld [vmem:[#allocation22 + $0x4f0] sm:$0xff] }
 0xf25   :  { %11498 = vmatpush1.bf16.msra.mxu0 %v15862_v29  ;;  %v11625_v29 = vpack.c.bf16 %v4281_v17, %v4277_v46  ;;  %v4362_v46 = vld [vmem:[#allocation22 + $0x778] sm:$0xff] }
 0xf26   :  { %11500 = vmatprep.subr.bf16.mxu0 %v15865_v58  ;;  %v4286_v58 = vld [vmem:[#allocation22 + $0x518] sm:$0xff]  ;;  %v11663_v17 = vpack.c.bf16 %v4362_v46, %v4358_v44  ;;  %v4316_v44 = vld [vmem:[#allocation22 + $0x608] sm:$0xff] }
 0xf27   :  { %v4320_v46 = vld [vmem:[#allocation22 + $0x628] sm:$0xff] }
 0xf29   :  { %11502 = vmatpush1.bf16.msra.mxu0 %v15868_v32  ;;  %v4290_v32 = vld [vmem:[#allocation22 + $0x538] sm:$0xff] }
 0xf2a   :  { %11504 = vmatprep.subr.bf16.mxu0 %v15871_v39  ;;  %v4285_v39 = vld [vmem:[#allocation22 + $0x510] sm:$0xff] }
 0xf2d   :  { %11506 = vmatpush1.bf16.msra.mxu0 %v15874_v24  ;;  %v11627_v24 = vpack.c.bf16 %v4290_v32, %v4286_v58 }
 0xf2e   :  { %11508 = vmatprep.subr.bf16.mxu0 %v18871_v48  ;;  %v4309_v48 = vld [vmem:[#allocation22 + $0x5d0] sm:$0xff] }
 0xf31   :  { %11510 = vmatpush1.bf16.msra.mxu0 %v18872_v1 }
 0xf32   :  { %11512 = vmatprep.subr.bf16.mxu0 %v18873_v11  ;;  %v4313_v11 = vld [vmem:[#allocation22 + $0x5f0] sm:$0xff] }
 0xf35   :  { %11514 = vmatpush1.bf16.msra.mxu0 %v18874_v27  ;;  %v11641_v27 = vpack.c.bf16 %v4313_v11, %v4309_v48  ;;  %v4267_v11 = vld [vmem:[#allocation22 + $0x480] sm:$0xff] }
 0xf36   :  { %11516 = vmatprep.subr.bf16.mxu0 %v18875_v52  ;;  %v4318_v52 = vld [vmem:[#allocation22 + $0x618] sm:$0xff] }
 0xf39   :  { %11518 = vmatpush1.bf16.msra.mxu0 %v18876_v41  ;;  %v4322_v41 = vld [vmem:[#allocation22 + $0x638] sm:$0xff] }
 0xf3a   :  { %11520 = vmatprep.subr.bf16.mxu0 %v18877_v56  ;;  %v4317_v56 = vld [vmem:[#allocation22 + $0x610] sm:$0xff] }
 0xf3d   :  { %11522 = vmatpush1.bf16.msra.mxu0 %v18878_v26  ;;  %v11643_v26 = vpack.c.bf16 %v4322_v41, %v4318_v52  ;;  %v4276_v52 = vld [vmem:[#allocation22 + $0x4c8] sm:$0xff] }
 0xf3e   :  { %11524 = vmatprep.subr.bf16.mxu0 %v18879_v62  ;;  %v4321_v62 = vld [vmem:[#allocation22 + $0x630] sm:$0xff]  ;;  %v4280_v41 = vld [vmem:[#allocation22 + $0x4e8] sm:$0xff] }
 0xf41   :  { %11526 = vmatpush1.bf16.msra.mxu0 %v18880_v22  ;;  %v11645_v22 = vpack.c.bf16 %v4321_v62, %v4317_v56  ;;  %v4275_v62 = vld [vmem:[#allocation22 + $0x4c0] sm:$0xff] }
 0xf42   :  { %11528 = vmatprep.subr.bf16.mxu0 %v18881_v5  ;;  %v4326_v5 = vld [vmem:[#allocation22 + $0x658] sm:$0xff] }
 0xf45   :  { %11530 = vmatpush1.bf16.msra.mxu0 %v18882_v37  ;;  %v4330_v37 = vld [vmem:[#allocation22 + $0x678] sm:$0xff] }
 0xf46   :  { %11532 = vmatprep.subr.bf16.mxu0 %v18883_v15  ;;  %v4325_v15 = vld [vmem:[#allocation22 + $0x650] sm:$0xff] }
 0xf49   :  { %11534 = vmatpush1.bf16.msra.mxu0 %v18884_v54  ;;  %v11647_v54 = vpack.c.bf16 %v4330_v37, %v4326_v5  ;;  %v4284_v5 = vld [vmem:[#allocation22 + $0x508] sm:$0xff] }
 0xf4a   :  { %11536 = vmatprep.subr.bf16.mxu0 %v15919_v14  ;;  %v4289_v14 = vld [vmem:[#allocation22 + $0x530] sm:$0xff]  ;;  %v4288_v37 = vld [vmem:[#allocation22 + $0x528] sm:$0xff] }
 0xf4d   :  { %11538 = vmatpush1.bf16.msra.mxu0 %v15922_v35  ;;  %v11629_v35 = vpack.c.bf16 %v4289_v14, %v4285_v39 }
 0xf4e   :  { %11540 = vmatprep.subr.bf16.mxu0 %v15925_v19  ;;  %v4294_v19 = vld [vmem:[#allocation22 + $0x558] sm:$0xff] }
 0xf51   :  { %11542 = vmatpush1.bf16.msra.mxu0 %v15928_v55  ;;  %v4298_v55 = vld [vmem:[#allocation22 + $0x578] sm:$0xff] }
 0xf52   :  { %11544 = vmatprep.subr.bf16.mxu0 %v18885_v23  ;;  %v4329_v23 = vld [vmem:[#allocation22 + $0x670] sm:$0xff] }
 0xf53   :  { %v11649_v12 = vpack.c.bf16 %v4329_v23, %v4325_v15  ;;  %v4283_v23 = vld [vmem:[#allocation22 + $0x500] sm:$0xff] }
 0xf55   :  { %11546 = vmatpush1.bf16.msra.mxu0 %v15934_v45  ;;  %v11631_v45 = vpack.c.bf16 %v4298_v55, %v4294_v19  ;;  %v4256_v19 = vld [vmem:[#allocation22 + $0x428] sm:$0xff] }
 0xf56   :  { %11612 = vmatprep.subr.bf16.mxu0 %v11611_v33  ;;  %v4338_v33 = vld [vmem:[#allocation22 + $0x6b8] sm:$0xff] }
 0xf57   :  { %v11651_v57 = vpack.c.bf16 %v4338_v33, %v4334_v30  ;;  %v4292_v30 = vld [vmem:[#allocation22 + $0x548] sm:$0xff] }
 0xf58   :  { %4092 = vmatmul.mubr.f32.vlgmr.msra.gmra.mrb[38].mxu0 %v3949_v0  ;;  %v4310_v0 = vld [vmem:[#allocation22 + $0x5d8] sm:$0xff]  ;;  %v4296_v33 = vld [vmem:[#allocation22 + $0x568] sm:$0xff] }
 0xf59   :  { %11614 = vmatpush1.bf16.msra.mxu0 %v11613_v42  ;;  %v11639_v1 = vpack.c.bf16 %v4314_v47, %v4310_v0  ;;  %v4337_v42 = vld [vmem:[#allocation22 + $0x6b0] sm:$0xff]  ;;  %v4272_v0 = vld [vmem:[#allocation22 + $0x4a8] sm:$0xff] }
 0xf5a   :  { %11616 = vmatprep.subr.bf16.mxu0 %v11615_v60  ;;  %v11653_v63 = vpack.c.bf16 %v4337_v42, %v4333_v34  ;;  %v4341_v60 = vld [vmem:[#allocation22 + $0x6d0] sm:$0xff]  ;;  %v4291_v42 = vld [vmem:[#allocation22 + $0x540] sm:$0xff] }
 0xf5b   :  { %v18887_v47 = vld [vmem:[#allocation47_spill] sm:$0xff] }
 0xf5d   :  { %11618 = vmatpush1.bf16.msra.mxu0 %v11617_v43  ;;  %v4345_v43 = vld [vmem:[#allocation22 + $0x6f0] sm:$0xff] }
 0xf5e   :  { %11620 = vmatprep.subr.bf16.mxu0 %v11619_v13  ;;  %v11657_v25 = vpack.c.bf16 %v4345_v43, %v4341_v60  ;;  %v4349_v13 = vld [vmem:[#allocation22 + $0x710] sm:$0xff]  ;;  %v4299_v43 = vld [vmem:[#allocation22 + $0x580] sm:$0xff] }
 0xf61   :  { %11622 = vmatpush1.bf16.msra.mxu0 %v11621_v38  ;;  %v4353_v38 = vld [vmem:[#allocation22 + $0x730] sm:$0xff] }
 0xf62   :  { %11624 = vmatprep.subr.bf16.mxu0 %v11623_v31  ;;  %v11661_v6 = vpack.c.bf16 %v4353_v38, %v4349_v13  ;;  %v4357_v31 = vld [vmem:[#allocation22 + $0x750] sm:$0xff]  ;;  %v4307_v38 = vld [vmem:[#allocation22 + $0x5c0] sm:$0xff] }
 0xf65   :  { %11626 = vmatpush1.bf16.msra.mxu0 %v11625_v29  ;;  %v4361_v29 = vld [vmem:[#allocation22 + $0x770] sm:$0xff] }
 0xf66   :  { %11628 = vmatprep.subr.bf16.mxu0 %v11627_v24  ;;  %v11665_v58 = vpack.c.bf16 %v4361_v29, %v4357_v31  ;;  %v4315_v29 = vld [vmem:[#allocation22 + $0x600] sm:$0xff] }
 0xf69   :  { %11630 = vmatpush1.bf16.msra.mxu0 %v11629_v35  ;;  %v4252_v35 = vld [vmem:[#allocation22 + $0x408] sm:$0xff] }
 0xf6a   :  { %11632 = vmatprep.subr.bf16.mxu0 %v11631_v45  ;;  %v11547_v45 = vpack.c.bf16 %v4256_v19, %v4252_v35  ;;  %v4323_v35 = vld [vmem:[#allocation22 + $0x640] sm:$0xff] }
 0xf6b   :  { %v4327_v19 = vld [vmem:[#allocation22 + $0x660] sm:$0xff] }
 0xf6d   :  { %11634 = vmatpush1.bf16.msra.mxu0 %v11633_v9  ;;  %v4255_v9 = vld [vmem:[#allocation22 + $0x420] sm:$0xff] }
 0xf6e   :  { %11636 = vmatprep.subr.bf16.mxu0 %v11635_v20  ;;  %v4259_v20 = vld [vmem:[#allocation22 + $0x440] sm:$0xff] }
 0xf6f   :  { %v11553_v48 = vpack.c.bf16 %v4263_v53, %v4259_v20  ;;  %v4339_v53 = vld [vmem:[#allocation22 + $0x6c0] sm:$0xff] }
 0xf71   :  { %11638 = vmatpush1.bf16.msra.mxu0 %v11637_v59  ;;  %v4268_v59 = vld [vmem:[#allocation22 + $0x488] sm:$0xff] }
 0xf72   :  { %11640 = vmatprep.subr.bf16.mxu0 %v11639_v1  ;;  %v11555_v1 = vpack.c.bf16 %v4272_v0, %v4268_v59  ;;  %v4343_v59 = vld [vmem:[#allocation22 + $0x6e0] sm:$0xff]  ;;  %v4348_v0 = vld [vmem:[#allocation22 + $0x708] sm:$0xff] }
 0xf75   :  { %11642 = vmatpush1.bf16.msra.mxu0 %v11641_v27  ;;  %v4271_v27 = vld [vmem:[#allocation22 + $0x4a0] sm:$0xff] }
 0xf76   :  { %11644 = vmatprep.subr.bf16.mxu0 %v11643_v26  ;;  %v11557_v56 = vpack.c.bf16 %v4271_v27, %v4267_v11  ;;  %v11559_v26 = vpack.c.bf16 %v4280_v41, %v4276_v52  ;;  %v4347_v27 = vld [vmem:[#allocation22 + $0x700] sm:$0xff]  ;;  %v4356_v41 = vld [vmem:[#allocation22 + $0x748] sm:$0xff] }
 0xf77   :  { %v4351_v52 = vld [vmem:[#allocation22 + $0x720] sm:$0xff] }
 0xf79   :  { %11646 = vmatpush1.bf16.msra.mxu0 %v11645_v22  ;;  %v4279_v22 = vld [vmem:[#allocation22 + $0x4e0] sm:$0xff] }
 0xf7a   :  { %11648 = vmatprep.subr.bf16.mxu0 %v11647_v54  ;;  %v11561_v15 = vpack.c.bf16 %v4279_v22, %v4275_v62  ;;  %v11563_v54 = vpack.c.bf16 %v4288_v37, %v4284_v5  ;;  %v4355_v22 = vld [vmem:[#allocation22 + $0x740] sm:$0xff] }
 0xf7b   :  { %v4359_v5 = vld [vmem:[#allocation22 + $0x760] sm:$0xff] }
 0xf7c   :  { %v11601_v37 = vpack.c.bf16 %v4359_v5, %v4355_v22  ;;  %v4728_v22 = vld [vmem:[#allocation22 + $0x68] sm:$0xff] }
 0xf7d   :  { %11650 = vmatpush1.bf16.msra.mxu0 %v11649_v12  ;;  %v4287_v12 = vld [vmem:[#allocation22 + $0x520] sm:$0xff] }
 0xf7e   :  { %11652 = vmatprep.subr.bf16.mxu0 %v11651_v57  ;;  %v11565_v34 = vpack.c.bf16 %v4287_v12, %v4283_v23  ;;  %v11567_v57 = vpack.c.bf16 %v4296_v33, %v4292_v30  ;;  %v4363_v12 = vld [vmem:[#allocation22 + $0x780] sm:$0xff]  ;;  %v4366_v33 = vld [vmem:[#allocation22 + $0x798] sm:$0xff] }
 0xf7f   :  { %v4367_v30 = vld [vmem:[#allocation22 + $0x7a0] sm:$0xff] }
 0xf81   :  { %11654 = vmatpush1.bf16.msra.mxu0 %v11653_v63  ;;  %v4295_v63 = vld [vmem:[#allocation22 + $0x560] sm:$0xff] }
 0xf82   :  { %11656 = vmatprep.subr.bf16.mxu0 %v11655_v16  ;;  %v11569_v60 = vpack.c.bf16 %v4295_v63, %v4291_v42  ;;  %v11571_v16 = vpack.c.bf16 %v4304_v7, %v4300_v49  ;;  %v4365_v42 = vld [vmem:[#allocation22 + $0x790] sm:$0xff] }
 0xf83   :  { %v4369_v63 = vld [vmem:[#allocation22 + $0x7b0] sm:$0xff] }
 0xf84   :  { %v11669_v7 = vpack.c.bf16 %v4369_v63, %v4365_v42  ;;  %v4727_v42 = vld [vmem:[#allocation22 + $0x60] sm:$0xff]  ;;  %v4732_v63 = vld [vmem:[#allocation22 + $0x88] sm:$0xff] }
 0xf85   :  { %11658 = vmatpush1.bf16.msra.mxu0 %v11657_v25  ;;  %v4303_v25 = vld [vmem:[#allocation22 + $0x5a0] sm:$0xff] }
 0xf86   :  { %11660 = vmatprep.subr.bf16.mxu0 %v11659_v21  ;;  %v11573_v13 = vpack.c.bf16 %v4303_v25, %v4299_v43  ;;  %v11575_v21 = vpack.c.bf16 %v4312_v51, %v4308_v18  ;;  %v4371_v25 = vld [vmem:[#allocation22 + $0x7c0] sm:$0xff]  ;;  %v4374_v51 = vld [vmem:[#allocation22 + $0x7d8] sm:$0xff] }
 0xf87   :  { %v4375_v18 = vld [vmem:[#allocation22 + $0x7e0] sm:$0xff] }
 0xf89   :  { %11662 = vmatpush1.bf16.msra.mxu0 %v11661_v6  ;;  %v4311_v6 = vld [vmem:[#allocation22 + $0x5e0] sm:$0xff] }
 0xf8a   :  { %11664 = vmatprep.subr.bf16.mxu0 %v11663_v17  ;;  %v11577_v31 = vpack.c.bf16 %v4311_v6, %v4307_v38  ;;  %v11579_v17 = vpack.c.bf16 %v4320_v46, %v4316_v44  ;;  %v4373_v38 = vld [vmem:[#allocation22 + $0x7d0] sm:$0xff] }
 0xf8b   :  { %v4377_v6 = vld [vmem:[#allocation22 + $0x7f0] sm:$0xff] }
 0xf8c   :  { %v11673_v46 = vpack.c.bf16 %v4377_v6, %v4373_v38  ;;  %v4735_v38 = vld [vmem:[#allocation22 + $0xa0] sm:$0xff]  ;;  %v4740_v6 = vld [vmem:[#allocation22 + $0xc8] sm:$0xff] }
 0xf8d   :  { %11666 = vmatpush1.bf16.msra.mxu0 %v11665_v58  ;;  %v4319_v58 = vld [vmem:[#allocation22 + $0x620] sm:$0xff] }
0x102b   :  { %v4093_v32 = vpop.f32.mrb[38].mxu0 }
0x102c   :  { %v14347_v39 = vadd.f32 %v4093_v32, %v15941_v2  ;;  %v4095_v24 = vpop.f32.mrb[39].mxu0  ;;  %v11549_v2 = vpack.c.bf16 %v4255_v9, %v4251_v8  ;;  %v4324_v32 = vld [vmem:[#allocation22 + $0x648] sm:$0xff]  ;;  %v4331_v9 = vld [vmem:[#allocation22 + $0x680] sm:$0xff] }
0x102d   :  { %v14348_v14 = vadd.f32 %v4095_v24, %v15944_v61  ;;  %v11551_v61 = vpack.c.bf16 %v4264_v3, %v4260_v28  ;;  %v11581_v24 = vpack.c.bf16 %v4319_v58, %v4315_v29  ;;  %v4335_v28 = vld [vmem:[#allocation22 + $0x6a0] sm:$0xff]  ;;  %v4340_v3 = vld [vmem:[#allocation22 + $0x6c8] sm:$0xff] }
0x102e   :  { %v4100_v40 = vmax.f32 %v14347_v39, 0.0  ;;  %v4328_v39 = vld [vmem:[#allocation22 + $0x668] sm:$0xff] }
0x102f   :  { %v4101_v55 = vmax.f32 %v14348_v14, 0.0  ;;  %v11583_v14 = vpack.c.bf16 %v4328_v39, %v4324_v32  ;;  %v18888_v32 = vld [vmem:[#allocation42_spill] sm:$0xff] }
0x1030   :  { %v4547_v39 = vand.u32 1, %v18888_v32 }
0x1031   :  { %4104 = vmatprep.subr.mxu1 %v4101_v55 }
0x1032   :  { %4105 = vmatpush1.msra.mxu1 %v4100_v40  ;;  %vm4555_vm11 = vcmp.ne.s32.totalorder %v4547_v39, 0  ;;  %vm16029_vm13 = vcmp.ne.s32.totalorder %v4547_v39, 1  ;;  %v4758_v39 = vld [vmem:[#allocation22 + $0x158] sm:$0xff] }
0x1033   :  { %10032 = vmatmul.mubr.msk.f32.vlgmr.msra.gmra.mrb[20].mxu1 %vm2814_vm4, %v18886_v50  ;;  %4177 = vmatprep.subr.mxu1 %v4101_v55  ;;  %v4332_v55 = vld [vmem:[#allocation22 + $0x688] sm:$0xff]  ;;  %vm4556_vm12 = vmand %vm439_vm2, %vm4555_vm11  ;;  %v5364_v50 = vld [vmem:[#allocation25 + $0xaf8] sm:$0xff] }
0x1034   :  { %4178 = vmatpush1.msra.mxu1 %v4100_v40  ;;  %4241 = vmatprep.mubr.f32.mxu1 %v18870_v4  ;;  %v4336_v40 = vld [vmem:[#allocation22 + $0x6a8] sm:$0xff]  ;;  %vm4559_vm2 = vmand %vm507_vm6, %vm16029_vm13 }
0x1035   :  { %11548 = vmatprep.subr.bf16.mxu1 %v11547_v45  ;;  %v11585_v45 = vpack.c.bf16 %v4327_v19, %v4323_v35  ;;  %v11587_v8 = vpack.c.bf16 %v4336_v40, %v4332_v55  ;;  %v4717_v55 = vld [vmem:[#allocation22 + $0x10] sm:$0xff] }
0x1036   :  { %v4721_v40 = vld [vmem:[#allocation22 + $0x30] sm:$0xff] }
0x1037   :  { %10033 = vmatmul.mubr.msk.f32.vlgmr.msra.gmra.mrb[22].mxu1 %vm2814_vm4, %v18887_v47  ;;  %v5360_v47 = vld [vmem:[#allocation25 + $0xad8] sm:$0xff] }
0x1038   :  { %11550 = vmatpush1.bf16.msra.mxu1 %v11549_v2  ;;  %v4344_v2 = vld [vmem:[#allocation22 + $0x6e8] sm:$0xff] }
0x1039   :  { %11552 = vmatprep.subr.bf16.mxu1 %v11551_v61  ;;  %v11589_v61 = vpack.c.bf16 %v4335_v28, %v4331_v9  ;;  %v11591_v20 = vpack.c.bf16 %v4344_v2, %v4340_v3  ;;  %v4730_v9 = vld [vmem:[#allocation22 + $0x78] sm:$0xff]  ;;  %v4761_v28 = vld [vmem:[#allocation22 + $0x170] sm:$0xff] }
0x103a   :  { %v4766_v2 = vld [vmem:[#allocation22 + $0x198] sm:$0xff] }
0x103c   :  { %11554 = vmatpush1.bf16.msra.mxu1 %v11553_v48  ;;  %v4352_v48 = vld [vmem:[#allocation22 + $0x728] sm:$0xff] }
0x103d   :  { %11556 = vmatprep.subr.bf16.mxu1 %v11555_v1  ;;  %v11593_v1 = vpack.c.bf16 %v4343_v59, %v4339_v53  ;;  %v11595_v11 = vpack.c.bf16 %v4352_v48, %v4348_v0  ;;  %v11741_v53 = vpack.c.bf16 %v4721_v40, %v4717_v55  ;;  %v4725_v0 = vld [vmem:[#allocation22 + $0x50] sm:$0xff]  ;;  %v4748_v55 = vld [vmem:[#allocation22 + $0x108] sm:$0xff] }
0x103e   :  { %v4729_v48 = vld [vmem:[#allocation22 + $0x70] sm:$0xff]  ;;  %v4752_v40 = vld [vmem:[#allocation22 + $0x128] sm:$0xff] }
0x103f   :  { %v11745_v5 = vpack.c.bf16 %v4729_v48, %v4725_v0  ;;  %v4756_v0 = vld [vmem:[#allocation22 + $0x148] sm:$0xff] }
0x1040   :  { %11558 = vmatpush1.bf16.msra.mxu1 %v11557_v56  ;;  %v4360_v56 = vld [vmem:[#allocation22 + $0x768] sm:$0xff] }
0x1041   :  { %11560 = vmatprep.subr.bf16.mxu1 %v11559_v26  ;;  %v11597_v26 = vpack.c.bf16 %v4351_v52, %v4347_v27  ;;  %v11599_v62 = vpack.c.bf16 %v4360_v56, %v4356_v41  ;;  %v4738_v27 = vld [vmem:[#allocation22 + $0xb8] sm:$0xff]  ;;  %v4715_v56 = vld [vmem:[#allocation22] sm:$0xff]  ;;  %v4760_v48 = vld [vmem:[#allocation22 + $0x168] sm:$0xff] }
0x1042   :  { %v4765_v52 = vld [vmem:[#allocation22 + $0x190] sm:$0xff] }
0x1044   :  { %11562 = vmatpush1.bf16.msra.mxu1 %v11561_v15  ;;  %v4364_v15 = vld [vmem:[#allocation22 + $0x788] sm:$0xff] }
0x1045   :  { %11564 = vmatprep.subr.bf16.mxu1 %v11563_v54  ;;  %v4368_v54 = vld [vmem:[#allocation22 + $0x7a8] sm:$0xff] }
0x1046   :  { %v11603_v23 = vpack.c.bf16 %v4368_v54, %v4364_v15  ;;  %v4733_v15 = vld [vmem:[#allocation22 + $0x90] sm:$0xff] }
0x1047   :  { %v4737_v54 = vld [vmem:[#allocation22 + $0xb0] sm:$0xff] }
0x1048   :  { %11566 = vmatpush1.bf16.msra.mxu1 %v11565_v34  ;;  %v11605_v34 = vpack.c.bf16 %v4367_v30, %v4363_v12  ;;  %v4742_v30 = vld [vmem:[#allocation22 + $0xd8] sm:$0xff] }
0x1049   :  { %11568 = vmatprep.subr.bf16.mxu1 %v11567_v57  ;;  %v4370_v57 = vld [vmem:[#allocation22 + $0x7b8] sm:$0xff] }
0x104a   :  { %v11667_v49 = vpack.c.bf16 %v4370_v57, %v4366_v33  ;;  %v4746_v33 = vld [vmem:[#allocation22 + $0xf8] sm:$0xff]  ;;  %v4723_v57 = vld [vmem:[#allocation22 + $0x40] sm:$0xff] }
0x104c   :  { %11570 = vmatpush1.bf16.msra.mxu1 %v11569_v60  ;;  %v4372_v60 = vld [vmem:[#allocation22 + $0x7c8] sm:$0xff]  ;;  %11668 = vmatprep.subr.bf16.mxu0 %v11667_v49 }
0x104d   :  { %11572 = vmatprep.subr.bf16.mxu1 %v11571_v16  ;;  %v4376_v16 = vld [vmem:[#allocation22 + $0x7e8] sm:$0xff]  ;;  %11670 = vmatpush1.bf16.msra.mxu0 %v11669_v7  ;;  %v11749_v7 = vpack.c.bf16 %v4737_v54, %v4733_v15 }
0x104e   :  { %v11607_v43 = vpack.c.bf16 %v4376_v16, %v4372_v60  ;;  %v4736_v49 = vld [vmem:[#allocation22 + $0xa8] sm:$0xff]  ;;  %v11751_v60 = vpack.c.bf16 %v4746_v33, %v4742_v30  ;;  %v4741_v16 = vld [vmem:[#allocation22 + $0xd0] sm:$0xff] }
0x104f   :  { %v4764_v15 = vld [vmem:[#allocation22 + $0x188] sm:$0xff]  ;;  %v4773_v33 = vld [vmem:[#allocation22 + $0x1d0] sm:$0xff] }
0x1050   :  { %11574 = vmatpush1.bf16.msra.mxu1 %v11573_v13  ;;  %v11609_v13 = vpack.c.bf16 %v4375_v18, %v4371_v25  ;;  %v11681_v25 = vpack.c.bf16 %v4727_v42, %v4723_v57  ;;  %v4750_v18 = vld [vmem:[#allocation22 + $0x118] sm:$0xff]  ;;  %v4768_v54 = vld [vmem:[#allocation22 + $0x1a8] sm:$0xff] }
0x1051   :  { %11576 = vmatprep.subr.bf16.mxu1 %v11575_v21  ;;  %v4378_v21 = vld [vmem:[#allocation22 + $0x7f8] sm:$0xff] }
0x1052   :  { %v11671_v44 = vpack.c.bf16 %v4378_v21, %v4374_v51  ;;  %v4754_v51 = vld [vmem:[#allocation22 + $0x138] sm:$0xff]  ;;  %v4731_v21 = vld [vmem:[#allocation22 + $0x80] sm:$0xff] }
0x1053   :  { %v4782_v42 = vld [vmem:[#allocation22 + $0x218] sm:$0xff] }
0x1054   :  { %11578 = vmatpush1.bf16.msra.mxu1 %v11577_v31  ;;  %11672 = vmatprep.subr.bf16.mxu0 %v11671_v44  ;;  %v4718_v31 = vld [vmem:[#allocation22 + $0x18] sm:$0xff]  ;;  %v4744_v44 = vld [vmem:[#allocation22 + $0xe8] sm:$0xff] }
0x1055   :  { %11580 = vmatprep.subr.bf16.mxu1 %v11579_v17  ;;  %11674 = vmatpush1.bf16.msra.mxu0 %v11673_v46  ;;  %v4722_v17 = vld [vmem:[#allocation22 + $0x38] sm:$0xff] }
0x1056   :  { %v11739_v29 = vpack.c.bf16 %v4722_v17, %v4718_v31  ;;  %v11755_v31 = vpack.c.bf16 %v4754_v51, %v4750_v18  ;;  %v4749_v17 = vld [vmem:[#allocation22 + $0x110] sm:$0xff] }
0x1057   :  { %v4781_v51 = vld [vmem:[#allocation22 + $0x210] sm:$0xff] }
0x1058   :  { %11582 = vmatpush1.bf16.msra.mxu1 %v11581_v24  ;;  %11740 = vmatprep.subr.bf16.mxu0 %v11739_v29  ;;  %v4753_v29 = vld [vmem:[#allocation22 + $0x130] sm:$0xff] }
0x1059   :  { %11584 = vmatprep.subr.bf16.mxu1 %v11583_v14 }
0x105c   :  { %11586 = vmatpush1.bf16.msra.mxu1 %v11585_v45 }
0x105d   :  { %11588 = vmatprep.subr.bf16.mxu1 %v11587_v8  ;;  %v4726_v8 = vld [vmem:[#allocation22 + $0x58] sm:$0xff] }
0x105e   :  { %v11743_v59 = vpack.c.bf16 %v4730_v9, %v4726_v8  ;;  %v4757_v9 = vld [vmem:[#allocation22 + $0x150] sm:$0xff] }
0x1060   :  { %11590 = vmatpush1.bf16.msra.mxu1 %v11589_v61  ;;  %v4716_v61 = vld [vmem:[#allocation22 + $0x8] sm:$0xff] }
0x1061   :  { %11592 = vmatprep.subr.bf16.mxu1 %v11591_v20  ;;  %v4720_v20 = vld [vmem:[#allocation22 + $0x28] sm:$0xff] }
0x1062   :  { %v11675_v41 = vpack.c.bf16 %v4720_v20, %v4716_v61  ;;  %v4770_v61 = vld [vmem:[#allocation22 + $0x1b8] sm:$0xff]  ;;  %v11691_v20 = vpack.c.bf16 %v4752_v40, %v4748_v55 }
0x1063   :  { %v4802_v55 = vld [vmem:[#allocation22 + $0x2b8] sm:$0xff] }
0x1064   :  { %11594 = vmatpush1.bf16.msra.mxu1 %v11593_v1  ;;  %v16036_v1 = vsel %vm4556_vm12, 1.0, %v18870_v4 }
0x1065   :  { %11596 = vmatprep.subr.bf16.mxu1 %v11595_v11  ;;  %18893 = vst [vmem:[#allocation50_spill] sm:$0xff] %v16036_v1  ;;  %v4734_v11 = vld [vmem:[#allocation22 + $0x98] sm:$0xff] }
0x1068   :  { %11598 = vmatpush1.bf16.msra.mxu1 %v11597_v26  ;;  %v4719_v26 = vld [vmem:[#allocation22 + $0x20] sm:$0xff] }
0x1069   :  { %11600 = vmatprep.subr.bf16.mxu1 %v11599_v62  ;;  %v4724_v62 = vld [vmem:[#allocation22 + $0x48] sm:$0xff]  ;;  %v11677_v12 = vpack.c.bf16 %v4719_v26, %v4715_v56  ;;  %v4774_v26 = vld [vmem:[#allocation22 + $0x1d8] sm:$0xff] }
0x106c   :  { %11602 = vmatpush1.bf16.msra.mxu1 %v11601_v37  ;;  %v11747_v37 = vpack.c.bf16 %v4738_v27, %v4734_v11  ;;  %v11761_v11 = vpack.c.bf16 %v4761_v28, %v4757_v9  ;;  %v11763_v27 = vpack.c.bf16 %v4770_v61, %v4766_v2  ;;  %v4788_v9 = vld [vmem:[#allocation22 + $0x248] sm:$0xff]  ;;  %v4797_v61 = vld [vmem:[#allocation22 + $0x290] sm:$0xff] }
0x106d   :  { %11604 = vmatprep.subr.bf16.mxu1 %v11603_v23  ;;  %v16050_v23 = vsel %vm4559_vm2, 1.0, %v18870_v4  ;;  %v4792_v28 = vld [vmem:[#allocation22 + $0x268] sm:$0xff] }
0x106e   :  { %18895 = vst [vmem:[#allocation51_spill] sm:$0xff] %v16050_v23 }
0x1070   :  { %11606 = vmatpush1.bf16.msra.mxu1 %v11605_v34  ;;  %v11679_v34 = vpack.c.bf16 %v4728_v22, %v4724_v62  ;;  %v4778_v62 = vld [vmem:[#allocation22 + $0x1f8] sm:$0xff]  ;;  %v11695_v22 = vpack.c.bf16 %v4760_v48, %v4756_v0  ;;  %v11711_v48 = vpack.c.bf16 %v4792_v28, %v4788_v9 }
0x1071   :  { %11608 = vmatprep.subr.bf16.mxu1 %v11607_v43  ;;  %v4745_v43 = vld [vmem:[#allocation22 + $0xf0] sm:$0xff]  ;;  %v11767_v30 = vpack.c.bf16 %v4778_v62, %v4774_v26  ;;  %v4810_v0 = vld [vmem:[#allocation22 + $0x2f8] sm:$0xff] }
0x1072   :  { %v11753_v46 = vpack.c.bf16 %v4745_v43, %v4741_v16  ;;  %v4772_v16 = vld [vmem:[#allocation22 + $0x1c8] sm:$0xff]  ;;  %v4805_v62 = vld [vmem:[#allocation22 + $0x2d0] sm:$0xff]  ;;  %v4842_v9 = vld [vmem:[#allocation22 + $0x3f8] sm:$0xff] }
0x1073   :  { %v4776_v43 = vld [vmem:[#allocation22 + $0x1e8] sm:$0xff] }
0x1074   :  { %11610 = vmatpush1.bf16.msra.mxu1 %v11609_v13  ;;  %v11683_v13 = vpack.c.bf16 %v4736_v49, %v4732_v63  ;;  %v4786_v63 = vld [vmem:[#allocation22 + $0x238] sm:$0xff]  ;;  %v11699_v49 = vpack.c.bf16 %v4768_v54, %v4764_v15 }
0x1075   :  { %v11771_v18 = vpack.c.bf16 %v4786_v63, %v4782_v42  ;;  %v4818_v15 = vld [vmem:[#allocation22 + $0x338] sm:$0xff]  ;;  %v4813_v63 = vld [vmem:[#allocation22 + $0x310] sm:$0xff] }
0x1106   :  { %v4170_v58 = vpop.f32.mrb[20].mxu1 }
0x1107   :  { %v4172_v24 = vpop.f32.mrb[21].mxu1 }
0x110a   :  { %v4243_v14 = vpop.f32.mrb[22].mxu1 }
0x110b   :  { %v4248_v35 = vmax.f32 %v4170_v58, %v4243_v14  ;;  %v4245_v19 = vpop.f32.mrb[23].mxu1  ;;  %v11685_v58 = vpack.c.bf16 %v4735_v38, %v4731_v21  ;;  %v11687_v14 = vpack.c.bf16 %v4744_v44, %v4740_v6  ;;  %v4790_v38 = vld [vmem:[#allocation22 + $0x258] sm:$0xff]  ;;  %v11703_v44 = vpack.c.bf16 %v4776_v43, %v4772_v16 }
0x110c   :  { %v4249_v45 = vmax.f32 %v4172_v24, %v4245_v19  ;;  %v4762_v24 = vld [vmem:[#allocation22 + $0x178] sm:$0xff]  ;;  %v4743_v19 = vld [vmem:[#allocation22 + $0xe0] sm:$0xff] }
0x110d   :  { %v11759_v8 = vpack.c.bf16 %v4762_v24, %v4758_v39  ;;  %v4794_v6 = vld [vmem:[#allocation22 + $0x278] sm:$0xff]  ;;  %v4789_v24 = vld [vmem:[#allocation22 + $0x250] sm:$0xff] }
0x110e   :  { %4465 = vmatprep.mubr.f32.mxu1 %v4249_v45  ;;  %4536 = vmatprep.mubr.f32.mxu0 %v4249_v45  ;;  %v11775_v39 = vpack.c.bf16 %v4794_v6, %v4790_v38  ;;  %v4826_v16 = vld [vmem:[#allocation22 + $0x378] sm:$0xff]  ;;  %v4821_v6 = vld [vmem:[#allocation22 + $0x350] sm:$0xff] }
0x110f   :  { %10034 = vmatprep.subr.msk.mxu1 %vm339_vm0, %v4249_v45  ;;  %4466 = vmatmul.mubr.f32.vlgmr.msra.gmra.mrb[24].mxu1 %v4248_v35 }
0x1110   :  { %4537 = vmatmul.mubr.f32.vlgmr.msra.gmra.mrb[44].mxu0 %v4248_v35  ;;  %10035 = vmatpush1.msk.msra.mxu1 %vm339_vm0, %v4248_v35 }
0x1111   :  { %10037 = vmatprep.subr.msk.mxu1 %vm339_vm0, %v4249_v45  ;;  %4634 = vmatprep.mubr.f32.mxu1 %v18870_v4  ;;  %v11757_v45 = vpack.c.bf16 %v4753_v29, %v4749_v17  ;;  %v4780_v17 = vld [vmem:[#allocation22 + $0x208] sm:$0xff] }
0x1112   :  { %11742 = vmatpush1.bf16.msra.mxu0 %v11741_v53  ;;  %v4747_v53 = vld [vmem:[#allocation22 + $0x100] sm:$0xff]  ;;  %v4784_v29 = vld [vmem:[#allocation22 + $0x228] sm:$0xff] }
0x1113   :  { %10036 = vmatmul.mubr.msk.f32.vlgmr.msra.gmra.mrb[26].mxu1 %vm326_vm1, %v16036_v1  ;;  %11744 = vmatprep.subr.bf16.mxu0 %v11743_v59  ;;  %v4751_v59 = vld [vmem:[#allocation22 + $0x120] sm:$0xff]  ;;  %v11707_v40 = vpack.c.bf16 %v4784_v29, %v4780_v17  ;;  %v4834_v17 = vld [vmem:[#allocation22 + $0x3b8] sm:$0xff] }
0x1114   :  { %10038 = vmatpush1.msk.msra.mxu1 %vm339_vm0, %v4248_v35  ;;  %4708 = vmatprep.mubr.f32.mxu1 %v18870_v4  ;;  %v4739_v35 = vld [vmem:[#allocation22 + $0xc0] sm:$0xff]  ;;  %v11693_v56 = vpack.c.bf16 %v4751_v59, %v4747_v53  ;;  %v4806_v59 = vld [vmem:[#allocation22 + $0x2d8] sm:$0xff] }
0x1115   :  { %11676 = vmatprep.subr.bf16.mxu1 %v11675_v41  ;;  %v11689_v3 = vpack.c.bf16 %v4743_v19, %v4739_v35  ;;  %v4769_v41 = vld [vmem:[#allocation22 + $0x1b0] sm:$0xff]  ;;  %v4798_v19 = vld [vmem:[#allocation22 + $0x298] sm:$0xff]  ;;  %v11783_v26 = vpack.c.bf16 %v4810_v0, %v4806_v59 }
0x1116   :  { %11746 = vmatpush1.bf16.msra.mxu0 %v11745_v5  ;;  %v4755_v5 = vld [vmem:[#allocation22 + $0x140] sm:$0xff]  ;;  %v11779_v2 = vpack.c.bf16 %v4802_v55, %v4798_v19  ;;  %v4829_v55 = vld [vmem:[#allocation22 + $0x390] sm:$0xff] }
0x1117   :  { %10039 = vmatmul.mubr.msk.f32.vlgmr.msra.gmra.mrb[28].mxu1 %vm326_vm1, %v16050_v23  ;;  %11748 = vmatprep.subr.bf16.mxu0 %v11747_v37  ;;  %v4759_v37 = vld [vmem:[#allocation22 + $0x160] sm:$0xff]  ;;  %v4837_v0 = vld [vmem:[#allocation22 + $0x3d0] sm:$0xff] }
0x1118   :  { %11678 = vmatpush1.bf16.msra.mxu1 %v11677_v12  ;;  %v11765_v12 = vpack.c.bf16 %v4769_v41, %v4765_v52  ;;  %v11697_v57 = vpack.c.bf16 %v4759_v37, %v4755_v5  ;;  %v4796_v52 = vld [vmem:[#allocation22 + $0x288] sm:$0xff]  ;;  %v4814_v37 = vld [vmem:[#allocation22 + $0x318] sm:$0xff] }
0x1119   :  { %11680 = vmatprep.subr.bf16.mxu1 %v11679_v34  ;;  %v4777_v34 = vld [vmem:[#allocation22 + $0x1f0] sm:$0xff]  ;;  %v4800_v41 = vld [vmem:[#allocation22 + $0x2a8] sm:$0xff]  ;;  %v11787_v42 = vpack.c.bf16 %v4818_v15, %v4814_v37  ;;  %v4835_v37 = vld [vmem:[#allocation22 + $0x3c0] sm:$0xff] }
0x111a   :  { %11750 = vmatpush1.bf16.msra.mxu0 %v11749_v7  ;;  %v4763_v7 = vld [vmem:[#allocation22 + $0x180] sm:$0xff]  ;;  %v11715_v54 = vpack.c.bf16 %v4800_v41, %v4796_v52 }
0x111b   :  { %11752 = vmatprep.subr.bf16.mxu0 %v11751_v60  ;;  %v4767_v60 = vld [vmem:[#allocation22 + $0x1a0] sm:$0xff] }
0x111c   :  { %11682 = vmatpush1.bf16.msra.mxu1 %v11681_v25  ;;  %v11769_v25 = vpack.c.bf16 %v4777_v34, %v4773_v33  ;;  %v11701_v21 = vpack.c.bf16 %v4767_v60, %v4763_v7  ;;  %v4804_v33 = vld [vmem:[#allocation22 + $0x2c8] sm:$0xff]  ;;  %v4822_v60 = vld [vmem:[#allocation22 + $0x358] sm:$0xff]  ;;  %v4827_v52 = vld [vmem:[#allocation22 + $0x380] sm:$0xff] }
0x111d   :  { %11684 = vmatprep.subr.bf16.mxu1 %v11683_v13  ;;  %v4785_v13 = vld [vmem:[#allocation22 + $0x230] sm:$0xff]  ;;  %v4808_v34 = vld [vmem:[#allocation22 + $0x2e8] sm:$0xff]  ;;  %v11791_v38 = vpack.c.bf16 %v4826_v16, %v4822_v60  ;;  %v4831_v41 = vld [vmem:[#allocation22 + $0x3a0] sm:$0xff] }
0x111e   :  { %11754 = vmatpush1.bf16.msra.mxu0 %v11753_v46  ;;  %v4771_v46 = vld [vmem:[#allocation22 + $0x1c0] sm:$0xff]  ;;  %v11719_v43 = vpack.c.bf16 %v4808_v34, %v4804_v33  ;;  %v4993_v33 = vld [vmem:[#allocation22 + $0x818] sm:$0xff]  ;;  %v4996_v60 = vld [vmem:[#allocation22 + $0x830] sm:$0xff] }
0x111f   :  { %11756 = vmatprep.subr.bf16.mxu0 %v11755_v31  ;;  %v4775_v31 = vld [vmem:[#allocation22 + $0x1e0] sm:$0xff]  ;;  %v4999_v16 = vld [vmem:[#allocation22 + $0x848] sm:$0xff] }
0x1120   :  { %11686 = vmatpush1.bf16.msra.mxu1 %v11685_v58  ;;  %v11773_v58 = vpack.c.bf16 %v4785_v13, %v4781_v51  ;;  %v11705_v35 = vpack.c.bf16 %v4775_v31, %v4771_v46  ;;  %v4812_v51 = vld [vmem:[#allocation22 + $0x308] sm:$0xff]  ;;  %v4830_v31 = vld [vmem:[#allocation22 + $0x398] sm:$0xff]  ;;  %v4839_v15 = vld [vmem:[#allocation22 + $0x3e0] sm:$0xff] }
0x1121   :  { %11688 = vmatprep.subr.bf16.mxu1 %v11687_v14  ;;  %v4793_v14 = vld [vmem:[#allocation22 + $0x270] sm:$0xff]  ;;  %v4816_v13 = vld [vmem:[#allocation22 + $0x328] sm:$0xff]  ;;  %v11795_v19 = vpack.c.bf16 %v4834_v17, %v4830_v31 }
0x1122   :  { %11758 = vmatpush1.bf16.msra.mxu0 %v11757_v45  ;;  %v4779_v45 = vld [vmem:[#allocation22 + $0x200] sm:$0xff]  ;;  %v11723_v29 = vpack.c.bf16 %v4816_v13, %v4812_v51  ;;  %v5000_v17 = vld [vmem:[#allocation22 + $0x850] sm:$0xff] }
0x1123   :  { %11760 = vmatprep.subr.bf16.mxu0 %v11759_v8  ;;  %v4783_v8 = vld [vmem:[#allocation22 + $0x220] sm:$0xff] }
0x1124   :  { %11690 = vmatpush1.bf16.msra.mxu1 %v11689_v3  ;;  %v11777_v3 = vpack.c.bf16 %v4793_v14, %v4789_v24  ;;  %v11709_v53 = vpack.c.bf16 %v4783_v8, %v4779_v45  ;;  %v4820_v24 = vld [vmem:[#allocation22 + $0x348] sm:$0xff]  ;;  %v4838_v8 = vld [vmem:[#allocation22 + $0x3d8] sm:$0xff] }
0x1125   :  { %11692 = vmatprep.subr.bf16.mxu1 %v11691_v20  ;;  %v4801_v20 = vld [vmem:[#allocation22 + $0x2b0] sm:$0xff]  ;;  %v4824_v14 = vld [vmem:[#allocation22 + $0x368] sm:$0xff]  ;;  %v11799_v59 = vpack.c.bf16 %v4842_v9, %v4838_v8 }
0x1126   :  { %11762 = vmatpush1.bf16.msra.mxu0 %v11761_v11  ;;  %v4787_v11 = vld [vmem:[#allocation22 + $0x240] sm:$0xff]  ;;  %v11727_v28 = vpack.c.bf16 %v4824_v14, %v4820_v24  ;;  %v5009_v24 = vld [vmem:[#allocation22 + $0x898] sm:$0xff] }
0x1127   :  { %11764 = vmatprep.subr.bf16.mxu0 %v11763_v27  ;;  %v4791_v27 = vld [vmem:[#allocation22 + $0x260] sm:$0xff]  ;;  %v5013_v14 = vld [vmem:[#allocation22 + $0x8b8] sm:$0xff] }
0x1128   :  { %11694 = vmatpush1.bf16.msra.mxu1 %v11693_v56  ;;  %v11781_v56 = vpack.c.bf16 %v4801_v20, %v4797_v61  ;;  %v11713_v5 = vpack.c.bf16 %v4791_v27, %v4787_v11  ;;  %v4828_v61 = vld [vmem:[#allocation22 + $0x388] sm:$0xff]  ;;  %v11875_v9 = vpack.c.bf16 %v5013_v14, %v5009_v24 }
0x1129   :  { %11696 = vmatprep.subr.bf16.mxu1 %v11695_v22  ;;  %v4809_v22 = vld [vmem:[#allocation22 + $0x2f0] sm:$0xff]  ;;  %v4832_v20 = vld [vmem:[#allocation22 + $0x3a8] sm:$0xff] }
0x112a   :  { %11766 = vmatpush1.bf16.msra.mxu0 %v11765_v12  ;;  %v4795_v12 = vld [vmem:[#allocation22 + $0x280] sm:$0xff]  ;;  %v11731_v27 = vpack.c.bf16 %v4832_v20, %v4828_v61  ;;  %v5019_v20 = vld [vmem:[#allocation22 + $0x8e8] sm:$0xff] }
0x112b   :  { %11768 = vmatprep.subr.bf16.mxu0 %v11767_v30  ;;  %v4799_v30 = vld [vmem:[#allocation22 + $0x2a0] sm:$0xff] }
0x112c   :  { %11698 = vmatpush1.bf16.msra.mxu1 %v11697_v57  ;;  %v11785_v57 = vpack.c.bf16 %v4809_v22, %v4805_v62  ;;  %v11717_v7 = vpack.c.bf16 %v4799_v30, %v4795_v12  ;;  %v11733_v22 = vpack.c.bf16 %v4831_v41, %v4827_v52  ;;  %v4991_v12 = vld [vmem:[#allocation22 + $0x808] sm:$0xff] }
0x112d   :  { %11700 = vmatprep.subr.bf16.mxu1 %v11699_v49  ;;  %v4817_v49 = vld [vmem:[#allocation22 + $0x330] sm:$0xff]  ;;  %v4995_v30 = vld [vmem:[#allocation22 + $0x828] sm:$0xff] }
0x112e   :  { %11770 = vmatpush1.bf16.msra.mxu0 %v11769_v25  ;;  %v4803_v25 = vld [vmem:[#allocation22 + $0x2c0] sm:$0xff]  ;;  %v11803_v34 = vpack.c.bf16 %v4995_v30, %v4991_v12 }
0x112f   :  { %11772 = vmatprep.subr.bf16.mxu0 %v11771_v18  ;;  %v4807_v18 = vld [vmem:[#allocation22 + $0x2e0] sm:$0xff] }
0x1130   :  { %11702 = vmatpush1.bf16.msra.mxu1 %v11701_v21  ;;  %v11789_v21 = vpack.c.bf16 %v4817_v49, %v4813_v63  ;;  %v11721_v46 = vpack.c.bf16 %v4807_v18, %v4803_v25  ;;  %v4990_v63 = vld [vmem:[#allocation22 + $0x800] sm:$0xff]  ;;  %v5001_v25 = vld [vmem:[#allocation22 + $0x858] sm:$0xff] }
0x1131   :  { %11704 = vmatprep.subr.bf16.mxu1 %v11703_v44  ;;  %v4825_v44 = vld [vmem:[#allocation22 + $0x370] sm:$0xff]  ;;  %v4994_v49 = vld [vmem:[#allocation22 + $0x820] sm:$0xff]  ;;  %v5005_v18 = vld [vmem:[#allocation22 + $0x878] sm:$0xff] }
0x1132   :  { %11774 = vmatpush1.bf16.msra.mxu0 %v11773_v58  ;;  %v4811_v58 = vld [vmem:[#allocation22 + $0x300] sm:$0xff]  ;;  %v11805_v13 = vpack.c.bf16 %v4994_v49, %v4990_v63  ;;  %v11871_v31 = vpack.c.bf16 %v5005_v18, %v5001_v25  ;;  %v5031_v63 = vld [vmem:[#allocation22 + $0x948] sm:$0xff] }
0x1133   :  { %11776 = vmatprep.subr.bf16.mxu0 %v11775_v39  ;;  %v4815_v39 = vld [vmem:[#allocation22 + $0x320] sm:$0xff]  ;;  %v5035_v49 = vld [vmem:[#allocation22 + $0x968] sm:$0xff] }
0x1134   :  { %11706 = vmatpush1.bf16.msra.mxu1 %v11705_v35  ;;  %v11793_v35 = vpack.c.bf16 %v4825_v44, %v4821_v6  ;;  %v11725_v45 = vpack.c.bf16 %v4815_v39, %v4811_v58  ;;  %v5002_v6 = vld [vmem:[#allocation22 + $0x860] sm:$0xff]  ;;  %v5007_v58 = vld [vmem:[#allocation22 + $0x888] sm:$0xff] }
0x1135   :  { %11708 = vmatprep.subr.bf16.mxu1 %v11707_v40  ;;  %v4833_v40 = vld [vmem:[#allocation22 + $0x3b0] sm:$0xff]  ;;  %v5011_v39 = vld [vmem:[#allocation22 + $0x8a8] sm:$0xff]  ;;  %v5022_v12 = vld [vmem:[#allocation22 + $0x900] sm:$0xff] }
0x1136   :  { %11778 = vmatpush1.bf16.msra.mxu0 %v11777_v3  ;;  %v4819_v3 = vld [vmem:[#allocation22 + $0x340] sm:$0xff]  ;;  %v11811_v8 = vpack.c.bf16 %v5011_v39, %v5007_v58 }
0x1137   :  { %11780 = vmatprep.subr.bf16.mxu0 %v11779_v2  ;;  %v4823_v2 = vld [vmem:[#allocation22 + $0x360] sm:$0xff] }
0x1138   :  { %11710 = vmatpush1.bf16.msra.mxu1 %v11709_v53  ;;  %v11797_v53 = vpack.c.bf16 %v4833_v40, %v4829_v55  ;;  %v11729_v11 = vpack.c.bf16 %v4823_v2, %v4819_v3  ;;  %v5006_v55 = vld [vmem:[#allocation22 + $0x880] sm:$0xff]  ;;  %v5012_v3 = vld [vmem:[#allocation22 + $0x8b0] sm:$0xff]  ;;  %v5015_v2 = vld [vmem:[#allocation22 + $0x8c8] sm:$0xff] }
0x1139   :  { %11712 = vmatprep.subr.bf16.mxu1 %v11711_v48  ;;  %v4841_v48 = vld [vmem:[#allocation22 + $0x3f0] sm:$0xff]  ;;  %v5010_v40 = vld [vmem:[#allocation22 + $0x8a0] sm:$0xff]  ;;  %v11815_v52 = vpack.c.bf16 %v5019_v20, %v5015_v2 }
0x113a   :  { %11782 = vmatpush1.bf16.msra.mxu0 %v11781_v56  ;;  %v4836_v56 = vld [vmem:[#allocation22 + $0x3c8] sm:$0xff]  ;;  %v11801_v62 = vpack.c.bf16 %v4841_v48, %v4837_v0  ;;  %v11813_v0 = vpack.c.bf16 %v5010_v40, %v5006_v55  ;;  %v5026_v30 = vld [vmem:[#allocation22 + $0x920] sm:$0xff] }
0x113b   :  { %11784 = vmatprep.subr.bf16.mxu0 %v11783_v26  ;;  %v4840_v26 = vld [vmem:[#allocation22 + $0x3e8] sm:$0xff]  ;;  %v5030_v25 = vld [vmem:[#allocation22 + $0x940] sm:$0xff] }
0x113c   :  { %11714 = vmatpush1.bf16.msra.mxu1 %v11713_v5  ;;  %v11735_v5 = vpack.c.bf16 %v4840_v26, %v4836_v56  ;;  %v5016_v56 = vld [vmem:[#allocation22 + $0x8d0] sm:$0xff]  ;;  %v5034_v18 = vld [vmem:[#allocation22 + $0x960] sm:$0xff]  ;;  %v5047_v55 = vld [vmem:[#allocation22 + $0x9c8] sm:$0xff] }
0x113d   :  { %11716 = vmatprep.subr.bf16.mxu1 %v11715_v54  ;;  %v11737_v54 = vpack.c.bf16 %v4839_v15, %v4835_v37  ;;  %v5020_v26 = vld [vmem:[#allocation22 + $0x8f0] sm:$0xff]  ;;  %v5029_v37 = vld [vmem:[#allocation22 + $0x938] sm:$0xff]  ;;  %v5038_v58 = vld [vmem:[#allocation22 + $0x980] sm:$0xff] }
0x113e   :  { %11786 = vmatpush1.bf16.msra.mxu0 %v11785_v57  ;;  %v4997_v57 = vld [vmem:[#allocation22 + $0x838] sm:$0xff]  ;;  %v5042_v39 = vld [vmem:[#allocation22 + $0x9a0] sm:$0xff]  ;;  %v5051_v40 = vld [vmem:[#allocation22 + $0x9e8] sm:$0xff] }
0x113f   :  { %11788 = vmatprep.subr.bf16.mxu0 %v11787_v42  ;;  %v11867_v42 = vpack.c.bf16 %v4997_v57, %v4993_v33  ;;  %v5024_v57 = vld [vmem:[#allocation22 + $0x910] sm:$0xff]  ;;  %v5046_v2 = vld [vmem:[#allocation22 + $0x9c0] sm:$0xff]  ;;  %v11831_v20 = vpack.c.bf16 %v5051_v40, %v5047_v55 }
0x1140   :  { %11718 = vmatpush1.bf16.msra.mxu1 %v11717_v7  ;;  %v4992_v7 = vld [vmem:[#allocation22 + $0x810] sm:$0xff]  ;;  %v5082_v55 = vld [vmem:[#allocation22 + $0xae0] sm:$0xff] }
0x1141   :  { %11720 = vmatprep.subr.bf16.mxu1 %v11719_v43  ;;  %v5003_v43 = vld [vmem:[#allocation22 + $0x868] sm:$0xff] }
0x1142   :  { %11790 = vmatpush1.bf16.msra.mxu0 %v11789_v21  ;;  %v11869_v21 = vpack.c.bf16 %v4996_v60, %v4992_v7  ;;  %v5033_v7 = vld [vmem:[#allocation22 + $0x958] sm:$0xff] }
0x1143   :  { %11792 = vmatprep.subr.bf16.mxu0 %v11791_v38  ;;  %v4998_v38 = vld [vmem:[#allocation22 + $0x840] sm:$0xff]  ;;  %v5037_v60 = vld [vmem:[#allocation22 + $0x978] sm:$0xff] }
0x1144   :  { %11722 = vmatpush1.bf16.msra.mxu1 %v11721_v46  ;;  %v11807_v46 = vpack.c.bf16 %v5003_v43, %v4999_v16  ;;  %v11821_v16 = vpack.c.bf16 %v5026_v30, %v5022_v12  ;;  %v5067_v12 = vld [vmem:[#allocation22 + $0xa68] sm:$0xff]  ;;  %v5065_v30 = vld [vmem:[#allocation22 + $0xa58] sm:$0xff] }
0x1145   :  { %11724 = vmatprep.subr.bf16.mxu1 %v11723_v29  ;;  %v5004_v29 = vld [vmem:[#allocation22 + $0x870] sm:$0xff] }
0x1146   :  { %11794 = vmatpush1.bf16.msra.mxu0 %v11793_v35  ;;  %v11809_v35 = vpack.c.bf16 %v5002_v6, %v4998_v38  ;;  %v5036_v38 = vld [vmem:[#allocation22 + $0x970] sm:$0xff]  ;;  %v5039_v6 = vld [vmem:[#allocation22 + $0x988] sm:$0xff] }
0x1147   :  { %11796 = vmatprep.subr.bf16.mxu0 %v11795_v19  ;;  %v11873_v19 = vpack.c.bf16 %v5004_v29, %v5000_v17  ;;  %v11825_v17 = vpack.c.bf16 %v5034_v18, %v5030_v25  ;;  %v5075_v25 = vld [vmem:[#allocation22 + $0xaa8] sm:$0xff]  ;;  %v5073_v18 = vld [vmem:[#allocation22 + $0xa98] sm:$0xff] }
0x1148   :  { %11726 = vmatpush1.bf16.msra.mxu1 %v11725_v45 }
0x1149   :  { %11728 = vmatprep.subr.bf16.mxu1 %v11727_v28  ;;  %v5008_v28 = vld [vmem:[#allocation22 + $0x890] sm:$0xff] }
0x114a   :  { %11798 = vmatpush1.bf16.msra.mxu0 %v11797_v53  ;;  %v5017_v53 = vld [vmem:[#allocation22 + $0x8d8] sm:$0xff]  ;;  %v11877_v48 = vpack.c.bf16 %v5012_v3, %v5008_v28  ;;  %v11829_v28 = vpack.c.bf16 %v5042_v39, %v5038_v58  ;;  %v5083_v58 = vld [vmem:[#allocation22 + $0xae8] sm:$0xff] }
0x114b   :  { %11800 = vmatprep.subr.bf16.mxu0 %v11799_v59  ;;  %v5021_v59 = vld [vmem:[#allocation22 + $0x8f8] sm:$0xff] }
0x114c   :  { %11730 = vmatpush1.bf16.msra.mxu1 %v11729_v11  ;;  %v5014_v11 = vld [vmem:[#allocation22 + $0x8c0] sm:$0xff]  ;;  %v11879_v41 = vpack.c.bf16 %v5021_v59, %v5017_v53  ;;  %v5048_v59 = vld [vmem:[#allocation22 + $0x9d0] sm:$0xff]  ;;  %v5081_v39 = vld [vmem:[#allocation22 + $0xad8] sm:$0xff] }
0x114d   :  { %11732 = vmatprep.subr.bf16.mxu1 %v11731_v27  ;;  %v5018_v27 = vld [vmem:[#allocation22 + $0x8e0] sm:$0xff] }
0x114e   :  { %11802 = vmatpush1.bf16.msra.mxu0 %v11801_v62  ;;  %v5023_v62 = vld [vmem:[#allocation22 + $0x908] sm:$0xff]  ;;  %v11817_v15 = vpack.c.bf16 %v5018_v27, %v5014_v11  ;;  %v5057_v27 = vld [vmem:[#allocation22 + $0xa18] sm:$0xff] }
0x114f   :  { %11868 = vmatprep.subr.bf16.mxu0 %v11867_v42  ;;  %v5028_v42 = vld [vmem:[#allocation22 + $0x930] sm:$0xff]  ;;  %v5059_v11 = vld [vmem:[#allocation22 + $0xa28] sm:$0xff] }
0x1150   :  { %11734 = vmatpush1.bf16.msra.mxu1 %v11733_v22  ;;  %v5027_v22 = vld [vmem:[#allocation22 + $0x928] sm:$0xff]  ;;  %v11885_v43 = vpack.c.bf16 %v5028_v42, %v5024_v57  ;;  %v5062_v42 = vld [vmem:[#allocation22 + $0xa40] sm:$0xff] }
0x1151   :  { %11736 = vmatprep.subr.bf16.mxu1 %v11735_v5  ;;  %v5025_v5 = vld [vmem:[#allocation22 + $0x918] sm:$0xff]  ;;  %v11819_v33 = vpack.c.bf16 %v5027_v22, %v5023_v62  ;;  %v5058_v62 = vld [vmem:[#allocation22 + $0xa20] sm:$0xff] }
0x1154   :  { %11738 = vmatpush1.bf16.msra.mxu1 %v11737_v54  ;;  %v11881_v54 = vpack.c.bf16 %v5020_v26, %v5016_v56  ;;  %v5054_v26 = vld [vmem:[#allocation22 + $0xa00] sm:$0xff] }
0x1155   :  { %11804 = vmatprep.subr.bf16.mxu1 %v11803_v34  ;;  %v11883_v34 = vpack.c.bf16 %v5029_v37, %v5025_v5  ;;  %v5056_v37 = vld [vmem:[#allocation22 + $0xa10] sm:$0xff] }
0x11e6   :  { %v4636_v51 = vpop.f32.mrb[26].mxu1 }
0x11e7   :  { %v4638_v44 = vpop.f32.mrb[27].mxu1 }
0x11e8   :  { %4907 = vmatprep.mubr.f32.mxu1 %v4638_v44  ;;  %4978 = vmatprep.mubr.f32.mxu0 %v4638_v44  ;;  %v5043_v44 = vld [vmem:[#allocation22 + $0x9a8] sm:$0xff] }
0x11e9   :  { %4908 = vmatmul.mubr.f32.vlgmr.msra.gmra.mrb[24].mxu1 %v4636_v51  ;;  %4979 = vmatmul.mubr.f32.vlgmr.msra.gmra.mrb[44].mxu0 %v4636_v51  ;;  %v11823_v51 = vpack.c.bf16 %v5035_v49, %v5031_v63  ;;  %v11827_v24 = vpack.c.bf16 %v5043_v44, %v5039_v6  ;;  %v5066_v63 = vld [vmem:[#allocation22 + $0xa60] sm:$0xff] }
0x11ea   :  { %11806 = vmatpush1.bf16.msra.mxu1 %v11805_v13  ;;  %11870 = vmatpush1.bf16.msra.mxu0 %v11869_v21  ;;  %v16054_v45 = vpop.f32.mrb[28].mxu1  ;;  %v11887_v13 = vpack.c.bf16 %v5037_v60, %v5033_v7  ;;  %v5032_v21 = vld [vmem:[#allocation22 + $0x950] sm:$0xff]  ;;  %v5074_v6 = vld [vmem:[#allocation22 + $0xaa0] sm:$0xff] }
0x11eb   :  { %11808 = vmatprep.subr.bf16.mxu1 %v11807_v46  ;;  %11872 = vmatprep.subr.bf16.mxu0 %v11871_v31  ;;  %v4712_v61 = vpop.f32.mrb[29].mxu1  ;;  %v5041_v46 = vld [vmem:[#allocation22 + $0x998] sm:$0xff]  ;;  %v11889_v29 = vpack.c.bf16 %v5036_v38, %v5032_v21  ;;  %v5064_v60 = vld [vmem:[#allocation22 + $0xa50] sm:$0xff]  ;;  %v5070_v38 = vld [vmem:[#allocation22 + $0xa80] sm:$0xff] }
0x11ec   :  { %5182 = vmatprep.mubr.f32.mxu1 %v4712_v61  ;;  %5253 = vmatprep.mubr.f32.mxu0 %v4712_v61  ;;  %v5045_v31 = vld [vmem:[#allocation22 + $0x9b8] sm:$0xff]  ;;  %v5050_v61 = vld [vmem:[#allocation22 + $0x9e0] sm:$0xff] }
0x11ed   :  { %v11891_v14 = vpack.c.bf16 %v5045_v31, %v5041_v46  ;;  %v5072_v31 = vld [vmem:[#allocation22 + $0xa90] sm:$0xff] }
0x11ee   :  { %11810 = vmatpush1.bf16.msra.mxu1 %v11809_v35  ;;  %11874 = vmatpush1.bf16.msra.mxu0 %v11873_v19  ;;  %v5040_v35 = vld [vmem:[#allocation22 + $0x990] sm:$0xff] }
0x11ef   :  { %11812 = vmatprep.subr.bf16.mxu1 %v11811_v8  ;;  %11876 = vmatprep.subr.bf16.mxu0 %v11875_v9  ;;  %v5044_v19 = vld [vmem:[#allocation22 + $0x9b0] sm:$0xff]  ;;  %v5049_v8 = vld [vmem:[#allocation22 + $0x9d8] sm:$0xff] }
0x11f0   :  { %v5053_v9 = vld [vmem:[#allocation22 + $0x9f8] sm:$0xff]  ;;  %v11893_v3 = vpack.c.bf16 %v5044_v19, %v5040_v35  ;;  %v5078_v19 = vld [vmem:[#allocation22 + $0xac0] sm:$0xff] }
0x11f1   :  { %v11895_v53 = vpack.c.bf16 %v5053_v9, %v5049_v8  ;;  %v5080_v9 = vld [vmem:[#allocation22 + $0xad0] sm:$0xff] }
0x11f2   :  { %11814 = vmatpush1.bf16.msra.mxu1 %v11813_v0  ;;  %11878 = vmatpush1.bf16.msra.mxu0 %v11877_v48  ;;  %v5052_v0 = vld [vmem:[#allocation22 + $0x9f0] sm:$0xff]  ;;  %v5055_v48 = vld [vmem:[#allocation22 + $0xa08] sm:$0xff] }
0x11f3   :  { %11816 = vmatprep.subr.bf16.mxu1 %v11815_v52  ;;  %11880 = vmatprep.subr.bf16.mxu0 %v11879_v41  ;;  %v5061_v52 = vld [vmem:[#allocation22 + $0xa38] sm:$0xff]  ;;  %v11833_v41 = vpack.c.bf16 %v5050_v61, %v5046_v2  ;;  %v11897_v56 = vpack.c.bf16 %v5052_v0, %v5048_v59  ;;  %v11835_v22 = vpack.c.bf16 %v5059_v11, %v5055_v48  ;;  %v5091_v2 = vld [vmem:[#allocation22 + $0xb28] sm:$0xff]  ;;  %v5086_v0 = vld [vmem:[#allocation22 + $0xb00] sm:$0xff] }
0x11f4   :  { %v11899_v5 = vpack.c.bf16 %v5061_v52, %v5057_v27  ;;  %v5089_v61 = vld [vmem:[#allocation22 + $0xb18] sm:$0xff]  ;;  %v5090_v48 = vld [vmem:[#allocation22 + $0xb20] sm:$0xff]  ;;  %v5088_v52 = vld [vmem:[#allocation22 + $0xb10] sm:$0xff] }
0x11f6   :  { %11818 = vmatpush1.bf16.msra.mxu1 %v11817_v15  ;;  %11882 = vmatpush1.bf16.msra.mxu0 %v11881_v54  ;;  %v5060_v15 = vld [vmem:[#allocation22 + $0xa30] sm:$0xff]  ;;  %v5063_v54 = vld [vmem:[#allocation22 + $0xa48] sm:$0xff] }
0x11f7   :  { %11820 = vmatprep.subr.bf16.mxu1 %v11819_v33  ;;  %11884 = vmatprep.subr.bf16.mxu0 %v11883_v34  ;;  %v5069_v33 = vld [vmem:[#allocation22 + $0xa78] sm:$0xff]  ;;  %v11837_v34 = vpack.c.bf16 %v5058_v62, %v5054_v26  ;;  %v11901_v57 = vpack.c.bf16 %v5060_v15, %v5056_v37  ;;  %v11839_v49 = vpack.c.bf16 %v5067_v12, %v5063_v54  ;;  %v5099_v26 = vld [vmem:[#allocation22 + $0xb68] sm:$0xff]  ;;  %v5094_v15 = vld [vmem:[#allocation22 + $0xb40] sm:$0xff] }
0x11f8   :  { %v11903_v7 = vpack.c.bf16 %v5069_v33, %v5065_v30  ;;  %v5097_v62 = vld [vmem:[#allocation22 + $0xb58] sm:$0xff]  ;;  %v5098_v54 = vld [vmem:[#allocation22 + $0xb60] sm:$0xff]  ;;  %v5096_v33 = vld [vmem:[#allocation22 + $0xb50] sm:$0xff] }
0x11fa   :  { %11822 = vmatpush1.bf16.msra.mxu1 %v11821_v16  ;;  %11886 = vmatpush1.bf16.msra.mxu0 %v11885_v43  ;;  %v5068_v16 = vld [vmem:[#allocation22 + $0xa70] sm:$0xff]  ;;  %v5071_v43 = vld [vmem:[#allocation22 + $0xa88] sm:$0xff] }
0x11fb   :  { %11824 = vmatprep.subr.bf16.mxu1 %v11823_v51  ;;  %11888 = vmatprep.subr.bf16.mxu0 %v11887_v13  ;;  %v5077_v51 = vld [vmem:[#allocation22 + $0xab8] sm:$0xff]  ;;  %v11841_v13 = vpack.c.bf16 %v5066_v63, %v5062_v42  ;;  %v11905_v21 = vpack.c.bf16 %v5068_v16, %v5064_v60  ;;  %v11843_v44 = vpack.c.bf16 %v5075_v25, %v5071_v43  ;;  %v5107_v42 = vld [vmem:[#allocation22 + $0xba8] sm:$0xff]  ;;  %v5102_v16 = vld [vmem:[#allocation22 + $0xb80] sm:$0xff] }
0x11fc   :  { %v11907_v46 = vpack.c.bf16 %v5077_v51, %v5073_v18  ;;  %v5105_v63 = vld [vmem:[#allocation22 + $0xb98] sm:$0xff]  ;;  %v5106_v43 = vld [vmem:[#allocation22 + $0xba0] sm:$0xff]  ;;  %v5104_v51 = vld [vmem:[#allocation22 + $0xb90] sm:$0xff] }
0x11fe   :  { %11826 = vmatpush1.bf16.msra.mxu1 %v11825_v17  ;;  %11890 = vmatpush1.bf16.msra.mxu0 %v11889_v29  ;;  %v5076_v17 = vld [vmem:[#allocation22 + $0xab0] sm:$0xff]  ;;  %v5079_v29 = vld [vmem:[#allocation22 + $0xac8] sm:$0xff] }
0x11ff   :  { %11828 = vmatprep.subr.bf16.mxu1 %v11827_v24  ;;  %11892 = vmatprep.subr.bf16.mxu0 %v11891_v14  ;;  %v5085_v24 = vld [vmem:[#allocation22 + $0xaf8] sm:$0xff]  ;;  %v11845_v14 = vpack.c.bf16 %v5074_v6, %v5070_v38  ;;  %v11909_v35 = vpack.c.bf16 %v5076_v17, %v5072_v31  ;;  %v11847_v40 = vpack.c.bf16 %v5083_v58, %v5079_v29  ;;  %v5115_v38 = vld [vmem:[#allocation22 + $0xbe8] sm:$0xff]  ;;  %v5110_v17 = vld [vmem:[#allocation22 + $0xbc0] sm:$0xff] }
0x1200   :  { %v11911_v8 = vpack.c.bf16 %v5085_v24, %v5081_v39  ;;  %v5113_v6 = vld [vmem:[#allocation22 + $0xbd8] sm:$0xff]  ;;  %v5114_v29 = vld [vmem:[#allocation22 + $0xbe0] sm:$0xff]  ;;  %v5112_v24 = vld [vmem:[#allocation22 + $0xbd0] sm:$0xff] }
0x1202   :  { %11830 = vmatpush1.bf16.msra.mxu1 %v11829_v28  ;;  %11894 = vmatpush1.bf16.msra.mxu0 %v11893_v3  ;;  %v5084_v28 = vld [vmem:[#allocation22 + $0xaf0] sm:$0xff]  ;;  %v5087_v3 = vld [vmem:[#allocation22 + $0xb08] sm:$0xff] }
0x1203   :  { %11832 = vmatprep.subr.bf16.mxu1 %v11831_v20  ;;  %11896 = vmatprep.subr.bf16.mxu0 %v11895_v53  ;;  %v5093_v20 = vld [vmem:[#allocation22 + $0xb38] sm:$0xff]  ;;  %v11849_v53 = vpack.c.bf16 %v5082_v55, %v5078_v19  ;;  %v11913_v59 = vpack.c.bf16 %v5084_v28, %v5080_v9  ;;  %v11851_v11 = vpack.c.bf16 %v5091_v2, %v5087_v3  ;;  %v5274_v19 = vld [vmem:[#allocation25 + $0x828] sm:$0xff]  ;;  %v5269_v28 = vld [vmem:[#allocation25 + $0x800] sm:$0xff] }
0x1204   :  { %v11915_v27 = vpack.c.bf16 %v5093_v20, %v5089_v61  ;;  %v5272_v55 = vld [vmem:[#allocation25 + $0x818] sm:$0xff]  ;;  %v5273_v3 = vld [vmem:[#allocation25 + $0x820] sm:$0xff]  ;;  %v5271_v20 = vld [vmem:[#allocation25 + $0x810] sm:$0xff] }
0x1206   :  { %11834 = vmatpush1.bf16.msra.mxu1 %v11833_v41  ;;  %11898 = vmatpush1.bf16.msra.mxu0 %v11897_v56  ;;  %v5092_v41 = vld [vmem:[#allocation22 + $0xb30] sm:$0xff]  ;;  %v5095_v56 = vld [vmem:[#allocation22 + $0xb48] sm:$0xff] }
0x1207   :  { %11836 = vmatprep.subr.bf16.mxu1 %v11835_v22  ;;  %11900 = vmatprep.subr.bf16.mxu0 %v11899_v5  ;;  %v5101_v22 = vld [vmem:[#allocation22 + $0xb78] sm:$0xff]  ;;  %v11853_v5 = vpack.c.bf16 %v5090_v48, %v5086_v0  ;;  %v11917_v37 = vpack.c.bf16 %v5092_v41, %v5088_v52  ;;  %v11855_v12 = vpack.c.bf16 %v5099_v26, %v5095_v56  ;;  %v5282_v0 = vld [vmem:[#allocation25 + $0x868] sm:$0xff]  ;;  %v5277_v41 = vld [vmem:[#allocation25 + $0x840] sm:$0xff] }
0x1208   :  { %v11919_v30 = vpack.c.bf16 %v5101_v22, %v5097_v62  ;;  %v5280_v48 = vld [vmem:[#allocation25 + $0x858] sm:$0xff]  ;;  %v5281_v56 = vld [vmem:[#allocation25 + $0x860] sm:$0xff]  ;;  %v5279_v22 = vld [vmem:[#allocation25 + $0x850] sm:$0xff] }
0x120a   :  { %11838 = vmatpush1.bf16.msra.mxu1 %v11837_v34  ;;  %11902 = vmatpush1.bf16.msra.mxu0 %v11901_v57  ;;  %v5100_v34 = vld [vmem:[#allocation22 + $0xb70] sm:$0xff]  ;;  %v5103_v57 = vld [vmem:[#allocation22 + $0xb88] sm:$0xff] }
0x120b   :  { %11840 = vmatprep.subr.bf16.mxu1 %v11839_v49  ;;  %11904 = vmatprep.subr.bf16.mxu0 %v11903_v7  ;;  %v5109_v49 = vld [vmem:[#allocation22 + $0xbb8] sm:$0xff]  ;;  %v11857_v7 = vpack.c.bf16 %v5098_v54, %v5094_v15  ;;  %v11921_v60 = vpack.c.bf16 %v5100_v34, %v5096_v33  ;;  %v11859_v25 = vpack.c.bf16 %v5107_v42, %v5103_v57  ;;  %v5290_v15 = vld [vmem:[#allocation25 + $0x8a8] sm:$0xff]  ;;  %v5285_v34 = vld [vmem:[#allocation25 + $0x880] sm:$0xff] }
0x120c   :  { %v11923_v18 = vpack.c.bf16 %v5109_v49, %v5105_v63  ;;  %v5288_v54 = vld [vmem:[#allocation25 + $0x898] sm:$0xff]  ;;  %v5289_v57 = vld [vmem:[#allocation25 + $0x8a0] sm:$0xff]  ;;  %v5287_v49 = vld [vmem:[#allocation25 + $0x890] sm:$0xff] }
0x120e   :  { %11842 = vmatpush1.bf16.msra.mxu1 %v11841_v13  ;;  %11906 = vmatpush1.bf16.msra.mxu0 %v11905_v21  ;;  %v5108_v13 = vld [vmem:[#allocation22 + $0xbb0] sm:$0xff]  ;;  %v5111_v21 = vld [vmem:[#allocation22 + $0xbc8] sm:$0xff] }
0x120f   :  { %11844 = vmatprep.subr.bf16.mxu1 %v11843_v44  ;;  %11908 = vmatprep.subr.bf16.mxu0 %v11907_v46  ;;  %v5117_v44 = vld [vmem:[#allocation22 + $0xbf8] sm:$0xff]  ;;  %v11861_v46 = vpack.c.bf16 %v5106_v43, %v5102_v16  ;;  %v11925_v31 = vpack.c.bf16 %v5108_v13, %v5104_v51  ;;  %v11863_v58 = vpack.c.bf16 %v5115_v38, %v5111_v21  ;;  %v5293_v51 = vld [vmem:[#allocation25 + $0x8c0] sm:$0xff] }
0x1210   :  { %v11927_v39 = vpack.c.bf16 %v5117_v44, %v5113_v6  ;;  %v5296_v16 = vld [vmem:[#allocation25 + $0x8d8] sm:$0xff]  ;;  %v5297_v13 = vld [vmem:[#allocation25 + $0x8e0] sm:$0xff]  ;;  %v5295_v6 = vld [vmem:[#allocation25 + $0x8d0] sm:$0xff] }
0x1211   :  { %v5300_v43 = vld [vmem:[#allocation25 + $0x8f8] sm:$0xff]  ;;  %v5299_v44 = vld [vmem:[#allocation25 + $0x8f0] sm:$0xff] }
0x1212   :  { %11846 = vmatpush1.bf16.msra.mxu1 %v11845_v14  ;;  %11910 = vmatpush1.bf16.msra.mxu0 %v11909_v35  ;;  %v5116_v14 = vld [vmem:[#allocation22 + $0xbf0] sm:$0xff]  ;;  %v16094_v38 = vpack.c.bf16 %v5300_v43, %v5296_v16 }
0x1213   :  { %11848 = vmatprep.subr.bf16.mxu1 %v11847_v40  ;;  %11912 = vmatprep.subr.bf16.mxu0 %v11911_v8  ;;  %v5270_v35 = vld [vmem:[#allocation25 + $0x808] sm:$0xff]  ;;  %v5276_v40 = vld [vmem:[#allocation25 + $0x838] sm:$0xff]  ;;  %v11865_v8 = vpack.c.bf16 %v5114_v29, %v5110_v17  ;;  %v11929_v9 = vpack.c.bf16 %v5116_v14, %v5112_v24  ;;  %v5301_v24 = vld [vmem:[#allocation25 + $0x900] sm:$0xff] }
0x1214   :  { %v16056_v2 = vpack.c.bf16 %v5274_v19, %v5270_v35  ;;  %v16058_v61 = vpack.c.bf16 %v5276_v40, %v5272_v55  ;;  %18902 = vst [vmem:[#allocation58_spill] sm:$0xff] %v16094_v38  ;;  %v5304_v17 = vld [vmem:[#allocation25 + $0x918] sm:$0xff]  ;;  %v5305_v14 = vld [vmem:[#allocation25 + $0x920] sm:$0xff]  ;;  %v5303_v55 = vld [vmem:[#allocation25 + $0x910] sm:$0xff] }
0x1215   :  { %v5308_v29 = vld [vmem:[#allocation25 + $0x938] sm:$0xff]  ;;  %v5307_v40 = vld [vmem:[#allocation25 + $0x930] sm:$0xff]  ;;  %v5326_v16 = vld [vmem:[#allocation25 + $0x9c8] sm:$0xff] }
0x1216   :  { %11850 = vmatpush1.bf16.msra.mxu1 %v11849_v53  ;;  %11914 = vmatpush1.bf16.msra.mxu0 %v11913_v59  ;;  %18896 = vst [vmem:[#allocation52_spill] sm:$0xff] %v16058_v61  ;;  %v5275_v53 = vld [vmem:[#allocation25 + $0x830] sm:$0xff]  ;;  %v5278_v59 = vld [vmem:[#allocation25 + $0x848] sm:$0xff]  ;;  %v16106_v19 = vpack.c.bf16 %v5308_v29, %v5304_v17 }
0x1217   :  { %11852 = vmatprep.subr.bf16.mxu1 %v11851_v11  ;;  %11916 = vmatprep.subr.bf16.mxu0 %v11915_v27  ;;  %v5284_v11 = vld [vmem:[#allocation25 + $0x878] sm:$0xff]  ;;  %v16060_v27 = vpack.c.bf16 %v5273_v3, %v5269_v28  ;;  %v16062_v52 = vpack.c.bf16 %v5275_v53, %v5271_v20  ;;  %v16066_v26 = vpack.c.bf16 %v5282_v0, %v5278_v59  ;;  %v5309_v59 = vld [vmem:[#allocation25 + $0x940] sm:$0xff]  ;;  %v5330_v43 = vld [vmem:[#allocation25 + $0x9e8] sm:$0xff] }
0x1218   :  { %v16068_v62 = vpack.c.bf16 %v5284_v11, %v5280_v48  ;;  %18904 = vst [vmem:[#allocation60_spill] sm:$0xff] %v16106_v19  ;;  %v5312_v28 = vld [vmem:[#allocation25 + $0x958] sm:$0xff]  ;;  %v16110_v20 = vpack.c.bf16 %v5305_v14, %v5301_v24  ;;  %v16112_v53 = vpack.c.bf16 %v5307_v40, %v5303_v55  ;;  %v5313_v0 = vld [vmem:[#allocation25 + $0x960] sm:$0xff]  ;;  %v16140_v17 = vpack.c.bf16 %v5330_v43, %v5326_v16  ;;  %v5327_v24 = vld [vmem:[#allocation25 + $0x9d0] sm:$0xff] }
0x1219   :  { %18897 = vst [vmem:[#allocation53_spill] sm:$0xff] %v16062_v52  ;;  %v5316_v3 = vld [vmem:[#allocation25 + $0x978] sm:$0xff]  ;;  %v5331_v14 = vld [vmem:[#allocation25 + $0x9f0] sm:$0xff]  ;;  %v5334_v55 = vld [vmem:[#allocation25 + $0xa08] sm:$0xff] }
0x121a   :  { %11854 = vmatpush1.bf16.msra.mxu1 %v11853_v5  ;;  %11918 = vmatpush1.bf16.msra.mxu0 %v11917_v37  ;;  %18898 = vst [vmem:[#allocation54_spill] sm:$0xff] %v16068_v62  ;;  %v5283_v5 = vld [vmem:[#allocation25 + $0x870] sm:$0xff]  ;;  %v5286_v37 = vld [vmem:[#allocation25 + $0x888] sm:$0xff]  ;;  %18905 = vst [vmem:[#allocation61_spill] sm:$0xff] %v16112_v53  ;;  %v16118_v11 = vpack.c.bf16 %v5316_v3, %v5312_v28  ;;  %v16148_v3 = vpack.c.bf16 %v5331_v14, %v5327_v24 }
0x121b   :  { %11856 = vmatprep.subr.bf16.mxu1 %v11855_v12  ;;  %11920 = vmatprep.subr.bf16.mxu0 %v11919_v30  ;;  %v5292_v12 = vld [vmem:[#allocation25 + $0x8b8] sm:$0xff]  ;;  %v16074_v30 = vpack.c.bf16 %v5281_v56, %v5277_v41  ;;  %v16076_v33 = vpack.c.bf16 %v5283_v5, %v5279_v22  ;;  %v16080_v42 = vpack.c.bf16 %v5290_v15, %v5286_v37  ;;  %v5311_v41 = vld [vmem:[#allocation25 + $0x950] sm:$0xff]  ;;  %v5318_v22 = vld [vmem:[#allocation25 + $0x988] sm:$0xff] }
0x121c   :  { %v16082_v63 = vpack.c.bf16 %v5292_v12, %v5288_v54  ;;  %18906 = vst [vmem:[#allocation62_spill] sm:$0xff] %v16118_v11  ;;  %v5315_v56 = vld [vmem:[#allocation25 + $0x970] sm:$0xff]  ;;  %v5322_v5 = vld [vmem:[#allocation25 + $0x9a8] sm:$0xff]  ;;  %v5320_v37 = vld [vmem:[#allocation25 + $0x998] sm:$0xff]  ;;  %v16122_v54 = vpack.c.bf16 %v5313_v0, %v5309_v59 }
0x121d   :  { %18899 = vst [vmem:[#allocation55_spill] sm:$0xff] %v16076_v33  ;;  %v5324_v15 = vld [vmem:[#allocation25 + $0x9b8] sm:$0xff]  ;;  %v16124_v12 = vpack.c.bf16 %v5315_v56, %v5311_v41  ;;  %v5338_v40 = vld [vmem:[#allocation25 + $0xa28] sm:$0xff]  ;;  %18911 = vst [vmem:[#allocation44_spill] sm:$0xff] %v16148_v3 }
0x121e   :  { %11858 = vmatpush1.bf16.msra.mxu1 %v11857_v7  ;;  %11922 = vmatpush1.bf16.msra.mxu0 %v11921_v60  ;;  %18900 = vst [vmem:[#allocation56_spill] sm:$0xff] %v16082_v63  ;;  %v5294_v7 = vld [vmem:[#allocation25 + $0x8c8] sm:$0xff]  ;;  %v5333_v59 = vld [vmem:[#allocation25 + $0xa00] sm:$0xff]  ;;  %v16152_v41 = vpack.c.bf16 %v5338_v40, %v5334_v55  ;;  %v5352_v55 = vld [vmem:[#allocation25 + $0xa98] sm:$0xff] }
0x121f   :  { %11860 = vmatprep.subr.bf16.mxu1 %v11859_v25  ;;  %11924 = vmatprep.subr.bf16.mxu0 %v11923_v18  ;;  %v5298_v60 = vld [vmem:[#allocation25 + $0x8e8] sm:$0xff]  ;;  %v16086_v25 = vpack.c.bf16 %v5289_v57, %v5285_v34  ;;  %18907 = vst [vmem:[#allocation63_spill] sm:$0xff] %v16124_v12  ;;  %v5317_v34 = vld [vmem:[#allocation25 + $0x980] sm:$0xff]  ;;  %v5356_v40 = vld [vmem:[#allocation25 + $0xab8] sm:$0xff] }
0x1220   :  { %v16092_v21 = vpack.c.bf16 %v5298_v60, %v5294_v7  ;;  %v5321_v57 = vld [vmem:[#allocation25 + $0x9a0] sm:$0xff]  ;;  %v5319_v7 = vld [vmem:[#allocation25 + $0x990] sm:$0xff]  ;;  %18912 = vst [vmem:[#allocation45_spill] sm:$0xff] %v16152_v41  ;;  %v5350_v24 = vld [vmem:[#allocation25 + $0xa88] sm:$0xff] }
0x1221   :  { %v5323_v60 = vld [vmem:[#allocation25 + $0x9b0] sm:$0xff]  ;;  %v5337_v0 = vld [vmem:[#allocation25 + $0xa20] sm:$0xff]  ;;  %v5354_v14 = vld [vmem:[#allocation25 + $0xaa8] sm:$0xff] }
0x1222   :  { %11862 = vmatpush1.bf16.msra.mxu1 %v11861_v46  ;;  %11926 = vmatpush1.bf16.msra.mxu0 %v11925_v31  ;;  %v5302_v46 = vld [vmem:[#allocation25 + $0x908] sm:$0xff]  ;;  %v5341_v16 = vld [vmem:[#allocation25 + $0xa40] sm:$0xff] }
0x1223   :  { %11864 = vmatprep.subr.bf16.mxu1 %v11863_v58  ;;  %11928 = vmatprep.subr.bf16.mxu0 %v11927_v39  ;;  %v5306_v31 = vld [vmem:[#allocation25 + $0x928] sm:$0xff]  ;;  %v16098_v58 = vpack.c.bf16 %v5297_v13, %v5293_v51  ;;  %v16100_v39 = vpack.c.bf16 %v5299_v44, %v5295_v6  ;;  %v5328_v51 = vld [vmem:[#allocation25 + $0x9d8] sm:$0xff]  ;;  %v16134_v6 = vpack.c.bf16 %v5321_v57, %v5317_v34  ;;  %v5345_v43 = vld [vmem:[#allocation25 + $0xa60] sm:$0xff] }
0x1224   :  { %v16104_v35 = vpack.c.bf16 %v5306_v31, %v5302_v46  ;;  %v5332_v13 = vld [vmem:[#allocation25 + $0x9f8] sm:$0xff]  ;;  %v16136_v44 = vpack.c.bf16 %v5323_v60, %v5319_v7  ;;  %v5325_v46 = vld [vmem:[#allocation25 + $0x9c0] sm:$0xff]  ;;  %v16158_v7 = vpack.c.bf16 %v5337_v0, %v5333_v59 }
0x1225   :  { %18903 = vst [vmem:[#allocation59_spill] sm:$0xff] %v16100_v39  ;;  %v5329_v31 = vld [vmem:[#allocation25 + $0x9e0] sm:$0xff]  ;;  %v16142_v29 = vpack.c.bf16 %v5332_v13, %v5328_v51  ;;  %v5344_v34 = vld [vmem:[#allocation25 + $0xa58] sm:$0xff] }
0x1226   :  { %11866 = vmatpush1.bf16.msra.mxu1 %v11865_v8  ;;  %11930 = vmatpush1.bf16.msra.mxu0 %v11929_v9  ;;  %v5310_v8 = vld [vmem:[#allocation25 + $0x948] sm:$0xff]  ;;  %18909 = vst [vmem:[#allocation42_spill] sm:$0xff] %v16136_v44  ;;  %v16146_v28 = vpack.c.bf16 %v5329_v31, %v5325_v46  ;;  %v5348_v57 = vld [vmem:[#allocation25 + $0xa78] sm:$0xff]  ;;  %18914 = vst [vmem:[#allocation66_spill] sm:$0xff] %v16158_v7 }
0x1227   :  { %11932 = vmatprep.subr.bf16.mxu1 %v16056_v2  ;;  %12060 = vmatprep.subr.bf16.mxu0 %v16058_v61  ;;  %v5314_v9 = vld [vmem:[#allocation25 + $0x968] sm:$0xff]  ;;  %18910 = vst [vmem:[#allocation43_spill] sm:$0xff] %v16142_v29  ;;  %v16166_v13 = vpack.c.bf16 %v5348_v57, %v5344_v34  ;;  %v5343_v46 = vld [vmem:[#allocation25 + $0xa50] sm:$0xff]  ;;  %v5349_v59 = vld [vmem:[#allocation25 + $0xa80] sm:$0xff] }
0x1228   :  { %v16116_v48 = vpack.c.bf16 %v5314_v9, %v5310_v8  ;;  %v5336_v8 = vld [vmem:[#allocation25 + $0xa18] sm:$0xff]  ;;  %v5347_v31 = vld [vmem:[#allocation25 + $0xa70] sm:$0xff]  ;;  %v5353_v0 = vld [vmem:[#allocation25 + $0xaa0] sm:$0xff] }
0x1229   :  { %5183 = vmatmul.mubr.f32.vlgmr.msra.gmra.mrb[24].mxu1 %v16054_v45  ;;  %5254 = vmatmul.mubr.f32.vlgmr.msra.gmra.mrb[44].mxu0 %v16054_v45  ;;  %v5291_v45 = vld [vmem:[#allocation25 + $0x8b0] sm:$0xff]  ;;  %v5340_v9 = vld [vmem:[#allocation25 + $0xa38] sm:$0xff]  ;;  %18917 = vst [vmem:[#allocation69_spill] sm:$0xff] %v16166_v13  ;;  %v5358_v34 = vld [vmem:[#allocation25 + $0xac8] sm:$0xff] }
0x122a   :  { %11934 = vmatpush1.bf16.msra.mxu1 %v16060_v27  ;;  %12062 = vmatpush1.bf16.msra.mxu0 %v16062_v52  ;;  %v16088_v18 = vpack.c.bf16 %v5291_v45, %v5287_v49  ;;  %v16128_v49 = vpack.c.bf16 %v5322_v5, %v5318_v22  ;;  %v16130_v45 = vpack.c.bf16 %v5324_v15, %v5320_v37  ;;  %v5335_v22 = vld [vmem:[#allocation25 + $0xa10] sm:$0xff]  ;;  %v5342_v37 = vld [vmem:[#allocation25 + $0xa48] sm:$0xff] }
0x122b   :  { %11936 = vmatprep.subr.bf16.mxu1 %v16066_v26  ;;  %12064 = vmatprep.subr.bf16.mxu0 %v16068_v62  ;;  %v16154_v56 = vpack.c.bf16 %v5340_v9, %v5336_v8  ;;  %v5339_v5 = vld [vmem:[#allocation25 + $0xa30] sm:$0xff]  ;;  %v5346_v15 = vld [vmem:[#allocation25 + $0xa68] sm:$0xff]  ;;  %v16170_v8 = vpack.c.bf16 %v5345_v43, %v5341_v16  ;;  %v16172_v9 = vpack.c.bf16 %v5347_v31, %v5343_v46  ;;  %v5357_v46 = vld [vmem:[#allocation25 + $0xac0] sm:$0xff] }
0x122c   :  { %18901 = vst [vmem:[#allocation57_spill] sm:$0xff] %v16088_v18  ;;  %18908 = vst [vmem:[#allocation64_spill] sm:$0xff] %v16130_v45  ;;  %v16160_v60 = vpack.c.bf16 %v5339_v5, %v5335_v22  ;;  %v16164_v51 = vpack.c.bf16 %v5346_v15, %v5342_v37  ;;  %v16176_v22 = vpack.c.bf16 %v5354_v14, %v5350_v24  ;;  %v5351_v37 = vld [vmem:[#allocation25 + $0xa90] sm:$0xff]  ;;  %v5362_v57 = vld [vmem:[#allocation25 + $0xae8] sm:$0xff] }
0x122d   :  { %18913 = vst [vmem:[#allocation65_spill] sm:$0xff] %v16154_v56  ;;  %18918 = vst [vmem:[#allocation70_spill] sm:$0xff] %v16170_v8  ;;  %v16178_v5 = vpack.c.bf16 %v5356_v40, %v5352_v55  ;;  %v5355_v15 = vld [vmem:[#allocation25 + $0xab0] sm:$0xff]  ;;  %v16182_v16 = vpack.c.bf16 %v5353_v0, %v5349_v59  ;;  %v5361_v31 = vld [vmem:[#allocation25 + $0xae0] sm:$0xff]  ;;  %v16188_v24 = vpack.c.bf16 %v5362_v57, %v5358_v34 }
0x122e   :  { %11938 = vmatpush1.bf16.msra.mxu1 %v16074_v30  ;;  %12066 = vmatpush1.bf16.msra.mxu0 %v16076_v33  ;;  %18915 = vst [vmem:[#allocation67_spill] sm:$0xff] %v16160_v60  ;;  %18916 = vst [vmem:[#allocation68_spill] sm:$0xff] %v16164_v51  ;;  %v16184_v43 = vpack.c.bf16 %v5355_v15, %v5351_v37  ;;  %v16190_v14 = vpack.c.bf16 %v5364_v50, %v5360_v47  ;;  %v5359_v55 = vld [vmem:[#allocation25 + $0xad0] sm:$0xff]  ;;  %v5365_v37 = vld [vmem:[#allocation25 + $0xb00] sm:$0xff] }
0x122f   :  { %11940 = vmatprep.subr.bf16.mxu1 %v16080_v42  ;;  %12068 = vmatprep.subr.bf16.mxu0 %v16082_v63  ;;  %18919 = vst [vmem:[#allocation71_spill] sm:$0xff] %v16172_v9  ;;  %18920 = vst [vmem:[#allocation72_spill] sm:$0xff] %v16176_v22  ;;  %v5363_v40 = vld [vmem:[#allocation25 + $0xaf0] sm:$0xff]  ;;  %v16194_v59 = vpack.c.bf16 %v5361_v31, %v5357_v46  ;;  %v5369_v15 = vld [vmem:[#allocation25 + $0xb20] sm:$0xff] }
0x1230   :  { %18921 = vst [vmem:[#allocation73_spill] sm:$0xff] %v16178_v5  ;;  %18922 = vst [vmem:[#allocation74_spill] sm:$0xff] %v16182_v16  ;;  %v16196_v0 = vpack.c.bf16 %v5363_v40, %v5359_v55  ;;  %v5367_v34 = vld [vmem:[#allocation25 + $0xb10] sm:$0xff]  ;;  %v16206_v46 = vpack.c.bf16 %v5369_v15, %v5365_v37  ;;  %v5373_v55 = vld [vmem:[#allocation25 + $0xb40] sm:$0xff] }
0x1231   :  { %18923 = vst [vmem:[#allocation75_spill] sm:$0xff] %v16184_v43  ;;  %18924 = vst [vmem:[#allocation76_spill] sm:$0xff] %v16188_v24  ;;  %v5371_v57 = vld [vmem:[#allocation25 + $0xb30] sm:$0xff]  ;;  %v5377_v40 = vld [vmem:[#allocation25 + $0xb60] sm:$0xff] }
0x1232   :  { %11942 = vmatpush1.bf16.msra.mxu1 %v16086_v25  ;;  %12070 = vmatpush1.bf16.msra.mxu0 %v16088_v18  ;;  %18925 = vst [vmem:[#allocation77_spill] sm:$0xff] %v16190_v14  ;;  %18926 = vst [vmem:[#allocation78_spill] sm:$0xff] %v16194_v59  ;;  %v16208_v31 = vpack.c.bf16 %v5371_v57, %v5367_v34  ;;  %v16218_v37 = vpack.c.bf16 %v5377_v40, %v5373_v55  ;;  %v5381_v34 = vld [vmem:[#allocation25 + $0xb80] sm:$0xff]  ;;  %v5387_v57 = vld [vmem:[#allocation25 + $0xbb0] sm:$0xff] }
0x1233   :  { %11944 = vmatprep.subr.bf16.mxu1 %v16092_v21  ;;  %12072 = vmatprep.subr.bf16.mxu0 %v16094_v38  ;;  %18927 = vst [vmem:[#allocation79_spill] sm:$0xff] %v16196_v0  ;;  %18930 = vst [vmem:[#allocation82_spill] sm:$0xff] %v16206_v46 }
0x1234   :  { %18931 = vst [vmem:[#allocation83_spill] sm:$0xff] %v16208_v31  ;;  %18934 = vst [vmem:[#allocation86_spill] sm:$0xff] %v16218_v37 }
0x1236   :  { %11946 = vmatpush1.bf16.msra.mxu1 %v16098_v58  ;;  %12074 = vmatpush1.bf16.msra.mxu0 %v16100_v39 }
0x1237   :  { %11948 = vmatprep.subr.bf16.mxu1 %v16104_v35  ;;  %12076 = vmatprep.subr.bf16.mxu0 %v16106_v19 }
0x123a   :  { %11950 = vmatpush1.bf16.msra.mxu1 %v16110_v20  ;;  %12078 = vmatpush1.bf16.msra.mxu0 %v16112_v53 }
0x123b   :  { %11952 = vmatprep.subr.bf16.mxu1 %v16116_v48  ;;  %12080 = vmatprep.subr.bf16.mxu0 %v16118_v11 }
0x123e   :  { %11954 = vmatpush1.bf16.msra.mxu1 %v16122_v54  ;;  %12082 = vmatpush1.bf16.msra.mxu0 %v16124_v12 }
0x123f   :  { %11956 = vmatprep.subr.bf16.mxu1 %v16128_v49  ;;  %12084 = vmatprep.subr.bf16.mxu0 %v16130_v45 }
0x1242   :  { %11958 = vmatpush1.bf16.msra.mxu1 %v16134_v6  ;;  %12086 = vmatpush1.bf16.msra.mxu0 %v16136_v44 }
0x1243   :  { %11960 = vmatprep.subr.bf16.mxu1 %v16140_v17  ;;  %12088 = vmatprep.subr.bf16.mxu0 %v16142_v29 }
0x1246   :  { %11962 = vmatpush1.bf16.msra.mxu1 %v16146_v28  ;;  %12090 = vmatpush1.bf16.msra.mxu0 %v16148_v3 }
0x1247   :  { %11964 = vmatprep.subr.bf16.mxu1 %v16152_v41  ;;  %12092 = vmatprep.subr.bf16.mxu0 %v16154_v56  ;;  %v5432_v56 = vld [vmem:[#allocation25 + $0xd18] sm:$0xff] }
0x124a   :  { %11966 = vmatpush1.bf16.msra.mxu1 %v16158_v7  ;;  %12094 = vmatpush1.bf16.msra.mxu0 %v16160_v60  ;;  %v5411_v60 = vld [vmem:[#allocation25 + $0xc70] sm:$0xff]  ;;  %v5414_v7 = vld [vmem:[#allocation25 + $0xc88] sm:$0xff] }
0x124b   :  { %11968 = vmatprep.subr.bf16.mxu1 %v16164_v51  ;;  %12096 = vmatprep.subr.bf16.mxu0 %v16166_v13  ;;  %v5366_v13 = vld [vmem:[#allocation25 + $0xb08] sm:$0xff]  ;;  %v5368_v51 = vld [vmem:[#allocation25 + $0xb18] sm:$0xff] }
0x124e   :  { %11970 = vmatpush1.bf16.msra.mxu1 %v16170_v8  ;;  %12098 = vmatpush1.bf16.msra.mxu0 %v16172_v9  ;;  %v5370_v8 = vld [vmem:[#allocation25 + $0xb28] sm:$0xff]  ;;  %v5372_v9 = vld [vmem:[#allocation25 + $0xb38] sm:$0xff] }
0x124f   :  { %11972 = vmatprep.subr.bf16.mxu1 %v16176_v22  ;;  %12100 = vmatprep.subr.bf16.mxu0 %v16178_v5  ;;  %v16200_v50 = vpack.c.bf16 %v5370_v8, %v5366_v13  ;;  %v16202_v47 = vpack.c.bf16 %v5372_v9, %v5368_v51  ;;  %v5374_v5 = vld [vmem:[#allocation25 + $0xb48] sm:$0xff]  ;;  %v5376_v22 = vld [vmem:[#allocation25 + $0xb58] sm:$0xff]  ;;  %v5375_v8 = vld [vmem:[#allocation25 + $0xb50] sm:$0xff] }
0x1250   :  { %v5379_v9 = vld [vmem:[#allocation25 + $0xb70] sm:$0xff] }
0x1251   :  { %18928 = vst [vmem:[#allocation80_spill] sm:$0xff] %v16200_v50  ;;  %18929 = vst [vmem:[#allocation81_spill] sm:$0xff] %v16202_v47  ;;  %v16220_v15 = vpack.c.bf16 %v5379_v9, %v5375_v8  ;;  %v5396_v8 = vld [vmem:[#allocation25 + $0xbf8] sm:$0xff]  ;;  %v5389_v9 = vld [vmem:[#allocation25 + $0xbc0] sm:$0xff] }
0x1252   :  { %11974 = vmatpush1.bf16.msra.mxu1 %v16182_v16  ;;  %12102 = vmatpush1.bf16.msra.mxu0 %v16184_v43  ;;  %v5378_v16 = vld [vmem:[#allocation25 + $0xb68] sm:$0xff]  ;;  %v5380_v43 = vld [vmem:[#allocation25 + $0xb78] sm:$0xff] }
0x1253   :  { %11976 = vmatprep.subr.bf16.mxu1 %v16188_v24  ;;  %12104 = vmatprep.subr.bf16.mxu0 %v16190_v14  ;;  %v16212_v51 = vpack.c.bf16 %v5378_v16, %v5374_v5  ;;  %v16214_v13 = vpack.c.bf16 %v5380_v43, %v5376_v22  ;;  %v5382_v14 = vld [vmem:[#allocation25 + $0xb88] sm:$0xff]  ;;  %v5384_v24 = vld [vmem:[#allocation25 + $0xb98] sm:$0xff]  ;;  %18935 = vst [vmem:[#allocation87_spill] sm:$0xff] %v16220_v15  ;;  %v5385_v16 = vld [vmem:[#allocation25 + $0xba0] sm:$0xff] }
0x1254   :  { %v5383_v43 = vld [vmem:[#allocation25 + $0xb90] sm:$0xff]  ;;  %v16230_v55 = vpack.c.bf16 %v5385_v16, %v5381_v34 }
0x1255   :  { %18932 = vst [vmem:[#allocation84_spill] sm:$0xff] %v16212_v51  ;;  %18933 = vst [vmem:[#allocation85_spill] sm:$0xff] %v16214_v13  ;;  %v16232_v40 = vpack.c.bf16 %v5387_v57, %v5383_v43  ;;  %v5391_v43 = vld [vmem:[#allocation25 + $0xbd0] sm:$0xff] }
0x1256   :  { %11978 = vmatpush1.bf16.msra.mxu1 %v16194_v59  ;;  %12106 = vmatpush1.bf16.msra.mxu0 %v16196_v0  ;;  %v5386_v59 = vld [vmem:[#allocation25 + $0xba8] sm:$0xff]  ;;  %v5388_v0 = vld [vmem:[#allocation25 + $0xbb8] sm:$0xff]  ;;  %18938 = vst [vmem:[#allocation90_spill] sm:$0xff] %v16230_v55  ;;  %v5395_v57 = vld [vmem:[#allocation25 + $0xbf0] sm:$0xff] }
0x1257   :  { %11980 = vmatprep.subr.bf16.mxu1 %v16200_v50  ;;  %12108 = vmatprep.subr.bf16.mxu0 %v16202_v47  ;;  %v16224_v22 = vpack.c.bf16 %v5386_v59, %v5382_v14  ;;  %v16226_v5 = vpack.c.bf16 %v5388_v0, %v5384_v24  ;;  %18939 = vst [vmem:[#allocation91_spill] sm:$0xff] %v16232_v40  ;;  %v5390_v24 = vld [vmem:[#allocation25 + $0xbc8] sm:$0xff]  ;;  %v5392_v59 = vld [vmem:[#allocation25 + $0xbd8] sm:$0xff]  ;;  %v5405_v47 = vld [vmem:[#allocation25 + $0xc40] sm:$0xff] }
0x1258   :  { %v5394_v14 = vld [vmem:[#allocation25 + $0xbe8] sm:$0xff]  ;;  %v16240_v34 = vpack.c.bf16 %v5396_v8, %v5392_v59  ;;  %v5400_v59 = vld [vmem:[#allocation25 + $0xc18] sm:$0xff]  ;;  %v5409_v50 = vld [vmem:[#allocation25 + $0xc60] sm:$0xff] }
0x1259   :  { %18936 = vst [vmem:[#allocation88_spill] sm:$0xff] %v16224_v22  ;;  %18937 = vst [vmem:[#allocation89_spill] sm:$0xff] %v16226_v5  ;;  %v16238_v0 = vpack.c.bf16 %v5394_v14, %v5390_v24  ;;  %v5402_v24 = vld [vmem:[#allocation25 + $0xc28] sm:$0xff]  ;;  %v5404_v8 = vld [vmem:[#allocation25 + $0xc38] sm:$0xff] }
0x125a   :  { %11982 = vmatpush1.bf16.msra.mxu1 %v16206_v46  ;;  %12110 = vmatpush1.bf16.msra.mxu0 %v16208_v31  ;;  %18941 = vst [vmem:[#allocation93_spill] sm:$0xff] %v16240_v34 }
0x125b   :  { %11984 = vmatprep.subr.bf16.mxu1 %v16212_v51  ;;  %12112 = vmatprep.subr.bf16.mxu0 %v16214_v13  ;;  %18940 = vst [vmem:[#allocation92_spill] sm:$0xff] %v16238_v0  ;;  %v5410_v13 = vld [vmem:[#allocation25 + $0xc68] sm:$0xff]  ;;  %v5408_v51 = vld [vmem:[#allocation25 + $0xc58] sm:$0xff] }
0x125e   :  { %11986 = vmatpush1.bf16.msra.mxu1 %v16218_v37  ;;  %12114 = vmatpush1.bf16.msra.mxu0 %v16220_v15  ;;  %v5393_v15 = vld [vmem:[#allocation25 + $0xbe0] sm:$0xff]  ;;  %v5406_v37 = vld [vmem:[#allocation25 + $0xc48] sm:$0xff] }
0x125f   :  { %11988 = vmatprep.subr.bf16.mxu1 %v16224_v22  ;;  %12116 = vmatprep.subr.bf16.mxu0 %v16226_v5  ;;  %v16242_v16 = vpack.c.bf16 %v5393_v15, %v5389_v9  ;;  %v16245_v5 = vpack.c.bf16 %v5395_v57, %v5391_v43  ;;  %v16252_v15 = vpack.c.bf16 %v5404_v8, %v5400_v59  ;;  %v16256_v9 = vld [vmem:[#allocation23] sm:$0xf]  ;;  %v18381_v43 = vsub.s32 3, %v18888_v32  ;;  %v5397_v8 = vld [vmem:[#allocation25 + $0xc00] sm:$0xff] }
0x1260   :  { %v4384_v57 = vrot.slane %v16256_v9, %v15703_v36 }
0x1261   :  { %18942 = vst [vmem:[#allocation94_spill] sm:$0xff] %v16242_v16  ;;  %18943 = vst [vmem:[#allocation95_spill] sm:$0xff] %v16245_v5 }
0x1262   :  { %11990 = vmatpush1.bf16.msra.mxu1 %v16230_v55  ;;  %12118 = vmatpush1.bf16.msra.mxu0 %v16232_v40  ;;  %v5398_v40 = vld [vmem:[#allocation25 + $0xc08] sm:$0xff]  ;;  %18945 = vst [vmem:[#allocation97_spill] sm:$0xff] %v16252_v15  ;;  %v5403_v55 = vld [vmem:[#allocation25 + $0xc30] sm:$0xff] }
0x1263   :  { %11992 = vmatprep.subr.bf16.mxu1 %v16238_v0  ;;  %12120 = vmatprep.subr.bf16.mxu0 %v16240_v34  ;;  %v16250_v14 = vpack.c.bf16 %v5402_v24, %v5398_v40  ;;  %v4396_v40 = vrot.slane %v16256_v9, %v18381_v43  ;;  %v5401_v34 = vld [vmem:[#allocation25 + $0xc20] sm:$0xff]  ;;  %v5399_v0 = vld [vmem:[#allocation25 + $0xc10] sm:$0xff] }
0x1264   :  { %v16270_v46 = vpack.c.bf16 %v5401_v34, %v5397_v8  ;;  %v16272_v43 = vpack.c.bf16 %v5403_v55, %v5399_v0  ;;  %v5416_v34 = vld [vmem:[#allocation25 + $0xc98] sm:$0xff]  ;;  %v16288_v0 = vpack.c.bf16 %v5409_v50, %v5405_v47  ;;  %v5422_v8 = vld [vmem:[#allocation25 + $0xcc8] sm:$0xff] }
0x1265   :  { %18944 = vst [vmem:[#allocation96_spill] sm:$0xff] %v16250_v14  ;;  %v5426_v50 = vld [vmem:[#allocation25 + $0xce8] sm:$0xff]  ;;  %v5428_v47 = vld [vmem:[#allocation25 + $0xcf8] sm:$0xff] }
0x1266   :  { %11994 = vmatpush1.bf16.msra.mxu1 %v16242_v16  ;;  %12122 = vmatpush1.bf16.msra.mxu0 %v16245_v5  ;;  %v4388_v5 = vrot.slane %v16256_v9, %v15706_v10  ;;  %v5412_v10 = vld [vmem:[#allocation25 + $0xc78] sm:$0xff]  ;;  %18946 = vst [vmem:[#allocation98_spill] sm:$0xff] %v16270_v46  ;;  %18947 = vst [vmem:[#allocation99_spill] sm:$0xff] %v16272_v43 }
0x1267   :  { %11996 = vmatprep.subr.bf16.mxu1 %v16250_v14  ;;  %12124 = vmatprep.subr.bf16.mxu0 %v16252_v15  ;;  %18950 = vst [vmem:[#allocation102_spill] sm:$0xff] %v16288_v0 }
0x12fc   :  { %v5184_v24 = vpop.f32.mrb[24].mxu1  ;;  %v16266_v59 = vpop.f32.mrb[44].mxu0 }
0x12fd   :  { %v14349_v14 = vadd.f32 %v5184_v24, %v4384_v57  ;;  %v5186_v15 = vpop.f32.mrb[25].mxu1  ;;  %v5257_v16 = vpop.f32.mrb[45].mxu0  ;;  %v5407_v24 = vld [vmem:[#allocation25 + $0xc50] sm:$0xff] }
0x12fe   :  { %v14350_v22 = vadd.f32 %v5186_v15, %v4388_v5  ;;  %v14352_v36 = vadd.f32 %v5257_v16, %v4396_v40  ;;  %v16278_v5 = vpack.c.bf16 %v5410_v13, %v5406_v37  ;;  %v16280_v16 = vpack.c.bf16 %v5412_v10, %v5408_v51  ;;  %v5420_v15 = vld [vmem:[#allocation25 + $0xcb8] sm:$0xff]  ;;  %v5413_v13 = vld [vmem:[#allocation25 + $0xc80] sm:$0xff]  ;;  %v5415_v37 = vld [vmem:[#allocation25 + $0xc90] sm:$0xff] }
0x12ff   :  { %v16274_v57 = vmax.f32 %v14349_v14, 0.0  ;;  %v16290_v14 = vpack.c.bf16 %v5411_v60, %v5407_v24  ;;  %v5417_v10 = vld [vmem:[#allocation25 + $0xca0] sm:$0xff]  ;;  %v16296_v51 = vpack.c.bf16 %v5420_v15, %v5416_v34  ;;  %v5419_v40 = vld [vmem:[#allocation25 + $0xcb0] sm:$0xff]  ;;  %v5424_v60 = vld [vmem:[#allocation25 + $0xcd8] sm:$0xff]  ;;  %v16308_v15 = vpack.c.bf16 %v5426_v50, %v5422_v8 }
0x1300   :  { %v16268_v31 = vmax.f32 %v14350_v22, 0.0  ;;  %18948 = vst [vmem:[#allocation100_spill] sm:$0xff] %v16278_v5  ;;  %18949 = vst [vmem:[#allocation101_spill] sm:$0xff] %v16280_v16  ;;  %v5418_v22 = vld [vmem:[#allocation25 + $0xca8] sm:$0xff]  ;;  %v16282_v55 = vmax.f32 %v14352_v36, 0.0  ;;  %v16302_v24 = vpack.c.bf16 %v5417_v10, %v5413_v13  ;;  %v5425_v34 = vld [vmem:[#allocation25 + $0xce0] sm:$0xff] }
0x1301   :  { %18951 = vst [vmem:[#allocation103_spill] sm:$0xff] %v16290_v14  ;;  %v16294_v36 = vpack.c.bf16 %v5418_v22, %v5414_v7  ;;  %18953 = vst [vmem:[#allocation105_spill] sm:$0xff] %v16296_v51  ;;  %v16304_v7 = vpack.c.bf16 %v5419_v40, %v5415_v37  ;;  %v5421_v22 = vld [vmem:[#allocation25 + $0xcc0] sm:$0xff] }
0x1302   :  { %5611 = vmatprep.mubr.f32.mxu1 %v16268_v31  ;;  %5753 = vmatprep.mubr.f32.mxu0 %v16268_v31  ;;  %18954 = vst [vmem:[#allocation106_spill] sm:$0xff] %v16302_v24  ;;  %18956 = vst [vmem:[#allocation108_spill] sm:$0xff] %v16308_v15  ;;  %v16314_v13 = vpack.c.bf16 %v5425_v34, %v5421_v22  ;;  %v5429_v37 = vld [vmem:[#allocation25 + $0xd00] sm:$0xff] }
0x1303   :  { %5612 = vmatmul.mubr.f32.vlgmr.msra.gmra.mrb[30].mxu1 %v16274_v57  ;;  %5754 = vmatmul.mubr.f32.vlgmr.msra.gmra.mrb[46].mxu0 %v16274_v57  ;;  %18952 = vst [vmem:[#allocation104_spill] sm:$0xff] %v16294_v36  ;;  %18955 = vst [vmem:[#allocation107_spill] sm:$0xff] %v16304_v7  ;;  %v5433_v40 = vld [vmem:[#allocation25 + $0xd20] sm:$0xff] }
0x1304   :  { %11998 = vmatpush1.bf16.msra.mxu1 %v16270_v46  ;;  %12126 = vmatpush1.bf16.msra.mxu0 %v16272_v43  ;;  %v5427_v43 = vld [vmem:[#allocation25 + $0xcf0] sm:$0xff]  ;;  %v5430_v46 = vld [vmem:[#allocation25 + $0xd08] sm:$0xff]  ;;  %18958 = vst [vmem:[#allocation110_spill] sm:$0xff] %v16314_v13  ;;  %v5437_v22 = vld [vmem:[#allocation25 + $0xd40] sm:$0xff] }
0x1305   :  { %5682 = vmatprep.mubr.f32.mxu1 %v16282_v55  ;;  %5824 = vmatprep.mubr.f32.mxu0 %v16282_v55  ;;  %v5441_v34 = vld [vmem:[#allocation25 + $0xd60] sm:$0xff] }
0x1306   :  { %12000 = vmatprep.subr.bf16.mxu1 %v16278_v5  ;;  %12128 = vmatprep.subr.bf16.mxu0 %v16280_v16  ;;  %v16310_v16 = vpack.c.bf16 %v5428_v47, %v5424_v60  ;;  %v5423_v5 = vld [vmem:[#allocation25 + $0xcd0] sm:$0xff] }
0x1307   :  { %v16316_v10 = vpack.c.bf16 %v5427_v43, %v5423_v5  ;;  %v5431_v60 = vld [vmem:[#allocation25 + $0xd10] sm:$0xff]  ;;  %v16326_v43 = vpack.c.bf16 %v5433_v40, %v5429_v37  ;;  %v16338_v37 = vpack.c.bf16 %v5441_v34, %v5437_v22 }
0x1308   :  { %12002 = vmatpush1.bf16.msra.mxu1 %v16288_v0  ;;  %12130 = vmatpush1.bf16.msra.mxu0 %v16290_v14  ;;  %18957 = vst [vmem:[#allocation109_spill] sm:$0xff] %v16310_v16  ;;  %v5434_v0 = vld [vmem:[#allocation25 + $0xd28] sm:$0xff]  ;;  %v5436_v14 = vld [vmem:[#allocation25 + $0xd38] sm:$0xff]  ;;  %v5435_v47 = vld [vmem:[#allocation25 + $0xd30] sm:$0xff] }
0x1309   :  { %12004 = vmatprep.subr.bf16.mxu1 %v16294_v36  ;;  %12132 = vmatprep.subr.bf16.mxu0 %v16296_v51  ;;  %18959 = vst [vmem:[#allocation111_spill] sm:$0xff] %v16316_v10  ;;  %v16320_v8 = vpack.c.bf16 %v5434_v0, %v5430_v46  ;;  %v16322_v50 = vpack.c.bf16 %v5436_v14, %v5432_v56  ;;  %v5438_v51 = vld [vmem:[#allocation25 + $0xd48] sm:$0xff]  ;;  %v5440_v36 = vld [vmem:[#allocation25 + $0xd58] sm:$0xff]  ;;  %18962 = vst [vmem:[#allocation114_spill] sm:$0xff] %v16326_v43 }
0x130a   :  { %v16328_v5 = vpack.c.bf16 %v5435_v47, %v5431_v60  ;;  %v5439_v0 = vld [vmem:[#allocation25 + $0xd50] sm:$0xff]  ;;  %18966 = vst [vmem:[#allocation118_spill] sm:$0xff] %v16338_v37  ;;  %v5445_v60 = vld [vmem:[#allocation25 + $0xd80] sm:$0xff] }
0x130b   :  { %18960 = vst [vmem:[#allocation112_spill] sm:$0xff] %v16320_v8  ;;  %18961 = vst [vmem:[#allocation113_spill] sm:$0xff] %v16322_v50  ;;  %v5443_v14 = vld [vmem:[#allocation25 + $0xd70] sm:$0xff]  ;;  %v5449_v47 = vld [vmem:[#allocation25 + $0xda0] sm:$0xff] }
0x130c   :  { %12006 = vmatpush1.bf16.msra.mxu1 %v16302_v24  ;;  %12134 = vmatpush1.bf16.msra.mxu0 %v16304_v7  ;;  %v5442_v24 = vld [vmem:[#allocation25 + $0xd68] sm:$0xff]  ;;  %v5444_v7 = vld [vmem:[#allocation25 + $0xd78] sm:$0xff]  ;;  %18963 = vst [vmem:[#allocation115_spill] sm:$0xff] %v16328_v5  ;;  %v16340_v40 = vpack.c.bf16 %v5443_v14, %v5439_v0  ;;  %v16350_v22 = vpack.c.bf16 %v5449_v47, %v5445_v60  ;;  %v5453_v0 = vld [vmem:[#allocation25 + $0xdc0] sm:$0xff] }
0x130d   :  { %12008 = vmatprep.subr.bf16.mxu1 %v16308_v15  ;;  %12136 = vmatprep.subr.bf16.mxu0 %v16310_v16  ;;  %v16332_v56 = vpack.c.bf16 %v5442_v24, %v5438_v51  ;;  %v16334_v46 = vpack.c.bf16 %v5444_v7, %v5440_v36  ;;  %v5446_v16 = vld [vmem:[#allocation25 + $0xd88] sm:$0xff]  ;;  %v5448_v15 = vld [vmem:[#allocation25 + $0xd98] sm:$0xff]  ;;  %v5447_v24 = vld [vmem:[#allocation25 + $0xd90] sm:$0xff] }
0x130e   :  { %18967 = vst [vmem:[#allocation119_spill] sm:$0xff] %v16340_v40  ;;  %v5451_v7 = vld [vmem:[#allocation25 + $0xdb0] sm:$0xff]  ;;  %18970 = vst [vmem:[#allocation122_spill] sm:$0xff] %v16350_v22  ;;  %v5457_v14 = vld [vmem:[#allocation25 + $0xde0] sm:$0xff] }
0x130f   :  { %18964 = vst [vmem:[#allocation116_spill] sm:$0xff] %v16332_v56  ;;  %18965 = vst [vmem:[#allocation117_spill] sm:$0xff] %v16334_v46  ;;  %v16352_v34 = vpack.c.bf16 %v5451_v7, %v5447_v24  ;;  %v16362_v60 = vpack.c.bf16 %v5457_v14, %v5453_v0  ;;  %v5461_v24 = vld [vmem:[#allocation25 + $0xe00] sm:$0xff] }
0x1310   :  { %12010 = vmatpush1.bf16.msra.mxu1 %v16314_v13  ;;  %12138 = vmatpush1.bf16.msra.mxu0 %v16316_v10  ;;  %v5450_v13 = vld [vmem:[#allocation25 + $0xda8] sm:$0xff]  ;;  %v5452_v10 = vld [vmem:[#allocation25 + $0xdb8] sm:$0xff]  ;;  %v5465_v7 = vld [vmem:[#allocation25 + $0xe20] sm:$0xff] }
0x1311   :  { %12012 = vmatprep.subr.bf16.mxu1 %v16320_v8  ;;  %12140 = vmatprep.subr.bf16.mxu0 %v16322_v50  ;;  %v16344_v36 = vpack.c.bf16 %v5450_v13, %v5446_v16  ;;  %v16346_v51 = vpack.c.bf16 %v5452_v10, %v5448_v15  ;;  %v5454_v50 = vld [vmem:[#allocation25 + $0xdc8] sm:$0xff]  ;;  %v5456_v8 = vld [vmem:[#allocation25 + $0xdd8] sm:$0xff]  ;;  %18971 = vst [vmem:[#allocation123_spill] sm:$0xff] %v16352_v34  ;;  %v5455_v13 = vld [vmem:[#allocation25 + $0xdd0] sm:$0xff] }
0x1312   :  { %v5459_v10 = vld [vmem:[#allocation25 + $0xdf0] sm:$0xff]  ;;  %18974 = vst [vmem:[#allocation126_spill] sm:$0xff] %v16362_v60  ;;  %v16374_v0 = vpack.c.bf16 %v5465_v7, %v5461_v24 }
0x1313   :  { %18968 = vst [vmem:[#allocation120_spill] sm:$0xff] %v16344_v36  ;;  %18969 = vst [vmem:[#allocation121_spill] sm:$0xff] %v16346_v51  ;;  %v16364_v47 = vpack.c.bf16 %v5459_v10, %v5455_v13  ;;  %v5469_v13 = vld [vmem:[#allocation25 + $0xe40] sm:$0xff] }
0x1314   :  { %12014 = vmatpush1.bf16.msra.mxu1 %v16326_v43  ;;  %12142 = vmatpush1.bf16.msra.mxu0 %v16328_v5  ;;  %v5458_v43 = vld [vmem:[#allocation25 + $0xde8] sm:$0xff]  ;;  %v5460_v5 = vld [vmem:[#allocation25 + $0xdf8] sm:$0xff]  ;;  %18978 = vst [vmem:[#allocation130_spill] sm:$0xff] %v16374_v0  ;;  %v5473_v10 = vld [vmem:[#allocation25 + $0xe60] sm:$0xff] }
0x1315   :  { %12016 = vmatprep.subr.bf16.mxu1 %v16332_v56  ;;  %12144 = vmatprep.subr.bf16.mxu0 %v16334_v46  ;;  %v16356_v16 = vpack.c.bf16 %v5458_v43, %v5454_v50  ;;  %v16358_v15 = vpack.c.bf16 %v5460_v5, %v5456_v8  ;;  %v5462_v46 = vld [vmem:[#allocation25 + $0xe08] sm:$0xff]  ;;  %v5464_v56 = vld [vmem:[#allocation25 + $0xe18] sm:$0xff]  ;;  %18975 = vst [vmem:[#allocation127_spill] sm:$0xff] %v16364_v47  ;;  %v5463_v43 = vld [vmem:[#allocation25 + $0xe10] sm:$0xff] }
0x1316   :  { %v5467_v5 = vld [vmem:[#allocation25 + $0xe30] sm:$0xff]  ;;  %v16386_v24 = vpack.c.bf16 %v5473_v10, %v5469_v13 }
0x1317   :  { %18972 = vst [vmem:[#allocation124_spill] sm:$0xff] %v16356_v16  ;;  %18973 = vst [vmem:[#allocation125_spill] sm:$0xff] %v16358_v15  ;;  %v16376_v14 = vpack.c.bf16 %v5467_v5, %v5463_v43  ;;  %v5477_v43 = vld [vmem:[#allocation25 + $0xe80] sm:$0xff] }
0x1318   :  { %12018 = vmatpush1.bf16.msra.mxu1 %v16338_v37  ;;  %12146 = vmatpush1.bf16.msra.mxu0 %v16340_v40  ;;  %v5466_v37 = vld [vmem:[#allocation25 + $0xe28] sm:$0xff]  ;;  %v5468_v40 = vld [vmem:[#allocation25 + $0xe38] sm:$0xff]  ;;  %18982 = vst [vmem:[#allocation134_spill] sm:$0xff] %v16386_v24  ;;  %v5481_v5 = vld [vmem:[#allocation25 + $0xea0] sm:$0xff] }
0x1319   :  { %12020 = vmatprep.subr.bf16.mxu1 %v16344_v36  ;;  %12148 = vmatprep.subr.bf16.mxu0 %v16346_v51  ;;  %v16368_v8 = vpack.c.bf16 %v5466_v37, %v5462_v46  ;;  %v16370_v50 = vpack.c.bf16 %v5468_v40, %v5464_v56  ;;  %v5470_v51 = vld [vmem:[#allocation25 + $0xe48] sm:$0xff]  ;;  %v5472_v36 = vld [vmem:[#allocation25 + $0xe58] sm:$0xff]  ;;  %18979 = vst [vmem:[#allocation131_spill] sm:$0xff] %v16376_v14  ;;  %v5471_v37 = vld [vmem:[#allocation25 + $0xe50] sm:$0xff] }
0x131a   :  { %v5475_v40 = vld [vmem:[#allocation25 + $0xe70] sm:$0xff]  ;;  %v16398_v13 = vpack.c.bf16 %v5481_v5, %v5477_v43 }
0x131b   :  { %18976 = vst [vmem:[#allocation128_spill] sm:$0xff] %v16368_v8  ;;  %18977 = vst [vmem:[#allocation129_spill] sm:$0xff] %v16370_v50  ;;  %v16388_v7 = vpack.c.bf16 %v5475_v40, %v5471_v37  ;;  %v5485_v37 = vld [vmem:[#allocation25 + $0xec0] sm:$0xff] }
0x131c   :  { %12022 = vmatpush1.bf16.msra.mxu1 %v16350_v22  ;;  %12150 = vmatpush1.bf16.msra.mxu0 %v16352_v34  ;;  %v5474_v22 = vld [vmem:[#allocation25 + $0xe68] sm:$0xff]  ;;  %v5476_v34 = vld [vmem:[#allocation25 + $0xe78] sm:$0xff]  ;;  %18986 = vst [vmem:[#allocation138_spill] sm:$0xff] %v16398_v13  ;;  %v5489_v40 = vld [vmem:[#allocation25 + $0xee0] sm:$0xff] }
0x131d   :  { %12024 = vmatprep.subr.bf16.mxu1 %v16356_v16  ;;  %12152 = vmatprep.subr.bf16.mxu0 %v16358_v15  ;;  %v16380_v56 = vpack.c.bf16 %v5474_v22, %v5470_v51  ;;  %v16382_v46 = vpack.c.bf16 %v5476_v34, %v5472_v36  ;;  %v5478_v15 = vld [vmem:[#allocation25 + $0xe88] sm:$0xff]  ;;  %v5480_v16 = vld [vmem:[#allocation25 + $0xe98] sm:$0xff]  ;;  %18983 = vst [vmem:[#allocation135_spill] sm:$0xff] %v16388_v7  ;;  %v5479_v22 = vld [vmem:[#allocation25 + $0xe90] sm:$0xff] }
0x131e   :  { %v5483_v34 = vld [vmem:[#allocation25 + $0xeb0] sm:$0xff]  ;;  %v16410_v43 = vpack.c.bf16 %v5489_v40, %v5485_v37 }
0x131f   :  { %18980 = vst [vmem:[#allocation132_spill] sm:$0xff] %v16380_v56  ;;  %18981 = vst [vmem:[#allocation133_spill] sm:$0xff] %v16382_v46  ;;  %v16400_v10 = vpack.c.bf16 %v5483_v34, %v5479_v22  ;;  %v5493_v22 = vld [vmem:[#allocation25 + $0xf00] sm:$0xff] }
0x1320   :  { %12026 = vmatpush1.bf16.msra.mxu1 %v16362_v60  ;;  %12154 = vmatpush1.bf16.msra.mxu0 %v16364_v47  ;;  %v5482_v60 = vld [vmem:[#allocation25 + $0xea8] sm:$0xff]  ;;  %v5484_v47 = vld [vmem:[#allocation25 + $0xeb8] sm:$0xff]  ;;  %18990 = vst [vmem:[#allocation142_spill] sm:$0xff] %v16410_v43  ;;  %v5497_v34 = vld [vmem:[#allocation25 + $0xf20] sm:$0xff] }
0x1321   :  { %12028 = vmatprep.subr.bf16.mxu1 %v16368_v8  ;;  %12156 = vmatprep.subr.bf16.mxu0 %v16370_v50  ;;  %v16392_v36 = vpack.c.bf16 %v5482_v60, %v5478_v15  ;;  %v16394_v51 = vpack.c.bf16 %v5484_v47, %v5480_v16  ;;  %v5486_v50 = vld [vmem:[#allocation25 + $0xec8] sm:$0xff]  ;;  %v5488_v8 = vld [vmem:[#allocation25 + $0xed8] sm:$0xff]  ;;  %18987 = vst [vmem:[#allocation139_spill] sm:$0xff] %v16400_v10  ;;  %v5487_v60 = vld [vmem:[#allocation25 + $0xed0] sm:$0xff] }
0x1322   :  { %v5491_v47 = vld [vmem:[#allocation25 + $0xef0] sm:$0xff]  ;;  %v16422_v37 = vpack.c.bf16 %v5497_v34, %v5493_v22 }
0x1323   :  { %18984 = vst [vmem:[#allocation136_spill] sm:$0xff] %v16392_v36  ;;  %18985 = vst [vmem:[#allocation137_spill] sm:$0xff] %v16394_v51  ;;  %v16412_v5 = vpack.c.bf16 %v5491_v47, %v5487_v60  ;;  %v5501_v60 = vld [vmem:[#allocation25 + $0xf40] sm:$0xff] }
0x1324   :  { %12030 = vmatpush1.bf16.msra.mxu1 %v16374_v0  ;;  %12158 = vmatpush1.bf16.msra.mxu0 %v16376_v14  ;;  %v5490_v0 = vld [vmem:[#allocation25 + $0xee8] sm:$0xff]  ;;  %v5492_v14 = vld [vmem:[#allocation25 + $0xef8] sm:$0xff]  ;;  %18994 = vst [vmem:[#allocation146_spill] sm:$0xff] %v16422_v37  ;;  %v5505_v47 = vld [vmem:[#allocation25 + $0xf60] sm:$0xff] }
0x1325   :  { %12032 = vmatprep.subr.bf16.mxu1 %v16380_v56  ;;  %12160 = vmatprep.subr.bf16.mxu0 %v16382_v46  ;;  %v16404_v16 = vpack.c.bf16 %v5490_v0, %v5486_v50  ;;  %v16406_v15 = vpack.c.bf16 %v5492_v14, %v5488_v8  ;;  %v5494_v46 = vld [vmem:[#allocation25 + $0xf08] sm:$0xff]  ;;  %v5496_v56 = vld [vmem:[#allocation25 + $0xf18] sm:$0xff]  ;;  %18991 = vst [vmem:[#allocation143_spill] sm:$0xff] %v16412_v5  ;;  %v5495_v0 = vld [vmem:[#allocation25 + $0xf10] sm:$0xff] }
0x1326   :  { %v5499_v14 = vld [vmem:[#allocation25 + $0xf30] sm:$0xff]  ;;  %v16434_v22 = vpack.c.bf16 %v5505_v47, %v5501_v60  ;;  %v5520_v60 = vld [vmem:[#allocation25 + $0xfd8] sm:$0xff] }
0x1327   :  { %18988 = vst [vmem:[#allocation140_spill] sm:$0xff] %v16404_v16  ;;  %18989 = vst [vmem:[#allocation141_spill] sm:$0xff] %v16406_v15  ;;  %v16424_v40 = vpack.c.bf16 %v5499_v14, %v5495_v0  ;;  %v5509_v0 = vld [vmem:[#allocation25 + $0xf80] sm:$0xff]  ;;  %v5524_v47 = vld [vmem:[#allocation25 + $0xff8] sm:$0xff] }
0x1328   :  { %12034 = vmatpush1.bf16.msra.mxu1 %v16386_v24  ;;  %12162 = vmatpush1.bf16.msra.mxu0 %v16388_v7  ;;  %v5498_v24 = vld [vmem:[#allocation25 + $0xf28] sm:$0xff]  ;;  %v5500_v7 = vld [vmem:[#allocation25 + $0xf38] sm:$0xff]  ;;  %18998 = vst [vmem:[#allocation150_spill] sm:$0xff] %v16434_v22  ;;  %v5513_v14 = vld [vmem:[#allocation25 + $0xfa0] sm:$0xff] }
0x1329   :  { %12036 = vmatprep.subr.bf16.mxu1 %v16392_v36  ;;  %12164 = vmatprep.subr.bf16.mxu0 %v16394_v51  ;;  %v16416_v8 = vpack.c.bf16 %v5498_v24, %v5494_v46  ;;  %v16418_v50 = vpack.c.bf16 %v5500_v7, %v5496_v56  ;;  %v5502_v51 = vld [vmem:[#allocation25 + $0xf48] sm:$0xff]  ;;  %v5504_v36 = vld [vmem:[#allocation25 + $0xf58] sm:$0xff]  ;;  %18995 = vst [vmem:[#allocation147_spill] sm:$0xff] %v16424_v40  ;;  %v5503_v24 = vld [vmem:[#allocation25 + $0xf50] sm:$0xff] }
0x132a   :  { %v5507_v7 = vld [vmem:[#allocation25 + $0xf70] sm:$0xff] }
0x132b   :  { %18992 = vst [vmem:[#allocation144_spill] sm:$0xff] %v16416_v8  ;;  %18993 = vst [vmem:[#allocation145_spill] sm:$0xff] %v16418_v50  ;;  %v16436_v34 = vpack.c.bf16 %v5507_v7, %v5503_v24  ;;  %v16447_v24 = vpack.c.bf16 %v5513_v14, %v5509_v0  ;;  %v6130_v0 = vld [vmem:[#allocation25 + $0x18] sm:$0xff] }
0x132c   :  { %12038 = vmatpush1.bf16.msra.mxu1 %v16398_v13  ;;  %12166 = vmatpush1.bf16.msra.mxu0 %v16400_v10  ;;  %v5506_v13 = vld [vmem:[#allocation25 + $0xf68] sm:$0xff]  ;;  %v5508_v10 = vld [vmem:[#allocation25 + $0xf78] sm:$0xff] }
0x132d   :  { %12040 = vmatprep.subr.bf16.mxu1 %v16404_v16  ;;  %12168 = vmatprep.subr.bf16.mxu0 %v16406_v15  ;;  %v16428_v56 = vpack.c.bf16 %v5506_v13, %v5502_v51  ;;  %v16430_v46 = vpack.c.bf16 %v5508_v10, %v5504_v36  ;;  %v5510_v15 = vld [vmem:[#allocation25 + $0xf88] sm:$0xff]  ;;  %v5512_v16 = vld [vmem:[#allocation25 + $0xf98] sm:$0xff]  ;;  %18999 = vst [vmem:[#allocation151_spill] sm:$0xff] %v16436_v34  ;;  %v5511_v10 = vld [vmem:[#allocation25 + $0xf90] sm:$0xff] }
0x132e   :  { %19002 = vst [vmem:[#allocation154_spill] sm:$0xff] %v16447_v24  ;;  %v5517_v51 = vld [vmem:[#allocation25 + $0xfc0] sm:$0xff]  ;;  %v6134_v14 = vld [vmem:[#allocation25 + $0x38] sm:$0xff] }
0x132f   :  { %18996 = vst [vmem:[#allocation148_spill] sm:$0xff] %v16428_v56  ;;  %18997 = vst [vmem:[#allocation149_spill] sm:$0xff] %v16430_v46 }
0x1330   :  { %12042 = vmatpush1.bf16.msra.mxu1 %v16410_v43  ;;  %12170 = vmatpush1.bf16.msra.mxu0 %v16412_v5  ;;  %v5514_v43 = vld [vmem:[#allocation25 + $0xfa8] sm:$0xff]  ;;  %v5516_v5 = vld [vmem:[#allocation25 + $0xfb8] sm:$0xff] }
0x1331   :  { %12044 = vmatprep.subr.bf16.mxu1 %v16416_v8  ;;  %12172 = vmatprep.subr.bf16.mxu0 %v16418_v50  ;;  %v16441_v36 = vpack.c.bf16 %v5514_v43, %v5510_v15  ;;  %v16443_v13 = vpack.c.bf16 %v5516_v5, %v5512_v16  ;;  %v5518_v50 = vld [vmem:[#allocation25 + $0xfc8] sm:$0xff]  ;;  %v19004_v15 = vsub.s32 2, %v18888_v32  ;;  %v16458_v5 = vpack.c.bf16 %v5524_v47, %v5520_v60  ;;  %v6133_v60 = vld [vmem:[#allocation25 + $0x30] sm:$0xff]  ;;  %v6138_v47 = vld [vmem:[#allocation25 + $0x58] sm:$0xff] }
0x1333   :  { %19000 = vst [vmem:[#allocation152_spill] sm:$0xff] %v16441_v36  ;;  %19001 = vst [vmem:[#allocation153_spill] sm:$0xff] %v16443_v13  ;;  %v4392_v16 = vrot.slane %v16256_v9, %v19004_v15  ;;  %v6142_v15 = vld [vmem:[#allocation25 + $0x78] sm:$0xff] }
0x1334   :  { %12046 = vmatpush1.bf16.msra.mxu1 %v16422_v37  ;;  %12174 = vmatpush1.bf16.msra.mxu0 %v16424_v40  ;;  %v5515_v37 = vld [vmem:[#allocation25 + $0xfb0] sm:$0xff]  ;;  %v5522_v40 = vld [vmem:[#allocation25 + $0xfe8] sm:$0xff]  ;;  %19006 = vst [vmem:[#allocation157_spill] sm:$0xff] %v16458_v5 }
0x1335   :  { %12048 = vmatprep.subr.bf16.mxu1 %v16428_v56  ;;  %12176 = vmatprep.subr.bf16.mxu0 %v16430_v46  ;;  %v16449_v7 = vpack.c.bf16 %v5515_v37, %v5511_v10  ;;  %v16456_v43 = vpack.c.bf16 %v5522_v40, %v5518_v50  ;;  %v5519_v46 = vld [vmem:[#allocation25 + $0xfd0] sm:$0xff]  ;;  %v14351_v10 = vadd.f32 %v16266_v59, %v4392_v16  ;;  %v6146_v16 = vld [vmem:[#allocation25 + $0x98] sm:$0xff] }
0x1336   :  { %v16469_v50 = vpack.c.bf16 %v6134_v14, %v6130_v0  ;;  %v6129_v40 = vld [vmem:[#allocation25 + $0x10] sm:$0xff]  ;;  %v6150_v0 = vld [vmem:[#allocation25 + $0xb8] sm:$0xff] }
0x1337   :  { %19003 = vst [vmem:[#allocation155_spill] sm:$0xff] %v16449_v7  ;;  %19005 = vst [vmem:[#allocation156_spill] sm:$0xff] %v16456_v43  ;;  %v16476_v59 = vpack.c.bf16 %v6133_v60, %v6129_v40  ;;  %v6145_v40 = vld [vmem:[#allocation25 + $0x90] sm:$0xff] }
0x1338   :  { %12050 = vmatpush1.bf16.msra.mxu1 %v16434_v22  ;;  %12178 = vmatpush1.bf16.msra.mxu0 %v16436_v34  ;;  %v5521_v22 = vld [vmem:[#allocation25 + $0xfe0] sm:$0xff]  ;;  %v5523_v34 = vld [vmem:[#allocation25 + $0xff0] sm:$0xff]  ;;  %19009 = vst [vmem:[#allocation160_spill] sm:$0xff] %v16469_v50 }
0x1339   :  { %12052 = vmatprep.subr.bf16.mxu1 %v16441_v36  ;;  %12180 = vmatprep.subr.bf16.mxu0 %v16443_v13  ;;  %v16462_v37 = vpack.c.bf16 %v5521_v22, %v5517_v51  ;;  %v16464_v9 = vpack.c.bf16 %v5523_v34, %v5519_v46  ;;  %v5266_v22 = vmax.f32 %v14351_v10, 0.0  ;;  %19010 = vst [vmem:[#allocation161_spill] sm:$0xff] %v16476_v59  ;;  %v6137_v34 = vld [vmem:[#allocation25 + $0x50] sm:$0xff]  ;;  %v6322_v13 = vld [vmem:[#allocation25 + $0x618] sm:$0xff] }
0x133a   :  { %v16478_v46 = vpack.c.bf16 %v6142_v15, %v6138_v47  ;;  %v6141_v51 = vld [vmem:[#allocation25 + $0x70] sm:$0xff]  ;;  %v16489_v10 = vpack.c.bf16 %v6150_v0, %v6146_v16  ;;  %v6154_v47 = vld [vmem:[#allocation25 + $0xd8] sm:$0xff]  ;;  %v6132_v16 = vld [vmem:[#allocation25 + $0x28] sm:$0xff] }
0x133b   :  { %19007 = vst [vmem:[#allocation158_spill] sm:$0xff] %v16462_v37  ;;  %19008 = vst [vmem:[#allocation159_spill] sm:$0xff] %v16464_v9  ;;  %v16486_v14 = vpack.c.bf16 %v6141_v51, %v6137_v34  ;;  %v6149_v60 = vld [vmem:[#allocation25 + $0xb0] sm:$0xff]  ;;  %v6158_v15 = vld [vmem:[#allocation25 + $0xf8] sm:$0xff] }
0x133c   :  { %12054 = vmatpush1.bf16.msra.mxu1 %v16447_v24  ;;  %12182 = vmatpush1.bf16.msra.mxu0 %v16449_v7  ;;  %19011 = vst [vmem:[#allocation162_spill] sm:$0xff] %v16478_v46  ;;  %19013 = vst [vmem:[#allocation164_spill] sm:$0xff] %v16489_v10  ;;  %v6128_v34 = vld [vmem:[#allocation25 + $0x8] sm:$0xff]  ;;  %v16498_v51 = vpack.c.bf16 %v6149_v60, %v6145_v40  ;;  %v16501_v0 = vpack.c.bf16 %v6158_v15, %v6154_v47  ;;  %v6127_v40 = vld [vmem:[#allocation25] sm:$0xff] }
0x133d   :  { %12056 = vmatprep.subr.bf16.mxu1 %v16456_v43  ;;  %12184 = vmatprep.subr.bf16.mxu0 %v16458_v5  ;;  %19012 = vst [vmem:[#allocation163_spill] sm:$0xff] %v16486_v14  ;;  %v6131_v60 = vld [vmem:[#allocation25 + $0x20] sm:$0xff]  ;;  %v6136_v47 = vld [vmem:[#allocation25 + $0x48] sm:$0xff]  ;;  %v6293_v5 = vld [vmem:[#allocation25 + $0x530] sm:$0xff] }
0x133e   :  { %19014 = vst [vmem:[#allocation165_spill] sm:$0xff] %v16498_v51  ;;  %19015 = vst [vmem:[#allocation166_spill] sm:$0xff] %v16501_v0  ;;  %v6296_v43 = vld [vmem:[#allocation25 + $0x548] sm:$0xff]  ;;  %v6298_v7 = vld [vmem:[#allocation25 + $0x558] sm:$0xff] }
0x133f   :  { %v6320_v24 = vld [vmem:[#allocation25 + $0x608] sm:$0xff] }
0x1340   :  { %12058 = vmatpush1.bf16.msra.mxu1 %v16462_v37  ;;  %12186 = vmatpush1.bf16.msra.mxu0 %v16464_v9  ;;  %v6166_v9 = vld [vmem:[#allocation25 + $0x138] sm:$0xff] }
0x1341   :  { %10040 = vmatprep.subr.msk.mxu1 %vm339_vm0, %v16268_v31  ;;  %12316 = vmatprep.subr.bf16.mxu0 %v16469_v50  ;;  %v6162_v50 = vld [vmem:[#allocation25 + $0x118] sm:$0xff] }
0x1343   :  { %5683 = vmatmul.mubr.f32.vlgmr.msra.gmra.mrb[30].mxu1 %v5266_v22  ;;  %5825 = vmatmul.mubr.f32.vlgmr.msra.gmra.mrb[46].mxu0 %v5266_v22 }
0x1344   :  { %10041 = vmatpush1.msk.msra.mxu1 %vm339_vm0, %v16274_v57  ;;  %5907 = vmatprep.mubr.f32.mxu1 %v18870_v4 }
0x1345   :  { %10043 = vmatprep.subr.msk.mxu1 %vm339_vm0, %v16282_v55  ;;  %12318 = vmatpush1.bf16.msra.mxu0 %v16476_v59  ;;  %v6157_v59 = vld [vmem:[#allocation25 + $0xf0] sm:$0xff] }
0x1346   :  { %12320 = vmatprep.subr.bf16.mxu0 %v16478_v46  ;;  %v6153_v46 = vld [vmem:[#allocation25 + $0xd0] sm:$0xff] }
0x1347   :  { %10042 = vmatmul.mubr.msk.f32.vlgmr.msra.gmra.mrb[32].mxu1 %vm326_vm1, %v16036_v1  ;;  %v16513_v15 = vpack.c.bf16 %v6157_v59, %v6153_v46  ;;  %v6135_v46 = vld [vmem:[#allocation25 + $0x40] sm:$0xff] }
0x1348   :  { %10044 = vmatpush1.msk.msra.mxu1 %vm339_vm0, %v5266_v22  ;;  %5978 = vmatprep.mubr.f32.mxu1 %v18870_v4 }
0x1349   :  { %10046 = vmatprep.subr.msk.mxu1 %vm339_vm0, %v16268_v31  ;;  %12322 = vmatpush1.bf16.msra.mxu0 %v16486_v14  ;;  %v16510_v31 = vpack.c.bf16 %v6132_v16, %v6128_v34  ;;  %19017 = vst [vmem:[#allocation168_spill] sm:$0xff] %v16513_v15  ;;  %v16516_v14 = vpack.c.bf16 %v6166_v9, %v6162_v50  ;;  %v6174_v34 = vld [vmem:[#allocation25 + $0x178] sm:$0xff]  ;;  %v6139_v9 = vld [vmem:[#allocation25 + $0x60] sm:$0xff]  ;;  %v6144_v50 = vld [vmem:[#allocation25 + $0x88] sm:$0xff] }
0x134a   :  { %12324 = vmatprep.subr.bf16.mxu0 %v16489_v10  ;;  %v6140_v10 = vld [vmem:[#allocation25 + $0x68] sm:$0xff]  ;;  %v16522_v16 = vpack.c.bf16 %v6131_v60, %v6127_v40  ;;  %v6178_v40 = vld [vmem:[#allocation25 + $0x198] sm:$0xff]  ;;  %v16536_v60 = vpack.c.bf16 %v6139_v9, %v6135_v46 }
0x134b   :  { %10045 = vmatmul.mubr.msk.f32.vlgmr.msra.gmra.mrb[34].mxu1 %vm326_vm1, %v16036_v1  ;;  %19016 = vst [vmem:[#allocation167_spill] sm:$0xff] %v16510_v31  ;;  %19018 = vst [vmem:[#allocation169_spill] sm:$0xff] %v16516_v14  ;;  %v6165_v1 = vld [vmem:[#allocation25 + $0x130] sm:$0xff]  ;;  %v16525_v59 = vpack.c.bf16 %v6140_v10, %v6136_v47  ;;  %v6182_v10 = vld [vmem:[#allocation25 + $0x1b8] sm:$0xff] }
0x134c   :  { %10047 = vmatpush1.msk.msra.mxu1 %vm339_vm0, %v16274_v57  ;;  %6049 = vmatprep.mubr.f32.mxu1 %v18870_v4  ;;  %v6161_v57 = vld [vmem:[#allocation25 + $0x110] sm:$0xff]  ;;  %19019 = vst [vmem:[#allocation170_spill] sm:$0xff] %v16522_v16  ;;  %19023 = vst [vmem:[#allocation174_spill] sm:$0xff] %v16536_v60  ;;  %v6143_v47 = vld [vmem:[#allocation25 + $0x80] sm:$0xff] }
0x134d   :  { %10049 = vmatprep.subr.msk.mxu1 %vm339_vm0, %v16282_v55  ;;  %12326 = vmatpush1.bf16.msra.mxu0 %v16498_v51  ;;  %v6170_v55 = vld [vmem:[#allocation25 + $0x158] sm:$0xff]  ;;  %19020 = vst [vmem:[#allocation171_spill] sm:$0xff] %v16525_v59  ;;  %v6148_v51 = vld [vmem:[#allocation25 + $0xa8] sm:$0xff] }
0x134e   :  { %12328 = vmatprep.subr.bf16.mxu0 %v16501_v0  ;;  %v16528_v0 = vpack.c.bf16 %v6165_v1, %v6161_v57  ;;  %v16531_v37 = vpack.c.bf16 %v6174_v34, %v6170_v55  ;;  %v16539_v1 = vpack.c.bf16 %v6148_v51, %v6144_v50  ;;  %v6147_v57 = vld [vmem:[#allocation25 + $0xa0] sm:$0xff]  ;;  %v6156_v34 = vld [vmem:[#allocation25 + $0xe8] sm:$0xff]  ;;  %v6186_v46 = vld [vmem:[#allocation25 + $0x1d8] sm:$0xff] }
0x134f   :  { %10048 = vmatmul.mubr.msk.f32.vlgmr.msra.gmra.mrb[36].mxu1 %vm326_vm1, %v16050_v23  ;;  %v6190_v9 = vld [vmem:[#allocation25 + $0x1f8] sm:$0xff]  ;;  %v16548_v51 = vpack.c.bf16 %v6147_v57, %v6143_v47 }
0x1350   :  { %10050 = vmatpush1.msk.msra.mxu1 %vm339_vm0, %v5266_v22  ;;  %6120 = vmatprep.mubr.f32.mxu1 %v18870_v4  ;;  %19021 = vst [vmem:[#allocation172_spill] sm:$0xff] %v16528_v0  ;;  %19022 = vst [vmem:[#allocation173_spill] sm:$0xff] %v16531_v37  ;;  %v6169_v22 = vld [vmem:[#allocation25 + $0x150] sm:$0xff]  ;;  %v6194_v47 = vld [vmem:[#allocation25 + $0x218] sm:$0xff] }
0x1351   :  { %12188 = vmatprep.subr.bf16.mxu1 %v16510_v31  ;;  %12330 = vmatpush1.bf16.msra.mxu0 %v16513_v15  ;;  %v6173_v4 = vld [vmem:[#allocation25 + $0x170] sm:$0xff]  ;;  %19024 = vst [vmem:[#allocation175_spill] sm:$0xff] %v16539_v1  ;;  %v16545_v15 = vpack.c.bf16 %v6182_v10, %v6178_v40  ;;  %19027 = vst [vmem:[#allocation178_spill] sm:$0xff] %v16548_v51  ;;  %v6164_v40 = vld [vmem:[#allocation25 + $0x128] sm:$0xff]  ;;  %v16557_v10 = vpack.c.bf16 %v6190_v9, %v6186_v46 }
0x1352   :  { %12332 = vmatprep.subr.bf16.mxu0 %v16516_v14  ;;  %v6152_v14 = vld [vmem:[#allocation25 + $0xc8] sm:$0xff]  ;;  %v16542_v55 = vpack.c.bf16 %v6173_v4, %v6169_v22  ;;  %v6177_v31 = vld [vmem:[#allocation25 + $0x190] sm:$0xff]  ;;  %v6155_v4 = vld [vmem:[#allocation25 + $0xe0] sm:$0xff] }
0x1353   :  { %10051 = vmatmul.mubr.msk.f32.vlgmr.msra.gmra.mrb[38].mxu1 %vm326_vm1, %v16050_v23  ;;  %19026 = vst [vmem:[#allocation177_spill] sm:$0xff] %v16545_v15  ;;  %v16551_v50 = vpack.c.bf16 %v6156_v34, %v6152_v14  ;;  %v6160_v22 = vld [vmem:[#allocation25 + $0x108] sm:$0xff]  ;;  %19030 = vst [vmem:[#allocation181_spill] sm:$0xff] %v16557_v10  ;;  %v6198_v57 = vld [vmem:[#allocation25 + $0x238] sm:$0xff] }
0x1354   :  { %12190 = vmatpush1.bf16.msra.mxu1 %v16522_v16  ;;  %19025 = vst [vmem:[#allocation176_spill] sm:$0xff] %v16542_v55  ;;  %v6181_v16 = vld [vmem:[#allocation25 + $0x1b0] sm:$0xff]  ;;  %v16563_v34 = vpack.c.bf16 %v6164_v40, %v6160_v22  ;;  %v6172_v46 = vld [vmem:[#allocation25 + $0x168] sm:$0xff]  ;;  %v16569_v9 = vpack.c.bf16 %v6198_v57, %v6194_v47  ;;  %v6278_v23 = vld [vmem:[#allocation25 + $0x4b8] sm:$0xff] }
0x1355   :  { %12192 = vmatprep.subr.bf16.mxu1 %v16525_v59  ;;  %12334 = vmatpush1.bf16.msra.mxu0 %v16528_v0  ;;  %19028 = vst [vmem:[#allocation179_spill] sm:$0xff] %v16551_v50  ;;  %v6151_v0 = vld [vmem:[#allocation25 + $0xc0] sm:$0xff]  ;;  %v6185_v59 = vld [vmem:[#allocation25 + $0x1d0] sm:$0xff]  ;;  %v6180_v47 = vld [vmem:[#allocation25 + $0x1a8] sm:$0xff] }
0x1356   :  { %12336 = vmatprep.subr.bf16.mxu0 %v16531_v37  ;;  %v16554_v37 = vpack.c.bf16 %v6181_v16, %v6177_v31  ;;  %v16560_v14 = vpack.c.bf16 %v6155_v4, %v6151_v0  ;;  %19032 = vst [vmem:[#allocation183_spill] sm:$0xff] %v16563_v34  ;;  %v6163_v31 = vld [vmem:[#allocation25 + $0x120] sm:$0xff]  ;;  %v6168_v16 = vld [vmem:[#allocation25 + $0x148] sm:$0xff]  ;;  %19034 = vst [vmem:[#allocation185_spill] sm:$0xff] %v16569_v9 }
0x1357   :  { %v6202_v0 = vld [vmem:[#allocation25 + $0x258] sm:$0xff]  ;;  %v16575_v40 = vpack.c.bf16 %v6172_v46, %v6168_v16 }
0x1358   :  { %12194 = vmatpush1.bf16.msra.mxu1 %v16536_v60  ;;  %19029 = vst [vmem:[#allocation180_spill] sm:$0xff] %v16554_v37  ;;  %v6189_v60 = vld [vmem:[#allocation25 + $0x1f0] sm:$0xff]  ;;  %19031 = vst [vmem:[#allocation182_spill] sm:$0xff] %v16560_v14  ;;  %v6206_v4 = vld [vmem:[#allocation25 + $0x278] sm:$0xff] }
0x1359   :  { %12196 = vmatprep.subr.bf16.mxu1 %v16539_v1  ;;  %12338 = vmatpush1.bf16.msra.mxu0 %v16542_v55  ;;  %v6159_v55 = vld [vmem:[#allocation25 + $0x100] sm:$0xff]  ;;  %v6193_v1 = vld [vmem:[#allocation25 + $0x210] sm:$0xff]  ;;  %19036 = vst [vmem:[#allocation187_spill] sm:$0xff] %v16575_v40  ;;  %v16581_v57 = vpack.c.bf16 %v6206_v4, %v6202_v0  ;;  %v6188_v0 = vld [vmem:[#allocation25 + $0x1e8] sm:$0xff] }
0x135a   :  { %12340 = vmatprep.subr.bf16.mxu0 %v16545_v15  ;;  %v16566_v15 = vpack.c.bf16 %v6189_v60, %v6185_v59  ;;  %v16572_v22 = vpack.c.bf16 %v6163_v31, %v6159_v55  ;;  %v6171_v59 = vld [vmem:[#allocation25 + $0x160] sm:$0xff]  ;;  %v6176_v60 = vld [vmem:[#allocation25 + $0x188] sm:$0xff]  ;;  %v6210_v55 = vld [vmem:[#allocation25 + $0x298] sm:$0xff] }
0x135b   :  { %19038 = vst [vmem:[#allocation189_spill] sm:$0xff] %v16581_v57  ;;  %v6214_v31 = vld [vmem:[#allocation25 + $0x2b8] sm:$0xff]  ;;  %v16587_v46 = vpack.c.bf16 %v6180_v47, %v6176_v60 }
0x135c   :  { %12198 = vmatpush1.bf16.msra.mxu1 %v16548_v51  ;;  %19033 = vst [vmem:[#allocation184_spill] sm:$0xff] %v16566_v15  ;;  %v6197_v51 = vld [vmem:[#allocation25 + $0x230] sm:$0xff]  ;;  %19035 = vst [vmem:[#allocation186_spill] sm:$0xff] %v16572_v22  ;;  %v16593_v4 = vpack.c.bf16 %v6214_v31, %v6210_v55  ;;  %v6196_v55 = vld [vmem:[#allocation25 + $0x228] sm:$0xff] }
0x135d   :  { %12200 = vmatprep.subr.bf16.mxu1 %v16551_v50  ;;  %12342 = vmatpush1.bf16.msra.mxu0 %v16554_v37  ;;  %v6167_v37 = vld [vmem:[#allocation25 + $0x140] sm:$0xff]  ;;  %v6201_v50 = vld [vmem:[#allocation25 + $0x250] sm:$0xff]  ;;  %19040 = vst [vmem:[#allocation191_spill] sm:$0xff] %v16587_v46 }
0x135e   :  { %12344 = vmatprep.subr.bf16.mxu0 %v16557_v10  ;;  %v16578_v10 = vpack.c.bf16 %v6197_v51, %v6193_v1  ;;  %v16584_v16 = vpack.c.bf16 %v6171_v59, %v6167_v37  ;;  %v6179_v1 = vld [vmem:[#allocation25 + $0x1a0] sm:$0xff]  ;;  %v6184_v51 = vld [vmem:[#allocation25 + $0x1c8] sm:$0xff]  ;;  %19042 = vst [vmem:[#allocation193_spill] sm:$0xff] %v16593_v4  ;;  %v6218_v37 = vld [vmem:[#allocation25 + $0x2d8] sm:$0xff] }
0x135f   :  { %v6222_v59 = vld [vmem:[#allocation25 + $0x2f8] sm:$0xff]  ;;  %v16599_v47 = vpack.c.bf16 %v6188_v0, %v6184_v51 }
0x1360   :  { %12202 = vmatpush1.bf16.msra.mxu1 %v16560_v14  ;;  %19037 = vst [vmem:[#allocation188_spill] sm:$0xff] %v16578_v10  ;;  %v6205_v14 = vld [vmem:[#allocation25 + $0x270] sm:$0xff]  ;;  %19039 = vst [vmem:[#allocation190_spill] sm:$0xff] %v16584_v16  ;;  %v16605_v31 = vpack.c.bf16 %v6222_v59, %v6218_v37  ;;  %v6204_v37 = vld [vmem:[#allocation25 + $0x268] sm:$0xff] }
0x1361   :  { %12204 = vmatprep.subr.bf16.mxu1 %v16563_v34  ;;  %12346 = vmatpush1.bf16.msra.mxu0 %v16566_v15  ;;  %v6175_v15 = vld [vmem:[#allocation25 + $0x180] sm:$0xff]  ;;  %v6209_v34 = vld [vmem:[#allocation25 + $0x290] sm:$0xff]  ;;  %19044 = vst [vmem:[#allocation195_spill] sm:$0xff] %v16599_v47 }
0x1362   :  { %12348 = vmatprep.subr.bf16.mxu0 %v16569_v9  ;;  %v16590_v9 = vpack.c.bf16 %v6205_v14, %v6201_v50  ;;  %v16596_v60 = vpack.c.bf16 %v6179_v1, %v6175_v15  ;;  %v6187_v50 = vld [vmem:[#allocation25 + $0x1e0] sm:$0xff]  ;;  %v6192_v14 = vld [vmem:[#allocation25 + $0x208] sm:$0xff]  ;;  %19046 = vst [vmem:[#allocation197_spill] sm:$0xff] %v16605_v31  ;;  %v6226_v15 = vld [vmem:[#allocation25 + $0x318] sm:$0xff] }
0x1363   :  { %v6230_v1 = vld [vmem:[#allocation25 + $0x338] sm:$0xff]  ;;  %v16611_v0 = vpack.c.bf16 %v6196_v55, %v6192_v14 }
0x1364   :  { %12206 = vmatpush1.bf16.msra.mxu1 %v16572_v22  ;;  %19041 = vst [vmem:[#allocation192_spill] sm:$0xff] %v16590_v9  ;;  %v6213_v22 = vld [vmem:[#allocation25 + $0x2b0] sm:$0xff]  ;;  %19043 = vst [vmem:[#allocation194_spill] sm:$0xff] %v16596_v60  ;;  %v16617_v59 = vpack.c.bf16 %v6230_v1, %v6226_v15  ;;  %v6212_v15 = vld [vmem:[#allocation25 + $0x2a8] sm:$0xff] }
0x1365   :  { %12208 = vmatprep.subr.bf16.mxu1 %v16575_v40  ;;  %12350 = vmatpush1.bf16.msra.mxu0 %v16578_v10  ;;  %v6183_v10 = vld [vmem:[#allocation25 + $0x1c0] sm:$0xff]  ;;  %v6217_v40 = vld [vmem:[#allocation25 + $0x2d0] sm:$0xff]  ;;  %19048 = vst [vmem:[#allocation199_spill] sm:$0xff] %v16611_v0 }
0x1366   :  { %12352 = vmatprep.subr.bf16.mxu0 %v16581_v57  ;;  %v16602_v57 = vpack.c.bf16 %v6213_v22, %v6209_v34  ;;  %v16608_v51 = vpack.c.bf16 %v6187_v50, %v6183_v10  ;;  %v6195_v34 = vld [vmem:[#allocation25 + $0x220] sm:$0xff]  ;;  %v6200_v22 = vld [vmem:[#allocation25 + $0x248] sm:$0xff]  ;;  %19050 = vst [vmem:[#allocation201_spill] sm:$0xff] %v16617_v59  ;;  %v6234_v10 = vld [vmem:[#allocation25 + $0x358] sm:$0xff] }
0x1367   :  { %v6238_v50 = vld [vmem:[#allocation25 + $0x378] sm:$0xff]  ;;  %v16623_v55 = vpack.c.bf16 %v6204_v37, %v6200_v22 }
0x1368   :  { %12210 = vmatpush1.bf16.msra.mxu1 %v16584_v16  ;;  %19045 = vst [vmem:[#allocation196_spill] sm:$0xff] %v16602_v57  ;;  %v6221_v16 = vld [vmem:[#allocation25 + $0x2f0] sm:$0xff]  ;;  %19047 = vst [vmem:[#allocation198_spill] sm:$0xff] %v16608_v51  ;;  %v16629_v1 = vpack.c.bf16 %v6238_v50, %v6234_v10  ;;  %v6220_v10 = vld [vmem:[#allocation25 + $0x2e8] sm:$0xff] }
0x1369   :  { %12212 = vmatprep.subr.bf16.mxu1 %v16587_v46  ;;  %12354 = vmatpush1.bf16.msra.mxu0 %v16590_v9  ;;  %v6191_v9 = vld [vmem:[#allocation25 + $0x200] sm:$0xff]  ;;  %v6225_v46 = vld [vmem:[#allocation25 + $0x310] sm:$0xff]  ;;  %19052 = vst [vmem:[#allocation203_spill] sm:$0xff] %v16623_v55 }
0x136a   :  { %12356 = vmatprep.subr.bf16.mxu0 %v16593_v4  ;;  %v16614_v4 = vpack.c.bf16 %v6221_v16, %v6217_v40  ;;  %v16620_v14 = vpack.c.bf16 %v6195_v34, %v6191_v9  ;;  %v6203_v40 = vld [vmem:[#allocation25 + $0x260] sm:$0xff]  ;;  %v6208_v16 = vld [vmem:[#allocation25 + $0x288] sm:$0xff]  ;;  %19054 = vst [vmem:[#allocation205_spill] sm:$0xff] %v16629_v1  ;;  %v6242_v9 = vld [vmem:[#allocation25 + $0x398] sm:$0xff] }
0x136b   :  { %v6246_v34 = vld [vmem:[#allocation25 + $0x3b8] sm:$0xff]  ;;  %v16635_v37 = vpack.c.bf16 %v6212_v15, %v6208_v16 }
0x136c   :  { %12214 = vmatpush1.bf16.msra.mxu1 %v16596_v60  ;;  %19049 = vst [vmem:[#allocation200_spill] sm:$0xff] %v16614_v4  ;;  %v6229_v60 = vld [vmem:[#allocation25 + $0x330] sm:$0xff]  ;;  %19051 = vst [vmem:[#allocation202_spill] sm:$0xff] %v16620_v14  ;;  %v16641_v50 = vpack.c.bf16 %v6246_v34, %v6242_v9  ;;  %v6228_v9 = vld [vmem:[#allocation25 + $0x328] sm:$0xff] }
0x136d   :  { %12216 = vmatprep.subr.bf16.mxu1 %v16599_v47  ;;  %12358 = vmatpush1.bf16.msra.mxu0 %v16602_v57  ;;  %v6199_v57 = vld [vmem:[#allocation25 + $0x240] sm:$0xff]  ;;  %v6233_v47 = vld [vmem:[#allocation25 + $0x350] sm:$0xff]  ;;  %19056 = vst [vmem:[#allocation207_spill] sm:$0xff] %v16635_v37 }
0x136e   :  { %12360 = vmatprep.subr.bf16.mxu0 %v16605_v31  ;;  %v16626_v31 = vpack.c.bf16 %v6229_v60, %v6225_v46  ;;  %v16632_v22 = vpack.c.bf16 %v6203_v40, %v6199_v57  ;;  %v6211_v46 = vld [vmem:[#allocation25 + $0x2a0] sm:$0xff]  ;;  %v6216_v60 = vld [vmem:[#allocation25 + $0x2c8] sm:$0xff]  ;;  %19058 = vst [vmem:[#allocation209_spill] sm:$0xff] %v16641_v50  ;;  %v6250_v57 = vld [vmem:[#allocation25 + $0x3d8] sm:$0xff] }
0x136f   :  { %v6254_v40 = vld [vmem:[#allocation25 + $0x3f8] sm:$0xff]  ;;  %v16647_v15 = vpack.c.bf16 %v6220_v10, %v6216_v60  ;;  %v6223_v60 = vld [vmem:[#allocation25 + $0x300] sm:$0xff] }
0x1370   :  { %12218 = vmatpush1.bf16.msra.mxu1 %v16608_v51  ;;  %19053 = vst [vmem:[#allocation204_spill] sm:$0xff] %v16626_v31  ;;  %v6237_v51 = vld [vmem:[#allocation25 + $0x370] sm:$0xff]  ;;  %19055 = vst [vmem:[#allocation206_spill] sm:$0xff] %v16632_v22  ;;  %v16653_v34 = vpack.c.bf16 %v6254_v40, %v6250_v57  ;;  %v6227_v10 = vld [vmem:[#allocation25 + $0x320] sm:$0xff] }
0x1371   :  { %12220 = vmatprep.subr.bf16.mxu1 %v16611_v0  ;;  %12362 = vmatpush1.bf16.msra.mxu0 %v16614_v4  ;;  %v6207_v4 = vld [vmem:[#allocation25 + $0x280] sm:$0xff]  ;;  %v6241_v0 = vld [vmem:[#allocation25 + $0x390] sm:$0xff]  ;;  %19060 = vst [vmem:[#allocation211_spill] sm:$0xff] %v16647_v15  ;;  %v16666_v57 = vpack.c.bf16 %v6227_v10, %v6223_v60 }
0x1372   :  { %12364 = vmatprep.subr.bf16.mxu0 %v16617_v59  ;;  %v16638_v59 = vpack.c.bf16 %v6237_v51, %v6233_v47  ;;  %v16644_v16 = vpack.c.bf16 %v6211_v46, %v6207_v4  ;;  %v6219_v47 = vld [vmem:[#allocation25 + $0x2e0] sm:$0xff]  ;;  %v6224_v51 = vld [vmem:[#allocation25 + $0x308] sm:$0xff]  ;;  %19062 = vst [vmem:[#allocation213_spill] sm:$0xff] %v16653_v34 }
0x1373   :  { %v16659_v46 = vpack.c.bf16 %v6228_v9, %v6224_v51  ;;  %19066 = vst [vmem:[#allocation217_spill] sm:$0xff] %v16666_v57  ;;  %v6231_v40 = vld [vmem:[#allocation25 + $0x340] sm:$0xff]  ;;  %v6240_v51 = vld [vmem:[#allocation25 + $0x388] sm:$0xff] }
0x1374   :  { %12222 = vmatpush1.bf16.msra.mxu1 %v16620_v14  ;;  %19057 = vst [vmem:[#allocation208_spill] sm:$0xff] %v16638_v59  ;;  %v6245_v14 = vld [vmem:[#allocation25 + $0x3b0] sm:$0xff]  ;;  %19059 = vst [vmem:[#allocation210_spill] sm:$0xff] %v16644_v16  ;;  %v6244_v9 = vld [vmem:[#allocation25 + $0x3a8] sm:$0xff] }
0x1375   :  { %12224 = vmatprep.subr.bf16.mxu1 %v16623_v55  ;;  %12366 = vmatpush1.bf16.msra.mxu0 %v16626_v31  ;;  %v6215_v31 = vld [vmem:[#allocation25 + $0x2c0] sm:$0xff]  ;;  %v6249_v55 = vld [vmem:[#allocation25 + $0x3d0] sm:$0xff]  ;;  %19064 = vst [vmem:[#allocation215_spill] sm:$0xff] %v16659_v46 }
0x1376   :  { %12368 = vmatprep.subr.bf16.mxu0 %v16629_v1  ;;  %v16650_v1 = vpack.c.bf16 %v6245_v14, %v6241_v0  ;;  %v16656_v4 = vpack.c.bf16 %v6219_v47, %v6215_v31  ;;  %v6232_v14 = vld [vmem:[#allocation25 + $0x348] sm:$0xff]  ;;  %v6235_v47 = vld [vmem:[#allocation25 + $0x360] sm:$0xff] }
0x1377   :  { %v6239_v60 = vld [vmem:[#allocation25 + $0x380] sm:$0xff] }
0x1378   :  { %12226 = vmatpush1.bf16.msra.mxu1 %v16632_v22  ;;  %19061 = vst [vmem:[#allocation212_spill] sm:$0xff] %v16650_v1  ;;  %v6253_v22 = vld [vmem:[#allocation25 + $0x3f0] sm:$0xff]  ;;  %19063 = vst [vmem:[#allocation214_spill] sm:$0xff] %v16656_v4  ;;  %v6243_v10 = vld [vmem:[#allocation25 + $0x3a0] sm:$0xff] }
0x1379   :  { %12228 = vmatprep.subr.bf16.mxu1 %v16635_v37  ;;  %12370 = vmatpush1.bf16.msra.mxu0 %v16638_v59  ;;  %v16662_v0 = vpack.c.bf16 %v6253_v22, %v6249_v55  ;;  %v16673_v55 = vpack.c.bf16 %v6235_v47, %v6231_v40  ;;  %v16676_v22 = vpack.c.bf16 %v6244_v9, %v6240_v51  ;;  %v6256_v47 = vld [vmem:[#allocation25 + $0x408] sm:$0xff]  ;;  %v6258_v9 = vld [vmem:[#allocation25 + $0x418] sm:$0xff] }
0x137a   :  { %12372 = vmatprep.subr.bf16.mxu0 %v16641_v50  ;;  %v6236_v50 = vld [vmem:[#allocation25 + $0x368] sm:$0xff]  ;;  %v6274_v37 = vld [vmem:[#allocation25 + $0x498] sm:$0xff] }
0x137b   :  { %19065 = vst [vmem:[#allocation216_spill] sm:$0xff] %v16662_v0  ;;  %v16669_v31 = vpack.c.bf16 %v6236_v50, %v6232_v14  ;;  %19068 = vst [vmem:[#allocation219_spill] sm:$0xff] %v16673_v55  ;;  %v16679_v50 = vpack.c.bf16 %v6243_v10, %v6239_v60  ;;  %v6260_v51 = vld [vmem:[#allocation25 + $0x428] sm:$0xff]  ;;  %v6262_v60 = vld [vmem:[#allocation25 + $0x438] sm:$0xff] }
0x137c   :  { %12230 = vmatpush1.bf16.msra.mxu1 %v16644_v16  ;;  %19069 = vst [vmem:[#allocation220_spill] sm:$0xff] %v16676_v22  ;;  %v16691_v10 = vpack.c.bf16 %v6262_v60, %v6258_v9  ;;  %v6267_v9 = vld [vmem:[#allocation25 + $0x460] sm:$0xff]  ;;  %v6272_v16 = vld [vmem:[#allocation25 + $0x488] sm:$0xff] }
0x137d   :  { %12232 = vmatprep.subr.bf16.mxu1 %v16647_v15  ;;  %12374 = vmatpush1.bf16.msra.mxu0 %v16650_v1  ;;  %19067 = vst [vmem:[#allocation218_spill] sm:$0xff] %v16669_v31  ;;  %19070 = vst [vmem:[#allocation221_spill] sm:$0xff] %v16679_v50  ;;  %v6269_v15 = vld [vmem:[#allocation25 + $0x470] sm:$0xff]  ;;  %v6276_v59 = vld [vmem:[#allocation25 + $0x4a8] sm:$0xff] }
0x137e   :  { %12376 = vmatprep.subr.bf16.mxu0 %v16653_v34  ;;  %19074 = vst [vmem:[#allocation225_spill] sm:$0xff] %v16691_v10 }
0x1380   :  { %12234 = vmatpush1.bf16.msra.mxu1 %v16656_v4  ;;  %v6248_v4 = vld [vmem:[#allocation25 + $0x3c8] sm:$0xff] }
0x1381   :  { %12236 = vmatprep.subr.bf16.mxu1 %v16659_v46  ;;  %12378 = vmatpush1.bf16.msra.mxu0 %v16662_v0  ;;  %v6252_v46 = vld [vmem:[#allocation25 + $0x3e8] sm:$0xff]  ;;  %v6247_v0 = vld [vmem:[#allocation25 + $0x3c0] sm:$0xff] }
0x1382   :  { %v16682_v14 = vpack.c.bf16 %v6252_v46, %v6248_v4  ;;  %12380 = vmatprep.subr.bf16.mxu0 %v16691_v10  ;;  %v6255_v4 = vld [vmem:[#allocation25 + $0x400] sm:$0xff]  ;;  %v6265_v10 = vld [vmem:[#allocation25 + $0x450] sm:$0xff] }
0x1383   :  { %v6259_v46 = vld [vmem:[#allocation25 + $0x420] sm:$0xff] }
0x1384   :  { %12238 = vmatpush1.bf16.msra.mxu1 %v16666_v57  ;;  %19071 = vst [vmem:[#allocation222_spill] sm:$0xff] %v16682_v14  ;;  %v6251_v57 = vld [vmem:[#allocation25 + $0x3e0] sm:$0xff]  ;;  %v16695_v34 = vpack.c.bf16 %v6259_v46, %v6255_v4  ;;  %v16713_v46 = vpack.c.bf16 %v6276_v59, %v6272_v16 }
0x1385   :  { %12240 = vmatprep.subr.bf16.mxu1 %v16669_v31  ;;  %v16685_v40 = vpack.c.bf16 %v6251_v57, %v6247_v0  ;;  %v6257_v0 = vld [vmem:[#allocation25 + $0x410] sm:$0xff]  ;;  %v6279_v59 = vld [vmem:[#allocation25 + $0x4c0] sm:$0xff] }
0x1386   :  { %v6261_v57 = vld [vmem:[#allocation25 + $0x430] sm:$0xff]  ;;  %19075 = vst [vmem:[#allocation226_spill] sm:$0xff] %v16695_v34  ;;  %19081 = vst [vmem:[#allocation232_spill] sm:$0xff] %v16713_v46 }
0x1387   :  { %19072 = vst [vmem:[#allocation223_spill] sm:$0xff] %v16685_v40 }
0x1388   :  { %12242 = vmatpush1.bf16.msra.mxu1 %v16673_v55  ;;  %v16689_v55 = vpack.c.bf16 %v6260_v51, %v6256_v47  ;;  %v16697_v47 = vpack.c.bf16 %v6261_v57, %v6257_v0  ;;  %v6263_v51 = vld [vmem:[#allocation25 + $0x440] sm:$0xff]  ;;  %v16715_v0 = vpack.c.bf16 %v6278_v23, %v6274_v37  ;;  %v6277_v57 = vld [vmem:[#allocation25 + $0x4b0] sm:$0xff] }
0x1389   :  { %12244 = vmatprep.subr.bf16.mxu1 %v16676_v22  ;;  %v6266_v22 = vld [vmem:[#allocation25 + $0x458] sm:$0xff]  ;;  %v16705_v4 = vpack.c.bf16 %v6267_v9, %v6263_v51  ;;  %v6284_v51 = vld [vmem:[#allocation25 + $0x4e8] sm:$0xff]  ;;  %v6283_v23 = vld [vmem:[#allocation25 + $0x4e0] sm:$0xff] }
0x138a   :  { %19073 = vst [vmem:[#allocation224_spill] sm:$0xff] %v16689_v55  ;;  %19076 = vst [vmem:[#allocation227_spill] sm:$0xff] %v16697_v47  ;;  %v6282_v9 = vld [vmem:[#allocation25 + $0x4d8] sm:$0xff] }
0x138b   :  { %19079 = vst [vmem:[#allocation230_spill] sm:$0xff] %v16705_v4  ;;  %19082 = vst [vmem:[#allocation233_spill] sm:$0xff] %v16715_v0 }
0x138c   :  { %12246 = vmatpush1.bf16.msra.mxu1 %v16679_v50  ;;  %v6264_v50 = vld [vmem:[#allocation25 + $0x448] sm:$0xff] }
0x138d   :  { %12248 = vmatprep.subr.bf16.mxu1 %v16682_v14  ;;  %v6268_v14 = vld [vmem:[#allocation25 + $0x468] sm:$0xff] }
0x138e   :  { %v16699_v1 = vpack.c.bf16 %v6268_v14, %v6264_v50  ;;  %v16707_v50 = vpack.c.bf16 %v6269_v15, %v6265_v10  ;;  %v6275_v14 = vld [vmem:[#allocation25 + $0x4a0] sm:$0xff]  ;;  %v6286_v15 = vld [vmem:[#allocation25 + $0x4f8] sm:$0xff] }
0x1390   :  { %12250 = vmatpush1.bf16.msra.mxu1 %v16685_v40  ;;  %v6270_v40 = vld [vmem:[#allocation25 + $0x478] sm:$0xff]  ;;  %19077 = vst [vmem:[#allocation228_spill] sm:$0xff] %v16699_v1  ;;  %19080 = vst [vmem:[#allocation231_spill] sm:$0xff] %v16707_v50 }
0x1391   :  { %12252 = vmatprep.subr.bf16.mxu1 %v16689_v55  ;;  %v16701_v55 = vpack.c.bf16 %v6270_v40, %v6266_v22  ;;  %v6271_v22 = vld [vmem:[#allocation25 + $0x480] sm:$0xff] }
0x1392   :  { %v16719_v10 = vpack.c.bf16 %v6275_v14, %v6271_v22  ;;  %v6292_v22 = vld [vmem:[#allocation25 + $0x528] sm:$0xff]  ;;  %v6290_v14 = vld [vmem:[#allocation25 + $0x518] sm:$0xff] }
0x1393   :  { %19078 = vst [vmem:[#allocation229_spill] sm:$0xff] %v16701_v55 }
0x1394   :  { %19083 = vst [vmem:[#allocation234_spill] sm:$0xff] %v16719_v10 }
0x141a   :  { %v5909_v31 = vpop.f32.mrb[32].mxu1 }
0x141b   :  { %v5911_v60 = vpop.f32.mrb[33].mxu1 }
0x141c   :  { %6447 = vmatprep.mubr.f32.mxu1 %v5911_v60  ;;  %6589 = vmatprep.mubr.f32.mxu0 %v5911_v60  ;;  %v6280_v60 = vld [vmem:[#allocation25 + $0x4c8] sm:$0xff] }
0x141d   :  { %6448 = vmatmul.mubr.f32.vlgmr.msra.gmra.mrb[30].mxu1 %v5909_v31  ;;  %6590 = vmatmul.mubr.f32.vlgmr.msra.gmra.mrb[46].mxu0 %v5909_v31  ;;  %v6273_v31 = vld [vmem:[#allocation25 + $0x490] sm:$0xff]  ;;  %v16727_v16 = vpack.c.bf16 %v6284_v51, %v6280_v60  ;;  %v6287_v60 = vld [vmem:[#allocation25 + $0x500] sm:$0xff] }
0x141e   :  { %12254 = vmatpush1.bf16.msra.mxu1 %v16695_v34  ;;  %12382 = vmatpush1.bf16.msra.mxu0 %v16697_v47  ;;  %v16709_v40 = vpop.f32.mrb[34].mxu1  ;;  %v6288_v34 = vld [vmem:[#allocation25 + $0x508] sm:$0xff]  ;;  %v6291_v51 = vld [vmem:[#allocation25 + $0x520] sm:$0xff] }
0x141f   :  { %12256 = vmatprep.subr.bf16.mxu1 %v16699_v1  ;;  %12384 = vmatprep.subr.bf16.mxu0 %v16701_v55  ;;  %v5982_v47 = vpop.f32.mrb[35].mxu1  ;;  %v16721_v55 = vpack.c.bf16 %v6277_v57, %v6273_v31  ;;  %19085 = vst [vmem:[#allocation236_spill] sm:$0xff] %v16727_v16  ;;  %v16729_v1 = vpack.c.bf16 %v6286_v15, %v6282_v9  ;;  %v6294_v31 = vld [vmem:[#allocation25 + $0x538] sm:$0xff] }
0x1420   :  { %6518 = vmatprep.mubr.f32.mxu1 %v5982_v47  ;;  %6660 = vmatprep.mubr.f32.mxu0 %v5982_v47  ;;  %v6281_v47 = vld [vmem:[#allocation25 + $0x4d0] sm:$0xff]  ;;  %v16735_v57 = vpack.c.bf16 %v6283_v23, %v6279_v59  ;;  %v16741_v9 = vpack.c.bf16 %v6292_v22, %v6288_v34  ;;  %v16743_v15 = vpack.c.bf16 %v6294_v31, %v6290_v14  ;;  %v6295_v23 = vld [vmem:[#allocation25 + $0x540] sm:$0xff] }
0x1421   :  { %19084 = vst [vmem:[#allocation235_spill] sm:$0xff] %v16721_v55  ;;  %19086 = vst [vmem:[#allocation237_spill] sm:$0xff] %v16729_v1  ;;  %v6297_v14 = vld [vmem:[#allocation25 + $0x550] sm:$0xff] }
0x1422   :  { %12258 = vmatpush1.bf16.msra.mxu1 %v16705_v4  ;;  %12386 = vmatpush1.bf16.msra.mxu0 %v16707_v50  ;;  %v16723_v37 = vpop.f32.mrb[36].mxu1  ;;  %v6285_v4 = vld [vmem:[#allocation25 + $0x4f0] sm:$0xff]  ;;  %19087 = vst [vmem:[#allocation238_spill] sm:$0xff] %v16735_v57  ;;  %19089 = vst [vmem:[#allocation240_spill] sm:$0xff] %v16741_v9 }
0x1423   :  { %12260 = vmatprep.subr.bf16.mxu1 %v16713_v46  ;;  %12388 = vmatprep.subr.bf16.mxu0 %v16715_v0  ;;  %v16731_v50 = vpop.f32.mrb[37].mxu1  ;;  %v16737_v46 = vpack.c.bf16 %v6285_v4, %v6281_v47  ;;  %19090 = vst [vmem:[#allocation241_spill] sm:$0xff] %v16743_v15  ;;  %v6289_v0 = vld [vmem:[#allocation25 + $0x510] sm:$0xff]  ;;  %v16747_v4 = vpack.c.bf16 %v6291_v51, %v6287_v60  ;;  %v6299_v47 = vld [vmem:[#allocation25 + $0x560] sm:$0xff] }
0x1424   :  { %v16749_v59 = vpack.c.bf16 %v6293_v5, %v6289_v0  ;;  %v6301_v31 = vld [vmem:[#allocation25 + $0x570] sm:$0xff]  ;;  %v16759_v5 = vpack.c.bf16 %v6299_v47, %v6295_v23  ;;  %v6303_v60 = vld [vmem:[#allocation25 + $0x580] sm:$0xff]  ;;  %v6316_v23 = vld [vmem:[#allocation25 + $0x5e8] sm:$0xff] }
0x1425   :  { %19088 = vst [vmem:[#allocation239_spill] sm:$0xff] %v16737_v46  ;;  %19091 = vst [vmem:[#allocation242_spill] sm:$0xff] %v16747_v4  ;;  %v16761_v0 = vpack.c.bf16 %v6301_v31, %v6297_v14  ;;  %v6307_v51 = vld [vmem:[#allocation25 + $0x5a0] sm:$0xff]  ;;  %v6314_v47 = vld [vmem:[#allocation25 + $0x5d8] sm:$0xff] }
0x1426   :  { %12262 = vmatpush1.bf16.msra.mxu1 %v16719_v10  ;;  %12390 = vmatpush1.bf16.msra.mxu0 %v16721_v55  ;;  %v6300_v10 = vld [vmem:[#allocation25 + $0x568] sm:$0xff]  ;;  %v6302_v55 = vld [vmem:[#allocation25 + $0x578] sm:$0xff]  ;;  %19092 = vst [vmem:[#allocation243_spill] sm:$0xff] %v16749_v59  ;;  %19095 = vst [vmem:[#allocation246_spill] sm:$0xff] %v16759_v5  ;;  %v16775_v31 = vpack.c.bf16 %v6307_v51, %v6303_v60 }
0x1427   :  { %12264 = vmatprep.subr.bf16.mxu1 %v16727_v16  ;;  %12392 = vmatprep.subr.bf16.mxu0 %v16729_v1  ;;  %v16753_v34 = vpack.c.bf16 %v6300_v10, %v6296_v43  ;;  %v16755_v22 = vpack.c.bf16 %v6302_v55, %v6298_v7  ;;  %v6304_v1 = vld [vmem:[#allocation25 + $0x588] sm:$0xff]  ;;  %v6306_v16 = vld [vmem:[#allocation25 + $0x598] sm:$0xff]  ;;  %19096 = vst [vmem:[#allocation247_spill] sm:$0xff] %v16761_v0  ;;  %v16763_v43 = vpop.f32.mrb[38].mxu1  ;;  %v6305_v10 = vld [vmem:[#allocation25 + $0x590] sm:$0xff] }
0x1428   :  { %v6318_v14 = vld [vmem:[#allocation25 + $0x5f8] sm:$0xff]  ;;  %19099 = vst [vmem:[#allocation250_spill] sm:$0xff] %v16775_v31  ;;  %v6319_v51 = vld [vmem:[#allocation25 + $0x600] sm:$0xff] }
0x1429   :  { %19093 = vst [vmem:[#allocation244_spill] sm:$0xff] %v16753_v34  ;;  %19094 = vst [vmem:[#allocation245_spill] sm:$0xff] %v16755_v22 }
0x142a   :  { %12266 = vmatpush1.bf16.msra.mxu1 %v16735_v57  ;;  %12394 = vmatpush1.bf16.msra.mxu0 %v16737_v46  ;;  %v6308_v57 = vld [vmem:[#allocation25 + $0x5a8] sm:$0xff]  ;;  %v6310_v46 = vld [vmem:[#allocation25 + $0x5b8] sm:$0xff] }
0x142b   :  { %12268 = vmatprep.subr.bf16.mxu1 %v16741_v9  ;;  %12396 = vmatprep.subr.bf16.mxu0 %v16743_v15  ;;  %v16767_v7 = vpack.c.bf16 %v6308_v57, %v6304_v1  ;;  %v16769_v55 = vpack.c.bf16 %v6310_v46, %v6306_v16  ;;  %v6312_v15 = vld [vmem:[#allocation25 + $0x5c8] sm:$0xff]  ;;  %v6311_v1 = vld [vmem:[#allocation25 + $0x5c0] sm:$0xff]  ;;  %v16783_v16 = vpack.c.bf16 %v6318_v14, %v6314_v47  ;;  %v6317_v9 = vld [vmem:[#allocation25 + $0x5f0] sm:$0xff] }
0x142c   :  { %v6315_v57 = vld [vmem:[#allocation25 + $0x5e0] sm:$0xff]  ;;  %v16781_v46 = vpack.c.bf16 %v6316_v23, %v6312_v15  ;;  %v6321_v47 = vld [vmem:[#allocation25 + $0x610] sm:$0xff] }
0x142d   :  { %19097 = vst [vmem:[#allocation248_spill] sm:$0xff] %v16767_v7  ;;  %19098 = vst [vmem:[#allocation249_spill] sm:$0xff] %v16769_v55  ;;  %v6325_v14 = vld [vmem:[#allocation25 + $0x630] sm:$0xff] }
0x142e   :  { %12270 = vmatpush1.bf16.msra.mxu1 %v16747_v4  ;;  %12398 = vmatpush1.bf16.msra.mxu0 %v16749_v59  ;;  %v6309_v4 = vld [vmem:[#allocation25 + $0x5b0] sm:$0xff]  ;;  %v16771_v59 = vpop.f32.mrb[39].mxu1  ;;  %19101 = vst [vmem:[#allocation252_spill] sm:$0xff] %v16781_v46  ;;  %19102 = vst [vmem:[#allocation253_spill] sm:$0xff] %v16783_v16 }
0x142f   :  { %12272 = vmatprep.subr.bf16.mxu1 %v16753_v34  ;;  %12400 = vmatprep.subr.bf16.mxu0 %v16755_v22  ;;  %v16777_v34 = vpack.c.bf16 %v6309_v4, %v6305_v10  ;;  %v6313_v22 = vld [vmem:[#allocation25 + $0x5d0] sm:$0xff]  ;;  %v16787_v4 = vpack.c.bf16 %v6315_v57, %v6311_v1  ;;  %v6323_v10 = vld [vmem:[#allocation25 + $0x620] sm:$0xff] }
0x1430   :  { %v16789_v60 = vpack.c.bf16 %v6317_v9, %v6313_v22  ;;  %v16799_v9 = vpack.c.bf16 %v6323_v10, %v6319_v51  ;;  %v16801_v22 = vpack.c.bf16 %v6325_v14, %v6321_v47  ;;  %v6327_v1 = vld [vmem:[#allocation25 + $0x640] sm:$0xff] }
0x1431   :  { %19100 = vst [vmem:[#allocation251_spill] sm:$0xff] %v16777_v34  ;;  %19103 = vst [vmem:[#allocation254_spill] sm:$0xff] %v16787_v4  ;;  %v6331_v57 = vld [vmem:[#allocation25 + $0x660] sm:$0xff] }
0x1432   :  { %12274 = vmatpush1.bf16.msra.mxu1 %v16759_v5  ;;  %12402 = vmatpush1.bf16.msra.mxu0 %v16761_v0  ;;  %v6324_v5 = vld [vmem:[#allocation25 + $0x628] sm:$0xff]  ;;  %v6326_v0 = vld [vmem:[#allocation25 + $0x638] sm:$0xff]  ;;  %19104 = vst [vmem:[#allocation255_spill] sm:$0xff] %v16789_v60  ;;  %19107 = vst [vmem:[#allocation258_spill] sm:$0xff] %v16799_v9  ;;  %v16811_v51 = vpack.c.bf16 %v6331_v57, %v6327_v1 }
0x1433   :  { %12276 = vmatprep.subr.bf16.mxu1 %v16767_v7  ;;  %12404 = vmatprep.subr.bf16.mxu0 %v16769_v55  ;;  %v16793_v15 = vpack.c.bf16 %v6324_v5, %v6320_v24  ;;  %v16795_v23 = vpack.c.bf16 %v6326_v0, %v6322_v13  ;;  %v6328_v55 = vld [vmem:[#allocation25 + $0x648] sm:$0xff]  ;;  %v6330_v7 = vld [vmem:[#allocation25 + $0x658] sm:$0xff]  ;;  %19108 = vst [vmem:[#allocation259_spill] sm:$0xff] %v16801_v22  ;;  %v6329_v5 = vld [vmem:[#allocation25 + $0x650] sm:$0xff] }
0x1434   :  { %v6333_v0 = vld [vmem:[#allocation25 + $0x670] sm:$0xff]  ;;  %19111 = vst [vmem:[#allocation262_spill] sm:$0xff] %v16811_v51  ;;  %v6335_v47 = vld [vmem:[#allocation25 + $0x680] sm:$0xff] }
0x1435   :  { %19105 = vst [vmem:[#allocation256_spill] sm:$0xff] %v16793_v15  ;;  %19106 = vst [vmem:[#allocation257_spill] sm:$0xff] %v16795_v23  ;;  %v16813_v10 = vpack.c.bf16 %v6333_v0, %v6329_v5  ;;  %v6339_v14 = vld [vmem:[#allocation25 + $0x6a0] sm:$0xff] }
0x1436   :  { %12278 = vmatpush1.bf16.msra.mxu1 %v16775_v31  ;;  %12406 = vmatpush1.bf16.msra.mxu0 %v16777_v34  ;;  %v6332_v31 = vld [vmem:[#allocation25 + $0x668] sm:$0xff]  ;;  %v6334_v34 = vld [vmem:[#allocation25 + $0x678] sm:$0xff]  ;;  %v16823_v1 = vpack.c.bf16 %v6339_v14, %v6335_v47  ;;  %v6343_v5 = vld [vmem:[#allocation25 + $0x6c0] sm:$0xff] }
0x1437   :  { %12280 = vmatprep.subr.bf16.mxu1 %v16781_v46  ;;  %12408 = vmatprep.subr.bf16.mxu0 %v16783_v16  ;;  %v16805_v13 = vpack.c.bf16 %v6332_v31, %v6328_v55  ;;  %v16807_v24 = vpack.c.bf16 %v6334_v34, %v6330_v7  ;;  %v6336_v16 = vld [vmem:[#allocation25 + $0x688] sm:$0xff]  ;;  %v6338_v46 = vld [vmem:[#allocation25 + $0x698] sm:$0xff]  ;;  %19112 = vst [vmem:[#allocation263_spill] sm:$0xff] %v16813_v10  ;;  %v6337_v55 = vld [vmem:[#allocation25 + $0x690] sm:$0xff] }
0x1438   :  { %v6341_v31 = vld [vmem:[#allocation25 + $0x6b0] sm:$0xff]  ;;  %19115 = vst [vmem:[#allocation266_spill] sm:$0xff] %v16823_v1  ;;  %v6347_v0 = vld [vmem:[#allocation25 + $0x6e0] sm:$0xff] }
0x1439   :  { %19109 = vst [vmem:[#allocation260_spill] sm:$0xff] %v16805_v13  ;;  %19110 = vst [vmem:[#allocation261_spill] sm:$0xff] %v16807_v24  ;;  %v16825_v57 = vpack.c.bf16 %v6341_v31, %v6337_v55  ;;  %v16835_v47 = vpack.c.bf16 %v6347_v0, %v6343_v5  ;;  %v6351_v55 = vld [vmem:[#allocation25 + $0x700] sm:$0xff] }
0x143a   :  { %12282 = vmatpush1.bf16.msra.mxu1 %v16787_v4  ;;  %12410 = vmatpush1.bf16.msra.mxu0 %v16789_v60  ;;  %v6340_v4 = vld [vmem:[#allocation25 + $0x6a8] sm:$0xff]  ;;  %v6342_v60 = vld [vmem:[#allocation25 + $0x6b8] sm:$0xff]  ;;  %v6355_v31 = vld [vmem:[#allocation25 + $0x720] sm:$0xff] }
0x143b   :  { %12284 = vmatprep.subr.bf16.mxu1 %v16793_v15  ;;  %12412 = vmatprep.subr.bf16.mxu0 %v16795_v23  ;;  %v16817_v34 = vpack.c.bf16 %v6340_v4, %v6336_v16  ;;  %v16819_v7 = vpack.c.bf16 %v6342_v60, %v6338_v46  ;;  %v6344_v23 = vld [vmem:[#allocation25 + $0x6c8] sm:$0xff]  ;;  %v6346_v15 = vld [vmem:[#allocation25 + $0x6d8] sm:$0xff]  ;;  %19116 = vst [vmem:[#allocation267_spill] sm:$0xff] %v16825_v57  ;;  %v6345_v4 = vld [vmem:[#allocation25 + $0x6d0] sm:$0xff] }
0x143c   :  { %v6349_v60 = vld [vmem:[#allocation25 + $0x6f0] sm:$0xff]  ;;  %19119 = vst [vmem:[#allocation270_spill] sm:$0xff] %v16835_v47  ;;  %v16847_v5 = vpack.c.bf16 %v6355_v31, %v6351_v55 }
0x143d   :  { %19113 = vst [vmem:[#allocation264_spill] sm:$0xff] %v16817_v34  ;;  %19114 = vst [vmem:[#allocation265_spill] sm:$0xff] %v16819_v7  ;;  %v16837_v14 = vpack.c.bf16 %v6349_v60, %v6345_v4  ;;  %v6359_v4 = vld [vmem:[#allocation25 + $0x740] sm:$0xff] }
0x143e   :  { %12286 = vmatpush1.bf16.msra.mxu1 %v16799_v9  ;;  %12414 = vmatpush1.bf16.msra.mxu0 %v16801_v22  ;;  %v6348_v9 = vld [vmem:[#allocation25 + $0x6e8] sm:$0xff]  ;;  %v6350_v22 = vld [vmem:[#allocation25 + $0x6f8] sm:$0xff]  ;;  %19123 = vst [vmem:[#allocation274_spill] sm:$0xff] %v16847_v5  ;;  %v6363_v60 = vld [vmem:[#allocation25 + $0x760] sm:$0xff] }
0x143f   :  { %12288 = vmatprep.subr.bf16.mxu1 %v16805_v13  ;;  %12416 = vmatprep.subr.bf16.mxu0 %v16807_v24  ;;  %v16829_v46 = vpack.c.bf16 %v6348_v9, %v6344_v23  ;;  %v16831_v16 = vpack.c.bf16 %v6350_v22, %v6346_v15  ;;  %v6352_v24 = vld [vmem:[#allocation25 + $0x708] sm:$0xff]  ;;  %v6354_v13 = vld [vmem:[#allocation25 + $0x718] sm:$0xff]  ;;  %19120 = vst [vmem:[#allocation271_spill] sm:$0xff] %v16837_v14  ;;  %v6353_v9 = vld [vmem:[#allocation25 + $0x710] sm:$0xff] }
0x1440   :  { %v6357_v22 = vld [vmem:[#allocation25 + $0x730] sm:$0xff]  ;;  %v16859_v55 = vpack.c.bf16 %v6363_v60, %v6359_v4 }
0x1441   :  { %19117 = vst [vmem:[#allocation268_spill] sm:$0xff] %v16829_v46  ;;  %19118 = vst [vmem:[#allocation269_spill] sm:$0xff] %v16831_v16  ;;  %v16849_v0 = vpack.c.bf16 %v6357_v22, %v6353_v9  ;;  %v6367_v9 = vld [vmem:[#allocation25 + $0x780] sm:$0xff] }
0x1442   :  { %12290 = vmatpush1.bf16.msra.mxu1 %v16811_v51  ;;  %12418 = vmatpush1.bf16.msra.mxu0 %v16813_v10  ;;  %v6356_v51 = vld [vmem:[#allocation25 + $0x728] sm:$0xff]  ;;  %v6358_v10 = vld [vmem:[#allocation25 + $0x738] sm:$0xff]  ;;  %19127 = vst [vmem:[#allocation278_spill] sm:$0xff] %v16859_v55  ;;  %v6371_v22 = vld [vmem:[#allocation25 + $0x7a0] sm:$0xff] }
0x1443   :  { %12292 = vmatprep.subr.bf16.mxu1 %v16817_v34  ;;  %12420 = vmatprep.subr.bf16.mxu0 %v16819_v7  ;;  %v16841_v15 = vpack.c.bf16 %v6356_v51, %v6352_v24  ;;  %v16843_v23 = vpack.c.bf16 %v6358_v10, %v6354_v13  ;;  %v6360_v7 = vld [vmem:[#allocation25 + $0x748] sm:$0xff]  ;;  %v6362_v34 = vld [vmem:[#allocation25 + $0x758] sm:$0xff]  ;;  %19124 = vst [vmem:[#allocation275_spill] sm:$0xff] %v16849_v0  ;;  %v6361_v51 = vld [vmem:[#allocation25 + $0x750] sm:$0xff] }
0x1444   :  { %v6365_v10 = vld [vmem:[#allocation25 + $0x770] sm:$0xff]  ;;  %v16871_v4 = vpack.c.bf16 %v6371_v22, %v6367_v9 }
0x1445   :  { %19121 = vst [vmem:[#allocation272_spill] sm:$0xff] %v16841_v15  ;;  %19122 = vst [vmem:[#allocation273_spill] sm:$0xff] %v16843_v23  ;;  %v16861_v31 = vpack.c.bf16 %v6365_v10, %v6361_v51  ;;  %v6375_v51 = vld [vmem:[#allocation25 + $0x7c0] sm:$0xff] }
0x1446   :  { %12294 = vmatpush1.bf16.msra.mxu1 %v16823_v1  ;;  %12422 = vmatpush1.bf16.msra.mxu0 %v16825_v57  ;;  %v6364_v1 = vld [vmem:[#allocation25 + $0x768] sm:$0xff]  ;;  %v6366_v57 = vld [vmem:[#allocation25 + $0x778] sm:$0xff]  ;;  %19131 = vst [vmem:[#allocation282_spill] sm:$0xff] %v16871_v4  ;;  %v6379_v10 = vld [vmem:[#allocation25 + $0x7e0] sm:$0xff] }
0x1447   :  { %12296 = vmatprep.subr.bf16.mxu1 %v16829_v46  ;;  %12424 = vmatprep.subr.bf16.mxu0 %v16831_v16  ;;  %v16853_v13 = vpack.c.bf16 %v6364_v1, %v6360_v7  ;;  %v16855_v24 = vpack.c.bf16 %v6366_v57, %v6362_v34  ;;  %v6368_v16 = vld [vmem:[#allocation25 + $0x788] sm:$0xff]  ;;  %v6370_v46 = vld [vmem:[#allocation25 + $0x798] sm:$0xff]  ;;  %19128 = vst [vmem:[#allocation279_spill] sm:$0xff] %v16861_v31  ;;  %v6369_v1 = vld [vmem:[#allocation25 + $0x790] sm:$0xff] }
0x1448   :  { %v6373_v57 = vld [vmem:[#allocation25 + $0x7b0] sm:$0xff]  ;;  %v16883_v9 = vpack.c.bf16 %v6379_v10, %v6375_v51 }
0x1449   :  { %19125 = vst [vmem:[#allocation276_spill] sm:$0xff] %v16853_v13  ;;  %19126 = vst [vmem:[#allocation277_spill] sm:$0xff] %v16855_v24  ;;  %v16873_v60 = vpack.c.bf16 %v6373_v57, %v6369_v1  ;;  %v6672_v1 = vld [vmem:[#allocation25 + $0x1000] sm:$0xff] }
0x144a   :  { %12298 = vmatpush1.bf16.msra.mxu1 %v16835_v47  ;;  %12426 = vmatpush1.bf16.msra.mxu0 %v16837_v14  ;;  %v6372_v47 = vld [vmem:[#allocation25 + $0x7a8] sm:$0xff]  ;;  %v6374_v14 = vld [vmem:[#allocation25 + $0x7b8] sm:$0xff]  ;;  %19135 = vst [vmem:[#allocation286_spill] sm:$0xff] %v16883_v9  ;;  %v6676_v57 = vld [vmem:[#allocation25 + $0x1020] sm:$0xff] }
0x144b   :  { %12300 = vmatprep.subr.bf16.mxu1 %v16841_v15  ;;  %12428 = vmatprep.subr.bf16.mxu0 %v16843_v23  ;;  %v16865_v34 = vpack.c.bf16 %v6372_v47, %v6368_v16  ;;  %v16867_v7 = vpack.c.bf16 %v6374_v14, %v6370_v46  ;;  %v6376_v23 = vld [vmem:[#allocation25 + $0x7c8] sm:$0xff]  ;;  %v6378_v15 = vld [vmem:[#allocation25 + $0x7d8] sm:$0xff]  ;;  %19132 = vst [vmem:[#allocation283_spill] sm:$0xff] %v16873_v60  ;;  %v6377_v47 = vld [vmem:[#allocation25 + $0x7d0] sm:$0xff] }
0x144c   :  { %v6381_v14 = vld [vmem:[#allocation25 + $0x7f0] sm:$0xff]  ;;  %v16895_v51 = vpack.c.bf16 %v6676_v57, %v6672_v1 }
0x144d   :  { %19129 = vst [vmem:[#allocation280_spill] sm:$0xff] %v16865_v34  ;;  %19130 = vst [vmem:[#allocation281_spill] sm:$0xff] %v16867_v7  ;;  %v16885_v22 = vpack.c.bf16 %v6381_v14, %v6377_v47  ;;  %v6680_v47 = vld [vmem:[#allocation25 + $0x1040] sm:$0xff] }
0x144e   :  { %12302 = vmatpush1.bf16.msra.mxu1 %v16847_v5  ;;  %12430 = vmatpush1.bf16.msra.mxu0 %v16849_v0  ;;  %v6380_v5 = vld [vmem:[#allocation25 + $0x7e8] sm:$0xff]  ;;  %v6382_v0 = vld [vmem:[#allocation25 + $0x7f8] sm:$0xff]  ;;  %19138 = vst [vmem:[#allocation289_spill] sm:$0xff] %v16895_v51  ;;  %v6684_v14 = vld [vmem:[#allocation25 + $0x1060] sm:$0xff] }
0x144f   :  { %12304 = vmatprep.subr.bf16.mxu1 %v16853_v13  ;;  %12432 = vmatprep.subr.bf16.mxu0 %v16855_v24  ;;  %v16877_v46 = vpack.c.bf16 %v6380_v5, %v6376_v23  ;;  %v16879_v16 = vpack.c.bf16 %v6382_v0, %v6378_v15  ;;  %v6673_v24 = vld [vmem:[#allocation25 + $0x1008] sm:$0xff]  ;;  %v6675_v13 = vld [vmem:[#allocation25 + $0x1018] sm:$0xff]  ;;  %19136 = vst [vmem:[#allocation287_spill] sm:$0xff] %v16885_v22  ;;  %v6674_v5 = vld [vmem:[#allocation25 + $0x1010] sm:$0xff] }
0x1450   :  { %v6678_v0 = vld [vmem:[#allocation25 + $0x1030] sm:$0xff]  ;;  %v16909_v1 = vpack.c.bf16 %v6684_v14, %v6680_v47 }
0x1451   :  { %19133 = vst [vmem:[#allocation284_spill] sm:$0xff] %v16877_v46  ;;  %19134 = vst [vmem:[#allocation285_spill] sm:$0xff] %v16879_v16  ;;  %v16897_v10 = vpack.c.bf16 %v6678_v0, %v6674_v5  ;;  %v6690_v5 = vld [vmem:[#allocation25 + $0x1090] sm:$0xff]  ;;  %v6697_v0 = vld [vmem:[#allocation25 + $0x10c8] sm:$0xff] }
0x1452   :  { %12306 = vmatpush1.bf16.msra.mxu1 %v16859_v55  ;;  %12434 = vmatpush1.bf16.msra.mxu0 %v16861_v31  ;;  %v6677_v55 = vld [vmem:[#allocation25 + $0x1028] sm:$0xff]  ;;  %v6679_v31 = vld [vmem:[#allocation25 + $0x1038] sm:$0xff]  ;;  %19141 = vst [vmem:[#allocation292_spill] sm:$0xff] %v16909_v1 }
0x1453   :  { %12308 = vmatprep.subr.bf16.mxu1 %v16865_v34  ;;  %12436 = vmatprep.subr.bf16.mxu0 %v16867_v7  ;;  %v16889_v15 = vpack.c.bf16 %v6677_v55, %v6673_v24  ;;  %v16891_v23 = vpack.c.bf16 %v6679_v31, %v6675_v13  ;;  %v6681_v7 = vld [vmem:[#allocation25 + $0x1048] sm:$0xff]  ;;  %v6683_v34 = vld [vmem:[#allocation25 + $0x1058] sm:$0xff]  ;;  %19139 = vst [vmem:[#allocation290_spill] sm:$0xff] %v16897_v10  ;;  %v6682_v55 = vld [vmem:[#allocation25 + $0x1050] sm:$0xff] }
0x1454   :  { %v6686_v31 = vld [vmem:[#allocation25 + $0x1070] sm:$0xff] }
0x1455   :  { %19137 = vst [vmem:[#allocation288_spill] sm:$0xff] %v16891_v23 }
0x1456   :  { %12310 = vmatpush1.bf16.msra.mxu1 %v16871_v4  ;;  %12438 = vmatpush1.bf16.msra.mxu0 %v16873_v60  ;;  %v6685_v4 = vld [vmem:[#allocation25 + $0x1068] sm:$0xff]  ;;  %v6687_v60 = vld [vmem:[#allocation25 + $0x1078] sm:$0xff] }
0x1457   :  { %12312 = vmatprep.subr.bf16.mxu1 %v16877_v46  ;;  %12440 = vmatprep.subr.bf16.mxu0 %v16879_v16  ;;  %v16901_v13 = vpack.c.bf16 %v6685_v4, %v6681_v7  ;;  %v16903_v24 = vpack.c.bf16 %v6687_v60, %v6683_v34  ;;  %v6689_v16 = vld [vmem:[#allocation25 + $0x1088] sm:$0xff]  ;;  %v6691_v46 = vld [vmem:[#allocation25 + $0x1098] sm:$0xff]  ;;  %v16911_v7 = vpack.c.bf16 %v6686_v31, %v6682_v55  ;;  %v6688_v34 = vld [vmem:[#allocation25 + $0x1080] sm:$0xff] }
0x1458   :  { %v6692_v4 = vld [vmem:[#allocation25 + $0x10a0] sm:$0xff]  ;;  %v6698_v55 = vld [vmem:[#allocation25 + $0x10d0] sm:$0xff]  ;;  %v6705_v31 = vld [vmem:[#allocation25 + $0x1108] sm:$0xff] }
0x1459   :  { %19140 = vst [vmem:[#allocation291_spill] sm:$0xff] %v16903_v24  ;;  %19142 = vst [vmem:[#allocation293_spill] sm:$0xff] %v16911_v7  ;;  %v16923_v47 = vpack.c.bf16 %v6692_v4, %v6688_v34 }
0x145a   :  { %12314 = vmatpush1.bf16.msra.mxu1 %v16883_v9  ;;  %12442 = vmatpush1.bf16.msra.mxu0 %v16885_v22  ;;  %v6693_v9 = vld [vmem:[#allocation25 + $0x10a8] sm:$0xff]  ;;  %v6695_v22 = vld [vmem:[#allocation25 + $0x10b8] sm:$0xff] }
0x145b   :  { %12444 = vmatprep.subr.bf16.mxu1 %v16889_v15  ;;  %12572 = vmatprep.subr.bf16.mxu0 %v16891_v23  ;;  %v16915_v60 = vpack.c.bf16 %v6693_v9, %v6689_v16  ;;  %v16917_v57 = vpack.c.bf16 %v6695_v22, %v6691_v46  ;;  %v6699_v23 = vld [vmem:[#allocation25 + $0x10d8] sm:$0xff]  ;;  %19145 = vst [vmem:[#allocation296_spill] sm:$0xff] %v16923_v47  ;;  %v6696_v46 = vld [vmem:[#allocation25 + $0x10c0] sm:$0xff] }
0x145c   :  { %v6700_v9 = vld [vmem:[#allocation25 + $0x10e0] sm:$0xff] }
0x145d   :  { %6519 = vmatmul.mubr.f32.vlgmr.msra.gmra.mrb[30].mxu1 %v16709_v40  ;;  %6661 = vmatmul.mubr.f32.vlgmr.msra.gmra.mrb[46].mxu0 %v16709_v40  ;;  %19143 = vst [vmem:[#allocation294_spill] sm:$0xff] %v16915_v60  ;;  %19144 = vst [vmem:[#allocation295_spill] sm:$0xff] %v16917_v57  ;;  %v6694_v40 = vld [vmem:[#allocation25 + $0x10b0] sm:$0xff]  ;;  %v16935_v34 = vpack.c.bf16 %v6700_v9, %v6696_v46 }
0x145e   :  { %12446 = vmatpush1.bf16.msra.mxu1 %v16895_v51  ;;  %12574 = vmatpush1.bf16.msra.mxu0 %v16897_v10  ;;  %v6701_v51 = vld [vmem:[#allocation25 + $0x10e8] sm:$0xff]  ;;  %v6703_v10 = vld [vmem:[#allocation25 + $0x10f8] sm:$0xff]  ;;  %v16925_v16 = vpack.c.bf16 %v6694_v40, %v6690_v5  ;;  %v6704_v5 = vld [vmem:[#allocation25 + $0x1100] sm:$0xff] }
0x145f   :  { %12448 = vmatprep.subr.bf16.mxu1 %v16901_v13  ;;  %12576 = vmatprep.subr.bf16.mxu0 %v16903_v24  ;;  %v16929_v22 = vpack.c.bf16 %v6701_v51, %v6697_v0  ;;  %v16931_v14 = vpack.c.bf16 %v6703_v10, %v6699_v23  ;;  %v6707_v24 = vld [vmem:[#allocation25 + $0x1118] sm:$0xff]  ;;  %19149 = vst [vmem:[#allocation300_spill] sm:$0xff] %v16935_v34  ;;  %v6708_v40 = vld [vmem:[#allocation25 + $0x1120] sm:$0xff]  ;;  %v6706_v10 = vld [vmem:[#allocation25 + $0x1110] sm:$0xff] }
0x1460   :  { %6992 = vmatprep.mubr.f32.mxu1 %v16731_v50  ;;  %7134 = vmatprep.mubr.f32.mxu0 %v16731_v50  ;;  %19146 = vst [vmem:[#allocation297_spill] sm:$0xff] %v16925_v16  ;;  %v6702_v50 = vld [vmem:[#allocation25 + $0x10f0] sm:$0xff]  ;;  %v16947_v46 = vpack.c.bf16 %v6708_v40, %v6704_v5 }
0x1461   :  { %19147 = vst [vmem:[#allocation298_spill] sm:$0xff] %v16929_v22  ;;  %19148 = vst [vmem:[#allocation299_spill] sm:$0xff] %v16931_v14  ;;  %v16937_v4 = vpack.c.bf16 %v6702_v50, %v6698_v55  ;;  %v6710_v0 = vld [vmem:[#allocation25 + $0x1130] sm:$0xff]  ;;  %v6712_v55 = vld [vmem:[#allocation25 + $0x1140] sm:$0xff] }
0x1462   :  { %12450 = vmatpush1.bf16.msra.mxu1 %v16909_v1  ;;  %12578 = vmatpush1.bf16.msra.mxu0 %v16911_v7  ;;  %v6709_v1 = vld [vmem:[#allocation25 + $0x1128] sm:$0xff]  ;;  %v6711_v7 = vld [vmem:[#allocation25 + $0x1138] sm:$0xff]  ;;  %19153 = vst [vmem:[#allocation304_spill] sm:$0xff] %v16947_v46  ;;  %v16949_v9 = vpack.c.bf16 %v6710_v0, %v6706_v10  ;;  %v6716_v50 = vld [vmem:[#allocation25 + $0x1160] sm:$0xff] }
0x1463   :  { %12452 = vmatprep.subr.bf16.mxu1 %v16915_v60  ;;  %12580 = vmatprep.subr.bf16.mxu0 %v16917_v57  ;;  %19150 = vst [vmem:[#allocation301_spill] sm:$0xff] %v16937_v4  ;;  %v16941_v23 = vpack.c.bf16 %v6709_v1, %v6705_v31  ;;  %v16943_v51 = vpack.c.bf16 %v6711_v7, %v6707_v24  ;;  %v6713_v57 = vld [vmem:[#allocation25 + $0x1148] sm:$0xff]  ;;  %v6715_v60 = vld [vmem:[#allocation25 + $0x1158] sm:$0xff]  ;;  %v6714_v7 = vld [vmem:[#allocation25 + $0x1150] sm:$0xff] }
0x1464   :  { %19154 = vst [vmem:[#allocation305_spill] sm:$0xff] %v16949_v9  ;;  %v6718_v31 = vld [vmem:[#allocation25 + $0x1170] sm:$0xff]  ;;  %v16959_v5 = vpack.c.bf16 %v6716_v50, %v6712_v55  ;;  %v6720_v10 = vld [vmem:[#allocation25 + $0x1180] sm:$0xff] }
0x1465   :  { %19151 = vst [vmem:[#allocation302_spill] sm:$0xff] %v16941_v23  ;;  %19152 = vst [vmem:[#allocation303_spill] sm:$0xff] %v16943_v51  ;;  %v16961_v40 = vpack.c.bf16 %v6718_v31, %v6714_v7  ;;  %v6724_v0 = vld [vmem:[#allocation25 + $0x11a0] sm:$0xff] }
0x1466   :  { %12454 = vmatpush1.bf16.msra.mxu1 %v16923_v47  ;;  %12582 = vmatpush1.bf16.msra.mxu0 %v16925_v16  ;;  %v6717_v47 = vld [vmem:[#allocation25 + $0x1168] sm:$0xff]  ;;  %v6719_v16 = vld [vmem:[#allocation25 + $0x1178] sm:$0xff]  ;;  %19157 = vst [vmem:[#allocation308_spill] sm:$0xff] %v16959_v5  ;;  %v16971_v55 = vpack.c.bf16 %v6724_v0, %v6720_v10  ;;  %v6728_v7 = vld [vmem:[#allocation25 + $0x11c0] sm:$0xff] }
0x1467   :  { %12456 = vmatprep.subr.bf16.mxu1 %v16929_v22  ;;  %12584 = vmatprep.subr.bf16.mxu0 %v16931_v14  ;;  %v16953_v24 = vpack.c.bf16 %v6717_v47, %v6713_v57  ;;  %v16955_v1 = vpack.c.bf16 %v6719_v16, %v6715_v60  ;;  %v6721_v14 = vld [vmem:[#allocation25 + $0x1188] sm:$0xff]  ;;  %v6723_v22 = vld [vmem:[#allocation25 + $0x1198] sm:$0xff]  ;;  %19158 = vst [vmem:[#allocation309_spill] sm:$0xff] %v16961_v40  ;;  %v6722_v47 = vld [vmem:[#allocation25 + $0x1190] sm:$0xff] }
0x1468   :  { %v6726_v16 = vld [vmem:[#allocation25 + $0x11b0] sm:$0xff]  ;;  %19161 = vst [vmem:[#allocation312_spill] sm:$0xff] %v16971_v55  ;;  %v6732_v31 = vld [vmem:[#allocation25 + $0x11e0] sm:$0xff] }
0x1469   :  { %19155 = vst [vmem:[#allocation306_spill] sm:$0xff] %v16953_v24  ;;  %19156 = vst [vmem:[#allocation307_spill] sm:$0xff] %v16955_v1  ;;  %v16973_v50 = vpack.c.bf16 %v6726_v16, %v6722_v47  ;;  %v16983_v10 = vpack.c.bf16 %v6732_v31, %v6728_v7  ;;  %v6736_v47 = vld [vmem:[#allocation25 + $0x1200] sm:$0xff] }
0x146a   :  { %12458 = vmatpush1.bf16.msra.mxu1 %v16935_v34  ;;  %12586 = vmatpush1.bf16.msra.mxu0 %v16937_v4  ;;  %v6725_v34 = vld [vmem:[#allocation25 + $0x11a8] sm:$0xff]  ;;  %v6727_v4 = vld [vmem:[#allocation25 + $0x11b8] sm:$0xff]  ;;  %v6740_v16 = vld [vmem:[#allocation25 + $0x1220] sm:$0xff] }
0x146b   :  { %12460 = vmatprep.subr.bf16.mxu1 %v16941_v23  ;;  %12588 = vmatprep.subr.bf16.mxu0 %v16943_v51  ;;  %v16965_v60 = vpack.c.bf16 %v6725_v34, %v6721_v14  ;;  %v16967_v57 = vpack.c.bf16 %v6727_v4, %v6723_v22  ;;  %v6729_v51 = vld [vmem:[#allocation25 + $0x11c8] sm:$0xff]  ;;  %v6731_v23 = vld [vmem:[#allocation25 + $0x11d8] sm:$0xff]  ;;  %19162 = vst [vmem:[#allocation313_spill] sm:$0xff] %v16973_v50  ;;  %v6730_v34 = vld [vmem:[#allocation25 + $0x11d0] sm:$0xff] }
0x146c   :  { %v6734_v4 = vld [vmem:[#allocation25 + $0x11f0] sm:$0xff]  ;;  %19165 = vst [vmem:[#allocation316_spill] sm:$0xff] %v16983_v10  ;;  %v16995_v7 = vpack.c.bf16 %v6740_v16, %v6736_v47 }
0x146d   :  { %19159 = vst [vmem:[#allocation310_spill] sm:$0xff] %v16965_v60  ;;  %19160 = vst [vmem:[#allocation311_spill] sm:$0xff] %v16967_v57  ;;  %v16985_v0 = vpack.c.bf16 %v6734_v4, %v6730_v34  ;;  %v6744_v34 = vld [vmem:[#allocation25 + $0x1240] sm:$0xff] }
0x146e   :  { %12462 = vmatpush1.bf16.msra.mxu1 %v16947_v46  ;;  %12590 = vmatpush1.bf16.msra.mxu0 %v16949_v9  ;;  %v6733_v46 = vld [vmem:[#allocation25 + $0x11e8] sm:$0xff]  ;;  %v6735_v9 = vld [vmem:[#allocation25 + $0x11f8] sm:$0xff]  ;;  %19169 = vst [vmem:[#allocation320_spill] sm:$0xff] %v16995_v7  ;;  %v6748_v4 = vld [vmem:[#allocation25 + $0x1260] sm:$0xff] }
0x146f   :  { %12464 = vmatprep.subr.bf16.mxu1 %v16953_v24  ;;  %12592 = vmatprep.subr.bf16.mxu0 %v16955_v1  ;;  %v16977_v22 = vpack.c.bf16 %v6733_v46, %v6729_v51  ;;  %v16979_v14 = vpack.c.bf16 %v6735_v9, %v6731_v23  ;;  %v6737_v1 = vld [vmem:[#allocation25 + $0x1208] sm:$0xff]  ;;  %v6739_v24 = vld [vmem:[#allocation25 + $0x1218] sm:$0xff]  ;;  %19166 = vst [vmem:[#allocation317_spill] sm:$0xff] %v16985_v0  ;;  %v6738_v46 = vld [vmem:[#allocation25 + $0x1210] sm:$0xff] }
0x1470   :  { %v6742_v9 = vld [vmem:[#allocation25 + $0x1230] sm:$0xff]  ;;  %v17007_v47 = vpack.c.bf16 %v6748_v4, %v6744_v34 }
0x1471   :  { %19163 = vst [vmem:[#allocation314_spill] sm:$0xff] %v16977_v22  ;;  %19164 = vst [vmem:[#allocation315_spill] sm:$0xff] %v16979_v14  ;;  %v16997_v31 = vpack.c.bf16 %v6742_v9, %v6738_v46  ;;  %v6752_v46 = vld [vmem:[#allocation25 + $0x1280] sm:$0xff] }
0x1472   :  { %12466 = vmatpush1.bf16.msra.mxu1 %v16959_v5  ;;  %12594 = vmatpush1.bf16.msra.mxu0 %v16961_v40  ;;  %v6741_v5 = vld [vmem:[#allocation25 + $0x1228] sm:$0xff]  ;;  %v6743_v40 = vld [vmem:[#allocation25 + $0x1238] sm:$0xff]  ;;  %19173 = vst [vmem:[#allocation324_spill] sm:$0xff] %v17007_v47  ;;  %v6756_v9 = vld [vmem:[#allocation25 + $0x12a0] sm:$0xff] }
0x1473   :  { %12468 = vmatprep.subr.bf16.mxu1 %v16965_v60  ;;  %12596 = vmatprep.subr.bf16.mxu0 %v16967_v57  ;;  %v16989_v23 = vpack.c.bf16 %v6741_v5, %v6737_v1  ;;  %v16991_v51 = vpack.c.bf16 %v6743_v40, %v6739_v24  ;;  %v6745_v57 = vld [vmem:[#allocation25 + $0x1248] sm:$0xff]  ;;  %v6747_v60 = vld [vmem:[#allocation25 + $0x1258] sm:$0xff]  ;;  %19170 = vst [vmem:[#allocation321_spill] sm:$0xff] %v16997_v31  ;;  %v6746_v5 = vld [vmem:[#allocation25 + $0x1250] sm:$0xff] }
0x1474   :  { %v6750_v40 = vld [vmem:[#allocation25 + $0x1270] sm:$0xff]  ;;  %v17019_v34 = vpack.c.bf16 %v6756_v9, %v6752_v46 }
0x1475   :  { %19167 = vst [vmem:[#allocation318_spill] sm:$0xff] %v16989_v23  ;;  %19168 = vst [vmem:[#allocation319_spill] sm:$0xff] %v16991_v51  ;;  %v17009_v16 = vpack.c.bf16 %v6750_v40, %v6746_v5  ;;  %v6760_v5 = vld [vmem:[#allocation25 + $0x12c0] sm:$0xff] }
0x1476   :  { %12470 = vmatpush1.bf16.msra.mxu1 %v16971_v55  ;;  %12598 = vmatpush1.bf16.msra.mxu0 %v16973_v50  ;;  %v6749_v55 = vld [vmem:[#allocation25 + $0x1268] sm:$0xff]  ;;  %v6751_v50 = vld [vmem:[#allocation25 + $0x1278] sm:$0xff]  ;;  %19177 = vst [vmem:[#allocation328_spill] sm:$0xff] %v17019_v34  ;;  %v6764_v40 = vld [vmem:[#allocation25 + $0x12e0] sm:$0xff] }
0x1477   :  { %12472 = vmatprep.subr.bf16.mxu1 %v16977_v22  ;;  %12600 = vmatprep.subr.bf16.mxu0 %v16979_v14  ;;  %v17001_v24 = vpack.c.bf16 %v6749_v55, %v6745_v57  ;;  %v17003_v1 = vpack.c.bf16 %v6751_v50, %v6747_v60  ;;  %v6753_v14 = vld [vmem:[#allocation25 + $0x1288] sm:$0xff]  ;;  %v6755_v22 = vld [vmem:[#allocation25 + $0x1298] sm:$0xff]  ;;  %19174 = vst [vmem:[#allocation325_spill] sm:$0xff] %v17009_v16  ;;  %v6754_v55 = vld [vmem:[#allocation25 + $0x1290] sm:$0xff] }
0x1478   :  { %v6758_v50 = vld [vmem:[#allocation25 + $0x12b0] sm:$0xff]  ;;  %v17031_v46 = vpack.c.bf16 %v6764_v40, %v6760_v5 }
0x1479   :  { %19171 = vst [vmem:[#allocation322_spill] sm:$0xff] %v17001_v24  ;;  %19172 = vst [vmem:[#allocation323_spill] sm:$0xff] %v17003_v1  ;;  %v17021_v4 = vpack.c.bf16 %v6758_v50, %v6754_v55  ;;  %v6768_v55 = vld [vmem:[#allocation25 + $0x1300] sm:$0xff] }
0x147a   :  { %12474 = vmatpush1.bf16.msra.mxu1 %v16983_v10  ;;  %12602 = vmatpush1.bf16.msra.mxu0 %v16985_v0  ;;  %v6757_v10 = vld [vmem:[#allocation25 + $0x12a8] sm:$0xff]  ;;  %v6759_v0 = vld [vmem:[#allocation25 + $0x12b8] sm:$0xff]  ;;  %19181 = vst [vmem:[#allocation332_spill] sm:$0xff] %v17031_v46  ;;  %v6772_v50 = vld [vmem:[#allocation25 + $0x1320] sm:$0xff] }
0x147b   :  { %12476 = vmatprep.subr.bf16.mxu1 %v16989_v23  ;;  %12604 = vmatprep.subr.bf16.mxu0 %v16991_v51  ;;  %v17013_v60 = vpack.c.bf16 %v6757_v10, %v6753_v14  ;;  %v17015_v57 = vpack.c.bf16 %v6759_v0, %v6755_v22  ;;  %v6761_v51 = vld [vmem:[#allocation25 + $0x12c8] sm:$0xff]  ;;  %v6763_v23 = vld [vmem:[#allocation25 + $0x12d8] sm:$0xff]  ;;  %19178 = vst [vmem:[#allocation329_spill] sm:$0xff] %v17021_v4  ;;  %v6762_v10 = vld [vmem:[#allocation25 + $0x12d0] sm:$0xff] }
0x147c   :  { %v6766_v0 = vld [vmem:[#allocation25 + $0x12f0] sm:$0xff]  ;;  %v17043_v5 = vpack.c.bf16 %v6772_v50, %v6768_v55 }
0x147d   :  { %19175 = vst [vmem:[#allocation326_spill] sm:$0xff] %v17013_v60  ;;  %19176 = vst [vmem:[#allocation327_spill] sm:$0xff] %v17015_v57  ;;  %v17033_v9 = vpack.c.bf16 %v6766_v0, %v6762_v10  ;;  %v6776_v10 = vld [vmem:[#allocation25 + $0x1340] sm:$0xff] }
0x147e   :  { %12478 = vmatpush1.bf16.msra.mxu1 %v16995_v7  ;;  %12606 = vmatpush1.bf16.msra.mxu0 %v16997_v31  ;;  %v6765_v7 = vld [vmem:[#allocation25 + $0x12e8] sm:$0xff]  ;;  %v6767_v31 = vld [vmem:[#allocation25 + $0x12f8] sm:$0xff]  ;;  %19185 = vst [vmem:[#allocation336_spill] sm:$0xff] %v17043_v5  ;;  %v6780_v0 = vld [vmem:[#allocation25 + $0x1360] sm:$0xff] }
0x147f   :  { %12480 = vmatprep.subr.bf16.mxu1 %v17001_v24  ;;  %12608 = vmatprep.subr.bf16.mxu0 %v17003_v1  ;;  %v17025_v22 = vpack.c.bf16 %v6765_v7, %v6761_v51  ;;  %v17027_v14 = vpack.c.bf16 %v6767_v31, %v6763_v23  ;;  %v6769_v1 = vld [vmem:[#allocation25 + $0x1308] sm:$0xff]  ;;  %v6771_v24 = vld [vmem:[#allocation25 + $0x1318] sm:$0xff]  ;;  %19182 = vst [vmem:[#allocation333_spill] sm:$0xff] %v17033_v9  ;;  %v6770_v7 = vld [vmem:[#allocation25 + $0x1310] sm:$0xff] }
0x1480   :  { %v6774_v31 = vld [vmem:[#allocation25 + $0x1330] sm:$0xff]  ;;  %v17055_v55 = vpack.c.bf16 %v6780_v0, %v6776_v10 }
0x1481   :  { %19179 = vst [vmem:[#allocation330_spill] sm:$0xff] %v17025_v22  ;;  %19180 = vst [vmem:[#allocation331_spill] sm:$0xff] %v17027_v14  ;;  %v17045_v40 = vpack.c.bf16 %v6774_v31, %v6770_v7  ;;  %v6784_v7 = vld [vmem:[#allocation25 + $0x1380] sm:$0xff] }
0x1482   :  { %12482 = vmatpush1.bf16.msra.mxu1 %v17007_v47  ;;  %12610 = vmatpush1.bf16.msra.mxu0 %v17009_v16  ;;  %v6773_v47 = vld [vmem:[#allocation25 + $0x1328] sm:$0xff]  ;;  %v6775_v16 = vld [vmem:[#allocation25 + $0x1338] sm:$0xff]  ;;  %19189 = vst [vmem:[#allocation340_spill] sm:$0xff] %v17055_v55  ;;  %v6788_v31 = vld [vmem:[#allocation25 + $0x13a0] sm:$0xff] }
0x1483   :  { %12484 = vmatprep.subr.bf16.mxu1 %v17013_v60  ;;  %12612 = vmatprep.subr.bf16.mxu0 %v17015_v57  ;;  %v17037_v23 = vpack.c.bf16 %v6773_v47, %v6769_v1  ;;  %v17039_v51 = vpack.c.bf16 %v6775_v16, %v6771_v24  ;;  %v6777_v57 = vld [vmem:[#allocation25 + $0x1348] sm:$0xff]  ;;  %v6779_v60 = vld [vmem:[#allocation25 + $0x1358] sm:$0xff]  ;;  %19186 = vst [vmem:[#allocation337_spill] sm:$0xff] %v17045_v40  ;;  %v6778_v47 = vld [vmem:[#allocation25 + $0x1350] sm:$0xff] }
0x1484   :  { %v6782_v16 = vld [vmem:[#allocation25 + $0x1370] sm:$0xff]  ;;  %v17067_v10 = vpack.c.bf16 %v6788_v31, %v6784_v7 }
0x1485   :  { %19183 = vst [vmem:[#allocation334_spill] sm:$0xff] %v17037_v23  ;;  %19184 = vst [vmem:[#allocation335_spill] sm:$0xff] %v17039_v51  ;;  %v17057_v50 = vpack.c.bf16 %v6782_v16, %v6778_v47  ;;  %v6792_v47 = vld [vmem:[#allocation25 + $0x13c0] sm:$0xff] }
0x1486   :  { %12486 = vmatpush1.bf16.msra.mxu1 %v17019_v34  ;;  %12614 = vmatpush1.bf16.msra.mxu0 %v17021_v4  ;;  %v6781_v34 = vld [vmem:[#allocation25 + $0x1368] sm:$0xff]  ;;  %v6783_v4 = vld [vmem:[#allocation25 + $0x1378] sm:$0xff]  ;;  %19193 = vst [vmem:[#allocation344_spill] sm:$0xff] %v17067_v10  ;;  %v6796_v16 = vld [vmem:[#allocation25 + $0x13e0] sm:$0xff] }
0x1487   :  { %12488 = vmatprep.subr.bf16.mxu1 %v17025_v22  ;;  %12616 = vmatprep.subr.bf16.mxu0 %v17027_v14  ;;  %v17049_v24 = vpack.c.bf16 %v6781_v34, %v6777_v57  ;;  %v17051_v1 = vpack.c.bf16 %v6783_v4, %v6779_v60  ;;  %v6785_v14 = vld [vmem:[#allocation25 + $0x1388] sm:$0xff]  ;;  %v6787_v22 = vld [vmem:[#allocation25 + $0x1398] sm:$0xff]  ;;  %19190 = vst [vmem:[#allocation341_spill] sm:$0xff] %v17057_v50  ;;  %v6786_v34 = vld [vmem:[#allocation25 + $0x1390] sm:$0xff] }
0x1488   :  { %v6790_v4 = vld [vmem:[#allocation25 + $0x13b0] sm:$0xff]  ;;  %v17079_v7 = vpack.c.bf16 %v6796_v16, %v6792_v47 }
0x1489   :  { %19187 = vst [vmem:[#allocation338_spill] sm:$0xff] %v17049_v24  ;;  %19188 = vst [vmem:[#allocation339_spill] sm:$0xff] %v17051_v1  ;;  %v17069_v0 = vpack.c.bf16 %v6790_v4, %v6786_v34  ;;  %v6800_v34 = vld [vmem:[#allocation25 + $0x1400] sm:$0xff] }
0x148a   :  { %12490 = vmatpush1.bf16.msra.mxu1 %v17031_v46  ;;  %12618 = vmatpush1.bf16.msra.mxu0 %v17033_v9  ;;  %v6789_v46 = vld [vmem:[#allocation25 + $0x13a8] sm:$0xff]  ;;  %v6791_v9 = vld [vmem:[#allocation25 + $0x13b8] sm:$0xff]  ;;  %19197 = vst [vmem:[#allocation348_spill] sm:$0xff] %v17079_v7  ;;  %v6804_v4 = vld [vmem:[#allocation25 + $0x1420] sm:$0xff] }
0x148b   :  { %12492 = vmatprep.subr.bf16.mxu1 %v17037_v23  ;;  %12620 = vmatprep.subr.bf16.mxu0 %v17039_v51  ;;  %v17061_v60 = vpack.c.bf16 %v6789_v46, %v6785_v14  ;;  %v17063_v57 = vpack.c.bf16 %v6791_v9, %v6787_v22  ;;  %v6793_v51 = vld [vmem:[#allocation25 + $0x13c8] sm:$0xff]  ;;  %v6795_v23 = vld [vmem:[#allocation25 + $0x13d8] sm:$0xff]  ;;  %19194 = vst [vmem:[#allocation345_spill] sm:$0xff] %v17069_v0  ;;  %v6794_v46 = vld [vmem:[#allocation25 + $0x13d0] sm:$0xff] }
0x148c   :  { %v6798_v9 = vld [vmem:[#allocation25 + $0x13f0] sm:$0xff]  ;;  %v17091_v47 = vpack.c.bf16 %v6804_v4, %v6800_v34 }
0x148d   :  { %19191 = vst [vmem:[#allocation342_spill] sm:$0xff] %v17061_v60  ;;  %19192 = vst [vmem:[#allocation343_spill] sm:$0xff] %v17063_v57  ;;  %v17081_v31 = vpack.c.bf16 %v6798_v9, %v6794_v46  ;;  %v6808_v46 = vld [vmem:[#allocation25 + $0x1440] sm:$0xff] }
0x148e   :  { %12494 = vmatpush1.bf16.msra.mxu1 %v17043_v5  ;;  %12622 = vmatpush1.bf16.msra.mxu0 %v17045_v40  ;;  %v6797_v5 = vld [vmem:[#allocation25 + $0x13e8] sm:$0xff]  ;;  %v6799_v40 = vld [vmem:[#allocation25 + $0x13f8] sm:$0xff]  ;;  %19200 = vst [vmem:[#allocation351_spill] sm:$0xff] %v17091_v47  ;;  %v6812_v9 = vld [vmem:[#allocation25 + $0x1460] sm:$0xff] }
0x148f   :  { %12496 = vmatprep.subr.bf16.mxu1 %v17049_v24  ;;  %12624 = vmatprep.subr.bf16.mxu0 %v17051_v1  ;;  %v17073_v22 = vpack.c.bf16 %v6797_v5, %v6793_v51  ;;  %v17075_v14 = vpack.c.bf16 %v6799_v40, %v6795_v23  ;;  %v6801_v1 = vld [vmem:[#allocation25 + $0x1408] sm:$0xff]  ;;  %v6803_v24 = vld [vmem:[#allocation25 + $0x1418] sm:$0xff]  ;;  %19198 = vst [vmem:[#allocation349_spill] sm:$0xff] %v17081_v31  ;;  %v6802_v5 = vld [vmem:[#allocation25 + $0x1410] sm:$0xff] }
0x1490   :  { %v6806_v40 = vld [vmem:[#allocation25 + $0x1430] sm:$0xff]  ;;  %v17105_v34 = vpack.c.bf16 %v6812_v9, %v6808_v46 }
0x1491   :  { %19195 = vst [vmem:[#allocation346_spill] sm:$0xff] %v17073_v22  ;;  %19196 = vst [vmem:[#allocation347_spill] sm:$0xff] %v17075_v14  ;;  %v17093_v16 = vpack.c.bf16 %v6806_v40, %v6802_v5  ;;  %v6818_v5 = vld [vmem:[#allocation25 + $0x1490] sm:$0xff]  ;;  %v6825_v40 = vld [vmem:[#allocation25 + $0x14c8] sm:$0xff] }
0x1492   :  { %12498 = vmatpush1.bf16.msra.mxu1 %v17055_v55  ;;  %12626 = vmatpush1.bf16.msra.mxu0 %v17057_v50  ;;  %v6805_v55 = vld [vmem:[#allocation25 + $0x1428] sm:$0xff]  ;;  %v6807_v50 = vld [vmem:[#allocation25 + $0x1438] sm:$0xff]  ;;  %19203 = vst [vmem:[#allocation354_spill] sm:$0xff] %v17105_v34 }
0x1493   :  { %12500 = vmatprep.subr.bf16.mxu1 %v17061_v60  ;;  %12628 = vmatprep.subr.bf16.mxu0 %v17063_v57  ;;  %v17085_v23 = vpack.c.bf16 %v6805_v55, %v6801_v1  ;;  %v17087_v51 = vpack.c.bf16 %v6807_v50, %v6803_v24  ;;  %v6809_v57 = vld [vmem:[#allocation25 + $0x1448] sm:$0xff]  ;;  %v6811_v60 = vld [vmem:[#allocation25 + $0x1458] sm:$0xff]  ;;  %19201 = vst [vmem:[#allocation352_spill] sm:$0xff] %v17093_v16  ;;  %v6810_v55 = vld [vmem:[#allocation25 + $0x1450] sm:$0xff] }
0x1494   :  { %v6814_v50 = vld [vmem:[#allocation25 + $0x1470] sm:$0xff] }
0x1495   :  { %19199 = vst [vmem:[#allocation350_spill] sm:$0xff] %v17087_v51 }
0x1496   :  { %12502 = vmatpush1.bf16.msra.mxu1 %v17067_v10  ;;  %12630 = vmatpush1.bf16.msra.mxu0 %v17069_v0  ;;  %v6813_v10 = vld [vmem:[#allocation25 + $0x1468] sm:$0xff]  ;;  %v6815_v0 = vld [vmem:[#allocation25 + $0x1478] sm:$0xff] }
0x1497   :  { %12504 = vmatprep.subr.bf16.mxu1 %v17073_v22  ;;  %12632 = vmatprep.subr.bf16.mxu0 %v17075_v14  ;;  %v17097_v24 = vpack.c.bf16 %v6813_v10, %v6809_v57  ;;  %v17099_v1 = vpack.c.bf16 %v6815_v0, %v6811_v60  ;;  %v6817_v14 = vld [vmem:[#allocation25 + $0x1488] sm:$0xff]  ;;  %v6819_v22 = vld [vmem:[#allocation25 + $0x1498] sm:$0xff]  ;;  %v17107_v57 = vpack.c.bf16 %v6814_v50, %v6810_v55  ;;  %v6816_v60 = vld [vmem:[#allocation25 + $0x1480] sm:$0xff] }
0x1498   :  { %v6820_v10 = vld [vmem:[#allocation25 + $0x14a0] sm:$0xff]  ;;  %v6826_v55 = vld [vmem:[#allocation25 + $0x14d0] sm:$0xff]  ;;  %v6833_v50 = vld [vmem:[#allocation25 + $0x1508] sm:$0xff] }
0x1499   :  { %19202 = vst [vmem:[#allocation353_spill] sm:$0xff] %v17099_v1  ;;  %19204 = vst [vmem:[#allocation355_spill] sm:$0xff] %v17107_v57  ;;  %v17119_v46 = vpack.c.bf16 %v6820_v10, %v6816_v60 }
0x149a   :  { %12506 = vmatpush1.bf16.msra.mxu1 %v17079_v7  ;;  %12634 = vmatpush1.bf16.msra.mxu0 %v17081_v31  ;;  %v6821_v7 = vld [vmem:[#allocation25 + $0x14a8] sm:$0xff]  ;;  %v6823_v31 = vld [vmem:[#allocation25 + $0x14b8] sm:$0xff] }
0x149b   :  { %12508 = vmatprep.subr.bf16.mxu1 %v17085_v23  ;;  %12636 = vmatprep.subr.bf16.mxu0 %v17087_v51  ;;  %v17111_v0 = vpack.c.bf16 %v6821_v7, %v6817_v14  ;;  %v17113_v4 = vpack.c.bf16 %v6823_v31, %v6819_v22  ;;  %v6827_v51 = vld [vmem:[#allocation25 + $0x14d8] sm:$0xff]  ;;  %19207 = vst [vmem:[#allocation358_spill] sm:$0xff] %v17119_v46  ;;  %v6824_v22 = vld [vmem:[#allocation25 + $0x14c0] sm:$0xff] }
0x149c   :  { %v6828_v7 = vld [vmem:[#allocation25 + $0x14e0] sm:$0xff] }
0x149d   :  { %6993 = vmatmul.mubr.f32.vlgmr.msra.gmra.mrb[30].mxu1 %v16723_v37  ;;  %7135 = vmatmul.mubr.f32.vlgmr.msra.gmra.mrb[46].mxu0 %v16723_v37  ;;  %19205 = vst [vmem:[#allocation356_spill] sm:$0xff] %v17111_v0  ;;  %19206 = vst [vmem:[#allocation357_spill] sm:$0xff] %v17113_v4  ;;  %v6822_v37 = vld [vmem:[#allocation25 + $0x14b0] sm:$0xff]  ;;  %v17131_v60 = vpack.c.bf16 %v6828_v7, %v6824_v22 }
0x149e   :  { %12510 = vmatpush1.bf16.msra.mxu1 %v17091_v47  ;;  %12638 = vmatpush1.bf16.msra.mxu0 %v17093_v16  ;;  %v6829_v47 = vld [vmem:[#allocation25 + $0x14e8] sm:$0xff]  ;;  %v6831_v16 = vld [vmem:[#allocation25 + $0x14f8] sm:$0xff]  ;;  %v17121_v14 = vpack.c.bf16 %v6822_v37, %v6818_v5  ;;  %v6832_v5 = vld [vmem:[#allocation25 + $0x1500] sm:$0xff] }
0x149f   :  { %12512 = vmatprep.subr.bf16.mxu1 %v17097_v24  ;;  %12640 = vmatprep.subr.bf16.mxu0 %v17099_v1  ;;  %v17125_v31 = vpack.c.bf16 %v6829_v47, %v6825_v40  ;;  %v17127_v9 = vpack.c.bf16 %v6831_v16, %v6827_v51  ;;  %v6835_v1 = vld [vmem:[#allocation25 + $0x1518] sm:$0xff]  ;;  %19211 = vst [vmem:[#allocation362_spill] sm:$0xff] %v17131_v60  ;;  %v6836_v37 = vld [vmem:[#allocation25 + $0x1520] sm:$0xff]  ;;  %v6834_v16 = vld [vmem:[#allocation25 + $0x1510] sm:$0xff] }
0x14a0   :  { %7063 = vmatprep.mubr.f32.mxu1 %v16771_v59  ;;  %7205 = vmatprep.mubr.f32.mxu0 %v16771_v59  ;;  %19208 = vst [vmem:[#allocation359_spill] sm:$0xff] %v17121_v14  ;;  %v6830_v59 = vld [vmem:[#allocation25 + $0x14f0] sm:$0xff]  ;;  %v17143_v22 = vpack.c.bf16 %v6836_v37, %v6832_v5 }
0x14a1   :  { %19209 = vst [vmem:[#allocation360_spill] sm:$0xff] %v17125_v31  ;;  %19210 = vst [vmem:[#allocation361_spill] sm:$0xff] %v17127_v9  ;;  %v17133_v10 = vpack.c.bf16 %v6830_v59, %v6826_v55  ;;  %v6838_v40 = vld [vmem:[#allocation25 + $0x1530] sm:$0xff]  ;;  %v6840_v55 = vld [vmem:[#allocation25 + $0x1540] sm:$0xff] }
0x14a2   :  { %12514 = vmatpush1.bf16.msra.mxu1 %v17105_v34  ;;  %12642 = vmatpush1.bf16.msra.mxu0 %v17107_v57  ;;  %v6837_v34 = vld [vmem:[#allocation25 + $0x1528] sm:$0xff]  ;;  %v6839_v57 = vld [vmem:[#allocation25 + $0x1538] sm:$0xff]  ;;  %19215 = vst [vmem:[#allocation366_spill] sm:$0xff] %v17143_v22  ;;  %v17145_v7 = vpack.c.bf16 %v6838_v40, %v6834_v16  ;;  %v6844_v59 = vld [vmem:[#allocation25 + $0x1560] sm:$0xff] }
0x14a3   :  { %12516 = vmatprep.subr.bf16.mxu1 %v17111_v0  ;;  %12644 = vmatprep.subr.bf16.mxu0 %v17113_v4  ;;  %19212 = vst [vmem:[#allocation363_spill] sm:$0xff] %v17133_v10  ;;  %v17137_v51 = vpack.c.bf16 %v6837_v34, %v6833_v50  ;;  %v17139_v47 = vpack.c.bf16 %v6839_v57, %v6835_v1  ;;  %v6841_v4 = vld [vmem:[#allocation25 + $0x1548] sm:$0xff]  ;;  %v6843_v0 = vld [vmem:[#allocation25 + $0x1558] sm:$0xff]  ;;  %v6842_v57 = vld [vmem:[#allocation25 + $0x1550] sm:$0xff] }
0x14a4   :  { %19216 = vst [vmem:[#allocation367_spill] sm:$0xff] %v17145_v7  ;;  %v6846_v50 = vld [vmem:[#allocation25 + $0x1570] sm:$0xff]  ;;  %v17155_v5 = vpack.c.bf16 %v6844_v59, %v6840_v55  ;;  %v6848_v16 = vld [vmem:[#allocation25 + $0x1580] sm:$0xff] }
0x14a5   :  { %19213 = vst [vmem:[#allocation364_spill] sm:$0xff] %v17137_v51  ;;  %19214 = vst [vmem:[#allocation365_spill] sm:$0xff] %v17139_v47  ;;  %v17157_v37 = vpack.c.bf16 %v6846_v50, %v6842_v57  ;;  %v6852_v40 = vld [vmem:[#allocation25 + $0x15a0] sm:$0xff] }
0x14a6   :  { %12518 = vmatpush1.bf16.msra.mxu1 %v17119_v46  ;;  %12646 = vmatpush1.bf16.msra.mxu0 %v17121_v14  ;;  %v6845_v46 = vld [vmem:[#allocation25 + $0x1568] sm:$0xff]  ;;  %v6847_v14 = vld [vmem:[#allocation25 + $0x1578] sm:$0xff]  ;;  %19219 = vst [vmem:[#allocation370_spill] sm:$0xff] %v17155_v5  ;;  %v17167_v55 = vpack.c.bf16 %v6852_v40, %v6848_v16  ;;  %v6856_v57 = vld [vmem:[#allocation25 + $0x15c0] sm:$0xff] }
0x14a7   :  { %12520 = vmatprep.subr.bf16.mxu1 %v17125_v31  ;;  %12648 = vmatprep.subr.bf16.mxu0 %v17127_v9  ;;  %v17149_v1 = vpack.c.bf16 %v6845_v46, %v6841_v4  ;;  %v17151_v34 = vpack.c.bf16 %v6847_v14, %v6843_v0  ;;  %v6849_v9 = vld [vmem:[#allocation25 + $0x1588] sm:$0xff]  ;;  %v6851_v31 = vld [vmem:[#allocation25 + $0x1598] sm:$0xff]  ;;  %19220 = vst [vmem:[#allocation371_spill] sm:$0xff] %v17157_v37  ;;  %v6850_v46 = vld [vmem:[#allocation25 + $0x1590] sm:$0xff] }
0x14a8   :  { %v6854_v14 = vld [vmem:[#allocation25 + $0x15b0] sm:$0xff]  ;;  %19223 = vst [vmem:[#allocation374_spill] sm:$0xff] %v17167_v55  ;;  %v6860_v50 = vld [vmem:[#allocation25 + $0x15e0] sm:$0xff] }
0x14a9   :  { %19217 = vst [vmem:[#allocation368_spill] sm:$0xff] %v17149_v1  ;;  %19218 = vst [vmem:[#allocation369_spill] sm:$0xff] %v17151_v34  ;;  %v17169_v59 = vpack.c.bf16 %v6854_v14, %v6850_v46  ;;  %v17179_v16 = vpack.c.bf16 %v6860_v50, %v6856_v57  ;;  %v6864_v46 = vld [vmem:[#allocation25 + $0x1600] sm:$0xff] }
0x14aa   :  { %12522 = vmatpush1.bf16.msra.mxu1 %v17131_v60  ;;  %12650 = vmatpush1.bf16.msra.mxu0 %v17133_v10  ;;  %v6853_v60 = vld [vmem:[#allocation25 + $0x15a8] sm:$0xff]  ;;  %v6855_v10 = vld [vmem:[#allocation25 + $0x15b8] sm:$0xff]  ;;  %v6868_v14 = vld [vmem:[#allocation25 + $0x1620] sm:$0xff] }
0x14ab   :  { %12524 = vmatprep.subr.bf16.mxu1 %v17137_v51  ;;  %12652 = vmatprep.subr.bf16.mxu0 %v17139_v47  ;;  %v17161_v0 = vpack.c.bf16 %v6853_v60, %v6849_v9  ;;  %v17163_v4 = vpack.c.bf16 %v6855_v10, %v6851_v31  ;;  %v6857_v47 = vld [vmem:[#allocation25 + $0x15c8] sm:$0xff]  ;;  %v6859_v51 = vld [vmem:[#allocation25 + $0x15d8] sm:$0xff]  ;;  %19224 = vst [vmem:[#allocation375_spill] sm:$0xff] %v17169_v59  ;;  %v6858_v60 = vld [vmem:[#allocation25 + $0x15d0] sm:$0xff] }
0x14ac   :  { %v6862_v10 = vld [vmem:[#allocation25 + $0x15f0] sm:$0xff]  ;;  %19227 = vst [vmem:[#allocation378_spill] sm:$0xff] %v17179_v16  ;;  %v17191_v57 = vpack.c.bf16 %v6868_v14, %v6864_v46 }
0x14ad   :  { %19221 = vst [vmem:[#allocation372_spill] sm:$0xff] %v17161_v0  ;;  %19222 = vst [vmem:[#allocation373_spill] sm:$0xff] %v17163_v4  ;;  %v17181_v40 = vpack.c.bf16 %v6862_v10, %v6858_v60  ;;  %v6872_v60 = vld [vmem:[#allocation25 + $0x1640] sm:$0xff] }
0x14ae   :  { %12526 = vmatpush1.bf16.msra.mxu1 %v17143_v22  ;;  %12654 = vmatpush1.bf16.msra.mxu0 %v17145_v7  ;;  %v6861_v22 = vld [vmem:[#allocation25 + $0x15e8] sm:$0xff]  ;;  %v6863_v7 = vld [vmem:[#allocation25 + $0x15f8] sm:$0xff]  ;;  %19231 = vst [vmem:[#allocation382_spill] sm:$0xff] %v17191_v57  ;;  %v6876_v10 = vld [vmem:[#allocation25 + $0x1660] sm:$0xff] }
0x14af   :  { %12528 = vmatprep.subr.bf16.mxu1 %v17149_v1  ;;  %12656 = vmatprep.subr.bf16.mxu0 %v17151_v34  ;;  %v17173_v31 = vpack.c.bf16 %v6861_v22, %v6857_v47  ;;  %v17175_v9 = vpack.c.bf16 %v6863_v7, %v6859_v51  ;;  %v6865_v34 = vld [vmem:[#allocation25 + $0x1608] sm:$0xff]  ;;  %v6867_v1 = vld [vmem:[#allocation25 + $0x1618] sm:$0xff]  ;;  %19228 = vst [vmem:[#allocation379_spill] sm:$0xff] %v17181_v40  ;;  %v6866_v22 = vld [vmem:[#allocation25 + $0x1610] sm:$0xff] }
0x14b0   :  { %v6870_v7 = vld [vmem:[#allocation25 + $0x1630] sm:$0xff]  ;;  %v17203_v46 = vpack.c.bf16 %v6876_v10, %v6872_v60 }
0x14b1   :  { %19225 = vst [vmem:[#allocation376_spill] sm:$0xff] %v17173_v31  ;;  %19226 = vst [vmem:[#allocation377_spill] sm:$0xff] %v17175_v9  ;;  %v17193_v50 = vpack.c.bf16 %v6870_v7, %v6866_v22  ;;  %v6880_v22 = vld [vmem:[#allocation25 + $0x1680] sm:$0xff] }
0x14b2   :  { %12530 = vmatpush1.bf16.msra.mxu1 %v17155_v5  ;;  %12658 = vmatpush1.bf16.msra.mxu0 %v17157_v37  ;;  %v6869_v5 = vld [vmem:[#allocation25 + $0x1628] sm:$0xff]  ;;  %v6871_v37 = vld [vmem:[#allocation25 + $0x1638] sm:$0xff]  ;;  %19235 = vst [vmem:[#allocation386_spill] sm:$0xff] %v17203_v46  ;;  %v6884_v7 = vld [vmem:[#allocation25 + $0x16a0] sm:$0xff] }
0x14b3   :  { %12532 = vmatprep.subr.bf16.mxu1 %v17161_v0  ;;  %12660 = vmatprep.subr.bf16.mxu0 %v17163_v4  ;;  %v17185_v51 = vpack.c.bf16 %v6869_v5, %v6865_v34  ;;  %v17187_v47 = vpack.c.bf16 %v6871_v37, %v6867_v1  ;;  %v6873_v4 = vld [vmem:[#allocation25 + $0x1648] sm:$0xff]  ;;  %v6875_v0 = vld [vmem:[#allocation25 + $0x1658] sm:$0xff]  ;;  %19232 = vst [vmem:[#allocation383_spill] sm:$0xff] %v17193_v50  ;;  %v6874_v5 = vld [vmem:[#allocation25 + $0x1650] sm:$0xff] }
0x14b4   :  { %v6878_v37 = vld [vmem:[#allocation25 + $0x1670] sm:$0xff]  ;;  %v17215_v60 = vpack.c.bf16 %v6884_v7, %v6880_v22 }
0x14b5   :  { %19229 = vst [vmem:[#allocation380_spill] sm:$0xff] %v17185_v51  ;;  %19230 = vst [vmem:[#allocation381_spill] sm:$0xff] %v17187_v47  ;;  %v17205_v14 = vpack.c.bf16 %v6878_v37, %v6874_v5  ;;  %v6888_v5 = vld [vmem:[#allocation25 + $0x16c0] sm:$0xff] }
0x14b6   :  { %12534 = vmatpush1.bf16.msra.mxu1 %v17167_v55  ;;  %12662 = vmatpush1.bf16.msra.mxu0 %v17169_v59  ;;  %v6877_v55 = vld [vmem:[#allocation25 + $0x1668] sm:$0xff]  ;;  %v6879_v59 = vld [vmem:[#allocation25 + $0x1678] sm:$0xff]  ;;  %19239 = vst [vmem:[#allocation390_spill] sm:$0xff] %v17215_v60  ;;  %v6892_v37 = vld [vmem:[#allocation25 + $0x16e0] sm:$0xff] }
0x14b7   :  { %12536 = vmatprep.subr.bf16.mxu1 %v17173_v31  ;;  %12664 = vmatprep.subr.bf16.mxu0 %v17175_v9  ;;  %v17197_v1 = vpack.c.bf16 %v6877_v55, %v6873_v4  ;;  %v17199_v34 = vpack.c.bf16 %v6879_v59, %v6875_v0  ;;  %v6881_v9 = vld [vmem:[#allocation25 + $0x1688] sm:$0xff]  ;;  %v6883_v31 = vld [vmem:[#allocation25 + $0x1698] sm:$0xff]  ;;  %19236 = vst [vmem:[#allocation387_spill] sm:$0xff] %v17205_v14  ;;  %v6882_v55 = vld [vmem:[#allocation25 + $0x1690] sm:$0xff] }
0x14b8   :  { %v6886_v59 = vld [vmem:[#allocation25 + $0x16b0] sm:$0xff]  ;;  %v17227_v22 = vpack.c.bf16 %v6892_v37, %v6888_v5 }
0x14b9   :  { %19233 = vst [vmem:[#allocation384_spill] sm:$0xff] %v17197_v1  ;;  %19234 = vst [vmem:[#allocation385_spill] sm:$0xff] %v17199_v34  ;;  %v17217_v10 = vpack.c.bf16 %v6886_v59, %v6882_v55  ;;  %v6896_v55 = vld [vmem:[#allocation25 + $0x1700] sm:$0xff] }
0x14ba   :  { %12538 = vmatpush1.bf16.msra.mxu1 %v17179_v16  ;;  %12666 = vmatpush1.bf16.msra.mxu0 %v17181_v40  ;;  %v6885_v16 = vld [vmem:[#allocation25 + $0x16a8] sm:$0xff]  ;;  %v6887_v40 = vld [vmem:[#allocation25 + $0x16b8] sm:$0xff]  ;;  %19243 = vst [vmem:[#allocation394_spill] sm:$0xff] %v17227_v22  ;;  %v6900_v59 = vld [vmem:[#allocation25 + $0x1720] sm:$0xff] }
0x14bb   :  { %12540 = vmatprep.subr.bf16.mxu1 %v17185_v51  ;;  %12668 = vmatprep.subr.bf16.mxu0 %v17187_v47  ;;  %v17209_v0 = vpack.c.bf16 %v6885_v16, %v6881_v9  ;;  %v17211_v4 = vpack.c.bf16 %v6887_v40, %v6883_v31  ;;  %v6889_v47 = vld [vmem:[#allocation25 + $0x16c8] sm:$0xff]  ;;  %v6891_v51 = vld [vmem:[#allocation25 + $0x16d8] sm:$0xff]  ;;  %19240 = vst [vmem:[#allocation391_spill] sm:$0xff] %v17217_v10  ;;  %v6890_v16 = vld [vmem:[#allocation25 + $0x16d0] sm:$0xff] }
0x14bc   :  { %v6894_v40 = vld [vmem:[#allocation25 + $0x16f0] sm:$0xff]  ;;  %v17239_v5 = vpack.c.bf16 %v6900_v59, %v6896_v55 }
0x14bd   :  { %19237 = vst [vmem:[#allocation388_spill] sm:$0xff] %v17209_v0  ;;  %19238 = vst [vmem:[#allocation389_spill] sm:$0xff] %v17211_v4  ;;  %v17229_v7 = vpack.c.bf16 %v6894_v40, %v6890_v16  ;;  %v6904_v16 = vld [vmem:[#allocation25 + $0x1740] sm:$0xff] }
0x14be   :  { %12542 = vmatpush1.bf16.msra.mxu1 %v17191_v57  ;;  %12670 = vmatpush1.bf16.msra.mxu0 %v17193_v50  ;;  %v6893_v57 = vld [vmem:[#allocation25 + $0x16e8] sm:$0xff]  ;;  %v6895_v50 = vld [vmem:[#allocation25 + $0x16f8] sm:$0xff]  ;;  %19247 = vst [vmem:[#allocation398_spill] sm:$0xff] %v17239_v5  ;;  %v6908_v40 = vld [vmem:[#allocation25 + $0x1760] sm:$0xff] }
0x14bf   :  { %12544 = vmatprep.subr.bf16.mxu1 %v17197_v1  ;;  %12672 = vmatprep.subr.bf16.mxu0 %v17199_v34  ;;  %v17221_v31 = vpack.c.bf16 %v6893_v57, %v6889_v47  ;;  %v17223_v9 = vpack.c.bf16 %v6895_v50, %v6891_v51  ;;  %v6897_v34 = vld [vmem:[#allocation25 + $0x1708] sm:$0xff]  ;;  %v6899_v1 = vld [vmem:[#allocation25 + $0x1718] sm:$0xff]  ;;  %19244 = vst [vmem:[#allocation395_spill] sm:$0xff] %v17229_v7  ;;  %v6898_v57 = vld [vmem:[#allocation25 + $0x1710] sm:$0xff] }
0x14c0   :  { %v6902_v50 = vld [vmem:[#allocation25 + $0x1730] sm:$0xff]  ;;  %v17251_v55 = vpack.c.bf16 %v6908_v40, %v6904_v16 }
0x14c1   :  { %19241 = vst [vmem:[#allocation392_spill] sm:$0xff] %v17221_v31  ;;  %19242 = vst [vmem:[#allocation393_spill] sm:$0xff] %v17223_v9  ;;  %v17241_v37 = vpack.c.bf16 %v6902_v50, %v6898_v57  ;;  %v6912_v57 = vld [vmem:[#allocation25 + $0x1780] sm:$0xff] }
0x14c2   :  { %12546 = vmatpush1.bf16.msra.mxu1 %v17203_v46  ;;  %12674 = vmatpush1.bf16.msra.mxu0 %v17205_v14  ;;  %v6901_v46 = vld [vmem:[#allocation25 + $0x1728] sm:$0xff]  ;;  %v6903_v14 = vld [vmem:[#allocation25 + $0x1738] sm:$0xff]  ;;  %v6916_v50 = vld [vmem:[#allocation25 + $0x17a0] sm:$0xff] }
0x14c3   :  { %12548 = vmatprep.subr.bf16.mxu1 %v17209_v0  ;;  %12676 = vmatprep.subr.bf16.mxu0 %v17211_v4  ;;  %v17233_v51 = vpack.c.bf16 %v6901_v46, %v6897_v34  ;;  %v17235_v47 = vpack.c.bf16 %v6903_v14, %v6899_v1  ;;  %v6905_v4 = vld [vmem:[#allocation25 + $0x1748] sm:$0xff]  ;;  %v6907_v0 = vld [vmem:[#allocation25 + $0x1758] sm:$0xff]  ;;  %19248 = vst [vmem:[#allocation399_spill] sm:$0xff] %v17241_v37  ;;  %v6906_v46 = vld [vmem:[#allocation25 + $0x1750] sm:$0xff] }
0x14c4   :  { %v6910_v14 = vld [vmem:[#allocation25 + $0x1770] sm:$0xff]  ;;  %v17263_v16 = vpack.c.bf16 %v6916_v50, %v6912_v57 }
0x14c5   :  { %19245 = vst [vmem:[#allocation396_spill] sm:$0xff] %v17233_v51  ;;  %19246 = vst [vmem:[#allocation397_spill] sm:$0xff] %v17235_v47  ;;  %v17253_v59 = vpack.c.bf16 %v6910_v14, %v6906_v46  ;;  %v6920_v46 = vld [vmem:[#allocation25 + $0x17c0] sm:$0xff]  ;;  %v6926_v14 = vld [vmem:[#allocation25 + $0x17f0] sm:$0xff] }
0x14c6   :  { %12550 = vmatpush1.bf16.msra.mxu1 %v17215_v60  ;;  %12678 = vmatpush1.bf16.msra.mxu0 %v17217_v10  ;;  %v6909_v60 = vld [vmem:[#allocation25 + $0x1768] sm:$0xff]  ;;  %v6911_v10 = vld [vmem:[#allocation25 + $0x1778] sm:$0xff] }
0x14c7   :  { %12552 = vmatprep.subr.bf16.mxu1 %v17221_v31  ;;  %12680 = vmatprep.subr.bf16.mxu0 %v17223_v9  ;;  %v17245_v1 = vpack.c.bf16 %v6909_v60, %v6905_v4  ;;  %v17247_v34 = vpack.c.bf16 %v6911_v10, %v6907_v0  ;;  %v6913_v9 = vld [vmem:[#allocation25 + $0x1788] sm:$0xff]  ;;  %v6915_v31 = vld [vmem:[#allocation25 + $0x1798] sm:$0xff]  ;;  %v6914_v60 = vld [vmem:[#allocation25 + $0x1790] sm:$0xff] }
0x14c8   :  { %v6918_v10 = vld [vmem:[#allocation25 + $0x17b0] sm:$0xff] }
0x14c9   :  { %v17265_v40 = vpack.c.bf16 %v6918_v10, %v6914_v60  ;;  %v19254_v60 = vld [vmem:[#allocation70_spill] sm:$0xff]  ;;  %v19255_v10 = vld [vmem:[#allocation71_spill] sm:$0xff] }
0x14ca   :  { %12554 = vmatpush1.bf16.msra.mxu1 %v17227_v22  ;;  %12682 = vmatpush1.bf16.msra.mxu0 %v17229_v7  ;;  %v6917_v22 = vld [vmem:[#allocation25 + $0x17a8] sm:$0xff]  ;;  %v6919_v7 = vld [vmem:[#allocation25 + $0x17b8] sm:$0xff] }
0x14cb   :  { %12556 = vmatprep.subr.bf16.mxu1 %v17233_v51  ;;  %12684 = vmatprep.subr.bf16.mxu0 %v17235_v47  ;;  %v17257_v0 = vpack.c.bf16 %v6917_v22, %v6913_v9  ;;  %v17259_v4 = vpack.c.bf16 %v6919_v7, %v6915_v31  ;;  %v6921_v47 = vld [vmem:[#allocation25 + $0x17c8] sm:$0xff]  ;;  %v6923_v51 = vld [vmem:[#allocation25 + $0x17d8] sm:$0xff]  ;;  %v6924_v22 = vld [vmem:[#allocation25 + $0x17e0] sm:$0xff] }
0x14cc   :  { %v6922_v7 = vld [vmem:[#allocation25 + $0x17d0] sm:$0xff]  ;;  %v17275_v57 = vpack.c.bf16 %v6924_v22, %v6920_v46  ;;  %v19256_v46 = vld [vmem:[#allocation72_spill] sm:$0xff]  ;;  %v19257_v22 = vld [vmem:[#allocation73_spill] sm:$0xff] }
0x14cd   :  { %v17277_v50 = vpack.c.bf16 %v6926_v14, %v6922_v7  ;;  %v19258_v7 = vld [vmem:[#allocation74_spill] sm:$0xff]  ;;  %v19259_v14 = vld [vmem:[#allocation75_spill] sm:$0xff] }
0x14ce   :  { %12558 = vmatpush1.bf16.msra.mxu1 %v17239_v5  ;;  %12686 = vmatpush1.bf16.msra.mxu0 %v17241_v37  ;;  %v6925_v5 = vld [vmem:[#allocation25 + $0x17e8] sm:$0xff]  ;;  %v6927_v37 = vld [vmem:[#allocation25 + $0x17f8] sm:$0xff] }
0x14cf   :  { %12560 = vmatprep.subr.bf16.mxu1 %v17245_v1  ;;  %12688 = vmatprep.subr.bf16.mxu0 %v17247_v34  ;;  %v17269_v31 = vpack.c.bf16 %v6925_v5, %v6921_v47  ;;  %v17271_v9 = vpack.c.bf16 %v6927_v37, %v6923_v51  ;;  %v19250_v51 = vld [vmem:[#allocation66_spill] sm:$0xff]  ;;  %v19251_v47 = vld [vmem:[#allocation67_spill] sm:$0xff]  ;;  %v19252_v5 = vld [vmem:[#allocation68_spill] sm:$0xff] }
0x14d0   :  { %v19253_v37 = vld [vmem:[#allocation69_spill] sm:$0xff] }
0x14d2   :  { %12562 = vmatpush1.bf16.msra.mxu1 %v17251_v55  ;;  %12690 = vmatpush1.bf16.msra.mxu0 %v17253_v59 }
0x14d3   :  { %12564 = vmatprep.subr.bf16.mxu1 %v17257_v0  ;;  %12692 = vmatprep.subr.bf16.mxu0 %v17259_v4 }
0x14d6   :  { %12566 = vmatpush1.bf16.msra.mxu1 %v17263_v16  ;;  %12694 = vmatpush1.bf16.msra.mxu0 %v17265_v40 }
0x14d7   :  { %12568 = vmatprep.subr.bf16.mxu1 %v17269_v31  ;;  %12696 = vmatprep.subr.bf16.mxu0 %v17271_v9 }
0x14da   :  { %12570 = vmatpush1.bf16.msra.mxu1 %v17275_v57  ;;  %12698 = vmatpush1.bf16.msra.mxu0 %v17277_v50 }
0x14db   :  { %12700 = vmatprep.subr.bf16.mxu1 %v16056_v2  ;;  %12828 = vmatprep.subr.bf16.mxu0 %v16058_v61 }
0x14dd   :  { %7064 = vmatmul.mubr.f32.vlgmr.msra.gmra.mrb[30].mxu1 %v16763_v43  ;;  %7206 = vmatmul.mubr.f32.vlgmr.msra.gmra.mrb[46].mxu0 %v16763_v43  ;;  %v19249_v43 = vld [vmem:[#allocation65_spill] sm:$0xff] }
0x14de   :  { %12702 = vmatpush1.bf16.msra.mxu1 %v16060_v27  ;;  %12830 = vmatpush1.bf16.msra.mxu0 %v16062_v52 }
0x14df   :  { %12704 = vmatprep.subr.bf16.mxu1 %v16066_v26  ;;  %12832 = vmatprep.subr.bf16.mxu0 %v16068_v62 }
0x14e2   :  { %12706 = vmatpush1.bf16.msra.mxu1 %v16074_v30  ;;  %12834 = vmatpush1.bf16.msra.mxu0 %v16076_v33  ;;  %v19284_v33 = vld [vmem:[#allocation49_spill] sm:$0xff] }
0x14e3   :  { %12708 = vmatprep.subr.bf16.mxu1 %v16080_v42  ;;  %12836 = vmatprep.subr.bf16.mxu0 %v16082_v63  ;;  %v19282_v63 = vld [vmem:[#allocation48_spill] sm:$0xff] }
0x14e6   :  { %12710 = vmatpush1.bf16.msra.mxu1 %v16086_v25  ;;  %12838 = vmatpush1.bf16.msra.mxu0 %v16088_v18  ;;  %v19281_v18 = vld [vmem:[#allocation97_spill] sm:$0xff] }
0x14e7   :  { %12712 = vmatprep.subr.bf16.mxu1 %v16092_v21  ;;  %12840 = vmatprep.subr.bf16.mxu0 %v16094_v38  ;;  %v19279_v38 = vld [vmem:[#allocation95_spill] sm:$0xff] }
0x14ea   :  { %12714 = vmatpush1.bf16.msra.mxu1 %v16098_v58  ;;  %12842 = vmatpush1.bf16.msra.mxu0 %v16100_v39  ;;  %v19277_v39 = vld [vmem:[#allocation93_spill] sm:$0xff] }
0x14eb   :  { %12716 = vmatprep.subr.bf16.mxu1 %v16104_v35  ;;  %12844 = vmatprep.subr.bf16.mxu0 %v16106_v19  ;;  %v19275_v19 = vld [vmem:[#allocation91_spill] sm:$0xff] }
0x14ee   :  { %12718 = vmatpush1.bf16.msra.mxu1 %v16110_v20  ;;  %12846 = vmatpush1.bf16.msra.mxu0 %v16112_v53  ;;  %v19273_v53 = vld [vmem:[#allocation89_spill] sm:$0xff] }
0x14ef   :  { %12720 = vmatprep.subr.bf16.mxu1 %v16116_v48  ;;  %12848 = vmatprep.subr.bf16.mxu0 %v16118_v11  ;;  %v19271_v11 = vld [vmem:[#allocation87_spill] sm:$0xff] }
0x14f2   :  { %12722 = vmatpush1.bf16.msra.mxu1 %v16122_v54  ;;  %12850 = vmatpush1.bf16.msra.mxu0 %v16124_v12  ;;  %v19269_v12 = vld [vmem:[#allocation85_spill] sm:$0xff] }
0x14f3   :  { %12724 = vmatprep.subr.bf16.mxu1 %v16128_v49  ;;  %12852 = vmatprep.subr.bf16.mxu0 %v16130_v45  ;;  %v19267_v45 = vld [vmem:[#allocation83_spill] sm:$0xff] }
0x14f6   :  { %12726 = vmatpush1.bf16.msra.mxu1 %v16134_v6  ;;  %12854 = vmatpush1.bf16.msra.mxu0 %v16136_v44  ;;  %v19265_v44 = vld [vmem:[#allocation81_spill] sm:$0xff] }
0x14f7   :  { %12728 = vmatprep.subr.bf16.mxu1 %v16140_v17  ;;  %12856 = vmatprep.subr.bf16.mxu0 %v16142_v29  ;;  %v19263_v29 = vld [vmem:[#allocation79_spill] sm:$0xff] }
0x14fa   :  { %12730 = vmatpush1.bf16.msra.mxu1 %v16146_v28  ;;  %12858 = vmatpush1.bf16.msra.mxu0 %v16148_v3  ;;  %v19261_v3 = vld [vmem:[#allocation77_spill] sm:$0xff] }
0x14fb   :  { %12732 = vmatprep.subr.bf16.mxu1 %v16152_v41  ;;  %12860 = vmatprep.subr.bf16.mxu0 %v19249_v43  ;;  %v19260_v43 = vld [vmem:[#allocation76_spill] sm:$0xff] }
0x14fe   :  { %12734 = vmatpush1.bf16.msra.mxu1 %v19250_v51  ;;  %12862 = vmatpush1.bf16.msra.mxu0 %v19251_v47  ;;  %v19262_v47 = vld [vmem:[#allocation78_spill] sm:$0xff] }
0x14ff   :  { %12736 = vmatprep.subr.bf16.mxu1 %v19252_v5  ;;  %12864 = vmatprep.subr.bf16.mxu0 %v19253_v37  ;;  %v19264_v37 = vld [vmem:[#allocation80_spill] sm:$0xff] }
0x1502   :  { %12738 = vmatpush1.bf16.msra.mxu1 %v19254_v60  ;;  %12866 = vmatpush1.bf16.msra.mxu0 %v19255_v10  ;;  %v19266_v10 = vld [vmem:[#allocation82_spill] sm:$0xff] }
0x1503   :  { %12740 = vmatprep.subr.bf16.mxu1 %v19256_v46  ;;  %12868 = vmatprep.subr.bf16.mxu0 %v19257_v22  ;;  %v19268_v22 = vld [vmem:[#allocation84_spill] sm:$0xff] }
0x1506   :  { %12742 = vmatpush1.bf16.msra.mxu1 %v19258_v7  ;;  %12870 = vmatpush1.bf16.msra.mxu0 %v19259_v14  ;;  %v19270_v14 = vld [vmem:[#allocation86_spill] sm:$0xff] }
0x1507   :  { %12744 = vmatprep.subr.bf16.mxu1 %v19260_v43  ;;  %12872 = vmatprep.subr.bf16.mxu0 %v19261_v3  ;;  %v19272_v3 = vld [vmem:[#allocation88_spill] sm:$0xff] }
0x150a   :  { %12746 = vmatpush1.bf16.msra.mxu1 %v19262_v47  ;;  %12874 = vmatpush1.bf16.msra.mxu0 %v19263_v29  ;;  %v19274_v29 = vld [vmem:[#allocation90_spill] sm:$0xff] }
0x150b   :  { %12748 = vmatprep.subr.bf16.mxu1 %v19264_v37  ;;  %12876 = vmatprep.subr.bf16.mxu0 %v19265_v44  ;;  %v19276_v44 = vld [vmem:[#allocation92_spill] sm:$0xff] }
0x150e   :  { %12750 = vmatpush1.bf16.msra.mxu1 %v19266_v10  ;;  %12878 = vmatpush1.bf16.msra.mxu0 %v19267_v45  ;;  %v19278_v45 = vld [vmem:[#allocation94_spill] sm:$0xff] }
0x150f   :  { %12752 = vmatprep.subr.bf16.mxu1 %v19268_v22  ;;  %12880 = vmatprep.subr.bf16.mxu0 %v19269_v12  ;;  %v19280_v12 = vld [vmem:[#allocation96_spill] sm:$0xff] }
0x1512   :  { %12754 = vmatpush1.bf16.msra.mxu1 %v19270_v14  ;;  %12882 = vmatpush1.bf16.msra.mxu0 %v19271_v11  ;;  %v17351_v11 = vld [vmem:[#allocation26] sm:$0xf] }
0x1513   :  { %12756 = vmatprep.subr.bf16.mxu1 %v19272_v3  ;;  %12884 = vmatprep.subr.bf16.mxu0 %v19273_v53  ;;  %v17355_v53 = vrot.slane %v17351_v11, %v19282_v63  ;;  %v19300_v3 = vld [vmem:[#allocation110_spill] sm:$0xff] }
0x1515   :  { %19283 = vst [vmem:[#allocation48_spill] sm:$0xff] %v17355_v53 }
0x1516   :  { %12758 = vmatpush1.bf16.msra.mxu1 %v19274_v29  ;;  %12886 = vmatpush1.bf16.msra.mxu0 %v19275_v19  ;;  %v17359_v19 = vrot.slane %v17351_v11, %v19284_v33  ;;  %v19299_v29 = vld [vmem:[#allocation109_spill] sm:$0xff] }
0x1517   :  { %12760 = vmatprep.subr.bf16.mxu1 %v19276_v44  ;;  %12888 = vmatprep.subr.bf16.mxu0 %v19277_v39  ;;  %v19286_v39 = vsub.s32 3, %v18888_v32 }
0x1518   :  { %19285 = vst [vmem:[#allocation49_spill] sm:$0xff] %v17359_v19 }
0x1519   :  { %v17364_v62 = vrot.slane %v17351_v11, %v19286_v39 }
0x151a   :  { %12762 = vmatpush1.bf16.msra.mxu1 %v19278_v45  ;;  %12890 = vmatpush1.bf16.msra.mxu0 %v19279_v38 }
0x151b   :  { %12764 = vmatprep.subr.bf16.mxu1 %v19280_v12  ;;  %12892 = vmatprep.subr.bf16.mxu0 %v19281_v18  ;;  %19287 = vst [vmem:[#allocation400_spill] sm:$0xff] %v17364_v62 }
0x15b0   :  { %v7065_v38 = vpop.f32.mrb[30].mxu1  ;;  %v17366_v52 = vpop.f32.mrb[46].mxu0 }
0x15b1   :  { %v14353_v18 = vadd.f32 %v7065_v38, %v17355_v53  ;;  %v7067_v61 = vpop.f32.mrb[31].mxu1  ;;  %v7209_v12 = vpop.f32.mrb[47].mxu0  ;;  %v19288_v38 = vld [vmem:[#allocation98_spill] sm:$0xff]  ;;  %v19289_v53 = vld [vmem:[#allocation99_spill] sm:$0xff] }
0x15b2   :  { %v14354_v45 = vadd.f32 %v7067_v61, %v17359_v19  ;;  %v14356_v63 = vadd.f32 %v7209_v12, %v17364_v62  ;;  %v19290_v61 = vld [vmem:[#allocation100_spill] sm:$0xff]  ;;  %v19292_v12 = vld [vmem:[#allocation102_spill] sm:$0xff]  ;;  %v19295_v62 = vld [vmem:[#allocation105_spill] sm:$0xff] }
0x15b3   :  { %v17373_v33 = vmax.f32 %v14353_v18, 0.0  ;;  %v19291_v18 = vld [vmem:[#allocation101_spill] sm:$0xff]  ;;  %v19296_v19 = vld [vmem:[#allocation106_spill] sm:$0xff] }
0x15b4   :  { %v17371_v44 = vmax.f32 %v14354_v45, 0.0  ;;  %v17377_v39 = vmax.f32 %v14356_v63, 0.0  ;;  %v19293_v45 = vld [vmem:[#allocation103_spill] sm:$0xff]  ;;  %v19294_v63 = vld [vmem:[#allocation104_spill] sm:$0xff] }
0x15b6   :  { %7284 = vmatprep.mubr.f32.mxu1 %v17371_v44  ;;  %7426 = vmatprep.mubr.f32.mxu0 %v17371_v44 }
0x15b7   :  { %7285 = vmatmul.mubr.f32.vlgmr.msra.gmra.mrb[40].mxu1 %v17373_v33  ;;  %7427 = vmatmul.mubr.f32.vlgmr.msra.gmra.mrb[48].mxu0 %v17373_v33 }
0x15b8   :  { %12766 = vmatpush1.bf16.msra.mxu1 %v19288_v38  ;;  %12894 = vmatpush1.bf16.msra.mxu0 %v19289_v53  ;;  %v19297_v38 = vld [vmem:[#allocation107_spill] sm:$0xff]  ;;  %v19298_v53 = vld [vmem:[#allocation108_spill] sm:$0xff] }
0x15b9   :  { %7355 = vmatprep.mubr.f32.mxu1 %v17377_v39  ;;  %7497 = vmatprep.mubr.f32.mxu0 %v17377_v39 }
0x15ba   :  { %12768 = vmatprep.subr.bf16.mxu1 %v19290_v61  ;;  %12896 = vmatprep.subr.bf16.mxu0 %v19291_v18  ;;  %v19301_v61 = vld [vmem:[#allocation111_spill] sm:$0xff]  ;;  %v19302_v18 = vld [vmem:[#allocation112_spill] sm:$0xff] }
0x15bc   :  { %12770 = vmatpush1.bf16.msra.mxu1 %v19292_v12  ;;  %12898 = vmatpush1.bf16.msra.mxu0 %v19293_v45  ;;  %v19303_v12 = vld [vmem:[#allocation113_spill] sm:$0xff]  ;;  %v19304_v45 = vld [vmem:[#allocation114_spill] sm:$0xff] }
0x15bd   :  { %12772 = vmatprep.subr.bf16.mxu1 %v19294_v63  ;;  %12900 = vmatprep.subr.bf16.mxu0 %v19295_v62  ;;  %v19305_v63 = vld [vmem:[#allocation115_spill] sm:$0xff]  ;;  %v19306_v62 = vld [vmem:[#allocation116_spill] sm:$0xff] }
0x15c0   :  { %12774 = vmatpush1.bf16.msra.mxu1 %v19296_v19  ;;  %12902 = vmatpush1.bf16.msra.mxu0 %v19297_v38  ;;  %v19307_v19 = vld [vmem:[#allocation117_spill] sm:$0xff]  ;;  %v19308_v38 = vld [vmem:[#allocation118_spill] sm:$0xff] }
0x15c1   :  { %12776 = vmatprep.subr.bf16.mxu1 %v19298_v53  ;;  %12904 = vmatprep.subr.bf16.mxu0 %v19299_v29  ;;  %v19309_v53 = vld [vmem:[#allocation119_spill] sm:$0xff]  ;;  %v19310_v29 = vld [vmem:[#allocation120_spill] sm:$0xff] }
0x15c4   :  { %12778 = vmatpush1.bf16.msra.mxu1 %v19300_v3  ;;  %12906 = vmatpush1.bf16.msra.mxu0 %v19301_v61  ;;  %v19311_v3 = vld [vmem:[#allocation121_spill] sm:$0xff]  ;;  %v19312_v61 = vld [vmem:[#allocation122_spill] sm:$0xff] }
0x15c5   :  { %12780 = vmatprep.subr.bf16.mxu1 %v19302_v18  ;;  %12908 = vmatprep.subr.bf16.mxu0 %v19303_v12  ;;  %v19313_v18 = vld [vmem:[#allocation123_spill] sm:$0xff]  ;;  %v19314_v12 = vld [vmem:[#allocation124_spill] sm:$0xff] }
0x15c8   :  { %12782 = vmatpush1.bf16.msra.mxu1 %v19304_v45  ;;  %12910 = vmatpush1.bf16.msra.mxu0 %v19305_v63  ;;  %v19315_v45 = vld [vmem:[#allocation125_spill] sm:$0xff]  ;;  %v19316_v63 = vld [vmem:[#allocation126_spill] sm:$0xff] }
0x15c9   :  { %12784 = vmatprep.subr.bf16.mxu1 %v19306_v62  ;;  %12912 = vmatprep.subr.bf16.mxu0 %v19307_v19  ;;  %v19317_v62 = vld [vmem:[#allocation127_spill] sm:$0xff]  ;;  %v19318_v19 = vld [vmem:[#allocation128_spill] sm:$0xff] }
0x15cc   :  { %12786 = vmatpush1.bf16.msra.mxu1 %v19308_v38  ;;  %12914 = vmatpush1.bf16.msra.mxu0 %v19309_v53  ;;  %v19319_v38 = vld [vmem:[#allocation129_spill] sm:$0xff]  ;;  %v19320_v53 = vld [vmem:[#allocation130_spill] sm:$0xff] }
0x15cd   :  { %12788 = vmatprep.subr.bf16.mxu1 %v19310_v29  ;;  %12916 = vmatprep.subr.bf16.mxu0 %v19311_v3  ;;  %v19321_v29 = vld [vmem:[#allocation131_spill] sm:$0xff]  ;;  %v19322_v3 = vld [vmem:[#allocation132_spill] sm:$0xff] }
0x15d0   :  { %12790 = vmatpush1.bf16.msra.mxu1 %v19312_v61  ;;  %12918 = vmatpush1.bf16.msra.mxu0 %v19313_v18  ;;  %v19323_v61 = vld [vmem:[#allocation133_spill] sm:$0xff]  ;;  %v19324_v18 = vld [vmem:[#allocation134_spill] sm:$0xff] }
0x15d1   :  { %12792 = vmatprep.subr.bf16.mxu1 %v19314_v12  ;;  %12920 = vmatprep.subr.bf16.mxu0 %v19315_v45  ;;  %v19325_v12 = vld [vmem:[#allocation135_spill] sm:$0xff]  ;;  %v19326_v45 = vld [vmem:[#allocation136_spill] sm:$0xff] }
0x15d4   :  { %12794 = vmatpush1.bf16.msra.mxu1 %v19316_v63  ;;  %12922 = vmatpush1.bf16.msra.mxu0 %v19317_v62  ;;  %v19327_v63 = vld [vmem:[#allocation137_spill] sm:$0xff]  ;;  %v19328_v62 = vld [vmem:[#allocation138_spill] sm:$0xff] }
0x15d5   :  { %12796 = vmatprep.subr.bf16.mxu1 %v19318_v19  ;;  %12924 = vmatprep.subr.bf16.mxu0 %v19319_v38  ;;  %v19329_v19 = vld [vmem:[#allocation139_spill] sm:$0xff]  ;;  %v19330_v38 = vld [vmem:[#allocation140_spill] sm:$0xff] }
0x15d8   :  { %12798 = vmatpush1.bf16.msra.mxu1 %v19320_v53  ;;  %12926 = vmatpush1.bf16.msra.mxu0 %v19321_v29  ;;  %v19331_v53 = vld [vmem:[#allocation141_spill] sm:$0xff]  ;;  %v19332_v29 = vld [vmem:[#allocation142_spill] sm:$0xff] }
0x15d9   :  { %12800 = vmatprep.subr.bf16.mxu1 %v19322_v3  ;;  %12928 = vmatprep.subr.bf16.mxu0 %v19323_v61  ;;  %v19333_v3 = vld [vmem:[#allocation143_spill] sm:$0xff] }
0x15dc   :  { %12802 = vmatpush1.bf16.msra.mxu1 %v19324_v18  ;;  %12930 = vmatpush1.bf16.msra.mxu0 %v19325_v12  ;;  %v19334_v18 = vld [vmem:[#allocation145_spill] sm:$0xff]  ;;  %v19335_v12 = vld [vmem:[#allocation146_spill] sm:$0xff] }
0x15dd   :  { %12804 = vmatprep.subr.bf16.mxu1 %v19326_v45  ;;  %12932 = vmatprep.subr.bf16.mxu0 %v19327_v63  ;;  %v19336_v45 = vld [vmem:[#allocation147_spill] sm:$0xff] }
0x15e0   :  { %12806 = vmatpush1.bf16.msra.mxu1 %v19328_v62  ;;  %12934 = vmatpush1.bf16.msra.mxu0 %v19329_v19  ;;  %v19337_v62 = vld [vmem:[#allocation149_spill] sm:$0xff]  ;;  %v19338_v19 = vld [vmem:[#allocation150_spill] sm:$0xff] }
0x15e1   :  { %12808 = vmatprep.subr.bf16.mxu1 %v19330_v38  ;;  %12936 = vmatprep.subr.bf16.mxu0 %v19331_v53  ;;  %v19339_v38 = vld [vmem:[#allocation151_spill] sm:$0xff]  ;;  %v19448_v53 = vld [vmem:[#allocation256_spill] sm:$0xff] }
0x15e4   :  { %12810 = vmatpush1.bf16.msra.mxu1 %v19332_v29  ;;  %12938 = vmatpush1.bf16.msra.mxu0 %v19333_v3  ;;  %v19340_v29 = vsub.s32 2, %v18888_v32  ;;  %v19348_v32 = vld [vmem:[#allocation159_spill] sm:$0xff] }
0x15e5   :  { %12812 = vmatprep.subr.bf16.mxu1 %v16416_v8  ;;  %12940 = vmatprep.subr.bf16.mxu0 %v19334_v18  ;;  %v19342_v18 = vld [vmem:[#allocation153_spill] sm:$0xff] }
0x15e6   :  { %v17440_v3 = vrot.slane %v17351_v11, %v19340_v29  ;;  %v19349_v29 = vld [vmem:[#allocation160_spill] sm:$0xff]  ;;  %v19445_v8 = vld [vmem:[#allocation253_spill] sm:$0xff] }
0x15e8   :  { %12814 = vmatpush1.bf16.msra.mxu1 %v19335_v12  ;;  %12942 = vmatpush1.bf16.msra.mxu0 %v19336_v45  ;;  %19341 = vst [vmem:[#allocation401_spill] sm:$0xff] %v17440_v3  ;;  %v19343_v12 = vld [vmem:[#allocation154_spill] sm:$0xff]  ;;  %v19344_v45 = vld [vmem:[#allocation155_spill] sm:$0xff] }
0x15e9   :  { %12816 = vmatprep.subr.bf16.mxu1 %v16428_v56  ;;  %12944 = vmatprep.subr.bf16.mxu0 %v19337_v62  ;;  %v14355_v62 = vadd.f32 %v17366_v52, %v17440_v3  ;;  %v19345_v56 = vld [vmem:[#allocation156_spill] sm:$0xff]  ;;  %v19350_v52 = vmov 0.0  }
0x15eb   :  { %v7218_v11 = vmax.f32 %v14355_v62, 0.0  ;;  %v19353_v62 = vld [vmem:[#allocation50_spill] sm:$0xff] }
0x15ec   :  { %12818 = vmatpush1.bf16.msra.mxu1 %v19338_v19  ;;  %12946 = vmatpush1.bf16.msra.mxu0 %v19339_v38  ;;  %v19346_v19 = vld [vmem:[#allocation157_spill] sm:$0xff]  ;;  %v19347_v38 = vld [vmem:[#allocation158_spill] sm:$0xff] }
0x15ed   :  { %12820 = vmatprep.subr.bf16.mxu1 %v16441_v36  ;;  %12948 = vmatprep.subr.bf16.mxu0 %v19342_v18  ;;  %v19433_v18 = vld [vmem:[#allocation241_spill] sm:$0xff] }
0x15f0   :  { %12822 = vmatpush1.bf16.msra.mxu1 %v19343_v12  ;;  %12950 = vmatpush1.bf16.msra.mxu0 %v19344_v45  ;;  %v19371_v45 = vld [vmem:[#allocation179_spill] sm:$0xff]  ;;  %v19429_v12 = vld [vmem:[#allocation237_spill] sm:$0xff] }
0x15f1   :  { %12824 = vmatprep.subr.bf16.mxu1 %v19345_v56  ;;  %12952 = vmatprep.subr.bf16.mxu0 %v19346_v19  ;;  %v19351_v19 = vld [vmem:[#allocation161_spill] sm:$0xff]  ;;  %v19367_v56 = vld [vmem:[#allocation175_spill] sm:$0xff] }
0x15f4   :  { %12826 = vmatpush1.bf16.msra.mxu1 %v19347_v38  ;;  %12954 = vmatpush1.bf16.msra.mxu0 %v19348_v32  ;;  %v19352_v38 = vld [vmem:[#allocation162_spill] sm:$0xff]  ;;  %v19355_v32 = vld [vmem:[#allocation164_spill] sm:$0xff] }
0x15f5   :  { %10052 = vmatprep.subr.msk.mxu1 %vm339_vm0, %v17371_v44  ;;  %13084 = vmatprep.subr.bf16.mxu0 %v19349_v29  ;;  %v19354_v29 = vld [vmem:[#allocation163_spill] sm:$0xff] }
0x15f7   :  { %7356 = vmatmul.mubr.f32.vlgmr.msra.gmra.mrb[40].mxu1 %v7218_v11  ;;  %7498 = vmatmul.mubr.f32.vlgmr.msra.gmra.mrb[48].mxu0 %v7218_v11 }
0x15f8   :  { %10053 = vmatpush1.msk.msra.mxu1 %vm339_vm0, %v17373_v33  ;;  %7580 = vmatprep.mubr.f32.mxu1 %v19350_v52 }
0x15f9   :  { %10055 = vmatprep.subr.msk.mxu1 %vm339_vm0, %v17377_v39  ;;  %13086 = vmatpush1.bf16.msra.mxu0 %v19351_v19  ;;  %v19356_v19 = vld [vmem:[#allocation165_spill] sm:$0xff] }
0x15fa   :  { %13088 = vmatprep.subr.bf16.mxu0 %v19352_v38  ;;  %v19357_v38 = vld [vmem:[#allocation166_spill] sm:$0xff] }
0x15fb   :  { %10054 = vmatmul.mubr.msk.f32.vlgmr.msra.gmra.mrb[42].mxu1 %vm326_vm1, %v19353_v62 }
0x15fc   :  { %10056 = vmatpush1.msk.msra.mxu1 %vm339_vm0, %v7218_v11  ;;  %7651 = vmatprep.mubr.f32.mxu1 %v19350_v52 }
0x15fd   :  { %10058 = vmatprep.subr.msk.mxu1 %vm339_vm0, %v17371_v44  ;;  %13090 = vmatpush1.bf16.msra.mxu0 %v19354_v29  ;;  %v19358_v44 = vld [vmem:[#allocation51_spill] sm:$0xff] }
0x15fe   :  { %13092 = vmatprep.subr.bf16.mxu0 %v19355_v32  ;;  %v19359_v32 = vld [vmem:[#allocation167_spill] sm:$0xff] }
0x15ff   :  { %10057 = vmatmul.mubr.msk.f32.vlgmr.msra.gmra.mrb[44].mxu1 %vm326_vm1, %v19353_v62  ;;  %v19360_v62 = vld [vmem:[#allocation168_spill] sm:$0xff]  ;;  %v19363_v29 = vld [vmem:[#allocation171_spill] sm:$0xff] }
0x1600   :  { %10059 = vmatpush1.msk.msra.mxu1 %vm339_vm0, %v17373_v33  ;;  %7722 = vmatprep.mubr.f32.mxu1 %v19350_v52  ;;  %v19361_v33 = vld [vmem:[#allocation169_spill] sm:$0xff] }
0x1601   :  { %10061 = vmatprep.subr.msk.mxu1 %vm339_vm0, %v17377_v39  ;;  %13094 = vmatpush1.bf16.msra.mxu0 %v19356_v19  ;;  %v19362_v39 = vld [vmem:[#allocation170_spill] sm:$0xff]  ;;  %v19364_v19 = vld [vmem:[#allocation172_spill] sm:$0xff] }
0x1602   :  { %13096 = vmatprep.subr.bf16.mxu0 %v19357_v38  ;;  %v19365_v38 = vld [vmem:[#allocation173_spill] sm:$0xff] }
0x1603   :  { %10060 = vmatmul.mubr.msk.f32.vlgmr.msra.gmra.mrb[46].mxu1 %vm326_vm1, %v19358_v44 }
0x1604   :  { %10062 = vmatpush1.msk.msra.mxu1 %vm339_vm0, %v7218_v11  ;;  %7793 = vmatprep.mubr.f32.mxu1 %v19350_v52  ;;  %v19366_v11 = vld [vmem:[#allocation174_spill] sm:$0xff] }
0x1605   :  { %12956 = vmatprep.subr.bf16.mxu1 %v19359_v32  ;;  %13098 = vmatpush1.bf16.msra.mxu0 %v19360_v62  ;;  %v19368_v32 = vld [vmem:[#allocation176_spill] sm:$0xff]  ;;  %v19369_v62 = vld [vmem:[#allocation177_spill] sm:$0xff] }
0x1606   :  { %13100 = vmatprep.subr.bf16.mxu0 %v19361_v33  ;;  %v19370_v33 = vld [vmem:[#allocation178_spill] sm:$0xff] }
0x1607   :  { %10063 = vmatmul.mubr.msk.f32.vlgmr.msra.gmra.mrb[48].mxu1 %vm326_vm1, %v19358_v44  ;;  %v19372_v44 = vld [vmem:[#allocation180_spill] sm:$0xff] }
0x1608   :  { %12958 = vmatpush1.bf16.msra.mxu1 %v19362_v39  ;;  %v19373_v39 = vld [vmem:[#allocation181_spill] sm:$0xff] }
0x1609   :  { %12960 = vmatprep.subr.bf16.mxu1 %v19363_v29  ;;  %13102 = vmatpush1.bf16.msra.mxu0 %v19364_v19  ;;  %v19374_v29 = vld [vmem:[#allocation182_spill] sm:$0xff]  ;;  %v19375_v19 = vld [vmem:[#allocation183_spill] sm:$0xff] }
0x160a   :  { %13104 = vmatprep.subr.bf16.mxu0 %v19365_v38  ;;  %v19376_v38 = vld [vmem:[#allocation184_spill] sm:$0xff] }
0x160c   :  { %12962 = vmatpush1.bf16.msra.mxu1 %v19366_v11  ;;  %v19377_v11 = vld [vmem:[#allocation185_spill] sm:$0xff] }
0x160d   :  { %12964 = vmatprep.subr.bf16.mxu1 %v19367_v56  ;;  %13106 = vmatpush1.bf16.msra.mxu0 %v19368_v32  ;;  %v19378_v56 = vld [vmem:[#allocation186_spill] sm:$0xff]  ;;  %v19379_v32 = vld [vmem:[#allocation187_spill] sm:$0xff] }
0x160e   :  { %13108 = vmatprep.subr.bf16.mxu0 %v19369_v62  ;;  %v19380_v62 = vld [vmem:[#allocation188_spill] sm:$0xff] }
0x1610   :  { %12966 = vmatpush1.bf16.msra.mxu1 %v19370_v33  ;;  %v19381_v33 = vld [vmem:[#allocation189_spill] sm:$0xff] }
0x1611   :  { %12968 = vmatprep.subr.bf16.mxu1 %v19371_v45  ;;  %13110 = vmatpush1.bf16.msra.mxu0 %v19372_v44  ;;  %v19382_v45 = vld [vmem:[#allocation190_spill] sm:$0xff]  ;;  %v19383_v44 = vld [vmem:[#allocation191_spill] sm:$0xff] }
0x1612   :  { %13112 = vmatprep.subr.bf16.mxu0 %v19373_v39  ;;  %v19384_v39 = vld [vmem:[#allocation192_spill] sm:$0xff] }
0x1614   :  { %12970 = vmatpush1.bf16.msra.mxu1 %v19374_v29  ;;  %v19385_v29 = vld [vmem:[#allocation193_spill] sm:$0xff] }
0x1615   :  { %12972 = vmatprep.subr.bf16.mxu1 %v19375_v19  ;;  %13114 = vmatpush1.bf16.msra.mxu0 %v19376_v38  ;;  %v19386_v19 = vld [vmem:[#allocation194_spill] sm:$0xff]  ;;  %v19387_v38 = vld [vmem:[#allocation195_spill] sm:$0xff] }
0x1616   :  { %13116 = vmatprep.subr.bf16.mxu0 %v19377_v11  ;;  %v19388_v11 = vld [vmem:[#allocation196_spill] sm:$0xff] }
0x1618   :  { %12974 = vmatpush1.bf16.msra.mxu1 %v19378_v56  ;;  %v19389_v56 = vld [vmem:[#allocation197_spill] sm:$0xff] }
0x1619   :  { %12976 = vmatprep.subr.bf16.mxu1 %v19379_v32  ;;  %13118 = vmatpush1.bf16.msra.mxu0 %v19380_v62  ;;  %v19390_v32 = vld [vmem:[#allocation198_spill] sm:$0xff]  ;;  %v19391_v62 = vld [vmem:[#allocation199_spill] sm:$0xff] }
0x161a   :  { %13120 = vmatprep.subr.bf16.mxu0 %v19381_v33  ;;  %v19392_v33 = vld [vmem:[#allocation200_spill] sm:$0xff] }
0x161c   :  { %12978 = vmatpush1.bf16.msra.mxu1 %v19382_v45  ;;  %v19393_v45 = vld [vmem:[#allocation201_spill] sm:$0xff] }
0x161d   :  { %12980 = vmatprep.subr.bf16.mxu1 %v19383_v44  ;;  %13122 = vmatpush1.bf16.msra.mxu0 %v19384_v39  ;;  %v19394_v44 = vld [vmem:[#allocation202_spill] sm:$0xff]  ;;  %v19395_v39 = vld [vmem:[#allocation203_spill] sm:$0xff] }
0x161e   :  { %13124 = vmatprep.subr.bf16.mxu0 %v19385_v29  ;;  %v19396_v29 = vld [vmem:[#allocation204_spill] sm:$0xff] }
0x1620   :  { %12982 = vmatpush1.bf16.msra.mxu1 %v19386_v19  ;;  %v19397_v19 = vld [vmem:[#allocation205_spill] sm:$0xff] }
0x1621   :  { %12984 = vmatprep.subr.bf16.mxu1 %v19387_v38  ;;  %13126 = vmatpush1.bf16.msra.mxu0 %v19388_v11  ;;  %v19398_v38 = vld [vmem:[#allocation206_spill] sm:$0xff]  ;;  %v19399_v11 = vld [vmem:[#allocation207_spill] sm:$0xff] }
0x1622   :  { %13128 = vmatprep.subr.bf16.mxu0 %v19389_v56  ;;  %v19400_v56 = vld [vmem:[#allocation208_spill] sm:$0xff] }
0x1624   :  { %12986 = vmatpush1.bf16.msra.mxu1 %v19390_v32  ;;  %v19401_v32 = vld [vmem:[#allocation209_spill] sm:$0xff] }
0x1625   :  { %12988 = vmatprep.subr.bf16.mxu1 %v19391_v62  ;;  %13130 = vmatpush1.bf16.msra.mxu0 %v19392_v33  ;;  %v19402_v62 = vld [vmem:[#allocation210_spill] sm:$0xff]  ;;  %v19403_v33 = vld [vmem:[#allocation211_spill] sm:$0xff] }
0x1626   :  { %13132 = vmatprep.subr.bf16.mxu0 %v19393_v45  ;;  %v19404_v45 = vld [vmem:[#allocation212_spill] sm:$0xff] }
0x1628   :  { %12990 = vmatpush1.bf16.msra.mxu1 %v19394_v44  ;;  %v19405_v44 = vld [vmem:[#allocation213_spill] sm:$0xff] }
0x1629   :  { %12992 = vmatprep.subr.bf16.mxu1 %v19395_v39  ;;  %13134 = vmatpush1.bf16.msra.mxu0 %v19396_v29  ;;  %v19406_v39 = vld [vmem:[#allocation214_spill] sm:$0xff]  ;;  %v19407_v29 = vld [vmem:[#allocation215_spill] sm:$0xff] }
0x162a   :  { %13136 = vmatprep.subr.bf16.mxu0 %v19397_v19  ;;  %v19408_v19 = vld [vmem:[#allocation216_spill] sm:$0xff] }
0x162c   :  { %12994 = vmatpush1.bf16.msra.mxu1 %v19398_v38  ;;  %v19409_v38 = vld [vmem:[#allocation225_spill] sm:$0xff] }
0x162d   :  { %12996 = vmatprep.subr.bf16.mxu1 %v19399_v11  ;;  %13138 = vmatpush1.bf16.msra.mxu0 %v19400_v56  ;;  %v19410_v11 = vld [vmem:[#allocation217_spill] sm:$0xff]  ;;  %v19411_v56 = vld [vmem:[#allocation218_spill] sm:$0xff] }
0x162e   :  { %13140 = vmatprep.subr.bf16.mxu0 %v19401_v32  ;;  %v19412_v32 = vld [vmem:[#allocation219_spill] sm:$0xff] }
0x1630   :  { %12998 = vmatpush1.bf16.msra.mxu1 %v19402_v62  ;;  %v19413_v62 = vld [vmem:[#allocation220_spill] sm:$0xff] }
0x1631   :  { %13000 = vmatprep.subr.bf16.mxu1 %v19403_v33  ;;  %13142 = vmatpush1.bf16.msra.mxu0 %v19404_v45  ;;  %v19414_v33 = vld [vmem:[#allocation221_spill] sm:$0xff]  ;;  %v19415_v45 = vld [vmem:[#allocation222_spill] sm:$0xff] }
0x1632   :  { %13144 = vmatprep.subr.bf16.mxu0 %v19405_v44  ;;  %v19416_v44 = vld [vmem:[#allocation223_spill] sm:$0xff] }
0x1634   :  { %13002 = vmatpush1.bf16.msra.mxu1 %v19406_v39  ;;  %v19417_v39 = vld [vmem:[#allocation224_spill] sm:$0xff] }
0x1635   :  { %13004 = vmatprep.subr.bf16.mxu1 %v19407_v29  ;;  %13146 = vmatpush1.bf16.msra.mxu0 %v19408_v19 }
0x1636   :  { %13148 = vmatprep.subr.bf16.mxu0 %v19409_v38  ;;  %v19418_v38 = vld [vmem:[#allocation226_spill] sm:$0xff] }
0x1638   :  { %13006 = vmatpush1.bf16.msra.mxu1 %v19410_v11  ;;  %v19419_v11 = vld [vmem:[#allocation227_spill] sm:$0xff] }
0x1639   :  { %13008 = vmatprep.subr.bf16.mxu1 %v19411_v56 }
0x163c   :  { %13010 = vmatpush1.bf16.msra.mxu1 %v19412_v32  ;;  %v19420_v32 = vld [vmem:[#allocation228_spill] sm:$0xff] }
0x163d   :  { %13012 = vmatprep.subr.bf16.mxu1 %v19413_v62  ;;  %v19421_v62 = vld [vmem:[#allocation229_spill] sm:$0xff] }
0x1640   :  { %13014 = vmatpush1.bf16.msra.mxu1 %v19414_v33 }
0x1641   :  { %13016 = vmatprep.subr.bf16.mxu1 %v19415_v45  ;;  %v19422_v45 = vld [vmem:[#allocation230_spill] sm:$0xff] }
0x1644   :  { %13018 = vmatpush1.bf16.msra.mxu1 %v19416_v44  ;;  %v19423_v44 = vld [vmem:[#allocation231_spill] sm:$0xff] }
0x1645   :  { %13020 = vmatprep.subr.bf16.mxu1 %v19417_v39 }
0x16ce   :  { %v7582_v29 = vpop.f32.mrb[42].mxu1 }
0x16cf   :  { %v7584_v19 = vpop.f32.mrb[43].mxu1 }
0x16d0   :  { %7864 = vmatprep.mubr.f32.mxu1 %v7584_v19  ;;  %8006 = vmatprep.mubr.f32.mxu0 %v7584_v19  ;;  %v19425_v19 = vld [vmem:[#allocation233_spill] sm:$0xff] }
0x16d1   :  { %7865 = vmatmul.mubr.f32.vlgmr.msra.gmra.mrb[40].mxu1 %v7582_v29  ;;  %8007 = vmatmul.mubr.f32.vlgmr.msra.gmra.mrb[48].mxu0 %v7582_v29  ;;  %v19424_v29 = vld [vmem:[#allocation232_spill] sm:$0xff] }
0x16d2   :  { %13022 = vmatpush1.bf16.msra.mxu1 %v19418_v38  ;;  %13150 = vmatpush1.bf16.msra.mxu0 %v19419_v11  ;;  %v17546_v56 = vpop.f32.mrb[44].mxu1  ;;  %v19426_v11 = vld [vmem:[#allocation234_spill] sm:$0xff] }
0x16d3   :  { %13024 = vmatprep.subr.bf16.mxu1 %v19420_v32  ;;  %13152 = vmatprep.subr.bf16.mxu0 %v19421_v62  ;;  %v7655_v33 = vpop.f32.mrb[45].mxu1  ;;  %v19427_v32 = vld [vmem:[#allocation235_spill] sm:$0xff]  ;;  %v19428_v62 = vld [vmem:[#allocation236_spill] sm:$0xff] }
0x16d4   :  { %7935 = vmatprep.mubr.f32.mxu1 %v7655_v33  ;;  %8077 = vmatprep.mubr.f32.mxu0 %v7655_v33  ;;  %v19430_v33 = vld [vmem:[#allocation238_spill] sm:$0xff] }
0x16d6   :  { %13026 = vmatpush1.bf16.msra.mxu1 %v19422_v45  ;;  %13154 = vmatpush1.bf16.msra.mxu0 %v19423_v44  ;;  %v17552_v39 = vpop.f32.mrb[46].mxu1  ;;  %v19431_v45 = vld [vmem:[#allocation239_spill] sm:$0xff]  ;;  %v19432_v44 = vld [vmem:[#allocation240_spill] sm:$0xff] }
0x16d7   :  { %13028 = vmatprep.subr.bf16.mxu1 %v19424_v29  ;;  %13156 = vmatprep.subr.bf16.mxu0 %v19425_v19  ;;  %v17556_v38 = vpop.f32.mrb[47].mxu1  ;;  %v19434_v29 = vld [vmem:[#allocation242_spill] sm:$0xff]  ;;  %v19435_v19 = vld [vmem:[#allocation243_spill] sm:$0xff] }
0x16da   :  { %13030 = vmatpush1.bf16.msra.mxu1 %v19426_v11  ;;  %13158 = vmatpush1.bf16.msra.mxu0 %v19427_v32  ;;  %v17568_v36 = vpop.f32.mrb[48].mxu1  ;;  %v19436_v11 = vld [vmem:[#allocation244_spill] sm:$0xff]  ;;  %v19437_v32 = vld [vmem:[#allocation245_spill] sm:$0xff] }
0x16db   :  { %13032 = vmatprep.subr.bf16.mxu1 %v19428_v62  ;;  %13160 = vmatprep.subr.bf16.mxu0 %v19429_v12  ;;  %v17572_v62 = vpop.f32.mrb[49].mxu1  ;;  %v19438_v12 = vld [vmem:[#allocation246_spill] sm:$0xff] }
0x16de   :  { %13034 = vmatpush1.bf16.msra.mxu1 %v19430_v33  ;;  %13162 = vmatpush1.bf16.msra.mxu0 %v19431_v45  ;;  %v19439_v33 = vld [vmem:[#allocation247_spill] sm:$0xff]  ;;  %v19440_v45 = vld [vmem:[#allocation248_spill] sm:$0xff] }
0x16df   :  { %13036 = vmatprep.subr.bf16.mxu1 %v19432_v44  ;;  %13164 = vmatprep.subr.bf16.mxu0 %v19433_v18  ;;  %v19441_v44 = vld [vmem:[#allocation249_spill] sm:$0xff]  ;;  %v19442_v18 = vld [vmem:[#allocation250_spill] sm:$0xff] }
0x16e2   :  { %13038 = vmatpush1.bf16.msra.mxu1 %v19434_v29  ;;  %13166 = vmatpush1.bf16.msra.mxu0 %v19435_v19  ;;  %v19443_v29 = vld [vmem:[#allocation251_spill] sm:$0xff]  ;;  %v19444_v19 = vld [vmem:[#allocation252_spill] sm:$0xff] }
0x16e3   :  { %13040 = vmatprep.subr.bf16.mxu1 %v19436_v11  ;;  %13168 = vmatprep.subr.bf16.mxu0 %v19437_v32  ;;  %v19446_v11 = vld [vmem:[#allocation254_spill] sm:$0xff]  ;;  %v19447_v32 = vld [vmem:[#allocation255_spill] sm:$0xff] }
0x16e6   :  { %13042 = vmatpush1.bf16.msra.mxu1 %v19438_v12  ;;  %13170 = vmatpush1.bf16.msra.mxu0 %v19439_v33  ;;  %v19449_v12 = vld [vmem:[#allocation257_spill] sm:$0xff]  ;;  %v19450_v33 = vld [vmem:[#allocation258_spill] sm:$0xff] }
0x16e7   :  { %13044 = vmatprep.subr.bf16.mxu1 %v19440_v45  ;;  %13172 = vmatprep.subr.bf16.mxu0 %v19441_v44  ;;  %v19451_v45 = vld [vmem:[#allocation259_spill] sm:$0xff]  ;;  %v19452_v44 = vld [vmem:[#allocation260_spill] sm:$0xff] }
0x16ea   :  { %13046 = vmatpush1.bf16.msra.mxu1 %v19442_v18  ;;  %13174 = vmatpush1.bf16.msra.mxu0 %v19443_v29  ;;  %v19453_v18 = vld [vmem:[#allocation261_spill] sm:$0xff]  ;;  %v19454_v29 = vld [vmem:[#allocation262_spill] sm:$0xff] }
0x16eb   :  { %13048 = vmatprep.subr.bf16.mxu1 %v19444_v19  ;;  %13176 = vmatprep.subr.bf16.mxu0 %v19445_v8  ;;  %v19455_v19 = vld [vmem:[#allocation263_spill] sm:$0xff]  ;;  %v19456_v8 = vld [vmem:[#allocation264_spill] sm:$0xff] }
0x16ee   :  { %13050 = vmatpush1.bf16.msra.mxu1 %v19446_v11  ;;  %13178 = vmatpush1.bf16.msra.mxu0 %v19447_v32  ;;  %v19457_v11 = vld [vmem:[#allocation265_spill] sm:$0xff]  ;;  %v19458_v32 = vld [vmem:[#allocation266_spill] sm:$0xff] }
0x16ef   :  { %13052 = vmatprep.subr.bf16.mxu1 %v19448_v53  ;;  %13180 = vmatprep.subr.bf16.mxu0 %v19449_v12  ;;  %v19459_v53 = vld [vmem:[#allocation267_spill] sm:$0xff]  ;;  %v19460_v12 = vld [vmem:[#allocation268_spill] sm:$0xff] }
0x16f2   :  { %13054 = vmatpush1.bf16.msra.mxu1 %v19450_v33  ;;  %13182 = vmatpush1.bf16.msra.mxu0 %v19451_v45  ;;  %v19461_v33 = vld [vmem:[#allocation269_spill] sm:$0xff]  ;;  %v19462_v45 = vld [vmem:[#allocation270_spill] sm:$0xff] }
0x16f3   :  { %13056 = vmatprep.subr.bf16.mxu1 %v19452_v44  ;;  %13184 = vmatprep.subr.bf16.mxu0 %v19453_v18  ;;  %v19463_v44 = vld [vmem:[#allocation271_spill] sm:$0xff]  ;;  %v19464_v18 = vld [vmem:[#allocation272_spill] sm:$0xff] }
0x16f6   :  { %13058 = vmatpush1.bf16.msra.mxu1 %v19454_v29  ;;  %13186 = vmatpush1.bf16.msra.mxu0 %v19455_v19  ;;  %v19465_v29 = vld [vmem:[#allocation273_spill] sm:$0xff]  ;;  %v19466_v19 = vld [vmem:[#allocation274_spill] sm:$0xff] }
0x16f7   :  { %13060 = vmatprep.subr.bf16.mxu1 %v19456_v8  ;;  %13188 = vmatprep.subr.bf16.mxu0 %v19457_v11  ;;  %v19467_v8 = vld [vmem:[#allocation275_spill] sm:$0xff]  ;;  %v19468_v11 = vld [vmem:[#allocation276_spill] sm:$0xff] }
0x16fa   :  { %13062 = vmatpush1.bf16.msra.mxu1 %v19458_v32  ;;  %13190 = vmatpush1.bf16.msra.mxu0 %v19459_v53  ;;  %v19469_v32 = vld [vmem:[#allocation277_spill] sm:$0xff]  ;;  %v19470_v53 = vld [vmem:[#allocation278_spill] sm:$0xff] }
0x16fb   :  { %13064 = vmatprep.subr.bf16.mxu1 %v19460_v12  ;;  %13192 = vmatprep.subr.bf16.mxu0 %v19461_v33  ;;  %v19471_v12 = vld [vmem:[#allocation279_spill] sm:$0xff]  ;;  %v19472_v33 = vld [vmem:[#allocation280_spill] sm:$0xff] }
0x16fe   :  { %13066 = vmatpush1.bf16.msra.mxu1 %v19462_v45  ;;  %13194 = vmatpush1.bf16.msra.mxu0 %v19463_v44  ;;  %v19473_v45 = vld [vmem:[#allocation281_spill] sm:$0xff]  ;;  %v19474_v44 = vld [vmem:[#allocation282_spill] sm:$0xff] }
0x16ff   :  { %13068 = vmatprep.subr.bf16.mxu1 %v19464_v18  ;;  %13196 = vmatprep.subr.bf16.mxu0 %v19465_v29  ;;  %v19475_v18 = vld [vmem:[#allocation283_spill] sm:$0xff]  ;;  %v19476_v29 = vld [vmem:[#allocation284_spill] sm:$0xff] }
0x1702   :  { %13070 = vmatpush1.bf16.msra.mxu1 %v19466_v19  ;;  %13198 = vmatpush1.bf16.msra.mxu0 %v19467_v8  ;;  %v19477_v19 = vld [vmem:[#allocation285_spill] sm:$0xff]  ;;  %v19478_v8 = vld [vmem:[#allocation286_spill] sm:$0xff] }
0x1703   :  { %13072 = vmatprep.subr.bf16.mxu1 %v19468_v11  ;;  %13200 = vmatprep.subr.bf16.mxu0 %v19469_v32  ;;  %v19479_v11 = vld [vmem:[#allocation287_spill] sm:$0xff]  ;;  %v19480_v32 = vld [vmem:[#allocation288_spill] sm:$0xff] }
0x1706   :  { %13074 = vmatpush1.bf16.msra.mxu1 %v19470_v53  ;;  %13202 = vmatpush1.bf16.msra.mxu0 %v19471_v12  ;;  %v19481_v53 = vld [vmem:[#allocation289_spill] sm:$0xff]  ;;  %v19482_v12 = vld [vmem:[#allocation290_spill] sm:$0xff] }
0x1707   :  { %13076 = vmatprep.subr.bf16.mxu1 %v19472_v33  ;;  %13204 = vmatprep.subr.bf16.mxu0 %v19473_v45  ;;  %v19483_v33 = vld [vmem:[#allocation291_spill] sm:$0xff]  ;;  %v19484_v45 = vld [vmem:[#allocation292_spill] sm:$0xff] }
0x170a   :  { %13078 = vmatpush1.bf16.msra.mxu1 %v19474_v44  ;;  %13206 = vmatpush1.bf16.msra.mxu0 %v19475_v18  ;;  %v19486_v44 = vld [vmem:[#allocation294_spill] sm:$0xff]  ;;  %v19487_v18 = vld [vmem:[#allocation295_spill] sm:$0xff] }
0x170b   :  { %13080 = vmatprep.subr.bf16.mxu1 %v19476_v29  ;;  %13208 = vmatprep.subr.bf16.mxu0 %v19477_v19  ;;  %v19489_v29 = vld [vmem:[#allocation297_spill] sm:$0xff]  ;;  %v19490_v19 = vld [vmem:[#allocation298_spill] sm:$0xff] }
0x170e   :  { %13082 = vmatpush1.bf16.msra.mxu1 %v19478_v8  ;;  %13210 = vmatpush1.bf16.msra.mxu0 %v19479_v11  ;;  %v19492_v8 = vld [vmem:[#allocation300_spill] sm:$0xff]  ;;  %v19493_v11 = vld [vmem:[#allocation301_spill] sm:$0xff] }
0x170f   :  { %13212 = vmatprep.subr.bf16.mxu1 %v16889_v15  ;;  %13340 = vmatprep.subr.bf16.mxu0 %v19480_v32  ;;  %v19485_v15 = vld [vmem:[#allocation293_spill] sm:$0xff]  ;;  %v19495_v32 = vld [vmem:[#allocation303_spill] sm:$0xff] }
0x1711   :  { %7936 = vmatmul.mubr.f32.vlgmr.msra.gmra.mrb[40].mxu1 %v17546_v56  ;;  %8078 = vmatmul.mubr.f32.vlgmr.msra.gmra.mrb[48].mxu0 %v17546_v56  ;;  %v19488_v56 = vld [vmem:[#allocation296_spill] sm:$0xff] }
0x1712   :  { %13214 = vmatpush1.bf16.msra.mxu1 %v19481_v53  ;;  %13342 = vmatpush1.bf16.msra.mxu0 %v19482_v12  ;;  %v19496_v53 = vld [vmem:[#allocation304_spill] sm:$0xff]  ;;  %v19497_v12 = vld [vmem:[#allocation305_spill] sm:$0xff] }
0x1713   :  { %13216 = vmatprep.subr.bf16.mxu1 %v16901_v13  ;;  %13344 = vmatprep.subr.bf16.mxu0 %v19483_v33  ;;  %v19491_v13 = vld [vmem:[#allocation299_spill] sm:$0xff]  ;;  %v19498_v33 = vld [vmem:[#allocation306_spill] sm:$0xff] }
0x1714   :  { %8152 = vmatprep.mubr.f32.mxu1 %v17556_v38  ;;  %8294 = vmatprep.mubr.f32.mxu0 %v17556_v38  ;;  %v19494_v38 = vld [vmem:[#allocation302_spill] sm:$0xff] }
0x1716   :  { %13218 = vmatpush1.bf16.msra.mxu1 %v19484_v45  ;;  %13346 = vmatpush1.bf16.msra.mxu0 %v19485_v15  ;;  %v19499_v45 = vld [vmem:[#allocation307_spill] sm:$0xff]  ;;  %v19500_v15 = vld [vmem:[#allocation308_spill] sm:$0xff] }
0x1717   :  { %13220 = vmatprep.subr.bf16.mxu1 %v19486_v44  ;;  %13348 = vmatprep.subr.bf16.mxu0 %v19487_v18  ;;  %v19501_v44 = vld [vmem:[#allocation309_spill] sm:$0xff]  ;;  %v19502_v18 = vld [vmem:[#allocation310_spill] sm:$0xff] }
0x171a   :  { %13222 = vmatpush1.bf16.msra.mxu1 %v19488_v56  ;;  %13350 = vmatpush1.bf16.msra.mxu0 %v19489_v29  ;;  %v19503_v56 = vld [vmem:[#allocation311_spill] sm:$0xff]  ;;  %v19504_v29 = vld [vmem:[#allocation312_spill] sm:$0xff] }
0x171b   :  { %13224 = vmatprep.subr.bf16.mxu1 %v19490_v19  ;;  %13352 = vmatprep.subr.bf16.mxu0 %v19491_v13  ;;  %v19505_v19 = vld [vmem:[#allocation313_spill] sm:$0xff]  ;;  %v19506_v13 = vld [vmem:[#allocation314_spill] sm:$0xff] }
0x171e   :  { %13226 = vmatpush1.bf16.msra.mxu1 %v19492_v8  ;;  %13354 = vmatpush1.bf16.msra.mxu0 %v19493_v11  ;;  %v19507_v8 = vld [vmem:[#allocation315_spill] sm:$0xff]  ;;  %v19508_v11 = vld [vmem:[#allocation316_spill] sm:$0xff] }
0x171f   :  { %13228 = vmatprep.subr.bf16.mxu1 %v19494_v38  ;;  %13356 = vmatprep.subr.bf16.mxu0 %v19495_v32  ;;  %v19509_v38 = vld [vmem:[#allocation317_spill] sm:$0xff]  ;;  %v19510_v32 = vld [vmem:[#allocation318_spill] sm:$0xff] }
0x1722   :  { %13230 = vmatpush1.bf16.msra.mxu1 %v19496_v53  ;;  %13358 = vmatpush1.bf16.msra.mxu0 %v19497_v12  ;;  %v19511_v53 = vld [vmem:[#allocation319_spill] sm:$0xff]  ;;  %v19512_v12 = vld [vmem:[#allocation320_spill] sm:$0xff] }
0x1723   :  { %13232 = vmatprep.subr.bf16.mxu1 %v19498_v33  ;;  %13360 = vmatprep.subr.bf16.mxu0 %v19499_v45  ;;  %v19513_v33 = vld [vmem:[#allocation321_spill] sm:$0xff]  ;;  %v19514_v45 = vld [vmem:[#allocation322_spill] sm:$0xff] }
0x1726   :  { %13234 = vmatpush1.bf16.msra.mxu1 %v19500_v15  ;;  %13362 = vmatpush1.bf16.msra.mxu0 %v19501_v44  ;;  %v19515_v15 = vld [vmem:[#allocation323_spill] sm:$0xff]  ;;  %v19516_v44 = vld [vmem:[#allocation324_spill] sm:$0xff] }
0x1727   :  { %13236 = vmatprep.subr.bf16.mxu1 %v19502_v18  ;;  %13364 = vmatprep.subr.bf16.mxu0 %v19503_v56  ;;  %v19517_v18 = vld [vmem:[#allocation325_spill] sm:$0xff]  ;;  %v19518_v56 = vld [vmem:[#allocation326_spill] sm:$0xff] }
0x172a   :  { %13238 = vmatpush1.bf16.msra.mxu1 %v19504_v29  ;;  %13366 = vmatpush1.bf16.msra.mxu0 %v19505_v19  ;;  %v19519_v29 = vld [vmem:[#allocation327_spill] sm:$0xff]  ;;  %v19520_v19 = vld [vmem:[#allocation328_spill] sm:$0xff] }
0x172b   :  { %13240 = vmatprep.subr.bf16.mxu1 %v19506_v13  ;;  %13368 = vmatprep.subr.bf16.mxu0 %v19507_v8  ;;  %v19521_v13 = vld [vmem:[#allocation329_spill] sm:$0xff]  ;;  %v19522_v8 = vld [vmem:[#allocation330_spill] sm:$0xff] }
0x172e   :  { %13242 = vmatpush1.bf16.msra.mxu1 %v19508_v11  ;;  %13370 = vmatpush1.bf16.msra.mxu0 %v19509_v38  ;;  %v19523_v11 = vld [vmem:[#allocation331_spill] sm:$0xff]  ;;  %v19524_v38 = vld [vmem:[#allocation332_spill] sm:$0xff] }
0x172f   :  { %13244 = vmatprep.subr.bf16.mxu1 %v19510_v32  ;;  %13372 = vmatprep.subr.bf16.mxu0 %v19511_v53  ;;  %v19525_v32 = vld [vmem:[#allocation333_spill] sm:$0xff]  ;;  %v19526_v53 = vld [vmem:[#allocation334_spill] sm:$0xff] }
0x1732   :  { %13246 = vmatpush1.bf16.msra.mxu1 %v19512_v12  ;;  %13374 = vmatpush1.bf16.msra.mxu0 %v19513_v33  ;;  %v19527_v12 = vld [vmem:[#allocation335_spill] sm:$0xff]  ;;  %v19528_v33 = vld [vmem:[#allocation336_spill] sm:$0xff] }
0x1733   :  { %13248 = vmatprep.subr.bf16.mxu1 %v19514_v45  ;;  %13376 = vmatprep.subr.bf16.mxu0 %v19515_v15  ;;  %v19529_v45 = vld [vmem:[#allocation337_spill] sm:$0xff]  ;;  %v19530_v15 = vld [vmem:[#allocation338_spill] sm:$0xff] }
0x1736   :  { %13250 = vmatpush1.bf16.msra.mxu1 %v19516_v44  ;;  %13378 = vmatpush1.bf16.msra.mxu0 %v19517_v18  ;;  %v19531_v44 = vld [vmem:[#allocation339_spill] sm:$0xff]  ;;  %v19532_v18 = vld [vmem:[#allocation340_spill] sm:$0xff] }
0x1737   :  { %13252 = vmatprep.subr.bf16.mxu1 %v19518_v56  ;;  %13380 = vmatprep.subr.bf16.mxu0 %v19519_v29  ;;  %v19533_v56 = vld [vmem:[#allocation341_spill] sm:$0xff]  ;;  %v19534_v29 = vld [vmem:[#allocation342_spill] sm:$0xff] }
0x173a   :  { %13254 = vmatpush1.bf16.msra.mxu1 %v19520_v19  ;;  %13382 = vmatpush1.bf16.msra.mxu0 %v19521_v13  ;;  %v19535_v19 = vld [vmem:[#allocation343_spill] sm:$0xff]  ;;  %v19536_v13 = vld [vmem:[#allocation344_spill] sm:$0xff] }
0x173b   :  { %13256 = vmatprep.subr.bf16.mxu1 %v19522_v8  ;;  %13384 = vmatprep.subr.bf16.mxu0 %v19523_v11  ;;  %v19537_v8 = vld [vmem:[#allocation345_spill] sm:$0xff]  ;;  %v19538_v11 = vld [vmem:[#allocation346_spill] sm:$0xff] }
0x173e   :  { %13258 = vmatpush1.bf16.msra.mxu1 %v19524_v38  ;;  %13386 = vmatpush1.bf16.msra.mxu0 %v19525_v32  ;;  %v19539_v38 = vld [vmem:[#allocation347_spill] sm:$0xff]  ;;  %v19540_v32 = vld [vmem:[#allocation348_spill] sm:$0xff] }
0x173f   :  { %13260 = vmatprep.subr.bf16.mxu1 %v19526_v53  ;;  %13388 = vmatprep.subr.bf16.mxu0 %v19527_v12  ;;  %v19541_v53 = vld [vmem:[#allocation349_spill] sm:$0xff]  ;;  %v19542_v12 = vld [vmem:[#allocation350_spill] sm:$0xff] }
0x1742   :  { %13262 = vmatpush1.bf16.msra.mxu1 %v19528_v33  ;;  %13390 = vmatpush1.bf16.msra.mxu0 %v19529_v45  ;;  %v19543_v33 = vld [vmem:[#allocation351_spill] sm:$0xff]  ;;  %v19544_v45 = vld [vmem:[#allocation352_spill] sm:$0xff] }
0x1743   :  { %13264 = vmatprep.subr.bf16.mxu1 %v19530_v15  ;;  %13392 = vmatprep.subr.bf16.mxu0 %v19531_v44  ;;  %v19545_v15 = vld [vmem:[#allocation353_spill] sm:$0xff]  ;;  %v19546_v44 = vld [vmem:[#allocation354_spill] sm:$0xff] }
0x1746   :  { %13266 = vmatpush1.bf16.msra.mxu1 %v19532_v18  ;;  %13394 = vmatpush1.bf16.msra.mxu0 %v19533_v56  ;;  %v19548_v18 = vld [vmem:[#allocation356_spill] sm:$0xff]  ;;  %v19549_v56 = vld [vmem:[#allocation357_spill] sm:$0xff] }
0x1747   :  { %13268 = vmatprep.subr.bf16.mxu1 %v19534_v29  ;;  %13396 = vmatprep.subr.bf16.mxu0 %v19535_v19  ;;  %v19551_v29 = vld [vmem:[#allocation359_spill] sm:$0xff]  ;;  %v19552_v19 = vld [vmem:[#allocation360_spill] sm:$0xff] }
0x174a   :  { %13270 = vmatpush1.bf16.msra.mxu1 %v19536_v13  ;;  %13398 = vmatpush1.bf16.msra.mxu0 %v19537_v8  ;;  %v19554_v13 = vld [vmem:[#allocation362_spill] sm:$0xff]  ;;  %v19555_v8 = vld [vmem:[#allocation363_spill] sm:$0xff] }
0x174b   :  { %13272 = vmatprep.subr.bf16.mxu1 %v19538_v11  ;;  %13400 = vmatprep.subr.bf16.mxu0 %v19539_v38  ;;  %v19557_v11 = vld [vmem:[#allocation365_spill] sm:$0xff]  ;;  %v19558_v38 = vld [vmem:[#allocation366_spill] sm:$0xff] }
0x174e   :  { %13274 = vmatpush1.bf16.msra.mxu1 %v19540_v32  ;;  %13402 = vmatpush1.bf16.msra.mxu0 %v19541_v53  ;;  %v19559_v32 = vld [vmem:[#allocation367_spill] sm:$0xff]  ;;  %v19560_v53 = vld [vmem:[#allocation368_spill] sm:$0xff] }
0x174f   :  { %13276 = vmatprep.subr.bf16.mxu1 %v17085_v23  ;;  %13404 = vmatprep.subr.bf16.mxu0 %v19542_v12  ;;  %v19547_v23 = vld [vmem:[#allocation355_spill] sm:$0xff]  ;;  %v19561_v12 = vld [vmem:[#allocation369_spill] sm:$0xff] }
0x1751   :  { %8153 = vmatmul.mubr.f32.vlgmr.msra.gmra.mrb[40].mxu1 %v17552_v39  ;;  %8295 = vmatmul.mubr.f32.vlgmr.msra.gmra.mrb[48].mxu0 %v17552_v39  ;;  %v19550_v39 = vld [vmem:[#allocation358_spill] sm:$0xff] }
0x1752   :  { %13278 = vmatpush1.bf16.msra.mxu1 %v19543_v33  ;;  %13406 = vmatpush1.bf16.msra.mxu0 %v19544_v45  ;;  %v19562_v33 = vld [vmem:[#allocation370_spill] sm:$0xff]  ;;  %v19563_v45 = vld [vmem:[#allocation371_spill] sm:$0xff] }
0x1753   :  { %13280 = vmatprep.subr.bf16.mxu1 %v17097_v24  ;;  %13408 = vmatprep.subr.bf16.mxu0 %v19545_v15  ;;  %v19553_v24 = vld [vmem:[#allocation361_spill] sm:$0xff]  ;;  %v19564_v15 = vld [vmem:[#allocation372_spill] sm:$0xff] }
0x1754   :  { %8223 = vmatprep.mubr.f32.mxu1 %v17572_v62  ;;  %8365 = vmatprep.mubr.f32.mxu0 %v17572_v62  ;;  %v19556_v62 = vld [vmem:[#allocation364_spill] sm:$0xff] }
0x1756   :  { %13282 = vmatpush1.bf16.msra.mxu1 %v19546_v44  ;;  %13410 = vmatpush1.bf16.msra.mxu0 %v19547_v23  ;;  %v19565_v44 = vld [vmem:[#allocation373_spill] sm:$0xff]  ;;  %v19566_v23 = vld [vmem:[#allocation374_spill] sm:$0xff] }
0x1757   :  { %13284 = vmatprep.subr.bf16.mxu1 %v19548_v18  ;;  %13412 = vmatprep.subr.bf16.mxu0 %v19549_v56  ;;  %v19567_v18 = vld [vmem:[#allocation375_spill] sm:$0xff]  ;;  %v19568_v56 = vld [vmem:[#allocation376_spill] sm:$0xff] }
0x175a   :  { %13286 = vmatpush1.bf16.msra.mxu1 %v19550_v39  ;;  %13414 = vmatpush1.bf16.msra.mxu0 %v19551_v29  ;;  %v19569_v39 = vld [vmem:[#allocation377_spill] sm:$0xff]  ;;  %v19570_v29 = vld [vmem:[#allocation378_spill] sm:$0xff] }
0x175b   :  { %13288 = vmatprep.subr.bf16.mxu1 %v19552_v19  ;;  %13416 = vmatprep.subr.bf16.mxu0 %v19553_v24  ;;  %v19571_v19 = vld [vmem:[#allocation379_spill] sm:$0xff]  ;;  %v19572_v24 = vld [vmem:[#allocation380_spill] sm:$0xff] }
0x175e   :  { %13290 = vmatpush1.bf16.msra.mxu1 %v19554_v13  ;;  %13418 = vmatpush1.bf16.msra.mxu0 %v19555_v8  ;;  %v19573_v13 = vld [vmem:[#allocation381_spill] sm:$0xff]  ;;  %v19574_v8 = vld [vmem:[#allocation382_spill] sm:$0xff] }
0x175f   :  { %13292 = vmatprep.subr.bf16.mxu1 %v19556_v62  ;;  %13420 = vmatprep.subr.bf16.mxu0 %v19557_v11  ;;  %v19575_v62 = vld [vmem:[#allocation383_spill] sm:$0xff]  ;;  %v19576_v11 = vld [vmem:[#allocation384_spill] sm:$0xff] }
0x1762   :  { %13294 = vmatpush1.bf16.msra.mxu1 %v19558_v38  ;;  %13422 = vmatpush1.bf16.msra.mxu0 %v19559_v32  ;;  %v19577_v38 = vld [vmem:[#allocation385_spill] sm:$0xff]  ;;  %v19578_v32 = vld [vmem:[#allocation386_spill] sm:$0xff] }
0x1763   :  { %13296 = vmatprep.subr.bf16.mxu1 %v19560_v53  ;;  %13424 = vmatprep.subr.bf16.mxu0 %v19561_v12  ;;  %v19579_v53 = vld [vmem:[#allocation387_spill] sm:$0xff]  ;;  %v19580_v12 = vld [vmem:[#allocation388_spill] sm:$0xff] }
0x1766   :  { %13298 = vmatpush1.bf16.msra.mxu1 %v19562_v33  ;;  %13426 = vmatpush1.bf16.msra.mxu0 %v19563_v45  ;;  %v19581_v33 = vld [vmem:[#allocation389_spill] sm:$0xff]  ;;  %v19582_v45 = vld [vmem:[#allocation390_spill] sm:$0xff] }
0x1767   :  { %13300 = vmatprep.subr.bf16.mxu1 %v19564_v15  ;;  %13428 = vmatprep.subr.bf16.mxu0 %v19565_v44  ;;  %v19583_v15 = vld [vmem:[#allocation391_spill] sm:$0xff]  ;;  %v19584_v44 = vld [vmem:[#allocation392_spill] sm:$0xff] }
0x176a   :  { %13302 = vmatpush1.bf16.msra.mxu1 %v19566_v23  ;;  %13430 = vmatpush1.bf16.msra.mxu0 %v19567_v18  ;;  %v19585_v23 = vld [vmem:[#allocation393_spill] sm:$0xff]  ;;  %v19586_v18 = vld [vmem:[#allocation394_spill] sm:$0xff] }
0x176b   :  { %13304 = vmatprep.subr.bf16.mxu1 %v19568_v56  ;;  %13432 = vmatprep.subr.bf16.mxu0 %v19569_v39  ;;  %v19587_v56 = vld [vmem:[#allocation395_spill] sm:$0xff]  ;;  %v19588_v39 = vld [vmem:[#allocation396_spill] sm:$0xff] }
0x176e   :  { %13306 = vmatpush1.bf16.msra.mxu1 %v19570_v29  ;;  %13434 = vmatpush1.bf16.msra.mxu0 %v19571_v19  ;;  %v19589_v29 = vld [vmem:[#allocation397_spill] sm:$0xff]  ;;  %v19590_v19 = vld [vmem:[#allocation398_spill] sm:$0xff] }
0x176f   :  { %13308 = vmatprep.subr.bf16.mxu1 %v19572_v24  ;;  %13436 = vmatprep.subr.bf16.mxu0 %v19573_v13  ;;  %v19591_v24 = vld [vmem:[#allocation399_spill] sm:$0xff]  ;;  %v19599_v13 = vld [vmem:[#allocation400_spill] sm:$0xff] }
0x1772   :  { %13310 = vmatpush1.bf16.msra.mxu1 %v19574_v8  ;;  %13438 = vmatpush1.bf16.msra.mxu0 %v19575_v62 }
0x1773   :  { %13312 = vmatprep.subr.bf16.mxu1 %v19576_v11  ;;  %13440 = vmatprep.subr.bf16.mxu0 %v19577_v38 }
0x1776   :  { %13314 = vmatpush1.bf16.msra.mxu1 %v19578_v32  ;;  %13442 = vmatpush1.bf16.msra.mxu0 %v19579_v53 }
0x1777   :  { %13316 = vmatprep.subr.bf16.mxu1 %v19580_v12  ;;  %13444 = vmatprep.subr.bf16.mxu0 %v19581_v33  ;;  %v19600_v12 = vld [vmem:[#allocation46_spill] sm:$0xff]  ;;  %v19601_v33 = vld [vmem:[#allocation47_spill] sm:$0xff] }
0x177a   :  { %13318 = vmatpush1.bf16.msra.mxu1 %v19582_v45  ;;  %13446 = vmatpush1.bf16.msra.mxu0 %v19583_v15  ;;  %v19602_v45 = vld [vmem:[#allocation52_spill] sm:$0xff]  ;;  %v19603_v15 = vld [vmem:[#allocation53_spill] sm:$0xff] }
0x177b   :  { %13320 = vmatprep.subr.bf16.mxu1 %v19584_v44  ;;  %13448 = vmatprep.subr.bf16.mxu0 %v19585_v23  ;;  %v19604_v44 = vld [vmem:[#allocation54_spill] sm:$0xff]  ;;  %v19605_v23 = vld [vmem:[#allocation55_spill] sm:$0xff] }
0x177e   :  { %13322 = vmatpush1.bf16.msra.mxu1 %v19586_v18  ;;  %13450 = vmatpush1.bf16.msra.mxu0 %v19587_v56  ;;  %v19606_v18 = vld [vmem:[#allocation56_spill] sm:$0xff]  ;;  %v19607_v56 = vld [vmem:[#allocation57_spill] sm:$0xff] }
0x177f   :  { %13324 = vmatprep.subr.bf16.mxu1 %v19588_v39  ;;  %13452 = vmatprep.subr.bf16.mxu0 %v19589_v29  ;;  %v19608_v39 = vld [vmem:[#allocation58_spill] sm:$0xff]  ;;  %v19609_v29 = vld [vmem:[#allocation59_spill] sm:$0xff] }
0x1782   :  { %13326 = vmatpush1.bf16.msra.mxu1 %v19590_v19  ;;  %13454 = vmatpush1.bf16.msra.mxu0 %v19591_v24  ;;  %v19610_v19 = vld [vmem:[#allocation60_spill] sm:$0xff]  ;;  %v19611_v24 = vld [vmem:[#allocation61_spill] sm:$0xff] }
0x1783   :  { %13328 = vmatprep.subr.bf16.mxu1 %v17245_v1  ;;  %13456 = vmatprep.subr.bf16.mxu0 %v17247_v34  ;;  %v19593_v1 = vld [vmem:[#allocation90_spill] sm:$0xff]  ;;  %v19594_v34 = vld [vmem:[#allocation92_spill] sm:$0xff] }
0x1786   :  { %13330 = vmatpush1.bf16.msra.mxu1 %v17251_v55  ;;  %13458 = vmatpush1.bf16.msra.mxu0 %v17253_v59  ;;  %v19595_v55 = vld [vmem:[#allocation94_spill] sm:$0xff]  ;;  %v19596_v59 = vld [vmem:[#allocation96_spill] sm:$0xff] }
0x1787   :  { %13332 = vmatprep.subr.bf16.mxu1 %v17257_v0  ;;  %13460 = vmatprep.subr.bf16.mxu0 %v17259_v4 }
0x178a   :  { %13334 = vmatpush1.bf16.msra.mxu1 %v17263_v16  ;;  %13462 = vmatpush1.bf16.msra.mxu0 %v17265_v40  ;;  %v19597_v16 = vld [vmem:[#allocation48_spill] sm:$0xff] }
0x178b   :  { %13336 = vmatprep.subr.bf16.mxu1 %v17269_v31  ;;  %13464 = vmatprep.subr.bf16.mxu0 %v17271_v9 }
0x178e   :  { %13338 = vmatpush1.bf16.msra.mxu1 %v17275_v57  ;;  %13466 = vmatpush1.bf16.msra.mxu0 %v17277_v50  ;;  %v19598_v57 = vld [vmem:[#allocation49_spill] sm:$0xff] }
0x178f   :  { %13468 = vmatprep.subr.bf16.mxu0 %v16056_v2 }
0x1791   :  { %8224 = vmatmul.mubr.f32.vlgmr.msra.gmra.mrb[40].mxu1 %v17568_v36  ;;  %8366 = vmatmul.mubr.f32.vlgmr.msra.gmra.mrb[48].mxu0 %v17568_v36  ;;  %v19592_v36 = vld [vmem:[#allocation88_spill] sm:$0xff] }
0x1792   :  { %8458 = vmatprep.mubr.f32.mxu1 %v19350_v52  ;;  %13470 = vmatpush1.bf16.msra.mxu0 %v16060_v27 }
0x1793   :  { %13472 = vmatprep.subr.bf16.mxu0 %v16066_v26 }
0x1796   :  { %13474 = vmatpush1.bf16.msra.mxu0 %v16074_v30 }
0x1797   :  { %13476 = vmatprep.subr.bf16.mxu0 %v16080_v42 }
0x179a   :  { %13478 = vmatpush1.bf16.msra.mxu0 %v16086_v25 }
0x179b   :  { %13480 = vmatprep.subr.bf16.mxu0 %v16092_v21 }
0x179e   :  { %13482 = vmatpush1.bf16.msra.mxu0 %v16098_v58 }
0x179f   :  { %13484 = vmatprep.subr.bf16.mxu0 %v16104_v35 }
0x17a2   :  { %13486 = vmatpush1.bf16.msra.mxu0 %v16110_v20 }
0x17a3   :  { %13488 = vmatprep.subr.bf16.mxu0 %v16116_v48 }
0x17a6   :  { %13490 = vmatpush1.bf16.msra.mxu0 %v16122_v54 }
0x17a7   :  { %13492 = vmatprep.subr.bf16.mxu0 %v16128_v49 }
0x17aa   :  { %13494 = vmatpush1.bf16.msra.mxu0 %v16134_v6 }
0x17ab   :  { %13496 = vmatprep.subr.bf16.mxu0 %v16140_v17 }
0x17ae   :  { %13498 = vmatpush1.bf16.msra.mxu0 %v16146_v28 }
0x17af   :  { %13500 = vmatprep.subr.bf16.mxu0 %v16152_v41 }
0x17b2   :  { %13502 = vmatpush1.bf16.msra.mxu0 %v19250_v51 }
0x17b3   :  { %13504 = vmatprep.subr.bf16.mxu0 %v19252_v5 }
0x17b6   :  { %13506 = vmatpush1.bf16.msra.mxu0 %v19254_v60 }
0x17b7   :  { %13508 = vmatprep.subr.bf16.mxu0 %v19256_v46 }
0x17ba   :  { %13510 = vmatpush1.bf16.msra.mxu0 %v19258_v7 }
0x17bb   :  { %13512 = vmatprep.subr.bf16.mxu0 %v19260_v43 }
0x17be   :  { %13514 = vmatpush1.bf16.msra.mxu0 %v19262_v47  ;;  %v19638_v47 = vld [vmem:[#allocation101_spill] sm:$0xff] }
0x17bf   :  { %13516 = vmatprep.subr.bf16.mxu0 %v19264_v37 }
0x17c2   :  { %13518 = vmatpush1.bf16.msra.mxu0 %v19266_v10 }
0x17c3   :  { %13520 = vmatprep.subr.bf16.mxu0 %v19268_v22 }
0x17c6   :  { %13522 = vmatpush1.bf16.msra.mxu0 %v19270_v14 }
0x17c7   :  { %13524 = vmatprep.subr.bf16.mxu0 %v19592_v36 }
0x17ca   :  { %13526 = vmatpush1.bf16.msra.mxu0 %v19593_v1  ;;  %v19634_v1 = vld [vmem:[#allocation97_spill] sm:$0xff] }
0x17cb   :  { %13528 = vmatprep.subr.bf16.mxu0 %v19594_v34  ;;  %v19633_v34 = vld [vmem:[#allocation95_spill] sm:$0xff] }
0x17ce   :  { %13530 = vmatpush1.bf16.msra.mxu0 %v19595_v55  ;;  %v19632_v55 = vld [vmem:[#allocation93_spill] sm:$0xff] }
0x17cf   :  { %13532 = vmatprep.subr.bf16.mxu0 %v19596_v59  ;;  %v19631_v59 = vld [vmem:[#allocation91_spill] sm:$0xff] }
0x1864   :  { %v8225_v0 = vpop.f32.mrb[40].mxu1  ;;  %v8367_v4 = vpop.f32.mrb[48].mxu0 }
0x1865   :  { %v14357_v40 = vadd.f32 %v8225_v0, %v19597_v16  ;;  %v8227_v31 = vpop.f32.mrb[41].mxu1  ;;  %v8369_v9 = vpop.f32.mrb[49].mxu0  ;;  %v14359_v62 = vadd.f32 %v8367_v4, %v17440_v3  ;;  %v19612_v0 = vld [vmem:[#allocation62_spill] sm:$0xff]  ;;  %v19613_v4 = vld [vmem:[#allocation63_spill] sm:$0xff]  ;;  %v19630_v16 = vld [vmem:[#allocation89_spill] sm:$0xff] }
0x1866   :  { %v14358_v50 = vadd.f32 %v8227_v31, %v19598_v57  ;;  %v14360_v8 = vadd.f32 %v8369_v9, %v19599_v13  ;;  %v19615_v31 = vld [vmem:[#allocation42_spill] sm:$0xff]  ;;  %v19616_v9 = vld [vmem:[#allocation43_spill] sm:$0xff]  ;;  %v19628_v13 = vld [vmem:[#allocation85_spill] sm:$0xff] }
0x1867   :  { %v8376_v38 = vmax.f32 %v14357_v40, 0.0  ;;  %v8378_v53 = vmax.f32 %v14359_v62, 0.0  ;;  %v19614_v40 = vld [vmem:[#allocation64_spill] sm:$0xff]  ;;  %v19619_v62 = vld [vmem:[#allocation67_spill] sm:$0xff] }
0x1868   :  { %v8377_v11 = vmax.f32 %v14358_v50, 0.0  ;;  %v8379_v32 = vmax.f32 %v14360_v8, 0.0  ;;  %v19617_v50 = vld [vmem:[#allocation44_spill] sm:$0xff]  ;;  %v19618_v8 = vld [vmem:[#allocation65_spill] sm:$0xff]  ;;  %v19627_v3 = vld [vmem:[#allocation83_spill] sm:$0xff] }
0x1869   :  { %v19629_v57 = vld [vmem:[#allocation87_spill] sm:$0xff] }
0x186a   :  { %10064 = vmatprep.subr.msk.mxu1 %vm339_vm0, %v8377_v11 }
0x186b   :  { %10065 = vmatpush1.msk.msra.mxu1 %vm339_vm0, %v8376_v38 }
0x186c   :  { %10066 = vmatmul.mubr.msk.f32.vlgmr.msra.gmra.mrb[50].mxu1 %vm326_vm1, %v19600_v12  ;;  %10067 = vmatprep.subr.msk.mxu1 %vm339_vm0, %v8379_v32 }
0x186d   :  { %10068 = vmatpush1.msk.msra.mxu1 %vm339_vm0, %v8378_v53  ;;  %8529 = vmatprep.mubr.f32.mxu1 %v19350_v52 }
0x186e   :  { %10070 = vmatprep.subr.msk.mxu1 %vm339_vm0, %v8377_v11  ;;  %v19620_v11 = vld [vmem:[#allocation69_spill] sm:$0xff] }
0x1870   :  { %10069 = vmatmul.mubr.msk.f32.vlgmr.msra.gmra.mrb[52].mxu1 %vm326_vm1, %v19600_v12  ;;  %v19624_v12 = vld [vmem:[#allocation77_spill] sm:$0xff] }
0x1871   :  { %10071 = vmatpush1.msk.msra.mxu1 %vm339_vm0, %v8376_v38  ;;  %8602 = vmatprep.mubr.f32.mxu1 %v19350_v52  ;;  %v19621_v38 = vld [vmem:[#allocation71_spill] sm:$0xff] }
0x1872   :  { %10073 = vmatprep.subr.msk.mxu1 %vm339_vm0, %v8379_v32  ;;  %v19622_v32 = vld [vmem:[#allocation73_spill] sm:$0xff] }
0x1874   :  { %10072 = vmatmul.mubr.msk.f32.vlgmr.msra.gmra.mrb[54].mxu1 %vm326_vm1, %v19601_v33 }
0x1875   :  { %10074 = vmatpush1.msk.msra.mxu1 %vm339_vm0, %v8378_v53  ;;  %8673 = vmatprep.mubr.f32.mxu1 %v19350_v52  ;;  %v19623_v53 = vld [vmem:[#allocation75_spill] sm:$0xff]  ;;  %v19626_v52 = vld [vmem:[#allocation81_spill] sm:$0xff]  ;;  %vm9939_vm0 = vcmask 1024  }
0x1876   :  { %13596 = vmatprep.subr.bf16.mxu1 %v19602_v45 }
0x1878   :  { %10075 = vmatmul.mubr.msk.f32.vlgmr.msra.gmra.mrb[56].mxu1 %vm326_vm1, %v19601_v33  ;;  %v19625_v33 = vld [vmem:[#allocation79_spill] sm:$0xff] }
0x1879   :  { %13598 = vmatpush1.bf16.msra.mxu1 %v19603_v15 }
0x187a   :  { %13600 = vmatprep.subr.bf16.mxu1 %v19604_v44 }
0x187d   :  { %13602 = vmatpush1.bf16.msra.mxu1 %v19605_v23 }
0x187e   :  { %13604 = vmatprep.subr.bf16.mxu1 %v19606_v18 }
0x1881   :  { %13606 = vmatpush1.bf16.msra.mxu1 %v19607_v56 }
0x1882   :  { %13608 = vmatprep.subr.bf16.mxu1 %v19608_v39 }
0x1885   :  { %13610 = vmatpush1.bf16.msra.mxu1 %v19609_v29 }
0x1886   :  { %13612 = vmatprep.subr.bf16.mxu1 %v19610_v19 }
0x1889   :  { %13614 = vmatpush1.bf16.msra.mxu1 %v19611_v24 }
0x188a   :  { %13616 = vmatprep.subr.bf16.mxu1 %v19612_v0 }
0x188d   :  { %13618 = vmatpush1.bf16.msra.mxu1 %v19613_v4 }
0x188e   :  { %13620 = vmatprep.subr.bf16.mxu1 %v19614_v40 }
0x1891   :  { %13622 = vmatpush1.bf16.msra.mxu1 %v19615_v31 }
0x1892   :  { %13624 = vmatprep.subr.bf16.mxu1 %v19616_v9 }
0x1895   :  { %13626 = vmatpush1.bf16.msra.mxu1 %v19617_v50 }
0x1896   :  { %13628 = vmatprep.subr.bf16.mxu1 %v19618_v8 }
0x1899   :  { %13630 = vmatpush1.bf16.msra.mxu1 %v19619_v62 }
0x189a   :  { %13632 = vmatprep.subr.bf16.mxu1 %v19620_v11 }
0x189d   :  { %13634 = vmatpush1.bf16.msra.mxu1 %v19621_v38 }
0x189e   :  { %13636 = vmatprep.subr.bf16.mxu1 %v19622_v32 }
0x18a1   :  { %13638 = vmatpush1.bf16.msra.mxu1 %v19623_v53 }
0x18a2   :  { %13640 = vmatprep.subr.bf16.mxu1 %v19624_v12 }
0x18a5   :  { %13642 = vmatpush1.bf16.msra.mxu1 %v19625_v33 }
0x18a6   :  { %13644 = vmatprep.subr.bf16.mxu1 %v19626_v52 }
0x18a9   :  { %13646 = vmatpush1.bf16.msra.mxu1 %v19627_v3 }
0x18aa   :  { %13648 = vmatprep.subr.bf16.mxu1 %v19628_v13 }
0x18ad   :  { %13650 = vmatpush1.bf16.msra.mxu1 %v19629_v57  ;;  %v19637_v57 = vld [vmem:[#allocation100_spill] sm:$0xff] }
0x18ae   :  { %13652 = vmatprep.subr.bf16.mxu1 %v19630_v16 }
0x18b1   :  { %13654 = vmatpush1.bf16.msra.mxu1 %v19631_v59 }
0x18b2   :  { %13656 = vmatprep.subr.bf16.mxu1 %v19632_v55 }
0x18b5   :  { %13658 = vmatpush1.bf16.msra.mxu1 %v19633_v34  ;;  %v19635_v34 = vld [vmem:[#allocation98_spill] sm:$0xff] }
0x18b6   :  { %13660 = vmatprep.subr.bf16.mxu1 %v19634_v1  ;;  %v19636_v1 = vld [vmem:[#allocation99_spill] sm:$0xff] }
0x193f   :  { %v8460_v36 = vpop.f32.mrb[50].mxu1 }
0x1940   :  { %v8462_v14 = vpop.f32.mrb[51].mxu1 }
0x1943   :  { %v8531_v22 = vpop.f32.mrb[52].mxu1 }
0x1944   :  { %v8533_v10 = vpop.f32.mrb[53].mxu1 }
0x1947   :  { %v8604_v52 = vpop.f32.mrb[54].mxu1 }
0x1948   :  { %v8680_v3 = vmax.f32 %v8460_v36, %v8604_v52  ;;  %v8606_v37 = vpop.f32.mrb[55].mxu1  ;;  %v19642_v52 = vld [vmem:[#allocation105_spill] sm:$0xff]  ;;  %v19645_v36 = vld [vmem:[#allocation108_spill] sm:$0xff] }
0x1949   :  { %v8681_v13 = vmax.f32 %v8462_v14, %v8606_v37  ;;  %v19639_v37 = vld [vmem:[#allocation102_spill] sm:$0xff]  ;;  %v19640_v14 = vld [vmem:[#allocation103_spill] sm:$0xff] }
0x194b   :  { %v8675_v33 = vpop.f32.mrb[56].mxu1  ;;  %8748 = vmatprep.mubr.f32.mxu0 %v8681_v13  ;;  %8890 = vmatprep.mubr.f32.mxu1 %v8681_v13  ;;  %v19647_v13 = vld [vmem:[#allocation110_spill] sm:$0xff] }
0x194c   :  { %v17844_v16 = vmax.f32 %v8531_v22, %v8675_v33  ;;  %v8677_v59 = vpop.f32.mrb[57].mxu1  ;;  %8749 = vmatmul.mubr.f32.vlgmr.msra.gmra.mrb[50].mxu0 %v8680_v3  ;;  %8891 = vmatmul.mubr.f32.vlgmr.msra.gmra.mrb[58].mxu1 %v8680_v3  ;;  %v19641_v22 = vld [vmem:[#allocation104_spill] sm:$0xff]  ;;  %v19643_v3 = vld [vmem:[#allocation106_spill] sm:$0xff]  ;;  %v19648_v33 = vld [vmem:[#allocation111_spill] sm:$0xff] }
0x194d   :  { %v8683_v55 = vmax.f32 %v8533_v10, %v8677_v59  ;;  %13534 = vmatpush1.bf16.msra.mxu0 %v19635_v34  ;;  %13662 = vmatpush1.bf16.msra.mxu1 %v19636_v1  ;;  %v19644_v10 = vld [vmem:[#allocation107_spill] sm:$0xff]  ;;  %v19646_v59 = vld [vmem:[#allocation109_spill] sm:$0xff] }
0x194e   :  { %13536 = vmatprep.subr.bf16.mxu0 %v19637_v57  ;;  %13664 = vmatprep.subr.bf16.mxu1 %v19638_v47 }
0x194f   :  { %8819 = vmatprep.mubr.f32.mxu0 %v8683_v55  ;;  %8961 = vmatprep.mubr.f32.mxu1 %v8683_v55  ;;  %v19649_v55 = vld [vmem:[#allocation112_spill] sm:$0xff] }
0x1951   :  { %13538 = vmatpush1.bf16.msra.mxu0 %v19639_v37  ;;  %13666 = vmatpush1.bf16.msra.mxu1 %v19640_v14  ;;  %v19650_v37 = vld [vmem:[#allocation113_spill] sm:$0xff]  ;;  %v19651_v14 = vld [vmem:[#allocation114_spill] sm:$0xff] }
0x1952   :  { %13540 = vmatprep.subr.bf16.mxu0 %v19641_v22  ;;  %13668 = vmatprep.subr.bf16.mxu1 %v19642_v52  ;;  %v19652_v22 = vld [vmem:[#allocation115_spill] sm:$0xff]  ;;  %v19653_v52 = vld [vmem:[#allocation116_spill] sm:$0xff] }
0x1955   :  { %13542 = vmatpush1.bf16.msra.mxu0 %v19643_v3  ;;  %13670 = vmatpush1.bf16.msra.mxu1 %v19644_v10  ;;  %v19654_v3 = vld [vmem:[#allocation117_spill] sm:$0xff]  ;;  %v19655_v10 = vld [vmem:[#allocation118_spill] sm:$0xff] }
0x1956   :  { %13544 = vmatprep.subr.bf16.mxu0 %v19645_v36  ;;  %13672 = vmatprep.subr.bf16.mxu1 %v19646_v59  ;;  %v19656_v36 = vld [vmem:[#allocation119_spill] sm:$0xff]  ;;  %v19657_v59 = vld [vmem:[#allocation120_spill] sm:$0xff] }
0x1959   :  { %13546 = vmatpush1.bf16.msra.mxu0 %v19647_v13  ;;  %13674 = vmatpush1.bf16.msra.mxu1 %v19648_v33  ;;  %v19658_v13 = vld [vmem:[#allocation121_spill] sm:$0xff]  ;;  %v19659_v33 = vld [vmem:[#allocation122_spill] sm:$0xff] }
0x195a   :  { %13548 = vmatprep.subr.bf16.mxu0 %v19649_v55  ;;  %13676 = vmatprep.subr.bf16.mxu1 %v19650_v37  ;;  %v19660_v55 = vld [vmem:[#allocation123_spill] sm:$0xff]  ;;  %v19661_v37 = vld [vmem:[#allocation124_spill] sm:$0xff] }
0x195d   :  { %13550 = vmatpush1.bf16.msra.mxu0 %v19651_v14  ;;  %13678 = vmatpush1.bf16.msra.mxu1 %v19652_v22  ;;  %v19662_v14 = vld [vmem:[#allocation125_spill] sm:$0xff]  ;;  %v19663_v22 = vld [vmem:[#allocation126_spill] sm:$0xff] }
0x195e   :  { %13552 = vmatprep.subr.bf16.mxu0 %v19653_v52  ;;  %13680 = vmatprep.subr.bf16.mxu1 %v19654_v3  ;;  %v19664_v52 = vld [vmem:[#allocation127_spill] sm:$0xff]  ;;  %v19665_v3 = vld [vmem:[#allocation128_spill] sm:$0xff] }
0x1961   :  { %13554 = vmatpush1.bf16.msra.mxu0 %v19655_v10  ;;  %13682 = vmatpush1.bf16.msra.mxu1 %v19656_v36  ;;  %v19666_v10 = vld [vmem:[#allocation129_spill] sm:$0xff]  ;;  %v19667_v36 = vld [vmem:[#allocation130_spill] sm:$0xff] }
0x1962   :  { %13556 = vmatprep.subr.bf16.mxu0 %v19657_v59  ;;  %13684 = vmatprep.subr.bf16.mxu1 %v19658_v13  ;;  %v19668_v59 = vld [vmem:[#allocation131_spill] sm:$0xff]  ;;  %v19669_v13 = vld [vmem:[#allocation132_spill] sm:$0xff] }
0x1965   :  { %13558 = vmatpush1.bf16.msra.mxu0 %v19659_v33  ;;  %13686 = vmatpush1.bf16.msra.mxu1 %v19660_v55  ;;  %v19670_v55 = vld [vmem:[#allocation134_spill] sm:$0xff] }
0x1966   :  { %13560 = vmatprep.subr.bf16.mxu0 %v19661_v37  ;;  %13688 = vmatprep.subr.bf16.mxu1 %v19662_v14  ;;  %v19671_v37 = vld [vmem:[#allocation135_spill] sm:$0xff]  ;;  %v19672_v14 = vld [vmem:[#allocation136_spill] sm:$0xff] }
0x1969   :  { %13562 = vmatpush1.bf16.msra.mxu0 %v19663_v22  ;;  %13690 = vmatpush1.bf16.msra.mxu1 %v19664_v52  ;;  %v19673_v52 = vld [vmem:[#allocation138_spill] sm:$0xff] }
0x196a   :  { %13564 = vmatprep.subr.bf16.mxu0 %v19665_v3  ;;  %13692 = vmatprep.subr.bf16.mxu1 %v19666_v10  ;;  %v19674_v3 = vld [vmem:[#allocation139_spill] sm:$0xff]  ;;  %v19675_v10 = vld [vmem:[#allocation140_spill] sm:$0xff] }
0x196d   :  { %13566 = vmatpush1.bf16.msra.mxu0 %v19667_v36  ;;  %13694 = vmatpush1.bf16.msra.mxu1 %v19668_v59  ;;  %v19676_v36 = vld [vmem:[#allocation141_spill] sm:$0xff]  ;;  %v19677_v59 = vld [vmem:[#allocation142_spill] sm:$0xff] }
0x196e   :  { %13568 = vmatprep.subr.bf16.mxu0 %v19669_v13  ;;  %13696 = vmatprep.subr.bf16.mxu1 %v19323_v61  ;;  %v19678_v13 = vld [vmem:[#allocation143_spill] sm:$0xff]  ;;  %v19679_v61 = vld [vmem:[#allocation144_spill] sm:$0xff] }
0x1971   :  { %13570 = vmatpush1.bf16.msra.mxu0 %v19670_v55  ;;  %13698 = vmatpush1.bf16.msra.mxu1 %v19671_v37  ;;  %v19680_v55 = vld [vmem:[#allocation145_spill] sm:$0xff]  ;;  %v19681_v37 = vld [vmem:[#allocation146_spill] sm:$0xff] }
0x1972   :  { %13572 = vmatprep.subr.bf16.mxu0 %v19672_v14  ;;  %13700 = vmatprep.subr.bf16.mxu1 %v19327_v63  ;;  %v19682_v14 = vld [vmem:[#allocation147_spill] sm:$0xff]  ;;  %v19683_v63 = vld [vmem:[#allocation148_spill] sm:$0xff] }
0x1975   :  { %13574 = vmatpush1.bf16.msra.mxu0 %v19673_v52  ;;  %13702 = vmatpush1.bf16.msra.mxu1 %v19674_v3  ;;  %v19684_v52 = vld [vmem:[#allocation149_spill] sm:$0xff]  ;;  %v19685_v3 = vld [vmem:[#allocation150_spill] sm:$0xff] }
0x1976   :  { %13576 = vmatprep.subr.bf16.mxu0 %v19675_v10  ;;  %13704 = vmatprep.subr.bf16.mxu1 %v19676_v36  ;;  %v19686_v10 = vld [vmem:[#allocation151_spill] sm:$0xff]  ;;  %v19687_v36 = vld [vmem:[#allocation152_spill] sm:$0xff] }
0x1979   :  { %13578 = vmatpush1.bf16.msra.mxu0 %v19677_v59  ;;  %13706 = vmatpush1.bf16.msra.mxu1 %v19678_v13  ;;  %v19688_v59 = vld [vmem:[#allocation153_spill] sm:$0xff]  ;;  %v19689_v13 = vld [vmem:[#allocation154_spill] sm:$0xff] }
0x197a   :  { %13580 = vmatprep.subr.bf16.mxu0 %v19679_v61  ;;  %13708 = vmatprep.subr.bf16.mxu1 %v19680_v55  ;;  %v19690_v61 = vld [vmem:[#allocation155_spill] sm:$0xff]  ;;  %v19691_v55 = vld [vmem:[#allocation156_spill] sm:$0xff] }
0x197d   :  { %13582 = vmatpush1.bf16.msra.mxu0 %v19681_v37  ;;  %13710 = vmatpush1.bf16.msra.mxu1 %v19682_v14  ;;  %v19692_v37 = vld [vmem:[#allocation157_spill] sm:$0xff]  ;;  %v19693_v14 = vld [vmem:[#allocation158_spill] sm:$0xff] }
0x197e   :  { %13584 = vmatprep.subr.bf16.mxu0 %v19683_v63  ;;  %13712 = vmatprep.subr.bf16.mxu1 %v19684_v52  ;;  %v19694_v63 = vld [vmem:[#allocation159_spill] sm:$0xff] }
0x1981   :  { %13586 = vmatpush1.bf16.msra.mxu0 %v19685_v3  ;;  %13714 = vmatpush1.bf16.msra.mxu1 %v19686_v10 }
0x1982   :  { %13588 = vmatprep.subr.bf16.mxu0 %v19687_v36  ;;  %13716 = vmatprep.subr.bf16.mxu1 %v19688_v59 }
0x1985   :  { %13590 = vmatpush1.bf16.msra.mxu0 %v19689_v13  ;;  %13718 = vmatpush1.bf16.msra.mxu1 %v19690_v61 }
0x1986   :  { %13592 = vmatprep.subr.bf16.mxu0 %v19691_v55  ;;  %13720 = vmatprep.subr.bf16.mxu1 %v19692_v37 }
0x1989   :  { %13594 = vmatpush1.bf16.msra.mxu0 %v19693_v14  ;;  %13722 = vmatpush1.bf16.msra.mxu1 %v19694_v63 }
0x198a   :  { %13724 = vmatprep.subr.bf16.mxu0 %v16056_v2  ;;  %13852 = vmatprep.subr.bf16.mxu1 %v19602_v45 }
0x198c   :  { %8820 = vmatmul.mubr.f32.vlgmr.msra.gmra.mrb[50].mxu0 %v17844_v16  ;;  %8962 = vmatmul.mubr.f32.vlgmr.msra.gmra.mrb[58].mxu1 %v17844_v16  ;;  %v19695_v16 = vld [vmem:[#allocation78_spill] sm:$0xff] }
0x198d   :  { %13726 = vmatpush1.bf16.msra.mxu0 %v16060_v27  ;;  %13854 = vmatpush1.bf16.msra.mxu1 %v19603_v15 }
0x198e   :  { %13728 = vmatprep.subr.bf16.mxu0 %v16066_v26  ;;  %13856 = vmatprep.subr.bf16.mxu1 %v19604_v44 }
0x1991   :  { %13730 = vmatpush1.bf16.msra.mxu0 %v16074_v30  ;;  %13858 = vmatpush1.bf16.msra.mxu1 %v19605_v23 }
0x1992   :  { %13732 = vmatprep.subr.bf16.mxu0 %v16080_v42  ;;  %13860 = vmatprep.subr.bf16.mxu1 %v19606_v18 }
0x1995   :  { %13734 = vmatpush1.bf16.msra.mxu0 %v16086_v25  ;;  %13862 = vmatpush1.bf16.msra.mxu1 %v19607_v56 }
0x1996   :  { %13736 = vmatprep.subr.bf16.mxu0 %v16092_v21  ;;  %13864 = vmatprep.subr.bf16.mxu1 %v19608_v39 }
0x1999   :  { %13738 = vmatpush1.bf16.msra.mxu0 %v16098_v58  ;;  %13866 = vmatpush1.bf16.msra.mxu1 %v19609_v29 }
0x199a   :  { %13740 = vmatprep.subr.bf16.mxu0 %v16104_v35  ;;  %13868 = vmatprep.subr.bf16.mxu1 %v19610_v19 }
0x199d   :  { %13742 = vmatpush1.bf16.msra.mxu0 %v16110_v20  ;;  %13870 = vmatpush1.bf16.msra.mxu1 %v19611_v24 }
0x199e   :  { %13744 = vmatprep.subr.bf16.mxu0 %v16116_v48  ;;  %13872 = vmatprep.subr.bf16.mxu1 %v19612_v0 }
0x19a1   :  { %13746 = vmatpush1.bf16.msra.mxu0 %v16122_v54  ;;  %13874 = vmatpush1.bf16.msra.mxu1 %v19613_v4 }
0x19a2   :  { %13748 = vmatprep.subr.bf16.mxu0 %v16128_v49  ;;  %13876 = vmatprep.subr.bf16.mxu1 %v19614_v40 }
0x19a5   :  { %13750 = vmatpush1.bf16.msra.mxu0 %v16134_v6  ;;  %13878 = vmatpush1.bf16.msra.mxu1 %v19615_v31 }
0x19a6   :  { %13752 = vmatprep.subr.bf16.mxu0 %v16140_v17  ;;  %13880 = vmatprep.subr.bf16.mxu1 %v19616_v9 }
0x19a9   :  { %13754 = vmatpush1.bf16.msra.mxu0 %v16146_v28  ;;  %13882 = vmatpush1.bf16.msra.mxu1 %v19617_v50 }
0x19aa   :  { %13756 = vmatprep.subr.bf16.mxu0 %v16152_v41  ;;  %13884 = vmatprep.subr.bf16.mxu1 %v19618_v8 }
0x19ad   :  { %13758 = vmatpush1.bf16.msra.mxu0 %v19250_v51  ;;  %13886 = vmatpush1.bf16.msra.mxu1 %v19619_v62 }
0x19ae   :  { %13760 = vmatprep.subr.bf16.mxu0 %v19252_v5  ;;  %13888 = vmatprep.subr.bf16.mxu1 %v19620_v11  ;;  %v19696_v5 = vld [vmem:[#allocation79_spill] sm:$0xff]  ;;  %v19697_v11 = vld [vmem:[#allocation80_spill] sm:$0xff] }
0x19b1   :  { %13762 = vmatpush1.bf16.msra.mxu0 %v19254_v60  ;;  %13890 = vmatpush1.bf16.msra.mxu1 %v19621_v38  ;;  %v19698_v60 = vld [vmem:[#allocation81_spill] sm:$0xff]  ;;  %v19699_v38 = vld [vmem:[#allocation82_spill] sm:$0xff] }
0x19b2   :  { %13764 = vmatprep.subr.bf16.mxu0 %v19256_v46  ;;  %13892 = vmatprep.subr.bf16.mxu1 %v19622_v32  ;;  %v19700_v46 = vld [vmem:[#allocation83_spill] sm:$0xff]  ;;  %v19701_v32 = vld [vmem:[#allocation84_spill] sm:$0xff] }
0x19b5   :  { %13766 = vmatpush1.bf16.msra.mxu0 %v19258_v7  ;;  %13894 = vmatpush1.bf16.msra.mxu1 %v19623_v53  ;;  %v19702_v7 = vld [vmem:[#allocation85_spill] sm:$0xff]  ;;  %v19703_v53 = vld [vmem:[#allocation86_spill] sm:$0xff] }
0x19b6   :  { %13768 = vmatprep.subr.bf16.mxu0 %v19260_v43  ;;  %13896 = vmatprep.subr.bf16.mxu1 %v19624_v12  ;;  %v19704_v43 = vld [vmem:[#allocation87_spill] sm:$0xff]  ;;  %v19705_v12 = vld [vmem:[#allocation88_spill] sm:$0xff] }
0x19b9   :  { %13770 = vmatpush1.bf16.msra.mxu0 %v19695_v16  ;;  %13898 = vmatpush1.bf16.msra.mxu1 %v19696_v5  ;;  %v19706_v16 = vld [vmem:[#allocation89_spill] sm:$0xff]  ;;  %v19707_v5 = vld [vmem:[#allocation90_spill] sm:$0xff] }
0x19ba   :  { %13772 = vmatprep.subr.bf16.mxu0 %v19697_v11  ;;  %13900 = vmatprep.subr.bf16.mxu1 %v19698_v60  ;;  %v19708_v11 = vld [vmem:[#allocation91_spill] sm:$0xff]  ;;  %v19709_v60 = vld [vmem:[#allocation92_spill] sm:$0xff] }
0x19bd   :  { %13774 = vmatpush1.bf16.msra.mxu0 %v19699_v38  ;;  %13902 = vmatpush1.bf16.msra.mxu1 %v19700_v46  ;;  %v19710_v38 = vld [vmem:[#allocation93_spill] sm:$0xff]  ;;  %v19711_v46 = vld [vmem:[#allocation94_spill] sm:$0xff] }
0x19be   :  { %13776 = vmatprep.subr.bf16.mxu0 %v19701_v32  ;;  %13904 = vmatprep.subr.bf16.mxu1 %v19702_v7  ;;  %v19712_v32 = vld [vmem:[#allocation95_spill] sm:$0xff]  ;;  %v19713_v7 = vld [vmem:[#allocation96_spill] sm:$0xff] }
0x19c1   :  { %13778 = vmatpush1.bf16.msra.mxu0 %v19703_v53  ;;  %13906 = vmatpush1.bf16.msra.mxu1 %v19704_v43  ;;  %v19714_v53 = vld [vmem:[#allocation97_spill] sm:$0xff] }
0x19c2   :  { %13780 = vmatprep.subr.bf16.mxu0 %v19705_v12  ;;  %13908 = vmatprep.subr.bf16.mxu1 %v19706_v16  ;;  %v19715_v16 = vld [vmem:[#allocation48_spill] sm:$0xff] }
0x19c5   :  { %13782 = vmatpush1.bf16.msra.mxu0 %v19707_v5  ;;  %13910 = vmatpush1.bf16.msra.mxu1 %v19708_v11  ;;  %v19716_v11 = vld [vmem:[#allocation49_spill] sm:$0xff] }
0x19c6   :  { %13784 = vmatprep.subr.bf16.mxu0 %v19709_v60  ;;  %13912 = vmatprep.subr.bf16.mxu1 %v19710_v38  ;;  %v19717_v60 = vld [vmem:[#allocation400_spill] sm:$0xff] }
0x19c9   :  { %13786 = vmatpush1.bf16.msra.mxu0 %v19711_v46  ;;  %13914 = vmatpush1.bf16.msra.mxu1 %v19712_v32 }
0x19ca   :  { %13788 = vmatprep.subr.bf16.mxu0 %v19713_v7  ;;  %13916 = vmatprep.subr.bf16.mxu1 %v19714_v53 }
0x1a5f   :  { %v8821_v43 = vpop.f32.mrb[50].mxu0  ;;  %v17976_v12 = vpop.f32.mrb[58].mxu1 }
0x1a60   :  { %v14361_v62 = vadd.f32 %v8821_v43, %v19715_v16  ;;  %v8823_v5 = vpop.f32.mrb[51].mxu0  ;;  %v8965_v51 = vpop.f32.mrb[59].mxu1  ;;  %v19718_v43 = vld [vmem:[#allocation102_spill] sm:$0xff] }
0x1a61   :  { %v14362_v8 = vadd.f32 %v8823_v5, %v19716_v11  ;;  %v14364_v41 = vadd.f32 %v8965_v51, %v19717_v60  ;;  %v19719_v51 = vld [vmem:[#allocation103_spill] sm:$0xff]  ;;  %v19720_v5 = vld [vmem:[#allocation104_spill] sm:$0xff] }
0x1a62   :  { %v8968_v50 = vmax.f32 %v14361_v62, 0.0  ;;  %v19724_v62 = vld [vmem:[#allocation108_spill] sm:$0xff] }
0x1a63   :  { %v8969_v38 = vmax.f32 %v14362_v8, 0.0  ;;  %v8971_v32 = vmax.f32 %v14364_v41, 0.0  ;;  %v19721_v8 = vld [vmem:[#allocation105_spill] sm:$0xff]  ;;  %v19722_v41 = vld [vmem:[#allocation106_spill] sm:$0xff] }
0x1a65   :  { %9036 = vmatprep.mubr.f32.mxu0 %v8969_v38  ;;  %9178 = vmatprep.mubr.f32.mxu1 %v8969_v38  ;;  %v19725_v38 = vld [vmem:[#allocation109_spill] sm:$0xff] }
0x1a66   :  { %9037 = vmatmul.mubr.f32.vlgmr.msra.gmra.mrb[52].mxu0 %v8968_v50  ;;  %9179 = vmatmul.mubr.f32.vlgmr.msra.gmra.mrb[60].mxu1 %v8968_v50  ;;  %v19723_v50 = vld [vmem:[#allocation107_spill] sm:$0xff] }
0x1a67   :  { %13790 = vmatpush1.bf16.msra.mxu0 %v19635_v34  ;;  %13918 = vmatpush1.bf16.msra.mxu1 %v19636_v1 }
0x1a68   :  { %9107 = vmatprep.mubr.f32.mxu0 %v8971_v32  ;;  %9249 = vmatprep.mubr.f32.mxu1 %v8971_v32  ;;  %v19726_v32 = vld [vmem:[#allocation110_spill] sm:$0xff] }
0x1a69   :  { %13792 = vmatprep.subr.bf16.mxu0 %v19637_v57  ;;  %13920 = vmatprep.subr.bf16.mxu1 %v19638_v47  ;;  %v19727_v57 = vld [vmem:[#allocation111_spill] sm:$0xff]  ;;  %v19728_v47 = vld [vmem:[#allocation112_spill] sm:$0xff] }
0x1a6b   :  { %13794 = vmatpush1.bf16.msra.mxu0 %v19718_v43  ;;  %13922 = vmatpush1.bf16.msra.mxu1 %v19719_v51  ;;  %v19729_v43 = vld [vmem:[#allocation113_spill] sm:$0xff]  ;;  %v19730_v51 = vld [vmem:[#allocation114_spill] sm:$0xff] }
0x1a6c   :  { %13796 = vmatprep.subr.bf16.mxu0 %v19720_v5  ;;  %13924 = vmatprep.subr.bf16.mxu1 %v19721_v8  ;;  %v19731_v5 = vld [vmem:[#allocation115_spill] sm:$0xff]  ;;  %v19732_v8 = vld [vmem:[#allocation116_spill] sm:$0xff] }
0x1a6f   :  { %13798 = vmatpush1.bf16.msra.mxu0 %v19722_v41  ;;  %13926 = vmatpush1.bf16.msra.mxu1 %v19723_v50  ;;  %v19733_v41 = vld [vmem:[#allocation117_spill] sm:$0xff]  ;;  %v19734_v50 = vld [vmem:[#allocation118_spill] sm:$0xff] }
0x1a70   :  { %13800 = vmatprep.subr.bf16.mxu0 %v19724_v62  ;;  %13928 = vmatprep.subr.bf16.mxu1 %v19725_v38  ;;  %v19735_v62 = vld [vmem:[#allocation119_spill] sm:$0xff]  ;;  %v19736_v38 = vld [vmem:[#allocation120_spill] sm:$0xff] }
0x1a73   :  { %13802 = vmatpush1.bf16.msra.mxu0 %v19726_v32  ;;  %13930 = vmatpush1.bf16.msra.mxu1 %v19727_v57  ;;  %v19737_v32 = vld [vmem:[#allocation121_spill] sm:$0xff] }
0x1a74   :  { %13804 = vmatprep.subr.bf16.mxu0 %v19728_v47  ;;  %13932 = vmatprep.subr.bf16.mxu1 %v19729_v43  ;;  %v19738_v47 = vld [vmem:[#allocation123_spill] sm:$0xff]  ;;  %v19739_v43 = vld [vmem:[#allocation124_spill] sm:$0xff] }
0x1a77   :  { %13806 = vmatpush1.bf16.msra.mxu0 %v19730_v51  ;;  %13934 = vmatpush1.bf16.msra.mxu1 %v19731_v5  ;;  %v19740_v51 = vld [vmem:[#allocation125_spill] sm:$0xff] }
0x1a78   :  { %13808 = vmatprep.subr.bf16.mxu0 %v19732_v8  ;;  %13936 = vmatprep.subr.bf16.mxu1 %v19733_v41  ;;  %v19741_v8 = vld [vmem:[#allocation127_spill] sm:$0xff]  ;;  %v19742_v41 = vld [vmem:[#allocation128_spill] sm:$0xff] }
0x1a7b   :  { %13810 = vmatpush1.bf16.msra.mxu0 %v19734_v50  ;;  %13938 = vmatpush1.bf16.msra.mxu1 %v19735_v62  ;;  %v19743_v50 = vld [vmem:[#allocation129_spill] sm:$0xff]  ;;  %v19744_v62 = vld [vmem:[#allocation130_spill] sm:$0xff] }
0x1a7c   :  { %13812 = vmatprep.subr.bf16.mxu0 %v19736_v38  ;;  %13940 = vmatprep.subr.bf16.mxu1 %v19737_v32  ;;  %v19745_v38 = vld [vmem:[#allocation131_spill] sm:$0xff]  ;;  %v19746_v32 = vld [vmem:[#allocation132_spill] sm:$0xff] }
0x1a7f   :  { %13814 = vmatpush1.bf16.msra.mxu0 %v19659_v33  ;;  %13942 = vmatpush1.bf16.msra.mxu1 %v19738_v47  ;;  %v19747_v33 = vld [vmem:[#allocation133_spill] sm:$0xff]  ;;  %v19748_v47 = vld [vmem:[#allocation134_spill] sm:$0xff] }
0x1a80   :  { %13816 = vmatprep.subr.bf16.mxu0 %v19739_v43  ;;  %13944 = vmatprep.subr.bf16.mxu1 %v19740_v51  ;;  %v19749_v43 = vld [vmem:[#allocation135_spill] sm:$0xff]  ;;  %v19750_v51 = vld [vmem:[#allocation136_spill] sm:$0xff] }
0x1a83   :  { %13818 = vmatpush1.bf16.msra.mxu0 %v19663_v22  ;;  %13946 = vmatpush1.bf16.msra.mxu1 %v19741_v8  ;;  %v19751_v22 = vld [vmem:[#allocation137_spill] sm:$0xff]  ;;  %v19752_v8 = vld [vmem:[#allocation138_spill] sm:$0xff] }
0x1a84   :  { %13820 = vmatprep.subr.bf16.mxu0 %v19742_v41  ;;  %13948 = vmatprep.subr.bf16.mxu1 %v19743_v50  ;;  %v19753_v41 = vld [vmem:[#allocation139_spill] sm:$0xff]  ;;  %v19754_v50 = vld [vmem:[#allocation140_spill] sm:$0xff] }
0x1a87   :  { %13822 = vmatpush1.bf16.msra.mxu0 %v19744_v62  ;;  %13950 = vmatpush1.bf16.msra.mxu1 %v19745_v38  ;;  %v19755_v62 = vld [vmem:[#allocation141_spill] sm:$0xff]  ;;  %v19756_v38 = vld [vmem:[#allocation142_spill] sm:$0xff] }
0x1a88   :  { %13824 = vmatprep.subr.bf16.mxu0 %v19746_v32  ;;  %13952 = vmatprep.subr.bf16.mxu1 %v19747_v33  ;;  %v19757_v32 = vld [vmem:[#allocation143_spill] sm:$0xff]  ;;  %v19758_v33 = vld [vmem:[#allocation144_spill] sm:$0xff] }
0x1a8b   :  { %13826 = vmatpush1.bf16.msra.mxu0 %v19748_v47  ;;  %13954 = vmatpush1.bf16.msra.mxu1 %v19749_v43  ;;  %v19759_v47 = vld [vmem:[#allocation145_spill] sm:$0xff]  ;;  %v19760_v43 = vld [vmem:[#allocation146_spill] sm:$0xff] }
0x1a8c   :  { %13828 = vmatprep.subr.bf16.mxu0 %v19750_v51  ;;  %13956 = vmatprep.subr.bf16.mxu1 %v19751_v22  ;;  %v19761_v51 = vld [vmem:[#allocation147_spill] sm:$0xff]  ;;  %v19762_v22 = vld [vmem:[#allocation148_spill] sm:$0xff] }
0x1a8f   :  { %13830 = vmatpush1.bf16.msra.mxu0 %v19752_v8  ;;  %13958 = vmatpush1.bf16.msra.mxu1 %v19753_v41 }
0x1a90   :  { %13832 = vmatprep.subr.bf16.mxu0 %v19754_v50  ;;  %13960 = vmatprep.subr.bf16.mxu1 %v19755_v62 }
0x1a93   :  { %13834 = vmatpush1.bf16.msra.mxu0 %v19756_v38  ;;  %13962 = vmatpush1.bf16.msra.mxu1 %v19757_v32 }
0x1a94   :  { %13836 = vmatprep.subr.bf16.mxu0 %v19758_v33  ;;  %13964 = vmatprep.subr.bf16.mxu1 %v19759_v47  ;;  %v19763_v47 = vld [vmem:[#allocation401_spill] sm:$0xff] }
0x1a97   :  { %13838 = vmatpush1.bf16.msra.mxu0 %v19760_v43  ;;  %13966 = vmatpush1.bf16.msra.mxu1 %v19761_v51  ;;  %v14363_v43 = vadd.f32 %v17976_v12, %v19763_v47  ;;  %v19795_v12 = vld [vmem:[#allocation95_spill] sm:$0xff] }
0x1a98   :  { %13840 = vmatprep.subr.bf16.mxu0 %v19762_v22  ;;  %13968 = vmatprep.subr.bf16.mxu1 %v19684_v52 }
0x1a9b   :  { %13842 = vmatpush1.bf16.msra.mxu0 %v19685_v3  ;;  %13970 = vmatpush1.bf16.msra.mxu1 %v19686_v10  ;;  %v8970_v10 = vmax.f32 %v14363_v43, 0.0 }
0x1a9c   :  { %13844 = vmatprep.subr.bf16.mxu0 %v19687_v36  ;;  %13972 = vmatprep.subr.bf16.mxu1 %v19688_v59 }
0x1a9f   :  { %13846 = vmatpush1.bf16.msra.mxu0 %v19689_v13  ;;  %13974 = vmatpush1.bf16.msra.mxu1 %v19690_v61 }
0x1aa0   :  { %13848 = vmatprep.subr.bf16.mxu0 %v19691_v55  ;;  %13976 = vmatprep.subr.bf16.mxu1 %v19692_v37 }
0x1aa3   :  { %13850 = vmatpush1.bf16.msra.mxu0 %v19693_v14  ;;  %13978 = vmatpush1.bf16.msra.mxu1 %v19694_v63 }
0x1aa4   :  { %13980 = vmatprep.subr.bf16.mxu0 %v16056_v2  ;;  %14108 = vmatprep.subr.bf16.mxu1 %v19602_v45  ;;  %v19764_v2 = vld [vmem:[#allocation44_spill] sm:$0xff]  ;;  %v19780_v45 = vld [vmem:[#allocation79_spill] sm:$0xff] }
0x1aa6   :  { %9108 = vmatmul.mubr.f32.vlgmr.msra.gmra.mrb[52].mxu0 %v8970_v10  ;;  %9250 = vmatmul.mubr.f32.vlgmr.msra.gmra.mrb[60].mxu1 %v8970_v10 }
0x1aa7   :  { %13982 = vmatpush1.bf16.msra.mxu0 %v16060_v27  ;;  %14110 = vmatpush1.bf16.msra.mxu1 %v19603_v15  ;;  %v19765_v27 = vld [vmem:[#allocation45_spill] sm:$0xff]  ;;  %v19781_v15 = vld [vmem:[#allocation80_spill] sm:$0xff] }
0x1aa8   :  { %13984 = vmatprep.subr.bf16.mxu0 %v16066_v26  ;;  %14112 = vmatprep.subr.bf16.mxu1 %v19604_v44  ;;  %v19766_v26 = vld [vmem:[#allocation65_spill] sm:$0xff] }
0x1aa9   :  { %v19782_v44 = vld [vmem:[#allocation81_spill] sm:$0xff] }
0x1aab   :  { %13986 = vmatpush1.bf16.msra.mxu0 %v16074_v30  ;;  %14114 = vmatpush1.bf16.msra.mxu1 %v19605_v23  ;;  %v19767_v30 = vld [vmem:[#allocation66_spill] sm:$0xff] }
0x1aac   :  { %13988 = vmatprep.subr.bf16.mxu0 %v16080_v42  ;;  %14116 = vmatprep.subr.bf16.mxu1 %v19606_v18  ;;  %v19768_v42 = vld [vmem:[#allocation67_spill] sm:$0xff]  ;;  %v19783_v23 = vld [vmem:[#allocation82_spill] sm:$0xff] }
0x1aad   :  { %v19784_v18 = vld [vmem:[#allocation83_spill] sm:$0xff] }
0x1aaf   :  { %13990 = vmatpush1.bf16.msra.mxu0 %v16086_v25  ;;  %14118 = vmatpush1.bf16.msra.mxu1 %v19607_v56  ;;  %v19769_v25 = vld [vmem:[#allocation68_spill] sm:$0xff] }
0x1ab0   :  { %13992 = vmatprep.subr.bf16.mxu0 %v16092_v21  ;;  %14120 = vmatprep.subr.bf16.mxu1 %v19608_v39  ;;  %v19770_v21 = vld [vmem:[#allocation69_spill] sm:$0xff]  ;;  %v19785_v56 = vld [vmem:[#allocation84_spill] sm:$0xff] }
0x1ab1   :  { %v19786_v39 = vld [vmem:[#allocation85_spill] sm:$0xff] }
0x1ab3   :  { %13994 = vmatpush1.bf16.msra.mxu0 %v16098_v58  ;;  %14122 = vmatpush1.bf16.msra.mxu1 %v19609_v29  ;;  %v19771_v58 = vld [vmem:[#allocation70_spill] sm:$0xff] }
0x1ab4   :  { %13996 = vmatprep.subr.bf16.mxu0 %v16104_v35  ;;  %14124 = vmatprep.subr.bf16.mxu1 %v19610_v19  ;;  %v19772_v35 = vld [vmem:[#allocation71_spill] sm:$0xff]  ;;  %v19787_v29 = vld [vmem:[#allocation86_spill] sm:$0xff] }
0x1ab5   :  { %v19788_v19 = vld [vmem:[#allocation87_spill] sm:$0xff] }
0x1ab7   :  { %13998 = vmatpush1.bf16.msra.mxu0 %v16110_v20  ;;  %14126 = vmatpush1.bf16.msra.mxu1 %v19611_v24  ;;  %v19773_v20 = vld [vmem:[#allocation72_spill] sm:$0xff] }
0x1ab8   :  { %14000 = vmatprep.subr.bf16.mxu0 %v16116_v48  ;;  %14128 = vmatprep.subr.bf16.mxu1 %v19612_v0  ;;  %v19774_v48 = vld [vmem:[#allocation73_spill] sm:$0xff]  ;;  %v19789_v24 = vld [vmem:[#allocation88_spill] sm:$0xff] }
0x1ab9   :  { %v19790_v0 = vld [vmem:[#allocation89_spill] sm:$0xff] }
0x1abb   :  { %14002 = vmatpush1.bf16.msra.mxu0 %v16122_v54  ;;  %14130 = vmatpush1.bf16.msra.mxu1 %v19613_v4  ;;  %v19775_v54 = vld [vmem:[#allocation74_spill] sm:$0xff] }
0x1abc   :  { %14004 = vmatprep.subr.bf16.mxu0 %v16128_v49  ;;  %14132 = vmatprep.subr.bf16.mxu1 %v19614_v40  ;;  %v19776_v49 = vld [vmem:[#allocation75_spill] sm:$0xff]  ;;  %v19791_v4 = vld [vmem:[#allocation90_spill] sm:$0xff] }
0x1abd   :  { %v19792_v40 = vld [vmem:[#allocation91_spill] sm:$0xff] }
0x1abf   :  { %14006 = vmatpush1.bf16.msra.mxu0 %v16134_v6  ;;  %14134 = vmatpush1.bf16.msra.mxu1 %v19615_v31  ;;  %v19777_v6 = vld [vmem:[#allocation76_spill] sm:$0xff] }
0x1ac0   :  { %14008 = vmatprep.subr.bf16.mxu0 %v16140_v17  ;;  %14136 = vmatprep.subr.bf16.mxu1 %v19616_v9  ;;  %v19778_v17 = vld [vmem:[#allocation77_spill] sm:$0xff]  ;;  %v19793_v31 = vld [vmem:[#allocation92_spill] sm:$0xff] }
0x1ac1   :  { %v19794_v9 = vld [vmem:[#allocation93_spill] sm:$0xff] }
0x1ac3   :  { %14010 = vmatpush1.bf16.msra.mxu0 %v16146_v28  ;;  %14138 = vmatpush1.bf16.msra.mxu1 %v19764_v2  ;;  %v19779_v28 = vld [vmem:[#allocation78_spill] sm:$0xff] }
0x1ac4   :  { %14012 = vmatprep.subr.bf16.mxu0 %v19765_v27  ;;  %14140 = vmatprep.subr.bf16.mxu1 %v19766_v26 }
0x1ac7   :  { %14014 = vmatpush1.bf16.msra.mxu0 %v19767_v30  ;;  %14142 = vmatpush1.bf16.msra.mxu1 %v19768_v42 }
0x1ac8   :  { %14016 = vmatprep.subr.bf16.mxu0 %v19769_v25  ;;  %14144 = vmatprep.subr.bf16.mxu1 %v19770_v21 }
0x1acb   :  { %14018 = vmatpush1.bf16.msra.mxu0 %v19771_v58  ;;  %14146 = vmatpush1.bf16.msra.mxu1 %v19772_v35  ;;  %v19798_v58 = vld [vmem:[#allocation102_spill] sm:$0xff]  ;;  %v19799_v35 = vld [vmem:[#allocation103_spill] sm:$0xff] }
0x1acc   :  { %14020 = vmatprep.subr.bf16.mxu0 %v19773_v20  ;;  %14148 = vmatprep.subr.bf16.mxu1 %v19774_v48  ;;  %v19800_v20 = vld [vmem:[#allocation104_spill] sm:$0xff]  ;;  %v19801_v48 = vld [vmem:[#allocation105_spill] sm:$0xff] }
0x1acf   :  { %14022 = vmatpush1.bf16.msra.mxu0 %v19775_v54  ;;  %14150 = vmatpush1.bf16.msra.mxu1 %v19776_v49  ;;  %v19802_v54 = vld [vmem:[#allocation106_spill] sm:$0xff]  ;;  %v19803_v49 = vld [vmem:[#allocation107_spill] sm:$0xff] }
0x1ad0   :  { %14024 = vmatprep.subr.bf16.mxu0 %v19777_v6  ;;  %14152 = vmatprep.subr.bf16.mxu1 %v19778_v17  ;;  %v19806_v6 = vld [vmem:[#allocation110_spill] sm:$0xff]  ;;  %v19807_v17 = vld [vmem:[#allocation112_spill] sm:$0xff] }
0x1ad3   :  { %14026 = vmatpush1.bf16.msra.mxu0 %v19779_v28  ;;  %14154 = vmatpush1.bf16.msra.mxu1 %v19780_v45  ;;  %v19808_v28 = vld [vmem:[#allocation113_spill] sm:$0xff]  ;;  %v19809_v45 = vld [vmem:[#allocation114_spill] sm:$0xff] }
0x1ad4   :  { %14028 = vmatprep.subr.bf16.mxu0 %v19781_v15  ;;  %14156 = vmatprep.subr.bf16.mxu1 %v19782_v44  ;;  %v19810_v15 = vld [vmem:[#allocation116_spill] sm:$0xff]  ;;  %v19811_v44 = vld [vmem:[#allocation117_spill] sm:$0xff] }
0x1ad7   :  { %14030 = vmatpush1.bf16.msra.mxu0 %v19783_v23  ;;  %14158 = vmatpush1.bf16.msra.mxu1 %v19784_v18  ;;  %v19812_v23 = vld [vmem:[#allocation118_spill] sm:$0xff]  ;;  %v19813_v18 = vld [vmem:[#allocation119_spill] sm:$0xff] }
0x1ad8   :  { %14032 = vmatprep.subr.bf16.mxu0 %v19785_v56  ;;  %14160 = vmatprep.subr.bf16.mxu1 %v19786_v39  ;;  %v19814_v56 = vld [vmem:[#allocation120_spill] sm:$0xff]  ;;  %v19815_v39 = vld [vmem:[#allocation121_spill] sm:$0xff] }
0x1adb   :  { %14034 = vmatpush1.bf16.msra.mxu0 %v19787_v29  ;;  %14162 = vmatpush1.bf16.msra.mxu1 %v19788_v19  ;;  %v19817_v29 = vld [vmem:[#allocation123_spill] sm:$0xff]  ;;  %v19818_v19 = vld [vmem:[#allocation124_spill] sm:$0xff] }
0x1adc   :  { %14036 = vmatprep.subr.bf16.mxu0 %v19789_v24  ;;  %14164 = vmatprep.subr.bf16.mxu1 %v19790_v0  ;;  %v19819_v24 = vld [vmem:[#allocation125_spill] sm:$0xff]  ;;  %v19821_v0 = vld [vmem:[#allocation127_spill] sm:$0xff] }
0x1adf   :  { %14038 = vmatpush1.bf16.msra.mxu0 %v19791_v4  ;;  %14166 = vmatpush1.bf16.msra.mxu1 %v19792_v40  ;;  %v19822_v4 = vld [vmem:[#allocation128_spill] sm:$0xff]  ;;  %v19823_v40 = vld [vmem:[#allocation129_spill] sm:$0xff] }
0x1ae0   :  { %14040 = vmatprep.subr.bf16.mxu0 %v19793_v31  ;;  %14168 = vmatprep.subr.bf16.mxu1 %v19794_v9  ;;  %v19824_v31 = vld [vmem:[#allocation130_spill] sm:$0xff]  ;;  %v19825_v9 = vld [vmem:[#allocation131_spill] sm:$0xff] }
0x1ae3   :  { %14042 = vmatpush1.bf16.msra.mxu0 %v19711_v46  ;;  %14170 = vmatpush1.bf16.msra.mxu1 %v19795_v12  ;;  %v19826_v12 = vld [vmem:[#allocation132_spill] sm:$0xff] }
0x1ae4   :  { %14044 = vmatprep.subr.bf16.mxu0 %v19713_v7  ;;  %14172 = vmatprep.subr.bf16.mxu1 %v19714_v53  ;;  %v19796_v7 = vld [vmem:[#allocation100_spill] sm:$0xff]  ;;  %v19797_v53 = vld [vmem:[#allocation101_spill] sm:$0xff] }
0x1b79   :  { %v9109_v10 = vpop.f32.mrb[52].mxu0  ;;  %v18111_v43 = vpop.f32.mrb[60].mxu1 }
0x1b7a   :  { %v14365_v2 = vadd.f32 %v9109_v10, %v19715_v16  ;;  %v9111_v27 = vpop.f32.mrb[53].mxu0  ;;  %v9253_v26 = vpop.f32.mrb[61].mxu1  ;;  %v19827_v10 = vld [vmem:[#allocation133_spill] sm:$0xff] }
0x1b7b   :  { %v14366_v30 = vadd.f32 %v9111_v27, %v19716_v11  ;;  %v14368_v42 = vadd.f32 %v9253_v26, %v19717_v60  ;;  %v19829_v27 = vld [vmem:[#allocation135_spill] sm:$0xff]  ;;  %v19830_v26 = vld [vmem:[#allocation136_spill] sm:$0xff] }
0x1b7c   :  { %v9256_v21 = vmax.f32 %v14365_v2, 0.0  ;;  %v19828_v2 = vld [vmem:[#allocation134_spill] sm:$0xff] }
0x1b7d   :  { %v9257_v25 = vmax.f32 %v14366_v30, 0.0  ;;  %v9259_v46 = vmax.f32 %v14368_v42, 0.0  ;;  %v19831_v30 = vld [vmem:[#allocation137_spill] sm:$0xff] }
0x1b7e   :  { %v19832_v42 = vld [vmem:[#allocation145_spill] sm:$0xff] }
0x1b7f   :  { %9324 = vmatprep.mubr.f32.mxu0 %v9257_v25  ;;  %9466 = vmatprep.mubr.f32.mxu1 %v9257_v25  ;;  %v19833_v25 = vld [vmem:[#allocation146_spill] sm:$0xff] }
0x1b80   :  { %9325 = vmatmul.mubr.f32.vlgmr.msra.gmra.mrb[54].mxu0 %v9256_v21  ;;  %9467 = vmatmul.mubr.f32.vlgmr.msra.gmra.mrb[62].mxu1 %v9256_v21  ;;  %v9567_v21 = vld [vmem:[#allocation28 + $0x98] sm:$0xff] }
0x1b81   :  { %14046 = vmatpush1.bf16.msra.mxu0 %v19635_v34  ;;  %14174 = vmatpush1.bf16.msra.mxu1 %v19636_v1  ;;  %v19804_v34 = vld [vmem:[#allocation108_spill] sm:$0xff]  ;;  %v19805_v1 = vld [vmem:[#allocation109_spill] sm:$0xff] }
0x1b82   :  { %9395 = vmatprep.mubr.f32.mxu0 %v9259_v46  ;;  %9537 = vmatprep.mubr.f32.mxu1 %v9259_v46  ;;  %v9598_v46 = vld [vmem:[#allocation28 + $0x190] sm:$0xff] }
0x1b83   :  { %14048 = vmatprep.subr.bf16.mxu0 %v19796_v7  ;;  %14176 = vmatprep.subr.bf16.mxu1 %v19797_v53  ;;  %v9599_v7 = vld [vmem:[#allocation28 + $0x198] sm:$0xff]  ;;  %v9550_v53 = vld [vmem:[#allocation28 + $0x10] sm:$0xff] }
0x1b85   :  { %14050 = vmatpush1.bf16.msra.mxu0 %v19798_v58  ;;  %14178 = vmatpush1.bf16.msra.mxu1 %v19799_v35  ;;  %v9582_v35 = vld [vmem:[#allocation28 + $0x110] sm:$0xff] }
0x1b86   :  { %14052 = vmatprep.subr.bf16.mxu0 %v19800_v20  ;;  %14180 = vmatprep.subr.bf16.mxu1 %v19801_v48  ;;  %v9583_v20 = vld [vmem:[#allocation28 + $0x118] sm:$0xff]  ;;  %v9568_v48 = vld [vmem:[#allocation28 + $0xa0] sm:$0xff] }
0x1b89   :  { %14054 = vmatpush1.bf16.msra.mxu0 %v19802_v54  ;;  %14182 = vmatpush1.bf16.msra.mxu1 %v19803_v49  ;;  %v9569_v54 = vld [vmem:[#allocation28 + $0xa8] sm:$0xff]  ;;  %v9600_v49 = vld [vmem:[#allocation28 + $0x1a0] sm:$0xff] }
0x1b8a   :  { %14056 = vmatprep.subr.bf16.mxu0 %v19804_v34  ;;  %14184 = vmatprep.subr.bf16.mxu1 %v19805_v1  ;;  %v9601_v34 = vld [vmem:[#allocation28 + $0x1a8] sm:$0xff]  ;;  %v9552_v1 = vld [vmem:[#allocation28 + $0x20] sm:$0xff] }
0x1b8d   :  { %14058 = vmatpush1.bf16.msra.mxu0 %v19806_v6  ;;  %14186 = vmatpush1.bf16.msra.mxu1 %v19727_v57  ;;  %v19816_v57 = vld [vmem:[#allocation122_spill] sm:$0xff] }
0x1b8e   :  { %14060 = vmatprep.subr.bf16.mxu0 %v19807_v17  ;;  %14188 = vmatprep.subr.bf16.mxu1 %v19808_v28  ;;  %v9553_v6 = vld [vmem:[#allocation28 + $0x28] sm:$0xff]  ;;  %v14243_v17 = vpack.c.bf16 %v9569_v54, %v9568_v48  ;;  %v14275_v28 = vpack.c.bf16 %v9601_v34, %v9600_v49  ;;  %v9578_v49 = vld [vmem:[#allocation28 + $0xf0] sm:$0xff]  ;;  %v9579_v34 = vld [vmem:[#allocation28 + $0xf8] sm:$0xff] }
0x1b8f   :  { %v9593_v48 = vld [vmem:[#allocation28 + $0x168] sm:$0xff] }
0x1b91   :  { %14062 = vmatpush1.bf16.msra.mxu0 %v19809_v45  ;;  %14190 = vmatpush1.bf16.msra.mxu1 %v19731_v5  ;;  %v19820_v5 = vld [vmem:[#allocation126_spill] sm:$0xff] }
0x1b92   :  { %14064 = vmatprep.subr.bf16.mxu0 %v19810_v15  ;;  %14192 = vmatprep.subr.bf16.mxu1 %v19811_v44  ;;  %v9584_v45 = vld [vmem:[#allocation28 + $0x120] sm:$0xff]  ;;  %v9585_v15 = vld [vmem:[#allocation28 + $0x128] sm:$0xff]  ;;  %v9570_v44 = vld [vmem:[#allocation28 + $0xb0] sm:$0xff] }
0x1b95   :  { %14066 = vmatpush1.bf16.msra.mxu0 %v19812_v23  ;;  %14194 = vmatpush1.bf16.msra.mxu1 %v19813_v18  ;;  %v9571_v23 = vld [vmem:[#allocation28 + $0xb8] sm:$0xff]  ;;  %v9602_v18 = vld [vmem:[#allocation28 + $0x1b0] sm:$0xff] }
0x1b96   :  { %14068 = vmatprep.subr.bf16.mxu0 %v19814_v56  ;;  %14196 = vmatprep.subr.bf16.mxu1 %v19815_v39  ;;  %v9603_v56 = vld [vmem:[#allocation28 + $0x1b8] sm:$0xff]  ;;  %v14245_v39 = vpack.c.bf16 %v9553_v6, %v9552_v1  ;;  %v9562_v6 = vld [vmem:[#allocation28 + $0x70] sm:$0xff] }
0x1b97   :  { %v9611_v1 = vld [vmem:[#allocation28 + $0x1f8] sm:$0xff] }
0x1b99   :  { %14070 = vmatpush1.bf16.msra.mxu0 %v19816_v57  ;;  %14198 = vmatpush1.bf16.msra.mxu1 %v19817_v29  ;;  %v14277_v57 = vpack.c.bf16 %v9585_v15, %v9584_v45  ;;  %v9554_v29 = vld [vmem:[#allocation28 + $0x30] sm:$0xff] }
0x1b9a   :  { %14072 = vmatprep.subr.bf16.mxu0 %v19818_v19  ;;  %14200 = vmatprep.subr.bf16.mxu1 %v19819_v24  ;;  %v9555_v19 = vld [vmem:[#allocation28 + $0x38] sm:$0xff]  ;;  %v14247_v24 = vpack.c.bf16 %v9571_v23, %v9570_v44  ;;  %v9594_v15 = vld [vmem:[#allocation28 + $0x170] sm:$0xff] }
0x1b9b   :  { %v9595_v44 = vld [vmem:[#allocation28 + $0x178] sm:$0xff] }
0x1b9c   :  { %v14297_v23 = vpack.c.bf16 %v9595_v44, %v9594_v15 }
0x1b9d   :  { %14074 = vmatpush1.bf16.msra.mxu0 %v19820_v5  ;;  %14202 = vmatpush1.bf16.msra.mxu1 %v19821_v0  ;;  %v14279_v5 = vpack.c.bf16 %v9603_v56, %v9602_v18  ;;  %v9586_v0 = vld [vmem:[#allocation28 + $0x130] sm:$0xff]  ;;  %v19835_v18 = vmov 0.0|0.0  }
0x1b9e   :  { %14076 = vmatprep.subr.bf16.mxu0 %v19822_v4  ;;  %14204 = vmatprep.subr.bf16.mxu1 %v19823_v40  ;;  %v9587_v4 = vld [vmem:[#allocation28 + $0x138] sm:$0xff]  ;;  %v9572_v40 = vld [vmem:[#allocation28 + $0xc0] sm:$0xff] }
0x1ba1   :  { %14078 = vmatpush1.bf16.msra.mxu0 %v19824_v31  ;;  %14206 = vmatpush1.bf16.msra.mxu1 %v19825_v9  ;;  %v9573_v31 = vld [vmem:[#allocation28 + $0xc8] sm:$0xff]  ;;  %v9604_v9 = vld [vmem:[#allocation28 + $0x1c0] sm:$0xff] }
0x1ba2   :  { %14080 = vmatprep.subr.bf16.mxu0 %v19826_v12  ;;  %14208 = vmatprep.subr.bf16.mxu1 %v19827_v10  ;;  %v9605_v12 = vld [vmem:[#allocation28 + $0x1c8] sm:$0xff]  ;;  %v14249_v10 = vpack.c.bf16 %v9555_v19, %v9554_v29 }
0x1ba5   :  { %14082 = vmatpush1.bf16.msra.mxu0 %v19828_v2  ;;  %14210 = vmatpush1.bf16.msra.mxu1 %v19829_v27  ;;  %v14281_v2 = vpack.c.bf16 %v9587_v4, %v9586_v0  ;;  %v9556_v27 = vld [vmem:[#allocation28 + $0x40] sm:$0xff] }
0x1ba6   :  { %14084 = vmatprep.subr.bf16.mxu0 %v19830_v26  ;;  %14212 = vmatprep.subr.bf16.mxu1 %v19831_v30  ;;  %v9557_v26 = vld [vmem:[#allocation28 + $0x48] sm:$0xff]  ;;  %v14251_v30 = vpack.c.bf16 %v9573_v31, %v9572_v40 }
0x1ba7   :  { %v9761_v0 = vld [vmem:[%s18281_s19 + $0x8] sm:$0xff] }
0x1ba9   :  { %14086 = vmatpush1.bf16.msra.mxu0 %v19752_v8  ;;  %14214 = vmatpush1.bf16.msra.mxu1 %v19753_v41  ;;  %v19834_v8 = vld [vmem:[#allocation151_spill] sm:$0xff]  ;;  %v9564_v41 = vld [vmem:[#allocation28 + $0x80] sm:$0xff] }
0x1baa   :  { %14088 = vmatprep.subr.bf16.mxu0 %v19754_v50  ;;  %14216 = vmatprep.subr.bf16.mxu1 %v19755_v62  ;;  %v9596_v50 = vld [vmem:[#allocation28 + $0x180] sm:$0xff]  ;;  %v9597_v62 = vld [vmem:[#allocation28 + $0x188] sm:$0xff] }
0x1bad   :  { %14090 = vmatpush1.bf16.msra.mxu0 %v19756_v38  ;;  %14218 = vmatpush1.bf16.msra.mxu1 %v19757_v32  ;;  %v9581_v38 = vld [vmem:[#allocation28 + $0x108] sm:$0xff]  ;;  %v9566_v32 = vld [vmem:[#allocation28 + $0x90] sm:$0xff] }
0x1bae   :  { %14092 = vmatprep.subr.bf16.mxu0 %v19758_v33  ;;  %14220 = vmatprep.subr.bf16.mxu1 %v19832_v42  ;;  %v9565_v33 = vld [vmem:[#allocation28 + $0x88] sm:$0xff]  ;;  %v14283_v42 = vpack.c.bf16 %v9605_v12, %v9604_v9 }
0x1bb1   :  { %14094 = vmatpush1.bf16.msra.mxu0 %v19833_v25  ;;  %14222 = vmatpush1.bf16.msra.mxu1 %v19761_v51  ;;  %v9548_v51 = vld [vmem:[#allocation28] sm:$0xff] }
0x1bb2   :  { %14096 = vmatprep.subr.bf16.mxu0 %v19762_v22  ;;  %14224 = vmatprep.subr.bf16.mxu1 %v19684_v52  ;;  %v9549_v22 = vld [vmem:[#allocation28 + $0x8] sm:$0xff]  ;;  %v14367_v52 = vadd.f32 %v18111_v43, %v19763_v47  ;;  %v9551_v43 = vld [vmem:[#allocation28 + $0x18] sm:$0xff]  ;;  %v9588_v25 = vld [vmem:[#allocation28 + $0x140] sm:$0xff] }
0x1bb4   :  { %v9258_v58 = vmax.f32 %v14367_v52, 0.0  ;;  %v9558_v52 = vld [vmem:[#allocation28 + $0x50] sm:$0xff] }
0x1bb5   :  { %14098 = vmatpush1.bf16.msra.mxu0 %v19685_v3  ;;  %14226 = vmatpush1.bf16.msra.mxu1 %v19834_v8  ;;  %v14235_v3 = vpack.c.bf16 %v9565_v33, %v9564_v41  ;;  %v9589_v8 = vld [vmem:[#allocation28 + $0x148] sm:$0xff]  ;;  %v9574_v41 = vld [vmem:[#allocation28 + $0xd0] sm:$0xff]  ;;  %v9575_v33 = vld [vmem:[#allocation28 + $0xd8] sm:$0xff] }
0x1bb6   :  { %14100 = vmatprep.subr.bf16.mxu0 %v19687_v36  ;;  %14228 = vmatprep.subr.bf16.mxu1 %v19688_v59  ;;  %v14267_v36 = vpack.c.bf16 %v9597_v62, %v9596_v50  ;;  %v9580_v59 = vld [vmem:[#allocation28 + $0x100] sm:$0xff]  ;;  %v9606_v50 = vld [vmem:[#allocation28 + $0x1d0] sm:$0xff]  ;;  %v9607_v62 = vld [vmem:[#allocation28 + $0x1d8] sm:$0xff] }
0x1bb9   :  { %14102 = vmatpush1.bf16.msra.mxu0 %v19689_v13  ;;  %14230 = vmatpush1.bf16.msra.mxu1 %v19690_v61  ;;  %v14237_v61 = vpack.c.bf16 %v9549_v22, %v9548_v51  ;;  %v14269_v13 = vpack.c.bf16 %v9581_v38, %v9580_v59  ;;  %v14253_v51 = vpack.c.bf16 %v9557_v26, %v9556_v27  ;;  %v9590_v38 = vld [vmem:[#allocation28 + $0x150] sm:$0xff]  ;;  %v9764_v27 = vld [vmem:[%s18281_s19 + $0x20] sm:$0xff]  ;;  %v9765_v26 = vld [vmem:[%s18281_s19 + $0x28] sm:$0xff] }
0x1bba   :  { %14104 = vmatprep.subr.bf16.mxu0 %v19691_v55  ;;  %14232 = vmatprep.subr.bf16.mxu1 %v19692_v37  ;;  %v14239_v37 = vpack.c.bf16 %v9567_v21, %v9566_v32  ;;  %v14271_v55 = vpack.c.bf16 %v9599_v7, %v9598_v46  ;;  %v14285_v22 = vpack.c.bf16 %v9589_v8, %v9588_v25  ;;  %v9591_v32 = vld [vmem:[#allocation28 + $0x158] sm:$0xff]  ;;  %v9576_v21 = vld [vmem:[#allocation28 + $0xe0] sm:$0xff]  ;;  %v9577_v46 = vld [vmem:[#allocation28 + $0xe8] sm:$0xff] }
0x1bbb   :  { %v14287_v59 = vpack.c.bf16 %v9607_v62, %v9606_v50  ;;  %v9608_v7 = vld [vmem:[#allocation28 + $0x1e0] sm:$0xff]  ;;  %v9767_v25 = vld [vmem:[%s18281_s19 + $0x38] sm:$0xff]  ;;  %v9770_v62 = vld [vmem:[%s18281_s19 + $0x50] sm:$0xff] }
0x1bbd   :  { %14106 = vmatpush1.bf16.msra.mxu0 %v19693_v14  ;;  %14234 = vmatpush1.bf16.msra.mxu1 %v19694_v63  ;;  %v14241_v63 = vpack.c.bf16 %v9551_v43, %v9550_v53  ;;  %v14273_v14 = vpack.c.bf16 %v9583_v20, %v9582_v35  ;;  %v14289_v53 = vpack.c.bf16 %v9591_v32, %v9590_v38  ;;  %v9592_v35 = vld [vmem:[#allocation28 + $0x160] sm:$0xff]  ;;  %v9775_v38 = vld [vmem:[%s18281_s19 + $0x78] sm:$0xff] }
0x1bbe   :  { %14236 = vmatprep.subr.bf16.mxu0 %v14235_v3  ;;  %14268 = vmatprep.subr.bf16.mxu1 %v14267_v36  ;;  %v9559_v3 = vld [vmem:[#allocation28 + $0x58] sm:$0xff]  ;;  %v14255_v36 = vpack.c.bf16 %v9575_v33, %v9574_v41  ;;  %v14259_v43 = vpack.c.bf16 %v9577_v46, %v9576_v21  ;;  %v14293_v54 = vpack.c.bf16 %v9593_v48, %v9592_v35  ;;  %v9769_v33 = vld [vmem:[%s18281_s19 + $0x48] sm:$0xff] }
0x1bbf   :  { %v9768_v41 = vld [vmem:[%s18281_s19 + $0x40] sm:$0xff]  ;;  %v9855_v46 = vld [vmem:[%s18283_s21 + $0x8] sm:$0xff] }
0x1bc0   :  { %9396 = vmatmul.mubr.f32.vlgmr.msra.gmra.mrb[54].mxu0 %v9258_v58  ;;  %9538 = vmatmul.mubr.f32.vlgmr.msra.gmra.mrb[62].mxu1 %v9258_v58  ;;  %v14312_v50 = vpack.c.bf16 %v9769_v33, %v9768_v41  ;;  %v9854_v21 = vld [vmem:[%s18283_s21] sm:$0xff] }
0x1bc1   :  { %14238 = vmatpush3.bf16.msra.mxu0 %v14237_v61  ;;  %14270 = vmatpush3.bf16.msra.mxu1 %v14269_v13  ;;  %v9609_v61 = vld [vmem:[#allocation28 + $0x1e8] sm:$0xff]  ;;  %v14257_v13 = vpack.c.bf16 %v9559_v3, %v9558_v52  ;;  %v9772_v52 = vld [vmem:[%s18281_s19 + $0x60] sm:$0xff] }
0x1bc2   :  { %14240 = vmatprep.subr.bf16.mxu0 %v14239_v37  ;;  %14272 = vmatprep.subr.bf16.mxu1 %v14271_v55  ;;  %v14291_v58 = vpack.c.bf16 %v9609_v61, %v9608_v7  ;;  %v9560_v37 = vld [vmem:[#allocation28 + $0x60] sm:$0xff]  ;;  %v9561_v55 = vld [vmem:[#allocation28 + $0x68] sm:$0xff]  ;;  %v14324_v7 = vpack.c.bf16 %v9855_v46, %v9854_v21 }
0x1bc3   :  { %v14261_v20 = vpack.c.bf16 %v9561_v55, %v9560_v37  ;;  %v9773_v3 = vld [vmem:[%s18281_s19 + $0x68] sm:$0xff] }
0x1bc5   :  { %14242 = vmatpush3.bf16.msra.mxu0 %v14241_v63  ;;  %14274 = vmatpush3.bf16.msra.mxu1 %v14273_v14  ;;  %v9610_v63 = vld [vmem:[#allocation28 + $0x1f0] sm:$0xff]  ;;  %v14263_v14 = vpack.c.bf16 %v9579_v34, %v9578_v49 }
0x1bc6   :  { %14244 = vmatprep.subr.bf16.mxu0 %v14243_v17  ;;  %14276 = vmatprep.subr.bf16.mxu1 %v14275_v28  ;;  %v9563_v17 = vld [vmem:[#allocation28 + $0x78] sm:$0xff]  ;;  %v14295_v28 = vpack.c.bf16 %v9611_v1, %v9610_v63  ;;  %v10077_v63 = vld [vmem:[#allocation31] ss:$0 sm:$0xff] }
0x1bc7   :  { %v14265_v45 = vpack.c.bf16 %v9563_v17, %v9562_v6  ;;  %v9857_v49 = vld [vmem:[%s18283_s21 + $0x18] sm:$0xff] }
0x1bc9   :  { %14246 = vmatpush3.bf16.msra.mxu0 %v14245_v39  ;;  %14278 = vmatpush3.bf16.msra.mxu1 %v14277_v57 }
0x1bca   :  { %14248 = vmatprep.subr.bf16.mxu0 %v14247_v24  ;;  %14280 = vmatprep.subr.bf16.mxu1 %v14279_v5  ;;  %v9760_v5 = vld [vmem:[%s18281_s19] sm:$0xff] }
0x1bcb   :  { %v14300_v12 = vpack.c.bf16 %v9761_v0, %v9760_v5 }
0x1bcd   :  { %14250 = vmatpush3.bf16.msra.mxu0 %v14249_v10  ;;  %14282 = vmatpush3.bf16.msra.mxu1 %v14281_v2  ;;  %v9763_v2 = vld [vmem:[%s18281_s19 + $0x18] sm:$0xff] }
0x1bce   :  { %14252 = vmatprep.subr.bf16.mxu0 %v14251_v30  ;;  %14284 = vmatprep.subr.bf16.mxu1 %v14283_v42  ;;  %v14306_v30 = vpack.c.bf16 %v9765_v26, %v9764_v27  ;;  %v9766_v42 = vld [vmem:[%s18281_s19 + $0x30] sm:$0xff] }
0x1bcf   :  { %v14309_v8 = vpack.c.bf16 %v9767_v25, %v9766_v42 }
0x1bd1   :  { %14254 = vmatpush3.bf16.msra.mxu0 %v14253_v51  ;;  %14286 = vmatpush3.bf16.msra.mxu1 %v14285_v22  ;;  %v9771_v51 = vld [vmem:[%s18281_s19 + $0x58] sm:$0xff] }
0x1bd2   :  { %14256 = vmatprep.subr.bf16.mxu0 %v14255_v36  ;;  %14288 = vmatprep.subr.bf16.mxu1 %v14287_v59  ;;  %v14315_v22 = vpack.c.bf16 %v9771_v51, %v9770_v62  ;;  %v14318_v36 = vpack.c.bf16 %v9773_v3, %v9772_v52  ;;  %v9774_v59 = vld [vmem:[%s18281_s19 + $0x70] sm:$0xff] }
0x1bd3   :  { %v14321_v32 = vpack.c.bf16 %v9775_v38, %v9774_v59 }
0x1bd5   :  { %14258 = vmatpush3.bf16.msra.mxu0 %v14257_v13  ;;  %14290 = vmatpush3.bf16.msra.mxu1 %v14289_v53  ;;  %v10076_v53 = vld [vmem:[#allocation29] ss:$0 sm:$0xff] }
0x1bd6   :  { %14260 = vmatprep.subr.bf16.mxu0 %v14259_v43  ;;  %14292 = vmatprep.subr.bf16.mxu1 %v14291_v58 }
0x1bd9   :  { %14262 = vmatpush3.bf16.msra.mxu0 %v14261_v20  ;;  %14294 = vmatpush3.bf16.msra.mxu1 %v14293_v54  ;;  %v9856_v54 = vld [vmem:[%s18283_s21 + $0x10] sm:$0xff] }
0x1bda   :  { %14264 = vmatprep.subr.bf16.mxu0 %v14263_v14  ;;  %14296 = vmatprep.subr.bf16.mxu1 %v14295_v28  ;;  %v14327_v34 = vpack.c.bf16 %v9857_v49, %v9856_v54  ;;  %v10078_v28 = vld [vmem:[#allocation2] ss:$0 sm:$0xff] }
0x1bdd   :  { %14266 = vmatpush3.bf16.msra.mxu0 %v14265_v45  ;;  %14298 = vmatpush3.bf16.msra.mxu1 %v14297_v23 }
0x1bde   :  { %14299 = vmatprep.subr.bf16.mxu0 %v19835_v18  ;;  %14323 = vmatprep.subr.bf16.mxu1 %v19835_v18 }
0x1c93   :  { %v9397_v56 = vpop.f32.mrb[54].mxu0  ;;  %v9539_v39 = vpop.f32.mrb[62].mxu1 }
0x1c94   :  { %v14369_v57 = vadd.f32 %v9397_v56, %v19715_v16  ;;  %v14371_v29 = vadd.f32 %v9539_v39, %v19763_v47  ;;  %v9399_v19 = vpop.f32.mrb[55].mxu0  ;;  %v9541_v24 = vpop.f32.mrb[63].mxu1  ;;  %v9762_v47 = vld [vmem:[%s18281_s19 + $0x10] sm:$0xff] }
0x1c95   :  { %v14370_v4 = vadd.f32 %v9399_v19, %v19716_v11  ;;  %v14372_v40 = vadd.f32 %v9541_v24, %v19717_v60  ;;  %v14303_v11 = vpack.c.bf16 %v9763_v2, %v9762_v47  ;;  %v19836_v60 = vmov 0.0  }
0x1c96   :  { %v9544_v16 = vmax.f32 %v14369_v57, 0.0  ;;  %v9546_v10 = vmax.f32 %v14371_v29, 0.0 }
0x1c97   :  { %v9545_v31 = vmax.f32 %v14370_v4, 0.0  ;;  %v9547_v9 = vmax.f32 %v14372_v40, 0.0 }
0x1c99   :  { %9683 = vmatprep.mubr.f32.mxu0 %v9545_v31  ;;  %9753 = vmatprep.mubr.f32.mxu1 %v9547_v9 }
0x1c9a   :  { %9684 = vmatmul.mubr.f32.vlgmr.msra.gmra.mrb[56].mxu0 %v9544_v16  ;;  %9754 = vmatmul.mubr.f32.vlgmr.msra.gmra.mrb[64].mxu1 %v9546_v10 }
0x1c9b   :  { %14301 = vmatpush3.bf16.msra.mxu0 %v14300_v12  ;;  %10791 = vmatprep.mubr.msk.f32.mxu0 %vm14964_vm10, %v19836_v60 }
0x1c9c   :  { %14302 = vmatprep.subr.bf16.mxu0 %v19835_v18  ;;  %10802 = vmatprep.mubr.msk.f32.mxu1 %vm14964_vm10, %v19836_v60 }
0x1c9d   :  { %14325 = vmatpush3.bf16.msra.mxu1 %v14324_v7 }
0x1c9e   :  { %14326 = vmatprep.subr.bf16.mxu1 %v19835_v18 }
0x1c9f   :  { %14304 = vmatpush3.bf16.msra.mxu0 %v14303_v11 }
0x1ca0   :  { %14305 = vmatprep.subr.bf16.mxu0 %v19835_v18 }
0x1ca1   :  { %14328 = vmatpush3.bf16.msra.mxu1 %v14327_v34 }
0x1ca3   :  { %14307 = vmatpush3.bf16.msra.mxu0 %v14306_v30 }
0x1ca4   :  { %14308 = vmatprep.subr.bf16.mxu0 %v19835_v18 }
0x1ca7   :  { %14310 = vmatpush3.bf16.msra.mxu0 %v14309_v8 }
0x1ca8   :  { %14311 = vmatprep.subr.bf16.mxu0 %v19835_v18 }
0x1cab   :  { %14313 = vmatpush3.bf16.msra.mxu0 %v14312_v50 }
0x1cac   :  { %14314 = vmatprep.subr.bf16.mxu0 %v19835_v18 }
0x1caf   :  { %14316 = vmatpush3.bf16.msra.mxu0 %v14315_v22 }
0x1cb0   :  { %14317 = vmatprep.subr.bf16.mxu0 %v19835_v18 }
0x1cb3   :  { %14319 = vmatpush3.bf16.msra.mxu0 %v14318_v36 }
0x1cb4   :  { %14320 = vmatprep.subr.bf16.mxu0 %v19835_v18 }
0x1cb7   :  { %14322 = vmatpush3.bf16.msra.mxu0 %v14321_v32 }
0x1d6d   :  { %v10317_v61 = vpop.f32.mrb[56].mxu0  ;;  %v10352_v13 = vpop.f32.mrb[64].mxu1 }
0x1d6e   :  { %v10318_v43 = vpop.f32.mrb[57].mxu0  ;;  %v10353_v58 = vpop.f32.mrb[65].mxu1 }
0x1d6f   :  { %v10319_v37 = vadd.f32 %v10318_v43, %v10317_v61  ;;  %v10354_v55 = vadd.f32 %v10353_v58, %v10352_v13 }
0x1d71   :  { %v9686_v35 = vadd.f32 %v10319_v37, %v10076_v53 }
0x1d73   :  { %v9756_v20 = vadd.f32 %v10354_v55, %v9686_v35 }
0x1d75   :  { %v9759_v48 = vmax.f32 %v9756_v20, 0.0 }
0x1d77   :  { %10792 = vmatmul.mubr.f32.vlgmr.msra.gmra.mrb[58].mxu0 %v9759_v48 }
0x1e4a   :  { %v9849_v14 = vpop.f32.mrb[58].mxu0 }
0x1e4b   :  { %v9850_v1 = vadd.f32 %v10077_v63, %v9849_v14  ;;  %v10793_v6 = vpop.f32.mrb[59].mxu0 }
0x1e4d   :  { %v9853_v17 = vmax.f32 %v9850_v1, 0.0 }
0x1e4f   :  { %10803 = vmatmul.mubr.msk.f32.vlgmr.msra.gmra.mrb[66].mxu1 %vm523_vm5, %v9853_v17 }
0x1f22   :  { %v9934_v45 = vpop.f32.mrb[66].mxu1 }
0x1f23   :  { %v9935_v15 = vadd.f32 %v10078_v28, %v9934_v45  ;;  %v10804_v44 = vpop.f32.mrb[67].mxu1 }
0x1f25   :  { %v9938_v23 = vmax.f32 %v9935_v15, 0.0 }
0x1f27   :  { %9940 = vst.msk [vmem:[%s18285_s23] sm:$0x3] %vm9939_vm0, %v9938_v23 }
0x1f28   :  { %9945 = vsyncpa [#allocation4], 1 }
0x1f29   :  { %9946 = vsyncpa [#allocation6], 1 }
0x1f2a   :  { %9947 = vsyncpa [#allocation9], 1 }
0x1f2b   :  { %9948 = vsyncpa [#allocation12], 1 }
0x1f2c   :  { %9949 = vsyncpa [#allocation15], 1 }
0x1f2d   :  { %9950 = vsyncpa [#allocation18], 1 }
0x1f2e   :  { %9951 = vsyncpa [#allocation21], 1 }
0x1f2f   :  { %9952 = vsyncpa [#allocation24], 1 }
0x1f30   :  { %9953 = vsyncpa [#allocation27], 1 }
0x1f31   :  { %9954 = vsyncpa [#allocation30], 1 }

</bundles_post_ra>
